<compile_context>
chip_gen: v7x
topology: tpu7x:2x2x1
jax: 0.10.0
libtpu: 0.0.40
codegen_flags: <defaults>
</compile_context>

<pallas_src>
import functools

import numpy as np
import jax
import jax.numpy as jnp
from jax.experimental import pallas as pl
from jax.experimental.pallas import tpu as pltpu

jax.config.update("jax_default_matmul_precision", "highest")


# ------------------------- the single fused kernel --------------------------

def _gwnet_kernel(*refs, layer_meta, c_res, c_dil, c_skip, n_hops, n_nodes):
    """Whole GWNET forward for ONE batch element (grid axis = batch).

    Every activation is node-major 2D (N, T*C) with lane index t*C + c, so the
    whole network is a chain of 2D MXU matmuls + VPU elementwise ops.  All
    intermediates (gated output, graph hops, running skip) stay resident in
    vregs/VMEM -- no HBM round-trips between layers.
    """
    n_layers = len(layer_meta)
    x_ref, p_ref, w0_ref, b0_ref = refs[0:4]
    pos = 4
    layer_refs = []
    for _ in range(n_layers):
        layer_refs.append(refs[pos:pos + 7])
        pos += 7
    e1w_ref, e1b_ref, e2w_ref, e2b_ref = refs[pos:pos + 4]
    out_ref = refs[pos + 4]

    # start_conv (1x1 over channels; time-block-diagonal weight)
    x = jnp.dot(x_ref[0], w0_ref[...],
                preferred_element_type=jnp.float32) + b0_ref[...]
    p_big = p_ref[...]                    # ((n_hops-1)*N, N) propagation stack

    skip = None
    for li in range(n_layers):
        t_in, t_out, _dil = layer_meta[li]
        wfg_ref, bfg_ref, wsk_ref, bsk_ref, wg_ref, sc_ref, sh_ref = layer_refs[li]
        residual = x

        # dilated (1,2) filter + gate convs: ONE dot, split lanes, gate.
        fg = jnp.dot(x, wfg_ref[...],
                     preferred_element_type=jnp.float32) + bfg_ref[...]
        half = t_out * c_dil
        xg = jnp.tanh(fg[:, :half]) * (1.0 / (1.0 + jnp.exp(-fg[:, half:])))

        # skip 1x1 conv + running skip accumulator (stays resident)
        s = jnp.dot(xg, wsk_ref[...],
                    preferred_element_type=jnp.float32) + bsk_ref[...]
        if skip is None:
            skip = s
        else:
            prev_t = skip.shape[1] // c_skip
            skip = s + skip[:, (prev_t - t_out) * c_skip:]

        # graph conv: all supports/orders in ONE (6N, N) @ (N, t_out*Cd) matmul
        prop = jnp.dot(p_big, xg, preferred_element_type=jnp.float32)
        blk = t_out * c_dil
        y = jnp.dot(xg, wg_ref[0:blk, :], preferred_element_type=jnp.float32)
        for k in range(1, n_hops):
            hop = prop[(k - 1) * n_nodes:k * n_nodes, :]
            y = y + jnp.dot(hop, wg_ref[k * blk:(k + 1) * blk, :],
                            preferred_element_type=jnp.float32)

        # + residual (trailing t_out steps) then folded eval-BatchNorm
        # (the gcn-mlp bias is folded into the BN shift).
        y = (y + residual[:, (t_in - t_out) * c_res:]) * sc_ref[...] + sh_ref[...]
        x = y

    # relu(skip) -> end_conv_1 -> relu -> end_conv_2
    z = jnp.maximum(skip, 0.0)
    z = jnp.dot(z, e1w_ref[...], preferred_element_type=jnp.float32) + e1b_ref[...]
    z = jnp.maximum(z, 0.0)
    out_ref[0] = jnp.dot(z, e2w_ref[...],
                         preferred_element_type=jnp.float32) + e2b_ref[...]


# ------------------------------- forward -----------------------------------

def _sel(t_in, t_out, offset):
    """Time-selection matrix S[t, l] = 1 iff t == l + offset (static)."""
    s = np.zeros((t_in, t_out), np.float32)
    s[np.arange(t_out) + offset, np.arange(t_out)] = 1.0
    return s


@functools.partial(jax.jit, static_argnames=("dilations", "receptive_field"))
def gwnet_forward(source, params, supports, dilations, receptive_field):
    """source (B, T_in, N, F_in) -> (B, output_window, N, T_final) (PyTorch NCHW)."""
    B, T_in, N, F_in = source.shape
    c_res = params["start_w"].shape[0]
    c_dil = params["filter_w"][0].shape[0]
    c_skip = params["skip_w"][0].shape[0]
    out_win = params["end2_w"].shape[0]

    # adaptive adjacency + stacked propagation operator (tiny, plain JAX)
    adp = jax.nn.softmax(
        jnp.maximum(params["nodevec1"] @ params["nodevec2"], 0.0), axis=1)
    p_rows = []
    for a in list(supports) + [adp]:
        at = jnp.transpose(a)
        p_rows.append(at)                    # order-1 propagation
        p_rows.append(at @ at)               # order-2 propagation
    p_big = jnp.concatenate(p_rows, axis=0).astype(jnp.float32)   # (6N, N)
    n_hops = len(p_rows) + 1                 # identity hop + 6 propagated hops

    # input: pad time on the left (as in PyTorch), go node-major (B, N, T*F)
    in_len = T_in + 1
    pad_len = 1 + max(0, receptive_field - in_len)
    t0 = T_in + pad_len
    x_in = jnp.pad(source, ((0, 0), (pad_len, 0), (0, 0), (0, 0)))
    x_in = jnp.transpose(x_in, (0, 2, 1, 3)).reshape(B, N, t0 * F_in)
    x_in = x_in.astype(jnp.float32)

    # expand every conv into a time-block-diagonal weight (built once per call,
    # a few hundred KB) so the kernel is a pure chain of 2D matmuls.
    w_start = jnp.kron(np.eye(t0, dtype=np.float32), params["start_w"].T)
    b_start = jnp.tile(params["start_b"], t0).reshape(1, -1)

    # pad the (only) odd contraction dim (t0*F_in) to a multiple of 8
    k0 = t0 * F_in
    k0p = ((k0 + 7) // 8) * 8
    if k0p != k0:
        x_in = jnp.pad(x_in, ((0, 0), (0, 0), (0, k0p - k0)))
        w_start = jnp.pad(w_start, ((0, k0p - k0), (0, 0)))

    layer_meta = []
    layer_args = []
    t_cur = t0
    for i, d in enumerate(dilations):
        t_out = t_cur - d
        s0, s1 = _sel(t_cur, t_out, 0), _sel(t_cur, t_out, d)
        wf0 = params["filter_w"][i][:, :, 0, 0].T
        wf1 = params["filter_w"][i][:, :, 0, 1].T
        wg0 = params["gate_w"][i][:, :, 0, 0].T
        wg1 = params["gate_w"][i][:, :, 0, 1].T
        w_f = jnp.kron(s0, wf0) + jnp.kron(s1, wf1)     # (t_cur*Cr, t_out*Cd)
        w_g = jnp.kron(s0, wg0) + jnp.kron(s1, wg1)
        w_fg = jnp.concatenate([w_f, w_g], axis=1)      # filter lanes | gate lanes
        b_fg = jnp.concatenate(
            [jnp.tile(params["filter_b"][i], t_out),
             jnp.tile(params["gate_b"][i], t_out)]).reshape(1, -1)
        eye_to = np.eye(t_out, dtype=np.float32)
        w_sk = jnp.kron(eye_to, params["skip_w"][i].T)  # (t_out*Cd, t_out*Cs)
        b_sk = jnp.tile(params["skip_b"][i], t_out).reshape(1, -1)
        gw = params["gcn_w"][i]                         # (c_res, n_hops*c_dil)
        w_gcn = jnp.concatenate(
            [jnp.kron(eye_to, gw[:, k * c_dil:(k + 1) * c_dil].T)
             for k in range(n_hops)], axis=0)           # (n_hops*t_out*Cd, t_out*Cr)
        scale = jnp.tile(params["bn_scale"][i], t_out).reshape(1, -1)
        shift = jnp.tile(params["gcn_b"][i] * params["bn_scale"][i]
                         + params["bn_shift"][i], t_out).reshape(1, -1)
        layer_args.extend([w_fg, b_fg, w_sk, b_sk, w_gcn, scale, shift])
        layer_meta.append((t_cur, t_out, d))
        t_cur = t_out

    t_fin = t_cur
    eye_tf = np.eye(t_fin, dtype=np.float32)
    w_e1 = jnp.kron(eye_tf, params["end1_w"].T)
    b_e1 = jnp.tile(params["end1_b"], t_fin).reshape(1, -1)
    w_e2 = jnp.kron(eye_tf, params["end2_w"].T)
    b_e2 = jnp.tile(params["end2_b"], t_fin).reshape(1, -1)

    args = [x_in, p_big, w_start, b_start] + layer_args + [w_e1, b_e1, w_e2, b_e2]

    def _full(a):                        # whole-array block, constant index_map
        return pl.BlockSpec(a.shape, lambda b: (0,) * a.ndim)

    in_specs = ([pl.BlockSpec((1, N, k0p), lambda b: (b, 0, 0))]
                + [_full(a) for a in args[1:]])

    kernel = functools.partial(
        _gwnet_kernel, layer_meta=tuple(layer_meta), c_res=c_res, c_dil=c_dil,
        c_skip=c_skip, n_hops=n_hops, n_nodes=N)

    out = pl.pallas_call(
        kernel,
        out_shape=jax.ShapeDtypeStruct((B, N, t_fin * out_win), jnp.float32),
        grid=(B,),
        in_specs=in_specs,
        out_specs=pl.BlockSpec((1, N, t_fin * out_win), lambda b: (b, 0, 0)),
        compiler_params=pltpu.CompilerParams(
            dimension_semantics=("parallel",)),
    )(*args)

    # (B, N, Tf, OW) -> PyTorch NCHW output (B, output_window, N, Tf)
    out = out.reshape(B, N, t_fin, out_win)
    return jnp.transpose(out, (0, 3, 1, 2))


# ------------------------ pure-JAX reference (check) ------------------------

@functools.partial(jax.jit, static_argnames=("dilations", "receptive_field"))
def gwnet_reference(source, params, supports, dilations, receptive_field):
    """Pure-JAX mirror of the PyTorch forward (eval mode), for validation."""
    def conv1x1(v, w, b):                # v (B,Cin,N,T), w (Cout,Cin)
        return jnp.einsum('oc,bcnt->bont', w, v) + b[None, :, None, None]

    x = jnp.transpose(source, (0, 3, 2, 1))            # (B, F, N, T)
    x = jnp.pad(x, ((0, 0), (0, 0), (0, 0), (1, 0)))
    if x.shape[3] < receptive_field:
        x = jnp.pad(x, ((0, 0), (0, 0), (0, 0), (receptive_field - x.shape[3], 0)))
    x = conv1x1(x, params["start_w"], params["start_b"])

    adp = jax.nn.softmax(
        jnp.maximum(params["nodevec1"] @ params["nodevec2"], 0.0), axis=1)
    new_supports = list(supports) + [adp]

    skip = None
    for i, d in enumerate(dilations):
        residual = x
        t_out = x.shape[3] - d

        def dconv(w, b):
            return (jnp.einsum('oc,bcnt->bont', w[:, :, 0, 0], x[..., :t_out])
                    + jnp.einsum('oc,bcnt->bont', w[:, :, 0, 1], x[..., d:d + t_out])
                    + b[None, :, None, None])

        xg = (jnp.tanh(dconv(params["filter_w"][i], params["filter_b"][i]))
              * jax.nn.sigmoid(dconv(params["gate_w"][i], params["gate_b"][i])))
        s = conv1x1(xg, params["skip_w"][i], params["skip_b"][i])
        skip = s if skip is None else s + skip[..., -s.shape[3]:]

        hops = [xg]
        for a in new_supports:
            x1 = jnp.einsum('bcvt,vw->bcwt', xg, a)
            hops.append(x1)
            x2 = jnp.einsum('bcvt,vw->bcwt', x1, a)
            hops.append(x2)
        h = jnp.concatenate(hops, axis=1)
        y = conv1x1(h, params["gcn_w"][i], params["gcn_b"][i])
        y = y + residual[..., -y.shape[3]:]
        y = (y * params["bn_scale"][i][None, :, None, None]
             + params["bn_shift"][i][None, :, None, None])
        x = y

    z = jnp.maximum(skip, 0.0)
    z = jnp.maximum(conv1x1(z, params["end1_w"], params["end1_b"]), 0.0)
    return conv1x1(z, params["end2_w"], params["end2_b"])


def asym_adj(a):
    """'transition' normalization D^-1 A (dense, no scipy)."""
    rowsum = a.sum(1)
    d_inv = np.where(rowsum > 0, 1.0 / rowsum, 0.0)
    return (d_inv[:, None] * a).astype(np.float32)


# --------------------------------- main ------------------------------------

if __name__ == "__main__":
    key = jax.random.PRNGKey(0)
    B, T_in, N, F_in = 2, 6, 8, 2
    blocks, layers, kernel_size = 2, 2, 2
    nhid = 8
    c_res = c_dil = nhid
    c_skip, c_end = nhid * 8, nhid * 16
    output_window, output_dim = 4, 1
    order, support_len = 2, 3            # doubletransition (2) + adaptive (1)
    n_layers = blocks * layers

    # dilation schedule + receptive field, exactly as in GWNET.__init__
    dilations = []
    receptive_field = output_dim
    for _ in range(blocks):
        add_scope, dil = kernel_size - 1, 1
        for _ in range(layers):
            dilations.append(dil)
            receptive_field += add_scope
            add_scope *= 2
            dil *= 2
    dilations = tuple(dilations)

    keys = iter(jax.random.split(key, 128))

    def rnd(shape, scale=0.1):
        return (scale * jax.random.normal(next(keys), shape)).astype(jnp.float32)

    adj = np.array(jax.random.uniform(next(keys), (N, N))) + np.eye(N, dtype=np.float32)
    supports = (jnp.asarray(asym_adj(adj)), jnp.asarray(asym_adj(adj.T)))

    gcn_cin = (order * support_len + 1) * c_dil      # 7 * dilation_channels

    params = {
        "start_w": rnd((c_res, F_in)), "start_b": rnd((c_res,)),
        "nodevec1": jax.random.normal(next(keys), (N, 10)).astype(jnp.float32),
        "nodevec2": jax.random.normal(next(keys), (10, N)).astype(jnp.float32),
        "filter_w": [rnd((c_dil, c_res, 1, kernel_size)) for _ in range(n_layers)],
        "filter_b": [rnd((c_dil,)) for _ in range(n_layers)],
        "gate_w": [rnd((c_dil, c_res, 1, kernel_size)) for _ in range(n_layers)],
        "gate_b": [rnd((c_dil,)) for _ in range(n_layers)],
        "skip_w": [rnd((c_skip, c_dil)) for _ in range(n_layers)],
        "skip_b": [rnd((c_skip,)) for _ in range(n_layers)],
        "gcn_w": [rnd((c_res, gcn_cin)) for _ in range(n_layers)],
        "gcn_b": [rnd((c_res,)) for _ in range(n_layers)],
        "end1_w": rnd((c_end, c_skip)), "end1_b": rnd((c_end,)),
        "end2_w": rnd((output_window, c_end)), "end2_b": rnd((output_window,)),
    }

    # BatchNorm2d (eval mode): fold (gamma, beta, running_mean, running_var)
    eps = 1e-5
    bn_scale, bn_shift = [], []
    for _ in range(n_layers):
        gamma = 1.0 + rnd((c_res,))
        beta = rnd((c_res,))
        rmean = rnd((c_res,))
        rvar = 1.0 + jnp.abs(rnd((c_res,)))
        sc = gamma / jnp.sqrt(rvar + eps)
        bn_scale.append(sc)
        bn_shift.append(beta - rmean * sc)
    params["bn_scale"] = bn_scale
    params["bn_shift"] = bn_shift

    source = jax.random.normal(next(keys), (B, T_in, N, F_in), dtype=jnp.float32)

    out = gwnet_forward(source, params, supports, dilations, receptive_field)
    out = jax.block_until_ready(out)
    assert out.shape == (B, output_window, N, 1), out.shape
    assert bool(jnp.all(jnp.isfinite(out)))

    ref = gwnet_reference(source, params, supports, dilations, receptive_field)
    ref = jax.block_until_ready(ref)
    assert out.shape == ref.shape
    assert bool(jnp.allclose(out, ref, rtol=5e-3, atol=5e-3)), (
        "max abs err = %g" % float(jnp.max(jnp.abs(out - ref))))

    print("KERNEL_OK")
</pallas_src>

<mosaic_0001>
module attributes {stable_mosaic.version = 11 : i64} {
  func.func @_gwnet_kernel(%arg0: i32, %arg1: memref<1x8x16xf32, #tpu.memory_space<vmem>>, %arg2: memref<48x8xf32, #tpu.memory_space<vmem>>, %arg3: memref<16x56xf32, #tpu.memory_space<vmem>>, %arg4: memref<1x56xf32, #tpu.memory_space<vmem>>, %arg5: memref<56x96xf32, #tpu.memory_space<vmem>>, %arg6: memref<1x96xf32, #tpu.memory_space<vmem>>, %arg7: memref<48x384xf32, #tpu.memory_space<vmem>>, %arg8: memref<1x384xf32, #tpu.memory_space<vmem>>, %arg9: memref<336x48xf32, #tpu.memory_space<vmem>>, %arg10: memref<1x48xf32, #tpu.memory_space<vmem>>, %arg11: memref<1x48xf32, #tpu.memory_space<vmem>>, %arg12: memref<48x64xf32, #tpu.memory_space<vmem>>, %arg13: memref<1x64xf32, #tpu.memory_space<vmem>>, %arg14: memref<32x256xf32, #tpu.memory_space<vmem>>, %arg15: memref<1x256xf32, #tpu.memory_space<vmem>>, %arg16: memref<224x32xf32, #tpu.memory_space<vmem>>, %arg17: memref<1x32xf32, #tpu.memory_space<vmem>>, %arg18: memref<1x32xf32, #tpu.memory_space<vmem>>, %arg19: memref<32x48xf32, #tpu.memory_space<vmem>>, %arg20: memref<1x48xf32, #tpu.memory_space<vmem>>, %arg21: memref<24x192xf32, #tpu.memory_space<vmem>>, %arg22: memref<1x192xf32, #tpu.memory_space<vmem>>, %arg23: memref<168x24xf32, #tpu.memory_space<vmem>>, %arg24: memref<1x24xf32, #tpu.memory_space<vmem>>, %arg25: memref<1x24xf32, #tpu.memory_space<vmem>>, %arg26: memref<24x16xf32, #tpu.memory_space<vmem>>, %arg27: memref<1x16xf32, #tpu.memory_space<vmem>>, %arg28: memref<8x64xf32, #tpu.memory_space<vmem>>, %arg29: memref<1x64xf32, #tpu.memory_space<vmem>>, %arg30: memref<56x8xf32, #tpu.memory_space<vmem>>, %arg31: memref<1x8xf32, #tpu.memory_space<vmem>>, %arg32: memref<1x8xf32, #tpu.memory_space<vmem>>, %arg33: memref<64x128xf32, #tpu.memory_space<vmem>>, %arg34: memref<1x128xf32, #tpu.memory_space<vmem>>, %arg35: memref<128x4xf32, #tpu.memory_space<vmem>>, %arg36: memref<1x4xf32, #tpu.memory_space<vmem>>, %arg37: memref<1x8x4xf32, #tpu.memory_space<vmem>>) attributes {dimension_semantics = [#tpu.dimension_semantics<parallel>], iteration_bounds = array<i64: 2>, scalar_prefetch = 0 : i64, scratch_operands = 0 : i64, tpu.core_type = #tpu.core_type<tc>, window_params = [{transform_indices = @transform_0, window_bounds = array<i64: 1, 8, 16>}, {pipeline_mode = #tpu.pipeline_mode<synchronous>, transform_indices = @transform_1, window_bounds = array<i64: 48, 8>}, {pipeline_mode = #tpu.pipeline_mode<synchronous>, transform_indices = @transform_2, window_bounds = array<i64: 16, 56>}, {pipeline_mode = #tpu.pipeline_mode<synchronous>, transform_indices = @transform_3, window_bounds = array<i64: 1, 56>}, {pipeline_mode = #tpu.pipeline_mode<synchronous>, transform_indices = @transform_4, window_bounds = array<i64: 56, 96>}, {pipeline_mode = #tpu.pipeline_mode<synchronous>, transform_indices = @transform_5, window_bounds = array<i64: 1, 96>}, {pipeline_mode = #tpu.pipeline_mode<synchronous>, transform_indices = @transform_6, window_bounds = array<i64: 48, 384>}, {pipeline_mode = #tpu.pipeline_mode<synchronous>, transform_indices = @transform_7, window_bounds = array<i64: 1, 384>}, {pipeline_mode = #tpu.pipeline_mode<synchronous>, transform_indices = @transform_8, window_bounds = array<i64: 336, 48>}, {pipeline_mode = #tpu.pipeline_mode<synchronous>, transform_indices = @transform_9, window_bounds = array<i64: 1, 48>}, {pipeline_mode = #tpu.pipeline_mode<synchronous>, transform_indices = @transform_10, window_bounds = array<i64: 1, 48>}, {pipeline_mode = #tpu.pipeline_mode<synchronous>, transform_indices = @transform_11, window_bounds = array<i64: 48, 64>}, {pipeline_mode = #tpu.pipeline_mode<synchronous>, transform_indices = @transform_12, window_bounds = array<i64: 1, 64>}, {pipeline_mode = #tpu.pipeline_mode<synchronous>, transform_indices = @transform_13, window_bounds = array<i64: 32, 256>}, {pipeline_mode = #tpu.pipeline_mode<synchronous>, transform_indices = @transform_14, window_bounds = array<i64: 1, 256>}, {pipeline_mode = #tpu.pipeline_mode<synchronous>, transform_indices = @transform_15, window_bounds = array<i64: 224, 32>}, {pipeline_mode = #tpu.pipeline_mode<synchronous>, transform_indices = @transform_16, window_bounds = array<i64: 1, 32>}, {pipeline_mode = #tpu.pipeline_mode<synchronous>, transform_indices = @transform_17, window_bounds = array<i64: 1, 32>}, {pipeline_mode = #tpu.pipeline_mode<synchronous>, transform_indices = @transform_18, window_bounds = array<i64: 32, 48>}, {pipeline_mode = #tpu.pipeline_mode<synchronous>, transform_indices = @transform_19, window_bounds = array<i64: 1, 48>}, {pipeline_mode = #tpu.pipeline_mode<synchronous>, transform_indices = @transform_20, window_bounds = array<i64: 24, 192>}, {pipeline_mode = #tpu.pipeline_mode<synchronous>, transform_indices = @transform_21, window_bounds = array<i64: 1, 192>}, {pipeline_mode = #tpu.pipeline_mode<synchronous>, transform_indices = @transform_22, window_bounds = array<i64: 168, 24>}, {pipeline_mode = #tpu.pipeline_mode<synchronous>, transform_indices = @transform_23, window_bounds = array<i64: 1, 24>}, {pipeline_mode = #tpu.pipeline_mode<synchronous>, transform_indices = @transform_24, window_bounds = array<i64: 1, 24>}, {pipeline_mode = #tpu.pipeline_mode<synchronous>, transform_indices = @transform_25, window_bounds = array<i64: 24, 16>}, {pipeline_mode = #tpu.pipeline_mode<synchronous>, transform_indices = @transform_26, window_bounds = array<i64: 1, 16>}, {pipeline_mode = #tpu.pipeline_mode<synchronous>, transform_indices = @transform_27, window_bounds = array<i64: 8, 64>}, {pipeline_mode = #tpu.pipeline_mode<synchronous>, transform_indices = @transform_28, window_bounds = array<i64: 1, 64>}, {pipeline_mode = #tpu.pipeline_mode<synchronous>, transform_indices = @transform_29, window_bounds = array<i64: 56, 8>}, {pipeline_mode = #tpu.pipeline_mode<synchronous>, transform_indices = @transform_30, window_bounds = array<i64: 1, 8>}, {pipeline_mode = #tpu.pipeline_mode<synchronous>, transform_indices = @transform_31, window_bounds = array<i64: 1, 8>}, {pipeline_mode = #tpu.pipeline_mode<synchronous>, transform_indices = @transform_32, window_bounds = array<i64: 64, 128>}, {pipeline_mode = #tpu.pipeline_mode<synchronous>, transform_indices = @transform_33, window_bounds = array<i64: 1, 128>}, {pipeline_mode = #tpu.pipeline_mode<synchronous>, transform_indices = @transform_34, window_bounds = array<i64: 128, 4>}, {pipeline_mode = #tpu.pipeline_mode<synchronous>, transform_indices = @transform_35, window_bounds = array<i64: 1, 4>}, {transform_indices = @transform_36, window_bounds = array<i64: 1, 8, 4>}]} {
    %c0 = arith.constant 0 : index
    %c0_0 = arith.constant 0 : index
    %c0_1 = arith.constant 0 : index
    %0 = vector.load %arg1[%c0, %c0_0, %c0_1] : memref<1x8x16xf32, #tpu.memory_space<vmem>>, vector<1x8x16xf32>
    %1 = vector.shape_cast %0 : vector<1x8x16xf32> to vector<8x16xf32>
    %c0_2 = arith.constant 0 : index
    %c0_3 = arith.constant 0 : index
    %2 = vector.load %arg3[%c0_2, %c0_3] : memref<16x56xf32, #tpu.memory_space<vmem>>, vector<16x56xf32>
    %cst = arith.constant dense<0.000000e+00> : vector<8x56xf32>
    %3 = tpu.matmul %1, %2, %cst {dimension_numbers = #tpu.dot_dimension_numbers<[1], [0], [0], [1], [0, 0, 1, 1], [], []>, precision = #tpu.contract_precision<fp32>} : vector<8x16xf32>, vector<16x56xf32>, vector<8x56xf32> -> vector<8x56xf32>
    %c0_4 = arith.constant 0 : index
    %c0_5 = arith.constant 0 : index
    %4 = vector.load %arg4[%c0_4, %c0_5] : memref<1x56xf32, #tpu.memory_space<vmem>>, vector<1x56xf32>
    %5 = vector.broadcast %4 : vector<1x56xf32> to vector<8x56xf32>
    %6 = arith.addf %3, %5 : vector<8x56xf32>
    %c0_6 = arith.constant 0 : index
    %c0_7 = arith.constant 0 : index
    %7 = vector.load %arg2[%c0_6, %c0_7] : memref<48x8xf32, #tpu.memory_space<vmem>>, vector<48x8xf32>
    %c0_8 = arith.constant 0 : index
    %c0_9 = arith.constant 0 : index
    %8 = vector.load %arg5[%c0_8, %c0_9] : memref<56x96xf32, #tpu.memory_space<vmem>>, vector<56x96xf32>
    %cst_10 = arith.constant dense<0.000000e+00> : vector<8x96xf32>
    %9 = tpu.matmul %6, %8, %cst_10 {dimension_numbers = #tpu.dot_dimension_numbers<[1], [0], [0], [1], [0, 0, 1, 1], [], []>, precision = #tpu.contract_precision<fp32>} : vector<8x56xf32>, vector<56x96xf32>, vector<8x96xf32> -> vector<8x96xf32>
    %c0_11 = arith.constant 0 : index
    %c0_12 = arith.constant 0 : index
    %10 = vector.load %arg6[%c0_11, %c0_12] : memref<1x96xf32, #tpu.memory_space<vmem>>, vector<1x96xf32>
    %11 = vector.broadcast %10 : vector<1x96xf32> to vector<8x96xf32>
    %12 = arith.addf %9, %11 : vector<8x96xf32>
    %13 = vector.extract_strided_slice %12 {offsets = [0, 0], sizes = [8, 48], strides = [1, 1]} : vector<8x96xf32> to vector<8x48xf32>
    %14 = math.tanh %13 : vector<8x48xf32>
    %15 = vector.extract_strided_slice %12 {offsets = [0, 48], sizes = [8, 48], strides = [1, 1]} : vector<8x96xf32> to vector<8x48xf32>
    %cst_13 = arith.constant 0.000000e+00 : f32
    %16 = vector.broadcast %cst_13 : f32 to vector<8x48xf32>
    %17 = arith.subf %16, %15 : vector<8x48xf32>
    %18 = math.exp %17 : vector<8x48xf32>
    %cst_14 = arith.constant 1.000000e+00 : f32
    %19 = vector.broadcast %cst_14 : f32 to vector<8x48xf32>
    %20 = arith.addf %19, %18 : vector<8x48xf32>
    %cst_15 = arith.constant 1.000000e+00 : f32
    %21 = vector.broadcast %cst_15 : f32 to vector<8x48xf32>
    %22 = arith.divf %21, %20 : vector<8x48xf32>
    %23 = arith.mulf %14, %22 : vector<8x48xf32>
    %c0_16 = arith.constant 0 : index
    %c0_17 = arith.constant 0 : index
    %24 = vector.load %arg7[%c0_16, %c0_17] : memref<48x384xf32, #tpu.memory_space<vmem>>, vector<48x384xf32>
    %cst_18 = arith.constant dense<0.000000e+00> : vector<8x384xf32>
    %25 = tpu.matmul %23, %24, %cst_18 {dimension_numbers = #tpu.dot_dimension_numbers<[1], [0], [0], [1], [0, 0, 1, 1], [], []>, precision = #tpu.contract_precision<fp32>} : vector<8x48xf32>, vector<48x384xf32>, vector<8x384xf32> -> vector<8x384xf32>
    %c0_19 = arith.constant 0 : index
    %c0_20 = arith.constant 0 : index
    %26 = vector.load %arg8[%c0_19, %c0_20] : memref<1x384xf32, #tpu.memory_space<vmem>>, vector<1x384xf32>
    %27 = vector.broadcast %26 : vector<1x384xf32> to vector<8x384xf32>
    %28 = arith.addf %25, %27 : vector<8x384xf32>
    %cst_21 = arith.constant dense<0.000000e+00> : vector<48x48xf32>
    %29 = tpu.matmul %7, %23, %cst_21 {dimension_numbers = #tpu.dot_dimension_numbers<[1], [0], [0], [1], [0, 0, 1, 1], [], []>, precision = #tpu.contract_precision<fp32>} : vector<48x8xf32>, vector<8x48xf32>, vector<48x48xf32> -> vector<48x48xf32>
    %c0_22 = arith.constant 0 : index
    %c0_23 = arith.constant 0 : index
    %30 = vector.load %arg9[%c0_22, %c0_23] : memref<336x48xf32, #tpu.memory_space<vmem>>, vector<48x48xf32>
    %cst_24 = arith.constant dense<0.000000e+00> : vector<8x48xf32>
    %31 = tpu.matmul %23, %30, %cst_24 {dimension_numbers = #tpu.dot_dimension_numbers<[1], [0], [0], [1], [0, 0, 1, 1], [], []>, precision = #tpu.contract_precision<fp32>} : vector<8x48xf32>, vector<48x48xf32>, vector<8x48xf32> -> vector<8x48xf32>
    %32 = vector.extract_strided_slice %29 {offsets = [0, 0], sizes = [8, 48], strides = [1, 1]} : vector<48x48xf32> to vector<8x48xf32>
    %c48 = arith.constant 48 : index
    %c0_25 = arith.constant 0 : index
    %33 = vector.load %arg9[%c48, %c0_25] : memref<336x48xf32, #tpu.memory_space<vmem>>, vector<48x48xf32>
    %cst_26 = arith.constant dense<0.000000e+00> : vector<8x48xf32>
    %34 = tpu.matmul %32, %33, %cst_26 {dimension_numbers = #tpu.dot_dimension_numbers<[1], [0], [0], [1], [0, 0, 1, 1], [], []>, precision = #tpu.contract_precision<fp32>} : vector<8x48xf32>, vector<48x48xf32>, vector<8x48xf32> -> vector<8x48xf32>
    %35 = arith.addf %31, %34 : vector<8x48xf32>
    %36 = vector.extract_strided_slice %29 {offsets = [8, 0], sizes = [8, 48], strides = [1, 1]} : vector<48x48xf32> to vector<8x48xf32>
    %c96 = arith.constant 96 : index
    %c0_27 = arith.constant 0 : index
    %37 = vector.load %arg9[%c96, %c0_27] : memref<336x48xf32, #tpu.memory_space<vmem>>, vector<48x48xf32>
    %cst_28 = arith.constant dense<0.000000e+00> : vector<8x48xf32>
    %38 = tpu.matmul %36, %37, %cst_28 {dimension_numbers = #tpu.dot_dimension_numbers<[1], [0], [0], [1], [0, 0, 1, 1], [], []>, precision = #tpu.contract_precision<fp32>} : vector<8x48xf32>, vector<48x48xf32>, vector<8x48xf32> -> vector<8x48xf32>
    %39 = arith.addf %35, %38 : vector<8x48xf32>
    %40 = vector.extract_strided_slice %29 {offsets = [16, 0], sizes = [8, 48], strides = [1, 1]} : vector<48x48xf32> to vector<8x48xf32>
    %c144 = arith.constant 144 : index
    %c0_29 = arith.constant 0 : index
    %41 = vector.load %arg9[%c144, %c0_29] : memref<336x48xf32, #tpu.memory_space<vmem>>, vector<48x48xf32>
    %cst_30 = arith.constant dense<0.000000e+00> : vector<8x48xf32>
    %42 = tpu.matmul %40, %41, %cst_30 {dimension_numbers = #tpu.dot_dimension_numbers<[1], [0], [0], [1], [0, 0, 1, 1], [], []>, precision = #tpu.contract_precision<fp32>} : vector<8x48xf32>, vector<48x48xf32>, vector<8x48xf32> -> vector<8x48xf32>
    %43 = arith.addf %39, %42 : vector<8x48xf32>
    %44 = vector.extract_strided_slice %29 {offsets = [24, 0], sizes = [8, 48], strides = [1, 1]} : vector<48x48xf32> to vector<8x48xf32>
    %c192 = arith.constant 192 : index
    %c0_31 = arith.constant 0 : index
    %45 = vector.load %arg9[%c192, %c0_31] : memref<336x48xf32, #tpu.memory_space<vmem>>, vector<48x48xf32>
    %cst_32 = arith.constant dense<0.000000e+00> : vector<8x48xf32>
    %46 = tpu.matmul %44, %45, %cst_32 {dimension_numbers = #tpu.dot_dimension_numbers<[1], [0], [0], [1], [0, 0, 1, 1], [], []>, precision = #tpu.contract_precision<fp32>} : vector<8x48xf32>, vector<48x48xf32>, vector<8x48xf32> -> vector<8x48xf32>
    %47 = arith.addf %43, %46 : vector<8x48xf32>
    %48 = vector.extract_strided_slice %29 {offsets = [32, 0], sizes = [8, 48], strides = [1, 1]} : vector<48x48xf32> to vector<8x48xf32>
    %c240 = arith.constant 240 : index
    %c0_33 = arith.constant 0 : index
    %49 = vector.load %arg9[%c240, %c0_33] : memref<336x48xf32, #tpu.memory_space<vmem>>, vector<48x48xf32>
    %cst_34 = arith.constant dense<0.000000e+00> : vector<8x48xf32>
    %50 = tpu.matmul %48, %49, %cst_34 {dimension_numbers = #tpu.dot_dimension_numbers<[1], [0], [0], [1], [0, 0, 1, 1], [], []>, precision = #tpu.contract_precision<fp32>} : vector<8x48xf32>, vector<48x48xf32>, vector<8x48xf32> -> vector<8x48xf32>
    %51 = arith.addf %47, %50 : vector<8x48xf32>
    %52 = vector.extract_strided_slice %29 {offsets = [40, 0], sizes = [8, 48], strides = [1, 1]} : vector<48x48xf32> to vector<8x48xf32>
    %c288 = arith.constant 288 : index
    %c0_35 = arith.constant 0 : index
    %53 = vector.load %arg9[%c288, %c0_35] : memref<336x48xf32, #tpu.memory_space<vmem>>, vector<48x48xf32>
    %cst_36 = arith.constant dense<0.000000e+00> : vector<8x48xf32>
    %54 = tpu.matmul %52, %53, %cst_36 {dimension_numbers = #tpu.dot_dimension_numbers<[1], [0], [0], [1], [0, 0, 1, 1], [], []>, precision = #tpu.contract_precision<fp32>} : vector<8x48xf32>, vector<48x48xf32>, vector<8x48xf32> -> vector<8x48xf32>
    %55 = arith.addf %51, %54 : vector<8x48xf32>
    %56 = vector.extract_strided_slice %6 {offsets = [0, 8], sizes = [8, 48], strides = [1, 1]} : vector<8x56xf32> to vector<8x48xf32>
    %57 = arith.addf %55, %56 : vector<8x48xf32>
    %c0_37 = arith.constant 0 : index
    %c0_38 = arith.constant 0 : index
    %58 = vector.load %arg10[%c0_37, %c0_38] : memref<1x48xf32, #tpu.memory_space<vmem>>, vector<1x48xf32>
    %59 = vector.broadcast %58 : vector<1x48xf32> to vector<8x48xf32>
    %60 = arith.mulf %57, %59 : vector<8x48xf32>
    %c0_39 = arith.constant 0 : index
    %c0_40 = arith.constant 0 : index
    %61 = vector.load %arg11[%c0_39, %c0_40] : memref<1x48xf32, #tpu.memory_space<vmem>>, vector<1x48xf32>
    %62 = vector.broadcast %61 : vector<1x48xf32> to vector<8x48xf32>
    %63 = arith.addf %60, %62 : vector<8x48xf32>
    %c0_41 = arith.constant 0 : index
    %c0_42 = arith.constant 0 : index
    %64 = vector.load %arg12[%c0_41, %c0_42] : memref<48x64xf32, #tpu.memory_space<vmem>>, vector<48x64xf32>
    %cst_43 = arith.constant dense<0.000000e+00> : vector<8x64xf32>
    %65 = tpu.matmul %63, %64, %cst_43 {dimension_numbers = #tpu.dot_dimension_numbers<[1], [0], [0], [1], [0, 0, 1, 1], [], []>, precision = #tpu.contract_precision<fp32>} : vector<8x48xf32>, vector<48x64xf32>, vector<8x64xf32> -> vector<8x64xf32>
    %c0_44 = arith.constant 0 : index
    %c0_45 = arith.constant 0 : index
    %66 = vector.load %arg13[%c0_44, %c0_45] : memref<1x64xf32, #tpu.memory_space<vmem>>, vector<1x64xf32>
    %67 = vector.broadcast %66 : vector<1x64xf32> to vector<8x64xf32>
    %68 = arith.addf %65, %67 : vector<8x64xf32>
    %69 = vector.extract_strided_slice %68 {offsets = [0, 0], sizes = [8, 32], strides = [1, 1]} : vector<8x64xf32> to vector<8x32xf32>
    %70 = math.tanh %69 : vector<8x32xf32>
    %71 = vector.extract_strided_slice %68 {offsets = [0, 32], sizes = [8, 32], strides = [1, 1]} : vector<8x64xf32> to vector<8x32xf32>
    %cst_46 = arith.constant 0.000000e+00 : f32
    %72 = vector.broadcast %cst_46 : f32 to vector<8x32xf32>
    %73 = arith.subf %72, %71 : vector<8x32xf32>
    %74 = math.exp %73 : vector<8x32xf32>
    %cst_47 = arith.constant 1.000000e+00 : f32
    %75 = vector.broadcast %cst_47 : f32 to vector<8x32xf32>
    %76 = arith.addf %75, %74 : vector<8x32xf32>
    %cst_48 = arith.constant 1.000000e+00 : f32
    %77 = vector.broadcast %cst_48 : f32 to vector<8x32xf32>
    %78 = arith.divf %77, %76 : vector<8x32xf32>
    %79 = arith.mulf %70, %78 : vector<8x32xf32>
    %c0_49 = arith.constant 0 : index
    %c0_50 = arith.constant 0 : index
    %80 = vector.load %arg14[%c0_49, %c0_50] : memref<32x256xf32, #tpu.memory_space<vmem>>, vector<32x256xf32>
    %cst_51 = arith.constant dense<0.000000e+00> : vector<8x256xf32>
    %81 = tpu.matmul %79, %80, %cst_51 {dimension_numbers = #tpu.dot_dimension_numbers<[1], [0], [0], [1], [0, 0, 1, 1], [], []>, precision = #tpu.contract_precision<fp32>} : vector<8x32xf32>, vector<32x256xf32>, vector<8x256xf32> -> vector<8x256xf32>
    %c0_52 = arith.constant 0 : index
    %c0_53 = arith.constant 0 : index
    %82 = vector.load %arg15[%c0_52, %c0_53] : memref<1x256xf32, #tpu.memory_space<vmem>>, vector<1x256xf32>
    %83 = vector.broadcast %82 : vector<1x256xf32> to vector<8x256xf32>
    %84 = arith.addf %81, %83 : vector<8x256xf32>
    %85 = vector.extract_strided_slice %28 {offsets = [0, 128], sizes = [8, 256], strides = [1, 1]} : vector<8x384xf32> to vector<8x256xf32>
    %86 = arith.addf %84, %85 : vector<8x256xf32>
    %cst_54 = arith.constant dense<0.000000e+00> : vector<48x32xf32>
    %87 = tpu.matmul %7, %79, %cst_54 {dimension_numbers = #tpu.dot_dimension_numbers<[1], [0], [0], [1], [0, 0, 1, 1], [], []>, precision = #tpu.contract_precision<fp32>} : vector<48x8xf32>, vector<8x32xf32>, vector<48x32xf32> -> vector<48x32xf32>
    %c0_55 = arith.constant 0 : index
    %c0_56 = arith.constant 0 : index
    %88 = vector.load %arg16[%c0_55, %c0_56] : memref<224x32xf32, #tpu.memory_space<vmem>>, vector<32x32xf32>
    %cst_57 = arith.constant dense<0.000000e+00> : vector<8x32xf32>
    %89 = tpu.matmul %79, %88, %cst_57 {dimension_numbers = #tpu.dot_dimension_numbers<[1], [0], [0], [1], [0, 0, 1, 1], [], []>, precision = #tpu.contract_precision<fp32>} : vector<8x32xf32>, vector<32x32xf32>, vector<8x32xf32> -> vector<8x32xf32>
    %90 = vector.extract_strided_slice %87 {offsets = [0, 0], sizes = [8, 32], strides = [1, 1]} : vector<48x32xf32> to vector<8x32xf32>
    %c32 = arith.constant 32 : index
    %c0_58 = arith.constant 0 : index
    %91 = vector.load %arg16[%c32, %c0_58] : memref<224x32xf32, #tpu.memory_space<vmem>>, vector<32x32xf32>
    %cst_59 = arith.constant dense<0.000000e+00> : vector<8x32xf32>
    %92 = tpu.matmul %90, %91, %cst_59 {dimension_numbers = #tpu.dot_dimension_numbers<[1], [0], [0], [1], [0, 0, 1, 1], [], []>, precision = #tpu.contract_precision<fp32>} : vector<8x32xf32>, vector<32x32xf32>, vector<8x32xf32> -> vector<8x32xf32>
    %93 = arith.addf %89, %92 : vector<8x32xf32>
    %94 = vector.extract_strided_slice %87 {offsets = [8, 0], sizes = [8, 32], strides = [1, 1]} : vector<48x32xf32> to vector<8x32xf32>
    %c64 = arith.constant 64 : index
    %c0_60 = arith.constant 0 : index
    %95 = vector.load %arg16[%c64, %c0_60] : memref<224x32xf32, #tpu.memory_space<vmem>>, vector<32x32xf32>
    %cst_61 = arith.constant dense<0.000000e+00> : vector<8x32xf32>
    %96 = tpu.matmul %94, %95, %cst_61 {dimension_numbers = #tpu.dot_dimension_numbers<[1], [0], [0], [1], [0, 0, 1, 1], [], []>, precision = #tpu.contract_precision<fp32>} : vector<8x32xf32>, vector<32x32xf32>, vector<8x32xf32> -> vector<8x32xf32>
    %97 = arith.addf %93, %96 : vector<8x32xf32>
    %98 = vector.extract_strided_slice %87 {offsets = [16, 0], sizes = [8, 32], strides = [1, 1]} : vector<48x32xf32> to vector<8x32xf32>
    %c96_62 = arith.constant 96 : index
    %c0_63 = arith.constant 0 : index
    %99 = vector.load %arg16[%c96_62, %c0_63] : memref<224x32xf32, #tpu.memory_space<vmem>>, vector<32x32xf32>
    %cst_64 = arith.constant dense<0.000000e+00> : vector<8x32xf32>
    %100 = tpu.matmul %98, %99, %cst_64 {dimension_numbers = #tpu.dot_dimension_numbers<[1], [0], [0], [1], [0, 0, 1, 1], [], []>, precision = #tpu.contract_precision<fp32>} : vector<8x32xf32>, vector<32x32xf32>, vector<8x32xf32> -> vector<8x32xf32>
    %101 = arith.addf %97, %100 : vector<8x32xf32>
    %102 = vector.extract_strided_slice %87 {offsets = [24, 0], sizes = [8, 32], strides = [1, 1]} : vector<48x32xf32> to vector<8x32xf32>
    %c128 = arith.constant 128 : index
    %c0_65 = arith.constant 0 : index
    %103 = vector.load %arg16[%c128, %c0_65] : memref<224x32xf32, #tpu.memory_space<vmem>>, vector<32x32xf32>
    %cst_66 = arith.constant dense<0.000000e+00> : vector<8x32xf32>
    %104 = tpu.matmul %102, %103, %cst_66 {dimension_numbers = #tpu.dot_dimension_numbers<[1], [0], [0], [1], [0, 0, 1, 1], [], []>, precision = #tpu.contract_precision<fp32>} : vector<8x32xf32>, vector<32x32xf32>, vector<8x32xf32> -> vector<8x32xf32>
    %105 = arith.addf %101, %104 : vector<8x32xf32>
    %106 = vector.extract_strided_slice %87 {offsets = [32, 0], sizes = [8, 32], strides = [1, 1]} : vector<48x32xf32> to vector<8x32xf32>
    %c160 = arith.constant 160 : index
    %c0_67 = arith.constant 0 : index
    %107 = vector.load %arg16[%c160, %c0_67] : memref<224x32xf32, #tpu.memory_space<vmem>>, vector<32x32xf32>
    %cst_68 = arith.constant dense<0.000000e+00> : vector<8x32xf32>
    %108 = tpu.matmul %106, %107, %cst_68 {dimension_numbers = #tpu.dot_dimension_numbers<[1], [0], [0], [1], [0, 0, 1, 1], [], []>, precision = #tpu.contract_precision<fp32>} : vector<8x32xf32>, vector<32x32xf32>, vector<8x32xf32> -> vector<8x32xf32>
    %109 = arith.addf %105, %108 : vector<8x32xf32>
    %110 = vector.extract_strided_slice %87 {offsets = [40, 0], sizes = [8, 32], strides = [1, 1]} : vector<48x32xf32> to vector<8x32xf32>
    %c192_69 = arith.constant 192 : index
    %c0_70 = arith.constant 0 : index
    %111 = vector.load %arg16[%c192_69, %c0_70] : memref<224x32xf32, #tpu.memory_space<vmem>>, vector<32x32xf32>
    %cst_71 = arith.constant dense<0.000000e+00> : vector<8x32xf32>
    %112 = tpu.matmul %110, %111, %cst_71 {dimension_numbers = #tpu.dot_dimension_numbers<[1], [0], [0], [1], [0, 0, 1, 1], [], []>, precision = #tpu.contract_precision<fp32>} : vector<8x32xf32>, vector<32x32xf32>, vector<8x32xf32> -> vector<8x32xf32>
    %113 = arith.addf %109, %112 : vector<8x32xf32>
    %114 = vector.extract_strided_slice %63 {offsets = [0, 16], sizes = [8, 32], strides = [1, 1]} : vector<8x48xf32> to vector<8x32xf32>
    %115 = arith.addf %113, %114 : vector<8x32xf32>
    %c0_72 = arith.constant 0 : index
    %c0_73 = arith.constant 0 : index
    %116 = vector.load %arg17[%c0_72, %c0_73] : memref<1x32xf32, #tpu.memory_space<vmem>>, vector<1x32xf32>
    %117 = vector.broadcast %116 : vector<1x32xf32> to vector<8x32xf32>
    %118 = arith.mulf %115, %117 : vector<8x32xf32>
    %c0_74 = arith.constant 0 : index
    %c0_75 = arith.constant 0 : index
    %119 = vector.load %arg18[%c0_74, %c0_75] : memref<1x32xf32, #tpu.memory_space<vmem>>, vector<1x32xf32>
    %120 = vector.broadcast %119 : vector<1x32xf32> to vector<8x32xf32>
    %121 = arith.addf %118, %120 : vector<8x32xf32>
    %c0_76 = arith.constant 0 : index
    %c0_77 = arith.constant 0 : index
    %122 = vector.load %arg19[%c0_76, %c0_77] : memref<32x48xf32, #tpu.memory_space<vmem>>, vector<32x48xf32>
    %cst_78 = arith.constant dense<0.000000e+00> : vector<8x48xf32>
    %123 = tpu.matmul %121, %122, %cst_78 {dimension_numbers = #tpu.dot_dimension_numbers<[1], [0], [0], [1], [0, 0, 1, 1], [], []>, precision = #tpu.contract_precision<fp32>} : vector<8x32xf32>, vector<32x48xf32>, vector<8x48xf32> -> vector<8x48xf32>
    %c0_79 = arith.constant 0 : index
    %c0_80 = arith.constant 0 : index
    %124 = vector.load %arg20[%c0_79, %c0_80] : memref<1x48xf32, #tpu.memory_space<vmem>>, vector<1x48xf32>
    %125 = vector.broadcast %124 : vector<1x48xf32> to vector<8x48xf32>
    %126 = arith.addf %123, %125 : vector<8x48xf32>
    %127 = vector.extract_strided_slice %126 {offsets = [0, 0], sizes = [8, 24], strides = [1, 1]} : vector<8x48xf32> to vector<8x24xf32>
    %128 = math.tanh %127 : vector<8x24xf32>
    %129 = vector.extract_strided_slice %126 {offsets = [0, 24], sizes = [8, 24], strides = [1, 1]} : vector<8x48xf32> to vector<8x24xf32>
    %cst_81 = arith.constant 0.000000e+00 : f32
    %130 = vector.broadcast %cst_81 : f32 to vector<8x24xf32>
    %131 = arith.subf %130, %129 : vector<8x24xf32>
    %132 = math.exp %131 : vector<8x24xf32>
    %cst_82 = arith.constant 1.000000e+00 : f32
    %133 = vector.broadcast %cst_82 : f32 to vector<8x24xf32>
    %134 = arith.addf %133, %132 : vector<8x24xf32>
    %cst_83 = arith.constant 1.000000e+00 : f32
    %135 = vector.broadcast %cst_83 : f32 to vector<8x24xf32>
    %136 = arith.divf %135, %134 : vector<8x24xf32>
    %137 = arith.mulf %128, %136 : vector<8x24xf32>
    %c0_84 = arith.constant 0 : index
    %c0_85 = arith.constant 0 : index
    %138 = vector.load %arg21[%c0_84, %c0_85] : memref<24x192xf32, #tpu.memory_space<vmem>>, vector<24x192xf32>
    %cst_86 = arith.constant dense<0.000000e+00> : vector<8x192xf32>
    %139 = tpu.matmul %137, %138, %cst_86 {dimension_numbers = #tpu.dot_dimension_numbers<[1], [0], [0], [1], [0, 0, 1, 1], [], []>, precision = #tpu.contract_precision<fp32>} : vector<8x24xf32>, vector<24x192xf32>, vector<8x192xf32> -> vector<8x192xf32>
    %c0_87 = arith.constant 0 : index
    %c0_88 = arith.constant 0 : index
    %140 = vector.load %arg22[%c0_87, %c0_88] : memref<1x192xf32, #tpu.memory_space<vmem>>, vector<1x192xf32>
    %141 = vector.broadcast %140 : vector<1x192xf32> to vector<8x192xf32>
    %142 = arith.addf %139, %141 : vector<8x192xf32>
    %143 = vector.extract_strided_slice %86 {offsets = [0, 64], sizes = [8, 192], strides = [1, 1]} : vector<8x256xf32> to vector<8x192xf32>
    %144 = arith.addf %142, %143 : vector<8x192xf32>
    %cst_89 = arith.constant dense<0.000000e+00> : vector<48x24xf32>
    %145 = tpu.matmul %7, %137, %cst_89 {dimension_numbers = #tpu.dot_dimension_numbers<[1], [0], [0], [1], [0, 0, 1, 1], [], []>, precision = #tpu.contract_precision<fp32>} : vector<48x8xf32>, vector<8x24xf32>, vector<48x24xf32> -> vector<48x24xf32>
    %c0_90 = arith.constant 0 : index
    %c0_91 = arith.constant 0 : index
    %146 = vector.load %arg23[%c0_90, %c0_91] : memref<168x24xf32, #tpu.memory_space<vmem>>, vector<24x24xf32>
    %cst_92 = arith.constant dense<0.000000e+00> : vector<8x24xf32>
    %147 = tpu.matmul %137, %146, %cst_92 {dimension_numbers = #tpu.dot_dimension_numbers<[1], [0], [0], [1], [0, 0, 1, 1], [], []>, precision = #tpu.contract_precision<fp32>} : vector<8x24xf32>, vector<24x24xf32>, vector<8x24xf32> -> vector<8x24xf32>
    %148 = vector.extract_strided_slice %145 {offsets = [0, 0], sizes = [8, 24], strides = [1, 1]} : vector<48x24xf32> to vector<8x24xf32>
    %c24 = arith.constant 24 : index
    %c0_93 = arith.constant 0 : index
    %149 = vector.load %arg23[%c24, %c0_93] : memref<168x24xf32, #tpu.memory_space<vmem>>, vector<24x24xf32>
    %cst_94 = arith.constant dense<0.000000e+00> : vector<8x24xf32>
    %150 = tpu.matmul %148, %149, %cst_94 {dimension_numbers = #tpu.dot_dimension_numbers<[1], [0], [0], [1], [0, 0, 1, 1], [], []>, precision = #tpu.contract_precision<fp32>} : vector<8x24xf32>, vector<24x24xf32>, vector<8x24xf32> -> vector<8x24xf32>
    %151 = arith.addf %147, %150 : vector<8x24xf32>
    %152 = vector.extract_strided_slice %145 {offsets = [8, 0], sizes = [8, 24], strides = [1, 1]} : vector<48x24xf32> to vector<8x24xf32>
    %c48_95 = arith.constant 48 : index
    %c0_96 = arith.constant 0 : index
    %153 = vector.load %arg23[%c48_95, %c0_96] : memref<168x24xf32, #tpu.memory_space<vmem>>, vector<24x24xf32>
    %cst_97 = arith.constant dense<0.000000e+00> : vector<8x24xf32>
    %154 = tpu.matmul %152, %153, %cst_97 {dimension_numbers = #tpu.dot_dimension_numbers<[1], [0], [0], [1], [0, 0, 1, 1], [], []>, precision = #tpu.contract_precision<fp32>} : vector<8x24xf32>, vector<24x24xf32>, vector<8x24xf32> -> vector<8x24xf32>
    %155 = arith.addf %151, %154 : vector<8x24xf32>
    %156 = vector.extract_strided_slice %145 {offsets = [16, 0], sizes = [8, 24], strides = [1, 1]} : vector<48x24xf32> to vector<8x24xf32>
    %c72 = arith.constant 72 : index
    %c0_98 = arith.constant 0 : index
    %157 = vector.load %arg23[%c72, %c0_98] : memref<168x24xf32, #tpu.memory_space<vmem>>, vector<24x24xf32>
    %cst_99 = arith.constant dense<0.000000e+00> : vector<8x24xf32>
    %158 = tpu.matmul %156, %157, %cst_99 {dimension_numbers = #tpu.dot_dimension_numbers<[1], [0], [0], [1], [0, 0, 1, 1], [], []>, precision = #tpu.contract_precision<fp32>} : vector<8x24xf32>, vector<24x24xf32>, vector<8x24xf32> -> vector<8x24xf32>
    %159 = arith.addf %155, %158 : vector<8x24xf32>
    %160 = vector.extract_strided_slice %145 {offsets = [24, 0], sizes = [8, 24], strides = [1, 1]} : vector<48x24xf32> to vector<8x24xf32>
    %c96_100 = arith.constant 96 : index
    %c0_101 = arith.constant 0 : index
    %161 = vector.load %arg23[%c96_100, %c0_101] : memref<168x24xf32, #tpu.memory_space<vmem>>, vector<24x24xf32>
    %cst_102 = arith.constant dense<0.000000e+00> : vector<8x24xf32>
    %162 = tpu.matmul %160, %161, %cst_102 {dimension_numbers = #tpu.dot_dimension_numbers<[1], [0], [0], [1], [0, 0, 1, 1], [], []>, precision = #tpu.contract_precision<fp32>} : vector<8x24xf32>, vector<24x24xf32>, vector<8x24xf32> -> vector<8x24xf32>
    %163 = arith.addf %159, %162 : vector<8x24xf32>
    %164 = vector.extract_strided_slice %145 {offsets = [32, 0], sizes = [8, 24], strides = [1, 1]} : vector<48x24xf32> to vector<8x24xf32>
    %c120 = arith.constant 120 : index
    %c0_103 = arith.constant 0 : index
    %165 = vector.load %arg23[%c120, %c0_103] : memref<168x24xf32, #tpu.memory_space<vmem>>, vector<24x24xf32>
    %cst_104 = arith.constant dense<0.000000e+00> : vector<8x24xf32>
    %166 = tpu.matmul %164, %165, %cst_104 {dimension_numbers = #tpu.dot_dimension_numbers<[1], [0], [0], [1], [0, 0, 1, 1], [], []>, precision = #tpu.contract_precision<fp32>} : vector<8x24xf32>, vector<24x24xf32>, vector<8x24xf32> -> vector<8x24xf32>
    %167 = arith.addf %163, %166 : vector<8x24xf32>
    %168 = vector.extract_strided_slice %145 {offsets = [40, 0], sizes = [8, 24], strides = [1, 1]} : vector<48x24xf32> to vector<8x24xf32>
    %c144_105 = arith.constant 144 : index
    %c0_106 = arith.constant 0 : index
    %169 = vector.load %arg23[%c144_105, %c0_106] : memref<168x24xf32, #tpu.memory_space<vmem>>, vector<24x24xf32>
    %cst_107 = arith.constant dense<0.000000e+00> : vector<8x24xf32>
    %170 = tpu.matmul %168, %169, %cst_107 {dimension_numbers = #tpu.dot_dimension_numbers<[1], [0], [0], [1], [0, 0, 1, 1], [], []>, precision = #tpu.contract_precision<fp32>} : vector<8x24xf32>, vector<24x24xf32>, vector<8x24xf32> -> vector<8x24xf32>
    %171 = arith.addf %167, %170 : vector<8x24xf32>
    %172 = vector.extract_strided_slice %121 {offsets = [0, 8], sizes = [8, 24], strides = [1, 1]} : vector<8x32xf32> to vector<8x24xf32>
    %173 = arith.addf %171, %172 : vector<8x24xf32>
    %c0_108 = arith.constant 0 : index
    %c0_109 = arith.constant 0 : index
    %174 = vector.load %arg24[%c0_108, %c0_109] : memref<1x24xf32, #tpu.memory_space<vmem>>, vector<1x24xf32>
    %175 = vector.broadcast %174 : vector<1x24xf32> to vector<8x24xf32>
    %176 = arith.mulf %173, %175 : vector<8x24xf32>
    %c0_110 = arith.constant 0 : index
    %c0_111 = arith.constant 0 : index
    %177 = vector.load %arg25[%c0_110, %c0_111] : memref<1x24xf32, #tpu.memory_space<vmem>>, vector<1x24xf32>
    %178 = vector.broadcast %177 : vector<1x24xf32> to vector<8x24xf32>
    %179 = arith.addf %176, %178 : vector<8x24xf32>
    %c0_112 = arith.constant 0 : index
    %c0_113 = arith.constant 0 : index
    %180 = vector.load %arg26[%c0_112, %c0_113] : memref<24x16xf32, #tpu.memory_space<vmem>>, vector<24x16xf32>
    %cst_114 = arith.constant dense<0.000000e+00> : vector<8x16xf32>
    %181 = tpu.matmul %179, %180, %cst_114 {dimension_numbers = #tpu.dot_dimension_numbers<[1], [0], [0], [1], [0, 0, 1, 1], [], []>, precision = #tpu.contract_precision<fp32>} : vector<8x24xf32>, vector<24x16xf32>, vector<8x16xf32> -> vector<8x16xf32>
    %c0_115 = arith.constant 0 : index
    %c0_116 = arith.constant 0 : index
    %182 = vector.load %arg27[%c0_115, %c0_116] : memref<1x16xf32, #tpu.memory_space<vmem>>, vector<1x16xf32>
    %183 = vector.broadcast %182 : vector<1x16xf32> to vector<8x16xf32>
    %184 = arith.addf %181, %183 : vector<8x16xf32>
    %185 = vector.extract_strided_slice %184 {offsets = [0, 0], sizes = [8, 8], strides = [1, 1]} : vector<8x16xf32> to vector<8x8xf32>
    %186 = math.tanh %185 : vector<8x8xf32>
    %187 = vector.extract_strided_slice %184 {offsets = [0, 8], sizes = [8, 8], strides = [1, 1]} : vector<8x16xf32> to vector<8x8xf32>
    %cst_117 = arith.constant 0.000000e+00 : f32
    %188 = vector.broadcast %cst_117 : f32 to vector<8x8xf32>
    %189 = arith.subf %188, %187 : vector<8x8xf32>
    %190 = math.exp %189 : vector<8x8xf32>
    %cst_118 = arith.constant 1.000000e+00 : f32
    %191 = vector.broadcast %cst_118 : f32 to vector<8x8xf32>
    %192 = arith.addf %191, %190 : vector<8x8xf32>
    %cst_119 = arith.constant 1.000000e+00 : f32
    %193 = vector.broadcast %cst_119 : f32 to vector<8x8xf32>
    %194 = arith.divf %193, %192 : vector<8x8xf32>
    %195 = arith.mulf %186, %194 : vector<8x8xf32>
    %c0_120 = arith.constant 0 : index
    %c0_121 = arith.constant 0 : index
    %196 = vector.load %arg28[%c0_120, %c0_121] : memref<8x64xf32, #tpu.memory_space<vmem>>, vector<8x64xf32>
    %cst_122 = arith.constant dense<0.000000e+00> : vector<8x64xf32>
    %197 = tpu.matmul %195, %196, %cst_122 {dimension_numbers = #tpu.dot_dimension_numbers<[1], [0], [0], [1], [0, 0, 1, 1], [], []>, precision = #tpu.contract_precision<fp32>} : vector<8x8xf32>, vector<8x64xf32>, vector<8x64xf32> -> vector<8x64xf32>
    %c0_123 = arith.constant 0 : index
    %c0_124 = arith.constant 0 : index
    %198 = vector.load %arg29[%c0_123, %c0_124] : memref<1x64xf32, #tpu.memory_space<vmem>>, vector<1x64xf32>
    %199 = vector.broadcast %198 : vector<1x64xf32> to vector<8x64xf32>
    %200 = arith.addf %197, %199 : vector<8x64xf32>
    %201 = vector.extract_strided_slice %144 {offsets = [0, 128], sizes = [8, 64], strides = [1, 1]} : vector<8x192xf32> to vector<8x64xf32>
    %202 = arith.addf %200, %201 : vector<8x64xf32>
    %cst_125 = arith.constant 0.000000e+00 : f32
    %203 = vector.broadcast %cst_125 : f32 to vector<8x64xf32>
    %204 = arith.maximumf %202, %203 : vector<8x64xf32>
    %c0_126 = arith.constant 0 : index
    %c0_127 = arith.constant 0 : index
    %205 = vector.load %arg33[%c0_126, %c0_127] : memref<64x128xf32, #tpu.memory_space<vmem>>, vector<64x128xf32>
    %cst_128 = arith.constant dense<0.000000e+00> : vector<8x128xf32>
    %206 = tpu.matmul %204, %205, %cst_128 {dimension_numbers = #tpu.dot_dimension_numbers<[1], [0], [0], [1], [0, 0, 1, 1], [], []>, precision = #tpu.contract_precision<fp32>} : vector<8x64xf32>, vector<64x128xf32>, vector<8x128xf32> -> vector<8x128xf32>
    %c0_129 = arith.constant 0 : index
    %c0_130 = arith.constant 0 : index
    %207 = vector.load %arg34[%c0_129, %c0_130] : memref<1x128xf32, #tpu.memory_space<vmem>>, vector<1x128xf32>
    %208 = vector.broadcast %207 : vector<1x128xf32> to vector<8x128xf32>
    %209 = arith.addf %206, %208 : vector<8x128xf32>
    %cst_131 = arith.constant 0.000000e+00 : f32
    %210 = vector.broadcast %cst_131 : f32 to vector<8x128xf32>
    %211 = arith.maximumf %209, %210 : vector<8x128xf32>
    %c0_132 = arith.constant 0 : index
    %c0_133 = arith.constant 0 : index
    %212 = vector.load %arg35[%c0_132, %c0_133] : memref<128x4xf32, #tpu.memory_space<vmem>>, vector<128x4xf32>
    %cst_134 = arith.constant dense<0.000000e+00> : vector<8x4xf32>
    %213 = tpu.matmul %211, %212, %cst_134 {dimension_numbers = #tpu.dot_dimension_numbers<[1], [0], [0], [1], [0, 0, 1, 1], [], []>, precision = #tpu.contract_precision<fp32>} : vector<8x128xf32>, vector<128x4xf32>, vector<8x4xf32> -> vector<8x4xf32>
    %c0_135 = arith.constant 0 : index
    %c0_136 = arith.constant 0 : index
    %214 = vector.load %arg36[%c0_135, %c0_136] : memref<1x4xf32, #tpu.memory_space<vmem>>, vector<1x4xf32>
    %215 = vector.broadcast %214 : vector<1x4xf32> to vector<8x4xf32>
    %216 = arith.addf %213, %215 : vector<8x4xf32>
    %c0_137 = arith.constant 0 : index
    %c0_138 = arith.constant 0 : index
    %c0_139 = arith.constant 0 : index
    %217 = vector.load %arg37[%c0_137, %c0_138, %c0_139] : memref<1x8x4xf32, #tpu.memory_space<vmem>>, vector<1x8x4xf32>
    %218 = vector.shape_cast %217 : vector<1x8x4xf32> to vector<8x4xf32>
    %219 = vector.shape_cast %216 : vector<8x4xf32> to vector<1x8x4xf32>
    tpu.vector_store %arg37[%c0_137, %c0_138, %c0_139], %219 {strides = array<i32>} : memref<1x8x4xf32, #tpu.memory_space<vmem>>, vector<1x8x4xf32>,
    return
  }
  func.func @transform_0(%arg0: i32) -> (i32, i32, i32) {
    %c0_i32 = arith.constant 0 : i32
    %c0_i32_0 = arith.constant 0 : i32
    %c0_i32_1 = arith.constant 0 : i32
    return %arg0, %c0_i32, %c0_i32_0 : i32, i32, i32
  }
  func.func @transform_1(%arg0: i32) -> (i32, i32) {
    %c0_i32 = arith.constant 0 : i32
    %c0_i32_0 = arith.constant 0 : i32
    %c0_i32_1 = arith.constant 0 : i32
    return %c0_i32, %c0_i32_0 : i32, i32
  }
  func.func @transform_2(%arg0: i32) -> (i32, i32) {
    %c0_i32 = arith.constant 0 : i32
    %c0_i32_0 = arith.constant 0 : i32
    %c0_i32_1 = arith.constant 0 : i32
    return %c0_i32, %c0_i32_0 : i32, i32
  }
  func.func @transform_3(%arg0: i32) -> (i32, i32) {
    %c0_i32 = arith.constant 0 : i32
    %c0_i32_0 = arith.constant 0 : i32
    %c0_i32_1 = arith.constant 0 : i32
    return %c0_i32, %c0_i32_0 : i32, i32
  }
  func.func @transform_4(%arg0: i32) -> (i32, i32) {
    %c0_i32 = arith.constant 0 : i32
    %c0_i32_0 = arith.constant 0 : i32
    %c0_i32_1 = arith.constant 0 : i32
    return %c0_i32, %c0_i32_0 : i32, i32
  }
  func.func @transform_5(%arg0: i32) -> (i32, i32) {
    %c0_i32 = arith.constant 0 : i32
    %c0_i32_0 = arith.constant 0 : i32
    %c0_i32_1 = arith.constant 0 : i32
    return %c0_i32, %c0_i32_0 : i32, i32
  }
  func.func @transform_6(%arg0: i32) -> (i32, i32) {
    %c0_i32 = arith.constant 0 : i32
    %c0_i32_0 = arith.constant 0 : i32
    %c0_i32_1 = arith.constant 0 : i32
    return %c0_i32, %c0_i32_0 : i32, i32
  }
  func.func @transform_7(%arg0: i32) -> (i32, i32) {
    %c0_i32 = arith.constant 0 : i32
    %c0_i32_0 = arith.constant 0 : i32
    %c0_i32_1 = arith.constant 0 : i32
    return %c0_i32, %c0_i32_0 : i32, i32
  }
  func.func @transform_8(%arg0: i32) -> (i32, i32) {
    %c0_i32 = arith.constant 0 : i32
    %c0_i32_0 = arith.constant 0 : i32
    %c0_i32_1 = arith.constant 0 : i32
    return %c0_i32, %c0_i32_0 : i32, i32
  }
  func.func @transform_9(%arg0: i32) -> (i32, i32) {
    %c0_i32 = arith.constant 0 : i32
    %c0_i32_0 = arith.constant 0 : i32
    %c0_i32_1 = arith.constant 0 : i32
    return %c0_i32, %c0_i32_0 : i32, i32
  }
  func.func @transform_10(%arg0: i32) -> (i32, i32) {
    %c0_i32 = arith.constant 0 : i32
    %c0_i32_0 = arith.constant 0 : i32
    %c0_i32_1 = arith.constant 0 : i32
    return %c0_i32, %c0_i32_0 : i32, i32
  }
  func.func @transform_11(%arg0: i32) -> (i32, i32) {
    %c0_i32 = arith.constant 0 : i32
    %c0_i32_0 = arith.constant 0 : i32
    %c0_i32_1 = arith.constant 0 : i32
    return %c0_i32, %c0_i32_0 : i32, i32
  }
  func.func @transform_12(%arg0: i32) -> (i32, i32) {
    %c0_i32 = arith.constant 0 : i32
    %c0_i32_0 = arith.constant 0 : i32
    %c0_i32_1 = arith.constant 0 : i32
    return %c0_i32, %c0_i32_0 : i32, i32
  }
  func.func @transform_13(%arg0: i32) -> (i32, i32) {
    %c0_i32 = arith.constant 0 : i32
    %c0_i32_0 = arith.constant 0 : i32
    %c0_i32_1 = arith.constant 0 : i32
    return %c0_i32, %c0_i32_0 : i32, i32
  }
  func.func @transform_14(%arg0: i32) -> (i32, i32) {
    %c0_i32 = arith.constant 0 : i32
    %c0_i32_0 = arith.constant 0 : i32
    %c0_i32_1 = arith.constant 0 : i32
    return %c0_i32, %c0_i32_0 : i32, i32
  }
  func.func @transform_15(%arg0: i32) -> (i32, i32) {
    %c0_i32 = arith.constant 0 : i32
    %c0_i32_0 = arith.constant 0 : i32
    %c0_i32_1 = arith.constant 0 : i32
    return %c0_i32, %c0_i32_0 : i32, i32
  }
  func.func @transform_16(%arg0: i32) -> (i32, i32) {
    %c0_i32 = arith.constant 0 : i32
    %c0_i32_0 = arith.constant 0 : i32
    %c0_i32_1 = arith.constant 0 : i32
    return %c0_i32, %c0_i32_0 : i32, i32
  }
  func.func @transform_17(%arg0: i32) -> (i32, i32) {
    %c0_i32 = arith.constant 0 : i32
    %c0_i32_0 = arith.constant 0 : i32
    %c0_i32_1 = arith.constant 0 : i32
    return %c0_i32, %c0_i32_0 : i32, i32
  }
  func.func @transform_18(%arg0: i32) -> (i32, i32) {
    %c0_i32 = arith.constant 0 : i32
    %c0_i32_0 = arith.constant 0 : i32
    %c0_i32_1 = arith.constant 0 : i32
    return %c0_i32, %c0_i32_0 : i32, i32
  }
  func.func @transform_19(%arg0: i32) -> (i32, i32) {
    %c0_i32 = arith.constant 0 : i32
    %c0_i32_0 = arith.constant 0 : i32
    %c0_i32_1 = arith.constant 0 : i32
    return %c0_i32, %c0_i32_0 : i32, i32
  }
  func.func @transform_20(%arg0: i32) -> (i32, i32) {
    %c0_i32 = arith.constant 0 : i32
    %c0_i32_0 = arith.constant 0 : i32
    %c0_i32_1 = arith.constant 0 : i32
    return %c0_i32, %c0_i32_0 : i32, i32
  }
  func.func @transform_21(%arg0: i32) -> (i32, i32) {
    %c0_i32 = arith.constant 0 : i32
    %c0_i32_0 = arith.constant 0 : i32
    %c0_i32_1 = arith.constant 0 : i32
    return %c0_i32, %c0_i32_0 : i32, i32
  }
  func.func @transform_22(%arg0: i32) -> (i32, i32) {
    %c0_i32 = arith.constant 0 : i32
    %c0_i32_0 = arith.constant 0 : i32
    %c0_i32_1 = arith.constant 0 : i32
    return %c0_i32, %c0_i32_0 : i32, i32
  }
  func.func @transform_23(%arg0: i32) -> (i32, i32) {
    %c0_i32 = arith.constant 0 : i32
    %c0_i32_0 = arith.constant 0 : i32
    %c0_i32_1 = arith.constant 0 : i32
    return %c0_i32, %c0_i32_0 : i32, i32
  }
  func.func @transform_24(%arg0: i32) -> (i32, i32) {
    %c0_i32 = arith.constant 0 : i32
    %c0_i32_0 = arith.constant 0 : i32
    %c0_i32_1 = arith.constant 0 : i32
    return %c0_i32, %c0_i32_0 : i32, i32
  }
  func.func @transform_25(%arg0: i32) -> (i32, i32) {
    %c0_i32 = arith.constant 0 : i32
    %c0_i32_0 = arith.constant 0 : i32
    %c0_i32_1 = arith.constant 0 : i32
    return %c0_i32, %c0_i32_0 : i32, i32
  }
  func.func @transform_26(%arg0: i32) -> (i32, i32) {
    %c0_i32 = arith.constant 0 : i32
    %c0_i32_0 = arith.constant 0 : i32
    %c0_i32_1 = arith.constant 0 : i32
    return %c0_i32, %c0_i32_0 : i32, i32
  }
  func.func @transform_27(%arg0: i32) -> (i32, i32) {
    %c0_i32 = arith.constant 0 : i32
    %c0_i32_0 = arith.constant 0 : i32
    %c0_i32_1 = arith.constant 0 : i32
    return %c0_i32, %c0_i32_0 : i32, i32
  }
  func.func @transform_28(%arg0: i32) -> (i32, i32) {
    %c0_i32 = arith.constant 0 : i32
    %c0_i32_0 = arith.constant 0 : i32
    %c0_i32_1 = arith.constant 0 : i32
    return %c0_i32, %c0_i32_0 : i32, i32
  }
  func.func @transform_29(%arg0: i32) -> (i32, i32) {
    %c0_i32 = arith.constant 0 : i32
    %c0_i32_0 = arith.constant 0 : i32
    %c0_i32_1 = arith.constant 0 : i32
    return %c0_i32, %c0_i32_0 : i32, i32
  }
  func.func @transform_30(%arg0: i32) -> (i32, i32) {
    %c0_i32 = arith.constant 0 : i32
    %c0_i32_0 = arith.constant 0 : i32
    %c0_i32_1 = arith.constant 0 : i32
    return %c0_i32, %c0_i32_0 : i32, i32
  }
  func.func @transform_31(%arg0: i32) -> (i32, i32) {
    %c0_i32 = arith.constant 0 : i32
    %c0_i32_0 = arith.constant 0 : i32
    %c0_i32_1 = arith.constant 0 : i32
    return %c0_i32, %c0_i32_0 : i32, i32
  }
  func.func @transform_32(%arg0: i32) -> (i32, i32) {
    %c0_i32 = arith.constant 0 : i32
    %c0_i32_0 = arith.constant 0 : i32
    %c0_i32_1 = arith.constant 0 : i32
    return %c0_i32, %c0_i32_0 : i32, i32
  }
  func.func @transform_33(%arg0: i32) -> (i32, i32) {
    %c0_i32 = arith.constant 0 : i32
    %c0_i32_0 = arith.constant 0 : i32
    %c0_i32_1 = arith.constant 0 : i32
    return %c0_i32, %c0_i32_0 : i32, i32
  }
  func.func @transform_34(%arg0: i32) -> (i32, i32) {
    %c0_i32 = arith.constant 0 : i32
    %c0_i32_0 = arith.constant 0 : i32
    %c0_i32_1 = arith.constant 0 : i32
    return %c0_i32, %c0_i32_0 : i32, i32
  }
  func.func @transform_35(%arg0: i32) -> (i32, i32) {
    %c0_i32 = arith.constant 0 : i32
    %c0_i32_0 = arith.constant 0 : i32
    %c0_i32_1 = arith.constant 0 : i32
    return %c0_i32, %c0_i32_0 : i32, i32
  }
  func.func @transform_36(%arg0: i32) -> (i32, i32, i32) {
    %c0_i32 = arith.constant 0 : i32
    %c0_i32_0 = arith.constant 0 : i32
    %c0_i32_1 = arith.constant 0 : i32
    return %arg0, %c0_i32, %c0_i32_0 : i32, i32, i32
  }
}

</mosaic_0001>

<bundles_post_ra>
// kernel: tile.88
= control target key start
LH: loop header
LB: loop body
LE: loop exit
PB: predicated region body
PF: predicated region fallthrough
CT: control target
= control target key end

     0   :  { %s22_s0 = inlined_call_operand.vmem [shape: f32[8], index: 0, kind: input, shape index: {}]   ;;  %s23_s1 = inlined_call_operand.vmem [shape: f32[7,8], index: 1, kind: output, shape index: {}]  }
   0x1   :  { %v4_v0 = vld [vmem:[%s22_s0] ss:$0 sm:$0xff] }
   0x2   :  { %5 = vst [vmem:[%s23_s1] sm:$0xff] %v4_v0 }

// kernel: tile.89
= control target key start
LH: loop header
LB: loop body
LE: loop exit
PB: predicated region body
PF: predicated region fallthrough
CT: control target
= control target key end

     0   :  { %s59_s10 = smov 48   ;;  %s60_s11 = smov 32   ;;  %vm3_vm0 = vcmask 64512   ;;  %vm9_vm1 = vcmask 458112   ;;  %vm15_vm2 = vcmask 392512   ;;  %vm21_vm3 = vcmask 326912   ;;  %s99_s0 = inlined_call_operand.vmem [shape: f32[7,8], index: 0, kind: input, shape index: {}]   ;;  %s100_s1 = inlined_call_operand.vmem [shape: f32[1,56], index: 1, kind: output, shape index: {}]  }
   0x1   :  { %v47_v0 = vld [vmem:[%s99_s0 + $0x6] sm:$0x1]   ;;  %v49_v1 = vld [vmem:[%s99_s0 + $0x4] sm:$0x1]   ;;  %v48_v2 = vld [vmem:[%s99_s0 + $0x5] sm:$0x1]  }
   0x2   :  { %7 = vrot.lane.b32.xlu0 %v47_v0, %s59_s10  ;;  %19 = vrot.lane.b32.xlu1 %v49_v1, %s60_s11  ;;  %v50_v3 = vld [vmem:[%s99_s0 + $0x3] sm:$0x1]   ;;  %v2_v4 = vld [vmem:[%s99_s0] sm:$0x1]   ;;  %s61_s18 = smov 40   ;;  %s62_s19 = smov 24  }
   0x3   :  { %4 = vst.msk [vmem:[#allocation0] sm:$0x1] %vm3_vm0, %v2_v4   ;;  %v51_v5 = vld [vmem:[%s99_s0 + $0x2] sm:$0x1]   ;;  %v52_v6 = vld [vmem:[%s99_s0 + $0x1] sm:$0x1]  }
   0x4   :  { %s63_s0 = smov 16   ;;  %s64_s24 = smov 8   ;;  %vm27_vm4 = vcmask 261312   ;;  %vm33_vm5 = vcmask 195712   ;;  %vm39_vm6 = vcmask 130112  }
   0x6   :  { %13 = vrot.lane.b32.xlu0 %v48_v2, %s61_s18  ;;  %25 = vrot.lane.b32.xlu1 %v50_v3, %s62_s19 }
   0xa   :  { %31 = vrot.lane.b32.xlu0 %v51_v5, %s63_s0  ;;  %37 = vrot.lane.b32.xlu1 %v52_v6, %s64_s24 }
  0x74   :  { %v8_v7 = vpop.permute.xlu0 %7   ;;  %v20_v8 = vpop.permute.xlu1 %19  }
  0x75   :  { %10 = vst.msk [vmem:[#allocation0] sm:$0x1] %vm9_vm1, %v8_v7  }
  0x78   :  { %v14_v9 = vpop.permute.xlu0 %13   ;;  %v26_v10 = vpop.permute.xlu1 %25  }
  0x79   :  { %16 = vst.msk [vmem:[#allocation0] sm:$0x1] %vm15_vm2, %v14_v9  }
  0x7a   :  { %22 = vst.msk [vmem:[#allocation0] sm:$0x1] %vm21_vm3, %v20_v8  }
  0x7b   :  { %28 = vst.msk [vmem:[#allocation0] sm:$0x1] %vm27_vm4, %v26_v10  }
  0x7c   :  { %v32_v11 = vpop.permute.xlu0 %31   ;;  %v38_v12 = vpop.permute.xlu1 %37  }
  0x7d   :  { %34 = vst.msk [vmem:[#allocation0] sm:$0x1] %vm33_vm5, %v32_v11  }
  0x7e   :  { %40 = vst.msk [vmem:[#allocation0] sm:$0x1] %vm39_vm6, %v38_v12  }
  0x85   :  { %v44_v13 = vld [vmem:[#allocation0] sm:$0x1] }
  0x86   :  { %46 = vst [vmem:[%s100_s1] sm:$0x1] %v44_v13 }

// kernel: tile.98
= control target key start
LH: loop header
LB: loop body
LE: loop exit
PB: predicated region body
PF: predicated region fallthrough
CT: control target
= control target key end

     0   :  { %s22_s0 = inlined_call_operand.vmem [shape: f32[8], index: 0, kind: input, shape index: {}]   ;;  %s23_s1 = inlined_call_operand.vmem [shape: f32[6,8], index: 1, kind: output, shape index: {}]  }
   0x1   :  { %v4_v0 = vld [vmem:[%s22_s0] ss:$0 sm:$0xff] }
   0x2   :  { %5 = vst [vmem:[%s23_s1] sm:$0xff] %v4_v0 }

// kernel: tile.99
= control target key start
LH: loop header
LB: loop body
LE: loop exit
PB: predicated region body
PF: predicated region fallthrough
CT: control target
= control target key end

     0   :  { %s51_s10 = smov 40   ;;  %s52_s11 = smov 24   ;;  %vm3_vm0 = vcmask 64512   ;;  %vm9_vm1 = vcmask 392512   ;;  %vm15_vm2 = vcmask 326912   ;;  %vm21_vm3 = vcmask 261312   ;;  %s87_s0 = inlined_call_operand.vmem [shape: f32[6,8], index: 0, kind: input, shape index: {}]   ;;  %s88_s1 = inlined_call_operand.vmem [shape: f32[48], index: 1, kind: output, shape index: {}]  }
   0x1   :  { %v41_v0 = vld [vmem:[%s87_s0 + $0x5] sm:$0x1]   ;;  %v43_v1 = vld [vmem:[%s87_s0 + $0x3] sm:$0x1]   ;;  %v42_v2 = vld [vmem:[%s87_s0 + $0x4] sm:$0x1]  }
   0x2   :  { %7 = vrot.lane.b32.xlu0 %v41_v0, %s51_s10  ;;  %19 = vrot.lane.b32.xlu1 %v43_v1, %s52_s11  ;;  %v44_v3 = vld [vmem:[%s87_s0 + $0x2] sm:$0x1]   ;;  %v2_v4 = vld [vmem:[%s87_s0] sm:$0x1]   ;;  %s53_s18 = smov 32   ;;  %s54_s19 = smov 16  }
   0x3   :  { %4 = vst.msk [vmem:[#allocation0] sm:$0x1] %vm3_vm0, %v2_v4   ;;  %v45_v5 = vld [vmem:[%s87_s0 + $0x1] sm:$0x1]   ;;  %s55_s0 = smov 8   ;;  %vm27_vm4 = vcmask 195712  }
   0x4   :  { %vm33_vm5 = vcmask 130112  }
   0x6   :  { %13 = vrot.lane.b32.xlu0 %v42_v2, %s53_s18  ;;  %25 = vrot.lane.b32.xlu1 %v44_v3, %s54_s19 }
   0xa   :  { %31 = vrot.lane.b32.xlu0 %v45_v5, %s55_s0 }
  0x74   :  { %v8_v6 = vpop.permute.xlu0 %7   ;;  %v20_v7 = vpop.permute.xlu1 %19  }
  0x75   :  { %10 = vst.msk [vmem:[#allocation0] sm:$0x1] %vm9_vm1, %v8_v6  }
  0x78   :  { %v14_v8 = vpop.permute.xlu0 %13   ;;  %v26_v9 = vpop.permute.xlu1 %25  }
  0x79   :  { %16 = vst.msk [vmem:[#allocation0] sm:$0x1] %vm15_vm2, %v14_v8  }
  0x7a   :  { %22 = vst.msk [vmem:[#allocation0] sm:$0x1] %vm21_vm3, %v20_v7  }
  0x7b   :  { %28 = vst.msk [vmem:[#allocation0] sm:$0x1] %vm27_vm4, %v26_v9  }
  0x7c   :  { %v32_v10 = vpop.permute.xlu0 %31  }
  0x7d   :  { %34 = vst.msk [vmem:[#allocation0] sm:$0x1] %vm33_vm5, %v32_v10  }
  0x84   :  { %v38_v11 = vld [vmem:[#allocation0] sm:$0x1] }
  0x85   :  { %40 = vst [vmem:[%s88_s1] sm:$0x1] %v38_v11 }

// kernel: tile.103
= control target key start
LH: loop header
LB: loop body
LE: loop exit
PB: predicated region body
PF: predicated region fallthrough
CT: control target
= control target key end

     0   :  { %s22_s0 = inlined_call_operand.vmem [shape: f32[64], index: 0, kind: input, shape index: {}]   ;;  %s23_s1 = inlined_call_operand.vmem [shape: f32[6,64], index: 1, kind: output, shape index: {}]  }
   0x1   :  { %v4_v0 = vld [vmem:[%s22_s0] ss:$0 sm:$0xff] }
   0x2   :  { %5 = vst [vmem:[%s23_s1] sm:$0xff] %v4_v0 }

// kernel: tile.104
= control target key start
LH: loop header
LB: loop body
LE: loop exit
PB: predicated region body
PF: predicated region fallthrough
CT: control target
= control target key end

     0   :  { %vm3_vm0 = vcmask 523264   ;;  %s33_s8 = smov 64   ;;  %vm9_vm1 = vcmask 1048064   ;;  %s59_s0 = inlined_call_operand.vmem [shape: f32[6,64], index: 0, kind: input, shape index: {}]   ;;  %s60_s1 = inlined_call_operand.vmem [shape: f32[1,384], index: 1, kind: output, shape index: {}]  }
   0x1   :  { %v29_v0 = vld [vmem:[%s59_s0 + $0x1] ss:$2 sm:$0x7]   ;;  %v2_v1 = vld [vmem:[%s59_s0] ss:$2 sm:$0x7]  }
   0x2   :  { %7 = vrot.lane.b32.xlu0 %v29_v0, %s33_s8  ;;  %4 = vst.msk [vmem:[#allocation0] ss:$8 sm:$0x7] %vm3_vm0, %v2_v1  }
  0x74   :  { %v8_v2 = vpop.permute.xlu0 %7  }
  0x75   :  { %10 = vst.msk [vmem:[#allocation0] ss:$8 sm:$0x7] %vm9_vm1, %v8_v2  }
  0x7c   :  { %v14_v3 = vld [vmem:[#allocation0] sm:$0x1]  ;;  %v18_v4 = vld [vmem:[#allocation0 + $0x8] sm:$0x1]  ;;  %v23_v5 = vld [vmem:[#allocation0 + $0x10] sm:$0x1] }
  0x7d   :  { %16 = vst [vmem:[%s60_s1] sm:$0x1] %v14_v3  ;;  %30 = vst [vmem:[%s60_s1 + $0x1] sm:$0x1] %v18_v4 }
  0x7e   :  { %31 = vst [vmem:[%s60_s1 + $0x2] sm:$0x1] %v23_v5 }

// kernel: tile.109
= control target key start
LH: loop header
LB: loop body
LE: loop exit
PB: predicated region body
PF: predicated region fallthrough
CT: control target
= control target key end

     0   :  { %s51_s10 = smov 40   ;;  %s52_s11 = smov 24   ;;  %vm3_vm0 = vcmask 64512   ;;  %vm9_vm1 = vcmask 392512   ;;  %vm15_vm2 = vcmask 326912   ;;  %vm21_vm3 = vcmask 261312   ;;  %s87_s0 = inlined_call_operand.vmem [shape: f32[6,8], index: 0, kind: input, shape index: {}]   ;;  %s88_s1 = inlined_call_operand.vmem [shape: f32[1,48], index: 1, kind: output, shape index: {}]  }
   0x1   :  { %v41_v0 = vld [vmem:[%s87_s0 + $0x5] sm:$0x1]   ;;  %v43_v1 = vld [vmem:[%s87_s0 + $0x3] sm:$0x1]   ;;  %v42_v2 = vld [vmem:[%s87_s0 + $0x4] sm:$0x1]  }
   0x2   :  { %7 = vrot.lane.b32.xlu0 %v41_v0, %s51_s10  ;;  %19 = vrot.lane.b32.xlu1 %v43_v1, %s52_s11  ;;  %v44_v3 = vld [vmem:[%s87_s0 + $0x2] sm:$0x1]   ;;  %v2_v4 = vld [vmem:[%s87_s0] sm:$0x1]   ;;  %s53_s18 = smov 32   ;;  %s54_s19 = smov 16  }
   0x3   :  { %4 = vst.msk [vmem:[#allocation0] sm:$0x1] %vm3_vm0, %v2_v4   ;;  %v45_v5 = vld [vmem:[%s87_s0 + $0x1] sm:$0x1]   ;;  %s55_s0 = smov 8   ;;  %vm27_vm4 = vcmask 195712  }
   0x4   :  { %vm33_vm5 = vcmask 130112  }
   0x6   :  { %13 = vrot.lane.b32.xlu0 %v42_v2, %s53_s18  ;;  %25 = vrot.lane.b32.xlu1 %v44_v3, %s54_s19 }
   0xa   :  { %31 = vrot.lane.b32.xlu0 %v45_v5, %s55_s0 }
  0x74   :  { %v8_v6 = vpop.permute.xlu0 %7   ;;  %v20_v7 = vpop.permute.xlu1 %19  }
  0x75   :  { %10 = vst.msk [vmem:[#allocation0] sm:$0x1] %vm9_vm1, %v8_v6  }
  0x78   :  { %v14_v8 = vpop.permute.xlu0 %13   ;;  %v26_v9 = vpop.permute.xlu1 %25  }
  0x79   :  { %16 = vst.msk [vmem:[#allocation0] sm:$0x1] %vm15_vm2, %v14_v8  }
  0x7a   :  { %22 = vst.msk [vmem:[#allocation0] sm:$0x1] %vm21_vm3, %v20_v7  }
  0x7b   :  { %28 = vst.msk [vmem:[#allocation0] sm:$0x1] %vm27_vm4, %v26_v9  }
  0x7c   :  { %v32_v10 = vpop.permute.xlu0 %31  }
  0x7d   :  { %34 = vst.msk [vmem:[#allocation0] sm:$0x1] %vm33_vm5, %v32_v10  }
  0x84   :  { %v38_v11 = vld [vmem:[#allocation0] sm:$0x1] }
  0x85   :  { %40 = vst [vmem:[%s88_s1] sm:$0x1] %v38_v11 }

// kernel: tile.123
= control target key start
LH: loop header
LB: loop body
LE: loop exit
PB: predicated region body
PF: predicated region fallthrough
CT: control target
= control target key end

     0   :  { %s22_s0 = inlined_call_operand.vmem [shape: f32[8], index: 0, kind: input, shape index: {}]   ;;  %s23_s1 = inlined_call_operand.vmem [shape: f32[4,8], index: 1, kind: output, shape index: {}]  }
   0x1   :  { %v4_v0 = vld [vmem:[%s22_s0] ss:$0 sm:$0xff] }
   0x2   :  { %5 = vst [vmem:[%s23_s1] sm:$0xf] %v4_v0 }

// kernel: tile.124
= control target key start
LH: loop header
LB: loop body
LE: loop exit
PB: predicated region body
PF: predicated region fallthrough
CT: control target
= control target key end

     0   :  { %vm7_vm0 = vcmask 64512   ;;  %s37_s8 = smov 8   ;;  %s38_s9 = smov 16   ;;  %vm13_vm1 = vcmask 261312   ;;  %vm19_vm2 = vcmask 195712   ;;  %vm25_vm3 = vcmask 130112   ;;  %s55_s0 = inlined_call_operand.vmem [shape: f32[4,8], index: 0, kind: input, shape index: {}]   ;;  %s56_s1 = inlined_call_operand.vmem [shape: f32[32], index: 1, kind: output, shape index: {}]  }
   0x1   :  { %v4_v0 = vld [vmem:[%s55_s0] sm:$0xf]  ;;  %s36_s0 = smov 24  }
   0x2   :  { %5 = vst [vmem:[#allocation1] sm:$0xf] %v4_v0 }
   0x9   :  { %v10_v1 = vld [vmem:[#allocation1 + $0x3] sm:$0x1]   ;;  %v22_v2 = vld [vmem:[#allocation1 + $0x1] sm:$0x1]   ;;  %v6_v3 = vld [vmem:[#allocation1] sm:$0x1]  }
   0xa   :  { %11 = vrot.lane.b32.xlu0 %v10_v1, %s36_s0  ;;  %23 = vrot.lane.b32.xlu1 %v22_v2, %s37_s8  ;;  %v16_v4 = vld [vmem:[#allocation1 + $0x2] sm:$0x1]   ;;  %8 = vst.msk [vmem:[#allocation0] sm:$0x1] %vm7_vm0, %v6_v3  }
   0xe   :  { %17 = vrot.lane.b32.xlu0 %v16_v4, %s38_s9 }
  0x7c   :  { %v12_v5 = vpop.permute.xlu0 %11   ;;  %v24_v6 = vpop.permute.xlu1 %23  }
  0x7d   :  { %14 = vst.msk [vmem:[#allocation0] sm:$0x1] %vm13_vm1, %v12_v5  }
  0x80   :  { %v18_v7 = vpop.permute.xlu0 %17  }
  0x81   :  { %20 = vst.msk [vmem:[#allocation0] sm:$0x1] %vm19_vm2, %v18_v7  }
  0x82   :  { %26 = vst.msk [vmem:[#allocation0] sm:$0x1] %vm25_vm3, %v24_v6  }
  0x89   :  { %v30_v8 = vld [vmem:[#allocation0] sm:$0x1] }
  0x8a   :  { %32 = vst [vmem:[%s56_s1] sm:$0x1] %v30_v8 }

// kernel: tile.129
= control target key start
LH: loop header
LB: loop body
LE: loop exit
PB: predicated region body
PF: predicated region fallthrough
CT: control target
= control target key end

     0   :  { %s6_s8 = smov 3  ;;  %vm8_vm0 = vcmask 523264   ;;  %s30_s9 = smov 64   ;;  %vm15_vm1 = vcmask 1048064   ;;  %s50_s0 = inlined_call_operand.vmem [shape: f32[4,64], index: 0, kind: input, shape index: {}]   ;;  %s51_s1 = inlined_call_operand.vmem [shape: f32[1,256], index: 1, kind: output, shape index: {}]  }
   0x1   :  { %v4_v0 = vld [vmem:[%s50_s0] sm:$0xf]  ;;  %s11_s0 = smov 3 }
   0x2   :  { %5 = vst [vmem:[#allocation1] sm:$0xf] %v4_v0 }
   0x9   :  { %v12_v1 = vld [vmem:[#allocation1 + $0x1] ss:$2 sm:%s11_s0]   ;;  %v7_v2 = vld [vmem:[#allocation1] ss:$2 sm:%s6_s8]  }
   0xa   :  { %13 = vrot.lane.b32.xlu0 %v12_v1, %s30_s9  ;;  %9 = vst.msk [vmem:[#allocation0] ss:$8 sm:$0x3] %vm8_vm0, %v7_v2  }
  0x7c   :  { %v14_v3 = vpop.permute.xlu0 %13  }
  0x7d   :  { %16 = vst.msk [vmem:[#allocation0] ss:$8 sm:$0x3] %vm15_vm1, %v14_v3  }
  0x84   :  { %v20_v4 = vld [vmem:[#allocation0] sm:$0x1]  ;;  %v24_v5 = vld [vmem:[#allocation0 + $0x8] sm:$0x1] }
  0x85   :  { %22 = vst [vmem:[%s51_s1] sm:$0x1] %v20_v4  ;;  %28 = vst [vmem:[%s51_s1 + $0x1] sm:$0x1] %v24_v5 }

// kernel: tile.128
= control target key start
LH: loop header
LB: loop body
LE: loop exit
PB: predicated region body
PF: predicated region fallthrough
CT: control target
= control target key end

     0   :  { %s22_s0 = inlined_call_operand.vmem [shape: f32[64], index: 0, kind: input, shape index: {}]   ;;  %s23_s1 = inlined_call_operand.vmem [shape: f32[4,64], index: 1, kind: output, shape index: {}]  }
   0x1   :  { %v4_v0 = vld [vmem:[%s22_s0] ss:$0 sm:$0xff] }
   0x2   :  { %5 = vst [vmem:[%s23_s1] sm:$0xf] %v4_v0 }

// kernel: tile.134
= control target key start
LH: loop header
LB: loop body
LE: loop exit
PB: predicated region body
PF: predicated region fallthrough
CT: control target
= control target key end

     0   :  { %vm7_vm0 = vcmask 64512   ;;  %s37_s8 = smov 8   ;;  %s38_s9 = smov 16   ;;  %vm13_vm1 = vcmask 261312   ;;  %vm19_vm2 = vcmask 195712   ;;  %vm25_vm3 = vcmask 130112   ;;  %s55_s0 = inlined_call_operand.vmem [shape: f32[4,8], index: 0, kind: input, shape index: {}]   ;;  %s56_s1 = inlined_call_operand.vmem [shape: f32[1,32], index: 1, kind: output, shape index: {}]  }
   0x1   :  { %v4_v0 = vld [vmem:[%s55_s0] sm:$0xf]  ;;  %s36_s0 = smov 24  }
   0x2   :  { %5 = vst [vmem:[#allocation1] sm:$0xf] %v4_v0 }
   0x9   :  { %v10_v1 = vld [vmem:[#allocation1 + $0x3] sm:$0x1]   ;;  %v22_v2 = vld [vmem:[#allocation1 + $0x1] sm:$0x1]   ;;  %v6_v3 = vld [vmem:[#allocation1] sm:$0x1]  }
   0xa   :  { %11 = vrot.lane.b32.xlu0 %v10_v1, %s36_s0  ;;  %23 = vrot.lane.b32.xlu1 %v22_v2, %s37_s8  ;;  %v16_v4 = vld [vmem:[#allocation1 + $0x2] sm:$0x1]   ;;  %8 = vst.msk [vmem:[#allocation0] sm:$0x1] %vm7_vm0, %v6_v3  }
   0xe   :  { %17 = vrot.lane.b32.xlu0 %v16_v4, %s38_s9 }
  0x7c   :  { %v12_v5 = vpop.permute.xlu0 %11   ;;  %v24_v6 = vpop.permute.xlu1 %23  }
  0x7d   :  { %14 = vst.msk [vmem:[#allocation0] sm:$0x1] %vm13_vm1, %v12_v5  }
  0x80   :  { %v18_v7 = vpop.permute.xlu0 %17  }
  0x81   :  { %20 = vst.msk [vmem:[#allocation0] sm:$0x1] %vm19_vm2, %v18_v7  }
  0x82   :  { %26 = vst.msk [vmem:[#allocation0] sm:$0x1] %vm25_vm3, %v24_v6  }
  0x89   :  { %v30_v8 = vld [vmem:[#allocation0] sm:$0x1] }
  0x8a   :  { %32 = vst [vmem:[%s56_s1] sm:$0x1] %v30_v8 }

// kernel: tile.148
= control target key start
LH: loop header
LB: loop body
LE: loop exit
PB: predicated region body
PF: predicated region fallthrough
CT: control target
= control target key end

     0   :  { %s22_s0 = inlined_call_operand.vmem [shape: f32[8], index: 0, kind: input, shape index: {}]   ;;  %s23_s1 = inlined_call_operand.vmem [shape: f32[3,8], index: 1, kind: output, shape index: {}]  }
   0x1   :  { %v4_v0 = vld [vmem:[%s22_s0] ss:$0 sm:$0xff] }
   0x2   :  { %5 = vst [vmem:[%s23_s1] sm:$0xf] %v4_v0 }

// kernel: tile.149
= control target key start
LH: loop header
LB: loop body
LE: loop exit
PB: predicated region body
PF: predicated region fallthrough
CT: control target
= control target key end

     0   :  { %vm7_vm0 = vcmask 64512   ;;  %s30_s8 = smov 8   ;;  %vm13_vm1 = vcmask 195712   ;;  %vm19_vm2 = vcmask 130112   ;;  %s47_s0 = inlined_call_operand.vmem [shape: f32[3,8], index: 0, kind: input, shape index: {}]   ;;  %s48_s1 = inlined_call_operand.vmem [shape: f32[24], index: 1, kind: output, shape index: {}]  }
   0x1   :  { %v4_v0 = vld [vmem:[%s47_s0] sm:$0xf]  ;;  %s29_s0 = smov 16  }
   0x2   :  { %5 = vst [vmem:[#allocation1] sm:$0xf] %v4_v0 }
   0x9   :  { %v10_v1 = vld [vmem:[#allocation1 + $0x2] sm:$0x1]   ;;  %v6_v2 = vld [vmem:[#allocation1] sm:$0x1]   ;;  %v16_v3 = vld [vmem:[#allocation1 + $0x1] sm:$0x1]  }
   0xa   :  { %11 = vrot.lane.b32.xlu0 %v10_v1, %s29_s0  ;;  %8 = vst.msk [vmem:[#allocation0] sm:$0x1] %vm7_vm0, %v6_v2  }
   0xe   :  { %17 = vrot.lane.b32.xlu0 %v16_v3, %s30_s8 }
  0x7c   :  { %v12_v4 = vpop.permute.xlu0 %11  }
  0x7d   :  { %14 = vst.msk [vmem:[#allocation0] sm:$0x1] %vm13_vm1, %v12_v4  }
  0x80   :  { %v18_v5 = vpop.permute.xlu0 %17  }
  0x81   :  { %20 = vst.msk [vmem:[#allocation0] sm:$0x1] %vm19_vm2, %v18_v5  }
  0x88   :  { %v24_v6 = vld [vmem:[#allocation0] sm:$0x1] }
  0x89   :  { %26 = vst [vmem:[%s48_s1] sm:$0x1] %v24_v6 }

// kernel: tile.153
= control target key start
LH: loop header
LB: loop body
LE: loop exit
PB: predicated region body
PF: predicated region fallthrough
CT: control target
= control target key end

     0   :  { %s22_s0 = inlined_call_operand.vmem [shape: f32[64], index: 0, kind: input, shape index: {}]   ;;  %s23_s1 = inlined_call_operand.vmem [shape: f32[3,64], index: 1, kind: output, shape index: {}]  }
   0x1   :  { %v4_v0 = vld [vmem:[%s22_s0] ss:$0 sm:$0xff] }
   0x2   :  { %5 = vst [vmem:[%s23_s1] sm:$0xf] %v4_v0 }

// kernel: tile.154
= control target key start
LH: loop header
LB: loop body
LE: loop exit
PB: predicated region body
PF: predicated region fallthrough
CT: control target
= control target key end

     0   :  { %vm8_vm0 = vcmask 523264   ;;  %s29_s8 = smov 64   ;;  %vm14_vm1 = vcmask 1048064   ;;  %s49_s0 = inlined_call_operand.vmem [shape: f32[3,64], index: 0, kind: input, shape index: {}]   ;;  %s50_s1 = inlined_call_operand.vmem [shape: f32[1,192], index: 1, kind: output, shape index: {}]  }
   0x1   :  { %v4_v0 = vld [vmem:[%s49_s0] sm:$0xf]  ;;  %s6_s0 = smov 3 }
   0x2   :  { %5 = vst [vmem:[#allocation1] sm:$0xf] %v4_v0 }
   0x9   :  { %v11_v1 = vld [vmem:[#allocation1 + $0x1] sm:$0x1]   ;;  %v7_v2 = vld [vmem:[#allocation1] ss:$2 sm:%s6_s0]  }
   0xa   :  { %12 = vrot.lane.b32.xlu0 %v11_v1, %s29_s8  ;;  %9 = vst.msk [vmem:[#allocation0] ss:$8 sm:$0x3] %vm8_vm0, %v7_v2  }
  0x11   :  { %v23_v3 = vld [vmem:[#allocation0 + $0x8] sm:$0x1] }
  0x12   :  { %27 = vst [vmem:[%s50_s1 + $0x1] sm:$0x1] %v23_v3 }
  0x7c   :  { %v13_v4 = vpop.permute.xlu0 %12  }
  0x7d   :  { %15 = vst.msk [vmem:[#allocation0] sm:$0x1] %vm14_vm1, %v13_v4  }
  0x84   :  { %v19_v5 = vld [vmem:[#allocation0] sm:$0x1] }
  0x85   :  { %21 = vst [vmem:[%s50_s1] sm:$0x1] %v19_v5 }

// kernel: tile.159
= control target key start
LH: loop header
LB: loop body
LE: loop exit
PB: predicated region body
PF: predicated region fallthrough
CT: control target
= control target key end

     0   :  { %vm7_vm0 = vcmask 64512   ;;  %s30_s8 = smov 8   ;;  %vm13_vm1 = vcmask 195712   ;;  %vm19_vm2 = vcmask 130112   ;;  %s47_s0 = inlined_call_operand.vmem [shape: f32[3,8], index: 0, kind: input, shape index: {}]   ;;  %s48_s1 = inlined_call_operand.vmem [shape: f32[1,24], index: 1, kind: output, shape index: {}]  }
   0x1   :  { %v4_v0 = vld [vmem:[%s47_s0] sm:$0xf]  ;;  %s29_s0 = smov 16  }
   0x2   :  { %5 = vst [vmem:[#allocation1] sm:$0xf] %v4_v0 }
   0x9   :  { %v10_v1 = vld [vmem:[#allocation1 + $0x2] sm:$0x1]   ;;  %v6_v2 = vld [vmem:[#allocation1] sm:$0x1]   ;;  %v16_v3 = vld [vmem:[#allocation1 + $0x1] sm:$0x1]  }
   0xa   :  { %11 = vrot.lane.b32.xlu0 %v10_v1, %s29_s0  ;;  %8 = vst.msk [vmem:[#allocation0] sm:$0x1] %vm7_vm0, %v6_v2  }
   0xe   :  { %17 = vrot.lane.b32.xlu0 %v16_v3, %s30_s8 }
  0x7c   :  { %v12_v4 = vpop.permute.xlu0 %11  }
  0x7d   :  { %14 = vst.msk [vmem:[#allocation0] sm:$0x1] %vm13_vm1, %v12_v4  }
  0x80   :  { %v18_v5 = vpop.permute.xlu0 %17  }
  0x81   :  { %20 = vst.msk [vmem:[#allocation0] sm:$0x1] %vm19_vm2, %v18_v5  }
  0x88   :  { %v24_v6 = vld [vmem:[#allocation0] sm:$0x1] }
  0x89   :  { %26 = vst [vmem:[%s48_s1] sm:$0x1] %v24_v6 }

// kernel: gwnet_forward.1
= control target key start
LH: loop header
LB: loop body
LE: loop exit
PB: predicated region body
PF: predicated region fallthrough
CT: control target
= control target key end

     0   :  { %s24775_s6 = smov 1   ;;  %s24776_s10 = smov 2   ;;  %s29007_s0 = inlined_call_operand.smem [shape: u32[37], index: -1, kind: input, shape index: {}] }
   0x1   :  { %s24825_s5 = sld [smem:[%s29007_s0]]   ;;  %s24777_s14 = smov 3  }
   0x2   :  { %s24830_s9 = sld [smem:[%s29007_s0 + %s24775_s6]]   ;;  %s24778_s18 = smov 4  }
   0x3   :  { %s24835_s13 = sld [smem:[%s29007_s0 + %s24776_s10]]   ;;  %s24779_s22 = smov 5  }
   0x4   :  { %s24840_s17 = sld [smem:[%s29007_s0 + %s24777_s14]]   ;;  %s24780_s26 = smov 6  }
   0x5   :  { %s24845_s21 = sld [smem:[%s29007_s0 + %s24778_s18]]   ;;  %s24781_s30 = smov 7  }
   0x6   :  { %s24850_s25 = sld [smem:[%s29007_s0 + %s24779_s22]]   ;;  %s24782_s4 = smov 8  }
   0x7   :  { %s24855_s29 = sld [smem:[%s29007_s0 + %s24780_s26]]   ;;  %s24783_s10 = smov 9  }
   0x8   :  { %s24860_s3 = sld [smem:[%s29007_s0 + %s24781_s30]]   ;;  %s24784_s15 = smov 10  }
   0x9   :  { %s24865_s8 = sld [smem:[%s29007_s0 + %s24782_s4]]   ;;  %s24785_s20 = smov 11  }
   0xa   :  { %s24870_s14 = sld [smem:[%s29007_s0 + %s24783_s10]]   ;;  %s24786_s26 = smov 12  }
   0xb   :  { %s24875_s19 = sld [smem:[%s29007_s0 + %s24784_s15]]   ;;  %s24787_s1 = smov 13  }
   0xc   :  { %s24880_s24 = sld [smem:[%s29007_s0 + %s24785_s20]]   ;;  %s24788_s7 = smov 14  }
   0xd   :  { %s24885_s30 = sld [smem:[%s29007_s0 + %s24786_s26]]   ;;  %s24789_s15 = smov 15  }
   0xe   :  { %29168 = sst [smem:[#allocation2_spill]] %s24860_s3  ;;  %s24790_s22 = smov 16  }
   0xf   :  { %s24890_s6 = sld [smem:[%s29007_s0 + %s24787_s1]]   ;;  %s24791_s28 = smov 17  }
  0x10   :  { %s24895_s12 = sld [smem:[%s29007_s0 + %s24788_s7]]   ;;  %s24792_s7 = smov 18  }
  0x11   :  { %s24900_s20 = sld [smem:[%s29007_s0 + %s24789_s15]]   ;;  %s24793_s15 = smov 19  }
  0x12   :  { %s24905_s27 = sld [smem:[%s29007_s0 + %s24790_s22]]   ;;  %s24794_s22 = smov 20  }
  0x13   :  { %s24910_s4 = sld [smem:[%s29007_s0 + %s24791_s28]]   ;;  %s24795_s28 = smov 21  }
  0x14   :  { %s24920_s3 = sld [smem:[%s29007_s0 + %s24793_s15]]   ;;  %s24797_s15 = smov 23  }
  0x16   :  { %29169 = sst [smem:[#allocation3_spill]] %s24895_s12 }
  0x17   :  { %s24915_s12 = sld [smem:[%s29007_s0 + %s24792_s7]]   ;;  %s24796_s7 = smov 22  }
  0x18   :  { %29170 = sst [smem:[#allocation4_spill]] %s24905_s27 }
  0x19   :  { %29171 = sst [smem:[#allocation5_spill]] %s24910_s4 }
  0x1a   :  { %29173 = sst [smem:[#allocation7_spill]] %s24920_s3 }
  0x1b   :  { %s24925_s27 = sld [smem:[%s29007_s0 + %s24794_s22]]   ;;  %s24798_s22 = smov 24  }
  0x1c   :  { %s24930_s4 = sld [smem:[%s29007_s0 + %s24795_s28]]   ;;  %s24799_s28 = smov 25  }
  0x1d   :  { %29172 = sst [smem:[#allocation6_spill]] %s24915_s12 }
  0x1e   :  { %s24935_s12 = sld [smem:[%s29007_s0 + %s24796_s7]]   ;;  %s24800_s7 = smov 26  }
  0x1f   :  { %s24940_s3 = sld [smem:[%s29007_s0 + %s24797_s15]]   ;;  %s24801_s15 = smov 27  }
  0x21   :  { %29174 = sst [smem:[#allocation8_spill]] %s24925_s27 }
  0x22   :  { %29175 = sst [smem:[#allocation9_spill]] %s24930_s4 }
  0x23   :  { %s24945_s27 = sld [smem:[%s29007_s0 + %s24798_s22]]   ;;  %s24802_s22 = smov 28  }
  0x24   :  { %29176 = sst [smem:[#allocation10_spill]] %s24935_s12 }
  0x25   :  { %29177 = sst [smem:[#allocation11_spill]] %s24940_s3 }
  0x26   :  { %s24950_s4 = sld [smem:[%s29007_s0 + %s24799_s28]]   ;;  %s24803_s28 = smov 32  }
  0x27   :  { %s24955_s12 = sld [smem:[%s29007_s0 + %s24800_s7]]   ;;  %s24804_s7 = smov 33  }
  0x28   :  { %s24960_s3 = sld [smem:[%s29007_s0 + %s24801_s15]]   ;;  %s24805_s15 = smov 34  }
  0x29   :  { %29178 = sst [smem:[#allocation12_spill]] %s24945_s27 }
  0x2a   :  { %s24965_s27 = sld [smem:[%s29007_s0 + %s24802_s22]]   ;;  %s24806_s22 = smov 35  }
  0x2c   :  { %29179 = sst [smem:[#allocation13_spill]] %s24950_s4 }
  0x2d   :  { %29180 = sst [smem:[#allocation14_spill]] %s24955_s12 }
  0x2e   :  { %29181 = sst [smem:[#allocation15_spill]] %s24960_s3 }
  0x2f   :  { %s24970_s4 = sld [smem:[%s29007_s0 + %s24803_s28]]   ;;  %s24807_s28 = smov 36  }
  0x30   :  { %29182 = sst [smem:[#allocation16_spill]] %s24965_s27 }
  0x31   :  { %s24975_s12 = sld [smem:[%s29007_s0 + %s24804_s7]]   ;;  %s24992_s7 = smov 0  }
  0x32   :  { %s24980_s3 = sld [smem:[%s29007_s0 + %s24805_s15]]  }
  0x33   :  { %s24985_s27 = sld [smem:[%s29007_s0 + %s24806_s22]]  }
  0x35   :  { %29183 = sst [smem:[#allocation17_spill]] %s24970_s4 }
  0x36   :  { %s24990_s4 = sld [smem:[%s29007_s0 + %s24807_s28]]  }
  0x37 LB: > { %s19558_s10 = sadd.s32 4294967295, %s24773_s7   ;;  %p19562_p0 = scmp.ge.s32.totalorder %s24773_s7, 1  ;;  %s24773_s7 = sphi %s24992_s7, %s83_s7  }
  0x38   : > { %p998_p1 = scmp.lt.s32.totalorder %s24773_s7, 3 }
  0x3a   : > { %p999_p2 = pnand %p19562_p0, %p998_p1 }
  0x3c   : > { %1002 = sbr.rel (%p999_p2) target bundleno = 5177 (0x1439), region = 164 }
  0x43   : > { %v1095_v0 = vld [vmem:[%s24835_s13] sm:$0xff]  ;;  %v1096_v1 = vld [vmem:[%s24835_s13 + $0x8] sm:$0xff]  ;;  %p1086_p3 = scmp.lt.s32.totalorder %s19558_s10, 1  ;;  %v29015_v2 = vmov 0.0|0.0   ;;  %vm24809_vm0 = vmmov 0   ;;  %v29017_v5 = vmov 0.0  }
  0x44   : > { %23217 = vmatprep.subr.bf16.mxu0 %v29015_v2  ;;  %v1109_v3 = vand.u32 4294901760, %v1095_v0  ;;  %v1112_v4 = vand.u32 4294901760, %v1096_v1  ;;  %20755 = vmatprep.mubr.msk.f32.mxu0 %vm24809_vm0, %v29017_v5  ;;  %v25006_v6 = vld [vmem:[%s24845_s21] sm:$0xff]  ;;  %v25009_v7 = vld [vmem:[%s24845_s21 + $0x8] sm:$0xff]  ;;  %v25012_v8 = vld [vmem:[%s24845_s21 + $0x10] sm:$0xff]  ;;  %vm1104_vm1 = vcmask 130048  }
  0x45   : > { %s29393_s10 = smov (!%p1086_p3, %s19558_s10), 1  ;;  %23244 = vmatprep.subr.bf16.mxu1 %v29015_v2  ;;  %v1592_v9 = vand.u32 4294901760, %v25006_v6  ;;  %v1595_v10 = vand.u32 4294901760, %v25009_v7  ;;  %v25020_v11 = vld [vmem:[%s24845_s21 + $0x18] sm:$0xff]  ;;  %v1598_v12 = vand.u32 4294901760, %v25012_v8  ;;  %20824 = vmatprep.mubr.msk.f32.mxu1 %vm24809_vm0, %v29017_v5  ;;  %v1577_v51 = vld [vmem:[%s24845_s21 + $0x20] sm:$0xff] }
  0x46   : > { %v25025_v13 = vpack.c.bf16 %v1112_v4, %v1109_v3  ;;  %v1187_v14 = vsub.f32 %v1095_v0, %v1109_v3  ;;  %v1194_v15 = vsub.f32 %v1096_v1, %v1112_v4  ;;  %v1601_v16 = vand.u32 4294901760, %v25020_v11  ;;  %s19563_s0 = sshll.u32 %s29393_s10, 3  ;;  %v1578_v52 = vld [vmem:[%s24845_s21 + $0x28] sm:$0xff]  ;;  %v1579_v59 = vld [vmem:[%s24845_s21 + $0x30] sm:$0xff]  ;;  %s24811_s15 = smov 80  }
  0x47   : > { %v25032_v17 = vsub.f32 %v25006_v6, %v1592_v9  ;;  %v25037_v18 = vsub.f32 %v25009_v7, %v1595_v10  ;;  %v25042_v19 = vsub.f32 %v25012_v8, %v1598_v12  ;;  %s1089_s11 = scalar_lea.vmem %s24825_s5, %s19563_s0  ;;  %v1604_v53 = vand.u32 4294901760, %v1577_v51  ;;  %v19565_v8 = vld [vmem:[%s24840_s17] ss:$0 sm:$0xff]  ;;  %s24812_s16 = smov 120  }
  0x48   : > { %23219 = vmatpush3.bf16.msra.mxu0 %v25025_v13  ;;  %v1188_v20 = vand.u32 4294901760, %v1187_v14  ;;  %v1195_v21 = vand.u32 4294901760, %v1194_v15  ;;  %v25051_v22 = vsub.f32 %v25020_v11, %v1601_v16  ;;  %v1094_v23 = vld [vmem:[%s1089_s11] sm:$0xff]  ;;  %v23224_v49 = vpack.c.bf16 %v1194_v15, %v1187_v14  ;;  %s24813_s18 = smov 96   ;;  %s24814_s22 = smov 112  }
  0x49   : > { %23220 = vmatprep.subr.bf16.mxu0 %v29015_v2  ;;  %v1676_v24 = vand.u32 4294901760, %v25032_v17  ;;  %v1683_v25 = vand.u32 4294901760, %v25037_v18  ;;  %v1690_v26 = vand.u32 4294901760, %v25042_v19  ;;  %v1106_v27 = vsel %vm1104_vm1, %v1094_v23, 0  ;;  %s29276_s23 = sld [smem:[#allocation2_spill]]  ;;  %s29277_s26 = sld [smem:[#allocation3_spill]] }
  0x4a   : > { %v1189_v28 = vsub.f32 %v1187_v14, %v1188_v20  ;;  %v1196_v29 = vsub.f32 %v1194_v15, %v1195_v21  ;;  %v1175_v30 = vand.u32 4294901760, %v1106_v27  ;;  %v1697_v34 = vand.u32 4294901760, %v25051_v22  ;;  %s29330_s28 = sld [smem:[#allocation6_spill]]  ;;  %s29331_s1 = sld [smem:[#allocation4_spill]] }
  0x4b   : > { %v1677_v31 = vsub.f32 %v25032_v17, %v1676_v24  ;;  %v1684_v32 = vsub.f32 %v25037_v18, %v1683_v25  ;;  %v1691_v33 = vsub.f32 %v25042_v19, %v1690_v26  ;;  %v23230_v50 = vpack.c.bf16 %v1195_v21, %v1188_v20  ;;  %s29332_s2 = sld [smem:[#allocation5_spill]]  ;;  %s24815_s11 = smov 64  }
  0x4c   : > { %v1176_v35 = vsub.f32 %v1106_v27, %v1175_v30  ;;  %v1190_v38 = vand.u32 4294901760, %v1189_v28  ;;  %v1197_v39 = vand.u32 4294901760, %v1196_v29  ;;  %v1698_v41 = vsub.f32 %v25051_v22, %v1697_v34 }
  0x4d   : > { %v1678_v36 = vand.u32 4294901760, %v1677_v31  ;;  %v1685_v37 = vand.u32 4294901760, %v1684_v32  ;;  %v1692_v40 = vand.u32 4294901760, %v1691_v33  ;;  %v1607_v54 = vand.u32 4294901760, %v1578_v52 }
  0x4e   : > { %v1177_v42 = vand.u32 4294901760, %v1176_v35  ;;  %v1699_v44 = vand.u32 4294901760, %v1698_v41  ;;  %v23221_v46 = vpack.c.bf16 %v1197_v39, %v1190_v38  ;;  %v1703_v55 = vsub.f32 %v1577_v51, %v1604_v53  ;;  %v2132_v51 = vld [vmem:[%s24855_s29 + $0x88] sm:$0xff] }
  0x4f   : > { %v23245_v43 = vpack.c.bf16 %v1685_v37, %v1678_v36  ;;  %v1710_v56 = vsub.f32 %v1578_v52, %v1607_v54  ;;  %v25094_v62 = vand.u32 4294901760, %v1579_v59  ;;  %v23239_v6 = vpack.c.bf16 %v1601_v16, %v1598_v12  ;;  %v2127_v36 = vld [vmem:[%s24855_s29 + $0x10] sm:$0xff]  ;;  %v2128_v37 = vld [vmem:[%s24855_s29 + $0x28] sm:$0xff] }
  0x50   : > { %v1178_v45 = vsub.f32 %v1176_v35, %v1177_v42  ;;  %v23248_v47 = vpack.c.bf16 %v1699_v44, %v1692_v40  ;;  %v1704_v57 = vand.u32 4294901760, %v1703_v55  ;;  %v23242_v7 = vpack.c.bf16 %v1607_v54, %v1604_v53  ;;  %v2130_v44 = vld [vmem:[%s24855_s29 + $0x58] sm:$0xff] }
  0x51   : > { %23246 = vmatpush3.bf16.msra.mxu1 %v23245_v43  ;;  %v1711_v58 = vand.u32 4294901760, %v1710_v56  ;;  %v25097_v1 = vsub.f32 %v1579_v59, %v25094_v62  ;;  %vm1587_vm2 = vcmask 457728   ;;  %v23254_v21 = vpack.c.bf16 %v25037_v18, %v25032_v17  ;;  %v2129_v43 = vld [vmem:[%s24855_s29 + $0x40] sm:$0xff] }
  0x52   : > { %23247 = vmatprep.subr.bf16.mxu1 %v29015_v2  ;;  %v1179_v48 = vand.u32 4294901760, %v1178_v45  ;;  %v1705_v60 = vsub.f32 %v1703_v55, %v1704_v57  ;;  %v23257_v28 = vpack.c.bf16 %v25051_v22, %v25042_v19  ;;  %v23272_v32 = vpack.c.bf16 %v1683_v25, %v1676_v24  ;;  %v19566_v19 = vld [vmem:[%s24850_s25] ss:$0 sm:$0xff] }
  0x53   : > { %v1712_v61 = vsub.f32 %v1710_v56, %v1711_v58  ;;  %v1718_v4 = vand.u32 4294901760, %v25097_v1  ;;  %v23275_v33 = vpack.c.bf16 %v1697_v34, %v1690_v26  ;;  %v2145_v38 = vand.u32 4294901760, %v2127_v36 }
  0x54   : > { %20756 = vmatmul.mubr.f32.vlgmr.msra.gmra.mrb[0].mxu0 %v1179_v48  ;;  %v1706_v63 = vand.u32 4294901760, %v1705_v60  ;;  %v2148_v39 = vand.u32 4294901760, %v2128_v37  ;;  %v2151_v45 = vand.u32 4294901760, %v2129_v43  ;;  %vm2655_vm3 = vcmask 64512  }
  0x55   : > { %23249 = vmatpush3.bf16.msra.mxu1 %v23248_v47  ;;  %23222 = vmatpush3.bf16.msra.mxu0 %v23221_v46  ;;  %v1713_v0 = vand.u32 4294901760, %v1712_v61  ;;  %v1719_v14 = vsub.f32 %v25097_v1, %v1718_v4  ;;  %v2154_v46 = vand.u32 4294901760, %v2130_v44  ;;  %v25181_v47 = vsub.f32 %v2127_v36, %v2145_v38  ;;  %v1568_v36 = vld [vmem:[%s24830_s9 + $0x8] sm:$0xff] }
  0x56   : > { %20762 = vmatprep.mubr.msk.f32.mxu0 %vm24809_vm0, %v29017_v5  ;;  %23223 = vmatprep.subr.bf16.mxu0 %v29015_v2  ;;  %v25175_v41 = vpack.c.bf16 %v2148_v39, %v2145_v38  ;;  %v25183_v48 = vsub.f32 %v2128_v37, %v2148_v39  ;;  %v25190_v52 = vsub.f32 %v2129_v43, %v2151_v45  ;;  %vm2140_vm4 = vcmask 392192   ;;  %v1570_v43 = vld [vmem:[%s24830_s9 + $0x18] sm:$0xff] }
  0x57   : > { %23250 = vmatprep.subr.bf16.mxu1 %v29015_v2  ;;  %v23251_v3 = vpack.c.bf16 %v1713_v0, %v1706_v63  ;;  %v1720_v15 = vand.u32 4294901760, %v1719_v14  ;;  %v25192_v53 = vsub.f32 %v2130_v44, %v2154_v46  ;;  %vm7551_vm5 = vcmask 261120  }
  0x58   : > { %vm12744_vm6 = vcmask 195584   ;;  %vm18264_vm7 = vcmask 523264   ;;  %vm19470_vm8 = vcmask 31744  }
  0x59   : > { %23252 = vmatpush3.bf16.msra.mxu1 %v23251_v3  ;;  %v2242_v3 = vand.u32 4294901760, %v25190_v52 }
  0x5a   : > { %20822 = vmatprep.subr.mxu1 %v29017_v5 }
  0x5c   : > { %20763 = vmatmul.mubr.f32.vlgmr.msra.gmra.mrb[0].mxu0 %v1175_v30 }
  0x5d   : > { %23225 = vmatpush3.bf16.msra.mxu0 %v23224_v49  ;;  %20769 = vmatprep.mubr.msk.f32.mxu0 %vm24809_vm0, %v29017_v5  ;;  %v25185_v49 = vpack.c.bf16 %v2154_v46, %v2151_v45  ;;  %v1571_v46 = vld [vmem:[%s24830_s9 + $0x20] sm:$0xff] }
  0x5e   : > { %23226 = vmatprep.subr.bf16.mxu0 %v29015_v2  ;;  %20823 = vmatpush3.msra.mxu1 %v1720_v15 }
  0x5f   : > { %23253 = vmatprep.subr.bf16.mxu1 %v29015_v2 }
  0x64   : > { %20770 = vmatmul.mubr.f32.vlgmr.msra.gmra.mrb[0].mxu0 %v1176_v35 }
  0x65   : > { %23228 = vmatpush3.bf16.msra.mxu0 %v25025_v13  ;;  %20776 = vmatprep.mubr.msk.f32.mxu0 %vm24809_vm0, %v29017_v5 }
  0x66   : > { %23229 = vmatprep.subr.bf16.mxu0 %v29015_v2 }
  0x6c   : > { %20777 = vmatmul.mubr.f32.vlgmr.msra.gmra.mrb[0].mxu0 %v1177_v42 }
  0x6d   : > { %23231 = vmatpush3.bf16.msra.mxu0 %v23230_v50  ;;  %20783 = vmatprep.mubr.msk.f32.mxu0 %vm24809_vm0, %v29017_v5  ;;  %v2131_v50 = vld [vmem:[%s24855_s29 + $0x70] sm:$0xff] }
  0x6e   : > { %23232 = vmatprep.subr.bf16.mxu0 %v29015_v2  ;;  %v2157_v54 = vand.u32 4294901760, %v2131_v50 }
  0x70   : > { %v25199_v59 = vsub.f32 %v2131_v50, %v2157_v54 }
  0x74   : > { %20784 = vmatmul.mubr.f32.vlgmr.msra.gmra.mrb[0].mxu0 %v1175_v30 }
  0x75   : > { %23234 = vmatpush3.bf16.msra.mxu0 %v25025_v13  ;;  %20790 = vmatprep.mubr.msk.f32.mxu0 %vm24809_vm0, %v29017_v5  ;;  %v25104_v13 = vpack.c.bf16 %v1595_v10, %v1592_v9  ;;  %v23260_v9 = vpack.c.bf16 %v1710_v56, %v1703_v55  ;;  %v23278_v10 = vpack.c.bf16 %v1711_v58, %v1704_v57  ;;  %v2160_v55 = vand.u32 4294901760, %v2132_v51 }
  0x76   : > { %23235 = vmatprep.subr.bf16.mxu0 %v29015_v2  ;;  %v2228_v56 = vand.u32 4294901760, %v25181_v47  ;;  %v2235_v57 = vand.u32 4294901760, %v25183_v48 }
  0x77   : > { %v25197_v58 = vpack.c.bf16 %v2160_v55, %v2157_v54  ;;  %v25201_v60 = vsub.f32 %v2132_v51, %v2160_v55  ;;  %v2666_v51 = vsel %vm2655_vm3, %v1570_v43, 0  ;;  %v2669_v55 = vsel %vm2655_vm3, %v1571_v46, 0 }
  0x78   : > { %v2229_v61 = vsub.f32 %v25181_v47, %v2228_v56 }
  0x7a   : > { %v2230_v63 = vand.u32 4294901760, %v2229_v61  ;;  %v25275_v61 = vand.u32 4294901760, %v2669_v55 }
  0x7c   : > { %20791 = vmatmul.mubr.f32.vlgmr.msra.gmra.mrb[0].mxu0 %v1175_v30  ;;  %29188 = vst [vmem:[#allocation22_spill] sm:$0xff] %v25275_v61 }
  0x7d   : > { %20807 = vmatprep.mubr.msk.f32.mxu0 %vm24809_vm0, %v29017_v5  ;;  %23237 = vmatpush3.bf16.msra.mxu0 %v25104_v13 }
  0x7e   : > { %23238 = vmatprep.subr.bf16.mxu0 %v29015_v2 }
  0x81   : > { %23240 = vmatpush3.bf16.msra.mxu0 %v23239_v6 }
  0x82   : > { %23241 = vmatprep.subr.bf16.mxu0 %v29015_v2 }
  0x85   : > { %23243 = vmatpush3.bf16.msra.mxu0 %v23242_v7 }
  0x86   : > { %20805 = vmatprep.subr.mxu0 %v29017_v5 }
  0x89   : > { %20806 = vmatpush3.msra.mxu0 %v25094_v62 }
  0x8a   : > { %23289 = vmatprep.subr.bf16.mxu0 %v29015_v2 }
 0x14f   : > { %v1563_v20 = vpop.f32.mrb[0].mxu0 }
 0x150   : > { %v25122_v11 = vadd.f32 %v19565_v8, %v1563_v20  ;;  %v20792_v12 = vpop.f32.mrb[1].mxu0  ;;  %v2256_v8 = vand.u32 4294901760, %v25199_v59  ;;  %v2263_v20 = vand.u32 4294901760, %v25201_v60 }
 0x152   : > { %v1589_v16 = vsel %vm1587_vm2, %v25122_v11, 0 }
 0x153   : > { %v1663_v23 = vand.u32 4294901760, %v1589_v16 }
 0x155   : > { %v1664_v27 = vsub.f32 %v1589_v16, %v1663_v23  ;;  %20825 = vmatmul.mubr.f32.vlgmr.msra.gmra.mrb[0].mxu1 %v1663_v23  ;;  %v2257_v16 = vsub.f32 %v25199_v59, %v2256_v8 }
 0x156   : > { %23255 = vmatpush3.bf16.msra.mxu1 %v23254_v21  ;;  %20841 = vmatprep.mubr.msk.f32.mxu1 %vm24809_vm0, %v29017_v5  ;;  %v2264_v21 = vsub.f32 %v25201_v60, %v2263_v20 }
 0x157   : > { %v1665_v29 = vand.u32 4294901760, %v1664_v27  ;;  %23256 = vmatprep.subr.bf16.mxu1 %v29015_v2 }
 0x159   : > { %v1666_v30 = vsub.f32 %v1664_v27, %v1665_v29 }
 0x15a   : > { %23258 = vmatpush3.bf16.msra.mxu1 %v23257_v28  ;;  %v2265_v28 = vand.u32 4294901760, %v2264_v21 }
 0x15b   : > { %23259 = vmatprep.subr.bf16.mxu1 %v29015_v2  ;;  %v1667_v31 = vand.u32 4294901760, %v1666_v30  ;;  %v23308_v30 = vpack.c.bf16 %v25183_v48, %v25181_v47 }
 0x15d   : > { %20808 = vmatmul.mubr.f32.vlgmr.msra.gmra.mrb[2].mxu0 %v1667_v31  ;;  %v23311_v31 = vpack.c.bf16 %v25192_v53, %v25190_v52 }
 0x15e   : > { %23261 = vmatpush3.bf16.msra.mxu1 %v23260_v9  ;;  %20907 = vmatprep.mubr.msk.f32.mxu0 %vm24809_vm0, %v29017_v5 }
 0x15f   : > { %20839 = vmatprep.subr.mxu1 %v29017_v5  ;;  %23291 = vmatpush3.bf16.msra.mxu0 %v25175_v41 }
 0x160   : > { %23292 = vmatprep.subr.bf16.mxu0 %v29015_v2 }
 0x162   : > { %20840 = vmatpush3.msra.mxu1 %v25097_v1  ;;  %v1567_v1 = vld [vmem:[%s24830_s9] sm:$0xff] }
 0x163   : > { %20842 = vmatmul.mubr.f32.vlgmr.msra.gmra.mrb[0].mxu1 %v1664_v27  ;;  %23262 = vmatprep.subr.bf16.mxu1 %v29015_v2  ;;  %v2258_v27 = vand.u32 4294901760, %v2257_v16 }
 0x164   : > { %23264 = vmatpush3.bf16.msra.mxu1 %v25104_v13  ;;  %20858 = vmatprep.mubr.msk.f32.mxu1 %vm24809_vm0, %v29017_v5 }
 0x165   : > { %23265 = vmatprep.subr.bf16.mxu1 %v29015_v2  ;;  %23294 = vmatpush3.bf16.msra.mxu0 %v25185_v49 }
 0x166   : > { %23295 = vmatprep.subr.bf16.mxu0 %v29015_v2 }
 0x168   : > { %23267 = vmatpush3.bf16.msra.mxu1 %v23239_v6 }
 0x169   : > { %23268 = vmatprep.subr.bf16.mxu1 %v29015_v2  ;;  %23297 = vmatpush3.bf16.msra.mxu0 %v25197_v58 }
 0x16a   : > { %23298 = vmatprep.subr.bf16.mxu0 %v29015_v2 }
 0x16c   : > { %23270 = vmatpush3.bf16.msra.mxu1 %v23242_v7 }
 0x16d   : > { %20856 = vmatprep.subr.mxu1 %v29017_v5 }
 0x170   : > { %20857 = vmatpush3.msra.mxu1 %v25094_v62 }
 0x171   : > { %20859 = vmatmul.mubr.f32.vlgmr.msra.gmra.mrb[0].mxu1 %v1665_v29  ;;  %23271 = vmatprep.subr.bf16.mxu1 %v29015_v2  ;;  %v23305_v29 = vpack.c.bf16 %v2265_v28, %v2258_v27  ;;  %v3341_v28 = vld [vmem:[%s24865_s8 + $0x30] sm:$0xff] }
 0x172   : > { %23273 = vmatpush3.bf16.msra.mxu1 %v23272_v32  ;;  %20875 = vmatprep.mubr.msk.f32.mxu1 %vm24809_vm0, %v29017_v5  ;;  %v23314_v32 = vpack.c.bf16 %v25201_v60, %v25199_v59 }
 0x173   : > { %23274 = vmatprep.subr.bf16.mxu1 %v29015_v2 }
 0x176   : > { %23276 = vmatpush3.bf16.msra.mxu1 %v23275_v33  ;;  %v25231_v33 = vpack.c.bf16 %v2235_v57, %v2228_v56  ;;  %v1572_v56 = vld [vmem:[%s24830_s9 + $0x28] sm:$0xff] }
 0x177   : > { %23277 = vmatprep.subr.bf16.mxu1 %v29015_v2 }
 0x17a   : > { %23279 = vmatpush3.bf16.msra.mxu1 %v23278_v10 }
 0x17b   : > { %20873 = vmatprep.subr.mxu1 %v29017_v5 }
 0x17e   : > { %20874 = vmatpush3.msra.mxu1 %v1718_v4  ;;  %v25210_v4 = vsel %vm2655_vm3, %v1567_v1, 0 }
 0x17f   : > { %20876 = vmatmul.mubr.f32.vlgmr.msra.gmra.mrb[0].mxu1 %v1663_v23  ;;  %23280 = vmatprep.subr.bf16.mxu1 %v29015_v2 }
 0x180   : > { %23282 = vmatpush3.bf16.msra.mxu1 %v25104_v13  ;;  %20892 = vmatprep.mubr.msk.f32.mxu1 %vm24809_vm0, %v29017_v5  ;;  %v2249_v13 = vand.u32 4294901760, %v25192_v53 }
 0x181   : > { %23283 = vmatprep.subr.bf16.mxu1 %v29015_v2 }
 0x182   : > { %v2250_v9 = vsub.f32 %v25192_v53, %v2249_v13 }
 0x184   : > { %23285 = vmatpush3.bf16.msra.mxu1 %v23239_v6  ;;  %v25214_v6 = vand.u32 4294901760, %v25210_v4  ;;  %v2251_v12 = vand.u32 4294901760, %v2250_v9 }
 0x185   : > { %23286 = vmatprep.subr.bf16.mxu1 %v29015_v2 }
 0x186   : > { %29184 = vst [vmem:[#allocation18_spill] sm:$0xff] %v25214_v6 }
 0x188   : > { %23288 = vmatpush3.bf16.msra.mxu1 %v23242_v7  ;;  %v2243_v7 = vsub.f32 %v25190_v52, %v2242_v3 }
 0x189   : > { %20890 = vmatprep.subr.mxu1 %v29017_v5 }
 0x18a   : > { %v2244_v10 = vand.u32 4294901760, %v2243_v7 }
 0x18c   : > { %20891 = vmatpush3.msra.mxu1 %v25094_v62  ;;  %v2236_v62 = vsub.f32 %v25183_v48, %v2235_v57  ;;  %v25272_v57 = vand.u32 4294901760, %v2666_v51 }
 0x18d   : > { %20893 = vmatmul.mubr.f32.vlgmr.msra.gmra.mrb[0].mxu1 %v1663_v23  ;;  %v23302_v23 = vpack.c.bf16 %v2251_v12, %v2244_v10 }
 0x18e   : > { %v2237_v0 = vand.u32 4294901760, %v2236_v62  ;;  %20998 = vmatprep.mubr.f32.mxu1 %v25214_v6  ;;  %29187 = vst [vmem:[#allocation21_spill] sm:$0xff] %v25272_v57  ;;  %v2672_v62 = vsel %vm2655_vm3, %v1572_v56, 0 }
 0x190   : > { %v23299_v15 = vpack.c.bf16 %v2237_v0, %v2230_v63  ;;  %v25283_v63 = vand.u32 4294901760, %v2672_v62  ;;  %v25289_v0 = vsub.f32 %v25210_v4, %v25214_v6  ;;  %v25303_v4 = vsub.f32 %v2666_v51, %v25272_v57 }
 0x192   : > { %29189 = vst [vmem:[#allocation23_spill] sm:$0xff] %v25283_v63  ;;  %29190 = vst [vmem:[#allocation24_spill] sm:$0xff] %v25289_v0  ;;  %v25342_v59 = vand.u32 4294901760, %v25303_v4 }
 0x193   : > { %29193 = vst [vmem:[#allocation27_spill] sm:$0xff] %v25303_v4 }
 0x194   : > { %29199 = vst [vmem:[#allocation33_spill] sm:$0xff] %v25342_v59 }
 0x230   : > { %v1669_v17 = vpop.f32.mrb[2].mxu0 }
 0x231   : > { %v20809_v18 = vpop.f32.mrb[3].mxu0  ;;  %v1670_v22 = vadd.f32 %v19566_v19, %v1669_v17  ;;  %v25233_v17 = vpack.c.bf16 %v2249_v13, %v2242_v3  ;;  %v25308_v13 = vsub.f32 %v2669_v55, %v25275_v61 }
 0x233   : > { %29194 = vst [vmem:[#allocation28_spill] sm:$0xff] %v25308_v13  ;;  %v25347_v60 = vand.u32 4294901760, %v25308_v13 }
 0x235   : > { %29200 = vst [vmem:[#allocation34_spill] sm:$0xff] %v25347_v60  ;;  %v2783_v12 = vsub.f32 %v25308_v13, %v25347_v60 }
 0x260   : > { %v2111_v24 = vpop.f32.mrb[0].mxu1 }
 0x261   : > { %v25170_v25 = vadd.f32 %v2111_v24, %v1670_v22  ;;  %v20894_v26 = vpop.f32.mrb[1].mxu1 }
 0x263   : > { %v2116_v34 = vsub.f32 0.0, %v25170_v25 }
 0x265   : > { %v2117_v35 = vmul.f32 1.442695, %v2116_v34 }
 0x267   : > { %24743 = vpow2.f32 %v2117_v35 }
 0x271   : > { %v24744_v40 = vpop.eup %24743 }
 0x272   : > { %v2119_v42 = vadd.f32 1.0, %v24744_v40  ;;  %v2660_v40 = vsel %vm2655_vm3, %v1568_v36, 0  ;;  %v3345_v36 = vld [vmem:[%s24865_s8 + $0x50] sm:$0xff] }
 0x273   : > { %v25261_v48 = vand.u32 4294901760, %v2660_v40 }
 0x274   : > { %24745 = vrcp.f32 %v2119_v42 }
 0x275   : > { %24747 = vtanh.f32 %v25170_v25  ;;  %v1569_v25 = vld [vmem:[%s24830_s9 + $0x10] sm:$0xff]  ;;  %29185 = vst [vmem:[#allocation19_spill] sm:$0xff] %v25261_v48  ;;  %v25293_v1 = vsub.f32 %v2660_v40, %v25261_v48 }
 0x276   : > { %v2663_v45 = vsel %vm2655_vm3, %v1569_v25, 0  ;;  %v3363_v25 = vand.u32 4294901760, %v3345_v36 }
 0x277   : > { %v25266_v54 = vand.u32 4294901760, %v2663_v45  ;;  %29191 = vst [vmem:[#allocation25_spill] sm:$0xff] %v25293_v1  ;;  %v25331_v52 = vand.u32 4294901760, %v25293_v1 }
 0x279   : > { %29186 = vst [vmem:[#allocation20_spill] sm:$0xff] %v25266_v54  ;;  %v25298_v3 = vsub.f32 %v2663_v45, %v25266_v54  ;;  %29197 = vst [vmem:[#allocation31_spill] sm:$0xff] %v25331_v52 }
 0x27b   : > { %29192 = vst [vmem:[#allocation26_spill] sm:$0xff] %v25298_v3  ;;  %v25336_v53 = vand.u32 4294901760, %v25298_v3 }
 0x27d   : > { %29198 = vst [vmem:[#allocation32_spill] sm:$0xff] %v25336_v53 }
 0x27e   : > { %v24746_v14 = vpop.eup %24745 }
 0x27f   : > { %2123 = vrot.lane.b32.xlu0 %v24746_v14, %s24811_s15  ;;  %v24748_v18 = vpop.eup %24747  ;;  %v25319_v14 = vsub.f32 %v2672_v62, %v25283_v63  ;;  %v25470_v62 = vsub.f32 %v3345_v36, %v3363_v25  ;;  %s29333_s15 = sld [smem:[#allocation7_spill]] }
 0x281   : > { %29195 = vst [vmem:[#allocation29_spill] sm:$0xff] %v25319_v14  ;;  %v25356_v7 = vand.u32 4294901760, %v25319_v14 }
 0x283   : > { %6977 = vrot.lane.b32.xlu0 %v25122_v11, %s24812_s16  ;;  %v25235_v11 = vpack.c.bf16 %v2263_v20, %v2256_v8  ;;  %29201 = vst [vmem:[#allocation35_spill] sm:$0xff] %v25356_v7  ;;  %v2773_v20 = vsub.f32 %v25303_v4, %v25342_v59  ;;  %v2793_v21 = vsub.f32 %v25319_v14, %v25356_v7 }
 0x285   : > { %v25418_v16 = vand.u32 4294901760, %v2773_v20  ;;  %v25426_v27 = vand.u32 4294901760, %v2793_v21 }
 0x287   : > { %29202 = vst [vmem:[#allocation36_spill] sm:$0xff] %v25426_v27 }
 0x2f1   : > { %v2124_v19 = vpop.permute.xlu0 %2123 }
 0x2f2   : > { %v2126_v22 = vmul.f32 %v24748_v18, %v2124_v19  ;;  %v3344_v18 = vld [vmem:[%s24865_s8 + $0x48] sm:$0xff] }
 0x2f4   : > { %v2142_v24 = vsel %vm2140_vm4, %v2126_v22, 0  ;;  %v25239_v26 = vand.u32 4294901760, %v2126_v22 }
 0x2f5   : > { %v25241_v34 = vand.u32 4294901760, %v2142_v24 }
 0x2f6   : > { %v2802_v35 = vsub.f32 %v2126_v22, %v25239_v26  ;;  %v3360_v22 = vand.u32 4294901760, %v3344_v18 }
 0x2f7   : > { %v25246_v37 = vsub.f32 %v2142_v24, %v25241_v34 }
 0x2f8   : > { %v25248_v38 = vand.u32 4294901760, %v2802_v35 }
 0x2f9   : > { %v25252_v39 = vand.u32 4294901760, %v25246_v37 }
 0x2fa   : > { %v2804_v42 = vsub.f32 %v2802_v35, %v25248_v38 }
 0x2fb   : > { %v2218_v44 = vsub.f32 %v25246_v37, %v25252_v39 }
 0x2fc   : > { %v2805_v47 = vand.u32 4294901760, %v2804_v42 }
 0x2fd   : > { %v25263_v50 = vand.u32 4294901760, %v2218_v44 }
 0x2fe   : > { %20996 = vmatprep.subr.mxu1 %v2805_v47 }
 0x2ff   : > { %20908 = vmatmul.mubr.f32.vlgmr.msra.gmra.mrb[4].mxu0 %v25263_v50  ;;  %20997 = vmatpush3.msra.mxu1 %v2805_v47 }
 0x300   : > { %23300 = vmatpush3.bf16.msra.mxu0 %v23299_v15  ;;  %20999 = vmatmul.mubr.f32.vlgmr.msra.gmra.mrb[2].mxu1 %v25261_v48  ;;  %v25324_v15 = vand.u32 4294901760, %v25289_v0 }
 0x301   : > { %21007 = vmatprep.subr.mxu1 %v2802_v35  ;;  %23301 = vmatprep.subr.bf16.mxu0 %v29015_v2 }
 0x302   : > { %21008 = vmatpush3.msra.mxu1 %v2802_v35  ;;  %21001 = vmatprep.mubr.f32.mxu1 %v25266_v54  ;;  %29196 = vst [vmem:[#allocation30_spill] sm:$0xff] %v25324_v15  ;;  %v2743_v9 = vsub.f32 %v25289_v0, %v25324_v15  ;;  %v25450_v35 = vsub.f32 %v3344_v18, %v3360_v22 }
 0x303   : > { %21018 = vmatprep.subr.mxu1 %v25239_v26  ;;  %20922 = vmatprep.mubr.msk.f32.mxu0 %vm24809_vm0, %v29017_v5 }
 0x304   : > { %23303 = vmatpush3.bf16.msra.mxu0 %v23302_v23  ;;  %21002 = vmatmul.mubr.f32.gmra.mrb[4].mxu1 %v25272_v57  ;;  %v25398_v10 = vand.u32 4294901760, %v2743_v9  ;;  %v25423_v23 = vand.u32 4294901760, %v2783_v12  ;;  %v3455_v56 = vand.u32 4294901760, %v25450_v35 }
 0x305   : > { %23304 = vmatprep.subr.bf16.mxu0 %v29015_v2  ;;  %21004 = vmatprep.mubr.f32.mxu1 %v25275_v61 }
 0x306   : > { %v3456_v20 = vsub.f32 %v25450_v35, %v3455_v56 }
 0x308   : > { %23306 = vmatpush3.bf16.msra.mxu0 %v23305_v29  ;;  %21005 = vmatmul.mubr.f32.gmra.mrb[6].mxu1 %v25283_v63  ;;  %v3342_v29 = vld [vmem:[%s24865_s8 + $0x38] sm:$0xff]  ;;  %v3457_v21 = vand.u32 4294901760, %v3456_v20 }
 0x309   : > { %23307 = vmatprep.subr.bf16.mxu0 %v29015_v2  ;;  %21009 = vmatprep.mubr.f32.mxu1 %v25289_v0 }
 0x30b   : > { %20923 = vmatmul.mubr.f32.vlgmr.msra.gmra.mrb[4].mxu0 %v25241_v34 }
 0x30c   : > { %23309 = vmatpush3.bf16.msra.mxu0 %v23308_v30  ;;  %21010 = vmatmul.mubr.f32.vlgmr.msra.gmra.mrb[2].mxu1 %v25293_v1  ;;  %v3351_v30 = vand.u32 4294901760, %v3341_v28 }
 0x30d   : > { %21019 = vmatpush3.msra.mxu1 %v25239_v26  ;;  %23310 = vmatprep.subr.bf16.mxu0 %v29015_v2 }
 0x30e   : > { %21029 = vmatprep.subr.mxu1 %v25248_v38  ;;  %21012 = vmatprep.mubr.f32.mxu1 %v25298_v3 }
 0x30f   : > { %20937 = vmatprep.mubr.msk.f32.mxu0 %vm24809_vm0, %v29017_v5 }
 0x310   : > { %23312 = vmatpush3.bf16.msra.mxu0 %v23311_v31  ;;  %21013 = vmatmul.mubr.f32.gmra.mrb[4].mxu1 %v25303_v4  ;;  %v3354_v31 = vand.u32 4294901760, %v3342_v29 }
 0x311   : > { %23313 = vmatprep.subr.bf16.mxu0 %v29015_v2  ;;  %21015 = vmatprep.mubr.f32.mxu1 %v25308_v13 }
 0x314   : > { %23315 = vmatpush3.bf16.msra.mxu0 %v23314_v32  ;;  %21016 = vmatmul.mubr.f32.gmra.mrb[6].mxu1 %v25319_v14  ;;  %v25434_v32 = vpack.c.bf16 %v3354_v31, %v3351_v30 }
 0x315   : > { %23316 = vmatprep.subr.bf16.mxu0 %v29015_v2  ;;  %21020 = vmatprep.mubr.f32.mxu1 %v25324_v15 }
 0x317   : > { %20938 = vmatmul.mubr.f32.vlgmr.msra.gmra.mrb[4].mxu0 %v25246_v37 }
 0x318   : > { %23318 = vmatpush3.bf16.msra.mxu0 %v25175_v41  ;;  %21021 = vmatmul.mubr.f32.vlgmr.msra.gmra.mrb[2].mxu1 %v25331_v52 }
 0x319   : > { %21030 = vmatpush3.msra.mxu1 %v25248_v38  ;;  %23319 = vmatprep.subr.bf16.mxu0 %v29015_v2  ;;  %v3346_v38 = vld [vmem:[%s24865_s8 + $0x58] sm:$0xff] }
 0x31a   : > { %21040 = vmatprep.subr.mxu1 %v25239_v26  ;;  %21023 = vmatprep.mubr.f32.mxu1 %v25336_v53  ;;  %v3366_v40 = vand.u32 4294901760, %v3346_v38 }
 0x31b   : > { %20952 = vmatprep.mubr.msk.f32.mxu0 %vm24809_vm0, %v29017_v5 }
 0x31c   : > { %23321 = vmatpush3.bf16.msra.mxu0 %v25185_v49  ;;  %21024 = vmatmul.mubr.f32.gmra.mrb[4].mxu1 %v25342_v59  ;;  %v25458_v42 = vpack.c.bf16 %v3366_v40, %v3363_v25  ;;  %v25472_v9 = vsub.f32 %v3346_v38, %v3366_v40 }
 0x31d   : > { %23322 = vmatprep.subr.bf16.mxu0 %v29015_v2  ;;  %21026 = vmatprep.mubr.f32.mxu1 %v25347_v60 }
 0x320   : > { %23324 = vmatpush3.bf16.msra.mxu0 %v25197_v58  ;;  %21027 = vmatmul.mubr.f32.gmra.mrb[6].mxu1 %v25356_v7 }
 0x321   : > { %23325 = vmatprep.subr.bf16.mxu0 %v29015_v2  ;;  %21031 = vmatprep.mubr.f32.mxu1 %v25214_v6 }
 0x323   : > { %20953 = vmatmul.mubr.f32.vlgmr.msra.gmra.mrb[4].mxu0 %v25252_v39 }
 0x324   : > { %23327 = vmatpush3.bf16.msra.mxu0 %v25231_v33  ;;  %21032 = vmatmul.mubr.f32.vlgmr.msra.gmra.mrb[2].mxu1 %v25261_v48  ;;  %v25436_v33 = vsub.f32 %v3341_v28, %v3351_v30  ;;  %v3462_v28 = vand.u32 4294901760, %v25470_v62 }
 0x325   : > { %21041 = vmatpush3.msra.mxu1 %v25239_v26  ;;  %23328 = vmatprep.subr.bf16.mxu0 %v29015_v2 }
 0x326   : > { %21034 = vmatprep.mubr.f32.mxu1 %v25266_v54  ;;  %20967 = vmatprep.mubr.msk.f32.mxu0 %vm24809_vm0, %v29017_v5  ;;  %v3434_v43 = vand.u32 4294901760, %v25436_v33 }
 0x327   : > { %23388 = vmatprep.subr.bf16.mxu1 %v29015_v2 }
 0x328   : > { %23330 = vmatpush3.bf16.msra.mxu0 %v25233_v17  ;;  %21035 = vmatmul.mubr.f32.gmra.mrb[4].mxu1 %v25272_v57  ;;  %v25438_v17 = vsub.f32 %v3342_v29, %v3354_v31  ;;  %v3435_v45 = vsub.f32 %v25436_v33, %v3434_v43  ;;  %v3469_v29 = vand.u32 4294901760, %v25472_v9  ;;  %v3463_v31 = vsub.f32 %v25470_v62, %v3462_v28 }
 0x329   : > { %23331 = vmatprep.subr.bf16.mxu0 %v29015_v2  ;;  %21037 = vmatprep.mubr.f32.mxu1 %v25275_v61 }
 0x32a   : > { %v3441_v44 = vand.u32 4294901760, %v25438_v17  ;;  %v3436_v47 = vand.u32 4294901760, %v3435_v45  ;;  %v3464_v18 = vand.u32 4294901760, %v3463_v31  ;;  %v25510_v31 = vld [vmem:[%s24865_s8 + $0x18] sm:$0xff] }
 0x32c   : > { %23333 = vmatpush3.bf16.msra.mxu0 %v25235_v11  ;;  %21038 = vmatmul.mubr.f32.gmra.mrb[6].mxu1 %v25283_v63  ;;  %v3343_v11 = vld [vmem:[%s24865_s8 + $0x40] sm:$0xff]  ;;  %v3442_v46 = vsub.f32 %v25438_v17, %v3441_v44  ;;  %v25492_v40 = vpack.c.bf16 %v3441_v44, %v3434_v43 }
 0x32d   : > { %23334 = vmatprep.subr.bf16.mxu0 %v29015_v2  ;;  %21042 = vmatprep.mubr.f32.mxu1 %v25214_v6  ;;  %v3357_v19 = vand.u32 4294901760, %v3343_v11 }
 0x32e   : > { %v3443_v51 = vand.u32 4294901760, %v3442_v46  ;;  %v25496_v46 = vpack.c.bf16 %v3469_v29, %v3462_v28  ;;  %v29028_v28 = vand.u32 4294901760, %v25510_v31 }
 0x32f   : > { %20968 = vmatmul.mubr.f32.vlgmr.msra.gmra.mrb[4].mxu0 %v25241_v34  ;;  %v25446_v24 = vpack.c.bf16 %v3360_v22, %v3357_v19 }
 0x330   : > { %23336 = vmatpush3.bf16.msra.mxu0 %v25175_v41  ;;  %21043 = vmatmul.mubr.f32.vlgmr.msra.gmra.mrb[2].mxu1 %v25261_v48  ;;  %v2753_v41 = vsub.f32 %v25293_v1, %v25331_v52 }
 0x331   : > { %23337 = vmatprep.subr.bf16.mxu0 %v29015_v2  ;;  %21045 = vmatprep.mubr.f32.mxu1 %v25266_v54 }
 0x332   : > { %20982 = vmatprep.mubr.msk.f32.mxu0 %vm24809_vm0, %v29017_v5  ;;  %v25406_v8 = vand.u32 4294901760, %v2753_v41  ;;  %23390 = vmatpush3.bf16.msra.mxu1 %v25434_v32  ;;  %v25474_v41 = vpack.c.bf16 %v3443_v51, %v3436_v47  ;;  %v25499_v47 = vld [vmem:[%s24865_s8] sm:$0xff]  ;;  %v25502_v51 = vld [vmem:[%s24865_s8 + $0x8] sm:$0xff] }
 0x333   : > { %23391 = vmatprep.subr.bf16.mxu1 %v29015_v2  ;;  %v29013_v20 = vand.u32 4294901760, %v25502_v51 }
 0x334   : > { %23339 = vmatpush3.bf16.msra.mxu0 %v25185_v49  ;;  %21046 = vmatmul.mubr.f32.gmra.mrb[4].mxu1 %v25272_v57  ;;  %v2763_v49 = vsub.f32 %v25298_v3, %v25336_v53 }
 0x335   : > { %23340 = vmatprep.subr.bf16.mxu0 %v29015_v2  ;;  %21048 = vmatprep.mubr.f32.mxu1 %v25275_v61 }
 0x336   : > { %23393 = vmatpush3.bf16.msra.mxu1 %v25446_v24 }
 0x337   : > { %23394 = vmatprep.subr.bf16.mxu1 %v29015_v2 }
 0x338   : > { %23342 = vmatpush3.bf16.msra.mxu0 %v25197_v58  ;;  %21049 = vmatmul.mubr.f32.gmra.mrb[6].mxu1 %v25283_v63  ;;  %v25412_v58 = vand.u32 4294901760, %v2763_v49 }
 0x339   : > { %20985 = vmatprep.subr.mxu0 %v25239_v26  ;;  %21138 = vmatprep.mubr.msk.f32.mxu1 %vm24809_vm0, %v29017_v5 }
 0x33a   : > { %23396 = vmatpush3.bf16.msra.mxu1 %v25458_v42 }
 0x33b   : > { %20983 = vmatmul.mubr.f32.vlgmr.msra.gmra.mrb[4].mxu0 %v25241_v34  ;;  %23406 = vmatprep.subr.bf16.mxu1 %v29015_v2 }
 0x33c   : > { %20986 = vmatpush3.msra.mxu0 %v25239_v26  ;;  %20987 = vmatprep.mubr.f32.mxu0 %v25398_v10  ;;  %v25448_v26 = vsub.f32 %v3343_v11, %v3357_v19  ;;  %v3470_v11 = vsub.f32 %v25472_v9, %v3469_v29 }
 0x33d   : > { %23343 = vmatprep.subr.bf16.mxu0 %v29015_v2 }
 0x33e   : > { %v3448_v55 = vand.u32 4294901760, %v25448_v26  ;;  %v3471_v19 = vand.u32 4294901760, %v3470_v11  ;;  %v25525_v11 = vld [vmem:[%s24865_s8 + $0x20] sm:$0xff] }
 0x33f   : > { %20988 = vmatmul.mubr.f32.vlgmr.msra.gmra.mrb[6].mxu0 %v25406_v8 }
 0x340   : > { %20990 = vmatprep.mubr.f32.mxu0 %v25412_v58  ;;  %23345 = vmatpush3.bf16.msra.mxu0 %v25434_v32  ;;  %v3449_v49 = vsub.f32 %v25448_v26, %v3448_v55  ;;  %v25484_v22 = vpack.c.bf16 %v3471_v19, %v3464_v18  ;;  %v25494_v45 = vpack.c.bf16 %v3455_v56, %v3448_v55  ;;  %v25528_v18 = vld [vmem:[%s24865_s8 + $0x28] sm:$0xff] }
 0x341   : > { %23346 = vmatprep.subr.bf16.mxu0 %v29015_v2  ;;  %v25520_v55 = vsub.f32 %v25502_v51, %v29013_v20  ;;  %v25540_v20 = vsub.f32 %v25510_v31, %v29028_v28  ;;  %v29205_v52 = vand.u32 4294901760, %v25528_v18 }
 0x342   : > { %v3450_v12 = vand.u32 4294901760, %v3449_v49  ;;  %v29014_v49 = vand.u32 4294901760, %v25499_v47 }
 0x343   : > { %20991 = vmatmul.mubr.f32.gmra.mrb[8].mxu0 %v25418_v16  ;;  %v29203_v60 = vand.u32 4294901760, %v25520_v55  ;;  %v29052_v28 = vand.u32 4294901760, %v25540_v20  ;;  %v25562_v15 = vsub.f32 %v25528_v18, %v29205_v52 }
 0x344   : > { %20993 = vmatprep.mubr.f32.mxu0 %v25423_v23  ;;  %23348 = vmatpush3.bf16.msra.mxu0 %v25446_v24  ;;  %v25480_v30 = vpack.c.bf16 %v3457_v21, %v3450_v12  ;;  %v25507_v12 = vld [vmem:[%s24865_s8 + $0x10] sm:$0xff]  ;;  %v25515_v44 = vsub.f32 %v25499_v47, %v29014_v49  ;;  %v29040_v49 = vand.u32 4294901760, %v25525_v11 }
 0x345   : > { %23349 = vmatprep.subr.bf16.mxu0 %v29015_v2  ;;  %v29023_v56 = vand.u32 4294901760, %v25507_v12  ;;  %v3967_v4 = vsub.f32 %v25540_v20, %v29052_v28  ;;  %v29055_v3 = vand.u32 4294901760, %v25562_v15 }
 0x346   : > { %v29033_v25 = vand.u32 4294901760, %v25515_v44 }
 0x347   : > { %20994 = vmatmul.mubr.f32.gmra.mrb[10].mxu0 %v25426_v27  ;;  %v25535_v36 = vsub.f32 %v25507_v12, %v29023_v56  ;;  %v3953_v56 = vsub.f32 %v25520_v55, %v29203_v60  ;;  %v3968_v61 = vand.u32 4294901760, %v3967_v4  ;;  %v3981_v28 = vsub.f32 %v25562_v15, %v29055_v3 }
 0x348   : > { %21063 = vmatprep.mubr.msk.f32.mxu0 %vm24809_vm0, %v29017_v5  ;;  %23351 = vmatpush3.bf16.msra.mxu0 %v25458_v42  ;;  %v3946_v38 = vsub.f32 %v25515_v44, %v29033_v25 }
 0x349   : > { %23352 = vmatprep.subr.bf16.mxu0 %v29015_v2  ;;  %v29051_v59 = vand.u32 4294901760, %v25535_v36  ;;  %v25557_v2 = vsub.f32 %v25525_v11, %v29040_v49  ;;  %v3954_v13 = vand.u32 4294901760, %v3953_v56 }
 0x34a   : > { %v3947_v14 = vand.u32 4294901760, %v3946_v38 }
 0x34b   : > { %v3960_v60 = vsub.f32 %v25535_v36, %v29051_v59  ;;  %v29056_v49 = vand.u32 4294901760, %v25557_v2 }
 0x34d   : > { %v3961_v38 = vand.u32 4294901760, %v3960_v60  ;;  %v3974_v59 = vsub.f32 %v25557_v2, %v29056_v49  ;;  %v3982_v60 = vand.u32 4294901760, %v3981_v28 }
 0x34f   : > { %v23410_v4 = vpack.c.bf16 %v3968_v61, %v3961_v38  ;;  %v25611_v38 = vld [vmem:[%s24865_s8 + $0x60] sm:$0xff] }
 0x403   : > { %v21044_v21 = vpop.f32.mrb[2].mxu1 }
 0x404   : > { %v3301_v43 = vpop.f32.mrb[3].mxu1 }
 0x407   : > { %v21047_v29 = vpop.f32.mrb[4].mxu1 }
 0x408   : > { %v3313_v19 = vpop.f32.mrb[5].mxu1 }
 0x40b   : > { %v21050_v5 = vpop.f32.mrb[6].mxu1 }
 0x40c   : > { %v3325_v7 = vpop.f32.mrb[7].mxu1 }
 0x40e   : > { %v25551_v53 = vpop.f32.mrb[4].mxu0 }
 0x40f   : > { %29204 = vst [vmem:[#allocation37_spill] sm:$0xff] %v25551_v53  ;;  %v20984_v25 = vpop.f32.mrb[5].mxu0 }
 0x410   : > { %v23407_v25 = vpack.c.bf16 %v3954_v13, %v3947_v14  ;;  %v3975_v14 = vand.u32 4294901760, %v3974_v59 }
 0x412   : > { %v20989_v53 = vpop.f32.mrb[6].mxu0  ;;  %v23413_v59 = vpack.c.bf16 %v3982_v60, %v3975_v14  ;;  %v25634_v60 = vld [vmem:[%s24865_s8 + $0x70] sm:$0xff] }
 0x413   : > { %v25572_v1 = vadd.f32 %v21044_v21, %v20989_v53  ;;  %v2746_v52 = vpop.f32.mrb[7].mxu0 }
 0x414   : > { %v24500_v0 = vadd.f32 %v3301_v43, %v2746_v52  ;;  %v29206_v52 = vmov 0.0  }
 0x416   : > { %v3348_v56 = vsel %vm2140_vm4, %v24500_v0, 0  ;;  %v20992_v63 = vpop.f32.mrb[8].mxu0 }
 0x417   : > { %v25581_v57 = vand.u32 4294901760, %v3348_v56  ;;  %v25583_v53 = vadd.f32 %v21047_v29, %v20992_v63  ;;  %v2766_v21 = vpop.f32.mrb[9].mxu0 }
 0x418   : > { %v25585_v43 = vadd.f32 %v3313_v19, %v2766_v21  ;;  %v29207_v21 = vmov 0.0|0.0  }
 0x419   : > { %v25588_v13 = vsub.f32 %v3348_v56, %v25581_v57  ;;  %21139 = vmatmul.mubr.f32.vlgmr.msra.gmra.mrb[8].mxu1 %v25581_v57 }
 0x41a   : > { %23408 = vmatpush3.bf16.msra.mxu1 %v23407_v25  ;;  %v20995_v0 = vpop.f32.mrb[10].mxu0  ;;  %21168 = vmatprep.mubr.msk.f32.mxu1 %vm24809_vm0, %v29206_v52  ;;  %v29209_v25 = vand.u32 4294901760, %v25502_v51  ;;  %v29210_v51 = vand.u32 4294901760, %v25507_v12 }
 0x41b   : > { %v3423_v63 = vand.u32 4294901760, %v25588_v13  ;;  %v25594_v29 = vadd.f32 %v21050_v5, %v20995_v0  ;;  %v2786_v19 = vpop.f32.mrb[11].mxu0  ;;  %23409 = vmatprep.subr.bf16.mxu1 %v29207_v21  ;;  %v29208_v5 = vand.u32 4294901760, %v25499_v47  ;;  %v25614_v0 = vld [vmem:[%s24865_s8 + $0x68] sm:$0xff] }
 0x41c   : > { %v25597_v56 = vadd.f32 %v3325_v7, %v2786_v19  ;;  %v4385_v47 = vand.u32 4294901760, %v25614_v0  ;;  %v25637_v19 = vld [vmem:[%s24865_s8 + $0x78] sm:$0xff] }
 0x41d   : > { %v3424_v61 = vsub.f32 %v25588_v13, %v3423_v63  ;;  %v25608_v7 = vpack.c.bf16 %v29209_v25, %v29208_v5  ;;  %v29057_v5 = vand.u32 4294901760, %v25637_v19  ;;  %v25664_v25 = vld [vmem:[%s24865_s8 + $0x80] sm:$0xff] }
 0x41e   : > { %23411 = vmatpush3.bf16.msra.mxu1 %v23410_v4  ;;  %v29211_v4 = vand.u32 4294901760, %v25510_v31  ;;  %v25649_v12 = vsub.f32 %v25614_v0, %v4385_v47  ;;  %v29212_v31 = vand.u32 4294901760, %v25525_v11  ;;  %v25792_v0 = vld [vmem:[%s24865_s8 + $0xa0] sm:$0xff] }
 0x41f   : > { %v3425_v28 = vand.u32 4294901760, %v3424_v61  ;;  %23412 = vmatprep.subr.bf16.mxu1 %v29207_v21  ;;  %v29213_v61 = vand.u32 4294901760, %v25528_v18  ;;  %v29214_v18 = vpack.c.bf16 %v25438_v17, %v25436_v33 }
 0x420   : > { %v25629_v14 = vpack.c.bf16 %v29211_v4, %v29210_v51  ;;  %v25667_v51 = vld [vmem:[%s24865_s8 + $0x88] sm:$0xff]  ;;  %v29059_v11 = vand.u32 4294901760, %v25649_v12 }
 0x421   : > { %21064 = vmatmul.mubr.f32.vlgmr.msra.gmra.mrb[12].mxu0 %v3425_v28  ;;  %v29062_v28 = vand.u32 4294901760, %v25634_v60  ;;  %v29060_v3 = vand.u32 4294901760, %v25667_v51 }
 0x422   : > { %23354 = vmatpush3.bf16.msra.mxu0 %v25474_v41  ;;  %23414 = vmatpush3.bf16.msra.mxu1 %v23413_v59  ;;  %v4382_v41 = vand.u32 4294901760, %v25611_v38  ;;  %v25657_v59 = vpack.c.bf16 %v29213_v61, %v29212_v31  ;;  %v25684_v31 = vsub.f32 %v25637_v19, %v29057_v5  ;;  %v29061_v61 = vand.u32 4294901760, %v25664_v25 }
 0x423   : > { %23355 = vmatprep.subr.bf16.mxu0 %v29207_v21  ;;  %23424 = vmatprep.subr.bf16.mxu1 %v29207_v21  ;;  %v25679_v4 = vsub.f32 %v25634_v60, %v29062_v28  ;;  %v4473_v17 = vsub.f32 %v25649_v12, %v29059_v11 }
 0x424   : > { %21078 = vmatprep.mubr.msk.f32.mxu0 %vm24809_vm0, %v29206_v52  ;;  %v29067_v5 = vand.u32 4294901760, %v25684_v31 }
 0x425   : > { %21169 = vmatmul.mubr.f32.vlgmr.msra.gmra.mrb[10].mxu1 %v25241_v34  ;;  %v29068_v49 = vand.u32 4294901760, %v25679_v4 }
 0x426   : > { %23357 = vmatpush3.bf16.msra.mxu0 %v25480_v30  ;;  %23426 = vmatpush3.bf16.msra.mxu1 %v25608_v7  ;;  %v25644_v30 = vsub.f32 %v25611_v38, %v4382_v41 }
 0x427   : > { %23358 = vmatprep.subr.bf16.mxu0 %v29207_v21  ;;  %23427 = vmatprep.subr.bf16.mxu1 %v29207_v21  ;;  %v4480_v11 = vsub.f32 %v25679_v4, %v29068_v49 }
 0x428   : > { %21198 = vmatprep.mubr.msk.f32.mxu1 %vm24809_vm0, %v29206_v52 }
 0x42a   : > { %23360 = vmatpush3.bf16.msra.mxu0 %v25484_v22  ;;  %23429 = vmatpush3.bf16.msra.mxu1 %v25629_v14  ;;  %v29058_v22 = vand.u32 4294901760, %v25644_v30 }
 0x42b   : > { %23361 = vmatprep.subr.bf16.mxu0 %v29207_v21  ;;  %23430 = vmatprep.subr.bf16.mxu1 %v29207_v21 }
 0x42c   : > { %v4466_v33 = vsub.f32 %v25644_v30, %v29058_v22  ;;  %v25713_v22 = vsub.f32 %v25667_v51, %v29060_v3  ;;  %v4487_v3 = vsub.f32 %v25684_v31, %v29067_v5 }
 0x42d   : > { %21079 = vmatmul.mubr.f32.vlgmr.msra.gmra.mrb[14].mxu0 %v25581_v57 }
 0x42e   : > { %23363 = vmatpush3.bf16.msra.mxu0 %v29214_v18  ;;  %23432 = vmatpush3.bf16.msra.mxu1 %v25657_v59  ;;  %v29215_v18 = vpack.c.bf16 %v25450_v35, %v25448_v26  ;;  %v4467_v26 = vand.u32 4294901760, %v4466_v33  ;;  %v4474_v35 = vand.u32 4294901760, %v4473_v17  ;;  %v29063_v28 = vand.u32 4294901760, %v25713_v22 }
 0x42f   : > { %23364 = vmatprep.subr.bf16.mxu0 %v29207_v21  ;;  %23442 = vmatprep.subr.bf16.mxu1 %v29207_v21  ;;  %v4488_v33 = vand.u32 4294901760, %v4487_v3 }
 0x430   : > { %21093 = vmatprep.mubr.msk.f32.mxu0 %vm24809_vm0, %v29206_v52 }
 0x431   : > { %21199 = vmatmul.mubr.f32.vlgmr.msra.gmra.mrb[12].mxu1 %v25252_v39  ;;  %v25708_v39 = vsub.f32 %v25664_v25, %v29061_v61 }
 0x432   : > { %23366 = vmatpush3.bf16.msra.mxu0 %v29215_v18  ;;  %23444 = vmatpush3.bf16.msra.mxu1 %v25608_v7  ;;  %v29216_v18 = vpack.c.bf16 %v25472_v9, %v25470_v62  ;;  %v23461_v62 = vpack.c.bf16 %v4474_v35, %v4467_v26  ;;  %v4481_v9 = vand.u32 4294901760, %v4480_v11  ;;  %v25767_v35 = vld [vmem:[%s24865_s8 + $0x90] sm:$0xff] }
 0x433   : > { %23367 = vmatprep.subr.bf16.mxu0 %v29207_v21  ;;  %23445 = vmatprep.subr.bf16.mxu1 %v29207_v21  ;;  %v29066_v61 = vand.u32 4294901760, %v25708_v39 }
 0x434   : > { %21228 = vmatprep.mubr.msk.f32.mxu1 %vm24809_vm0, %v29206_v52  ;;  %v23464_v3 = vpack.c.bf16 %v4488_v33, %v4481_v9 }
 0x435   : > { %v4494_v17 = vsub.f32 %v25708_v39, %v29066_v61 }
 0x436   : > { %23369 = vmatpush3.bf16.msra.mxu0 %v29216_v18  ;;  %23447 = vmatpush3.bf16.msra.mxu1 %v25629_v14  ;;  %v4501_v18 = vsub.f32 %v25713_v22, %v29063_v28 }
 0x437   : > { %23370 = vmatprep.subr.bf16.mxu0 %v29207_v21  ;;  %23448 = vmatprep.subr.bf16.mxu1 %v29207_v21 }
 0x438   : > { %v4502_v11 = vand.u32 4294901760, %v4501_v18 }
 0x439   : > { %21094 = vmatmul.mubr.f32.vlgmr.msra.gmra.mrb[16].mxu0 %v25588_v13  ;;  %v29217_v13 = vand.u32 4294901760, %v25634_v60  ;;  %v29219_v60 = vand.u32 4294901760, %v25664_v25 }
 0x43a   : > { %23372 = vmatpush3.bf16.msra.mxu0 %v25434_v32  ;;  %23450 = vmatpush3.bf16.msra.mxu1 %v25657_v59  ;;  %v4495_v32 = vand.u32 4294901760, %v4494_v17  ;;  %v4909_v17 = vand.u32 4294901760, %v25792_v0 }
 0x43b   : > { %23373 = vmatprep.subr.bf16.mxu0 %v29207_v21  ;;  %23460 = vmatprep.subr.bf16.mxu1 %v29207_v21 }
 0x43c   : > { %21108 = vmatprep.mubr.msk.f32.mxu0 %vm24809_vm0, %v29206_v52  ;;  %v23467_v26 = vpack.c.bf16 %v4502_v11, %v4495_v32  ;;  %v25828_v32 = vld [vmem:[%s24865_s8 + $0xb8] sm:$0xff]  ;;  %v25838_v11 = vsub.f32 %v25792_v0, %v4909_v17 }
 0x43d   : > { %21229 = vmatmul.mubr.f32.vlgmr.msra.gmra.mrb[14].mxu1 %v25241_v34 }
 0x43e   : > { %23375 = vmatpush3.bf16.msra.mxu0 %v25446_v24  ;;  %23462 = vmatpush3.bf16.msra.mxu1 %v23461_v62  ;;  %v4379_v24 = vsel %vm2140_vm4, %v25572_v1, 0  ;;  %v25770_v62 = vld [vmem:[%s24865_s8 + $0x98] sm:$0xff]  ;;  %v4903_v1 = vand.u32 4294901760, %v25767_v35 }
 0x43f   : > { %23376 = vmatprep.subr.bf16.mxu0 %v29207_v21  ;;  %23463 = vmatprep.subr.bf16.mxu1 %v29207_v21  ;;  %v25772_v9 = vand.u32 4294901760, %v4379_v24 }
 0x440   : > { %21258 = vmatprep.mubr.msk.f32.mxu1 %vm24809_vm0, %v29206_v52 }
 0x442   : > { %23378 = vmatpush3.bf16.msra.mxu0 %v25458_v42  ;;  %23465 = vmatpush3.bf16.msra.mxu1 %v23464_v3  ;;  %v25764_v42 = vpack.c.bf16 %v4385_v47, %v4382_v41  ;;  %v25795_v41 = vld [vmem:[%s24865_s8 + $0xa8] sm:$0xff]  ;;  %v25820_v3 = vsub.f32 %v4379_v24, %v25772_v9  ;;  %v29070_v24 = vand.u32 4294901760, %v25828_v32 }
 0x443   : > { %23379 = vmatprep.subr.bf16.mxu0 %v29207_v21  ;;  %23466 = vmatprep.subr.bf16.mxu1 %v29207_v21  ;;  %v4912_v18 = vand.u32 4294901760, %v25795_v41 }
 0x445   : > { %21109 = vmatmul.mubr.f32.vlgmr.msra.gmra.mrb[18].mxu0 %v3423_v63  ;;  %v29218_v63 = vand.u32 4294901760, %v25637_v19  ;;  %v29220_v19 = vand.u32 4294901760, %v25667_v51 }
 0x446   : > { %23381 = vmatpush3.bf16.msra.mxu0 %v25492_v40  ;;  %23468 = vmatpush3.bf16.msra.mxu1 %v23467_v26  ;;  %v4906_v40 = vand.u32 4294901760, %v25770_v62  ;;  %v25843_v26 = vsub.f32 %v25795_v41, %v4912_v18  ;;  %v29228_v41 = vand.u32 4294901760, %v25828_v32 }
 0x447   : > { %23382 = vmatprep.subr.bf16.mxu0 %v29207_v21  ;;  %23478 = vmatprep.subr.bf16.mxu1 %v29207_v21  ;;  %v25787_v38 = vpack.c.bf16 %v29218_v63, %v29217_v13  ;;  %v25815_v33 = vpack.c.bf16 %v29220_v19, %v29219_v60  ;;  %v29071_v60 = vand.u32 4294901760, %v25838_v11 }
 0x448   : > { %21123 = vmatprep.mubr.msk.f32.mxu0 %vm24809_vm0, %v29206_v52  ;;  %v25807_v47 = vsub.f32 %v25770_v62, %v4906_v40  ;;  %v29072_v19 = vand.u32 4294901760, %v25843_v26  ;;  %v29226_v62 = vand.u32 4294901760, %v25562_v15 }
 0x449   : > { %21259 = vmatmul.mubr.f32.vlgmr.msra.gmra.mrb[16].mxu1 %v25772_v9  ;;  %v5001_v5 = vsub.f32 %v25838_v11, %v29071_v60 }
 0x44a   : > { %23384 = vmatpush3.bf16.msra.mxu0 %v25494_v45  ;;  %23480 = vmatpush3.bf16.msra.mxu1 %v25764_v42  ;;  %v25802_v45 = vsub.f32 %v25767_v35, %v4903_v1  ;;  %v29065_v51 = vand.u32 4294901760, %v25807_v47  ;;  %v5008_v49 = vsub.f32 %v25843_v26, %v29072_v19  ;;  %v29225_v35 = vand.u32 4294901760, %v25557_v2 }
 0x44b   : > { %23385 = vmatprep.subr.bf16.mxu0 %v29207_v21  ;;  %23481 = vmatprep.subr.bf16.mxu1 %v29207_v21 }
 0x44c   : > { %21288 = vmatprep.mubr.msk.f32.mxu1 %vm24809_vm0, %v29206_v52  ;;  %v29064_v25 = vand.u32 4294901760, %v25802_v45  ;;  %v4994_v63 = vsub.f32 %v25807_v47, %v29065_v51  ;;  %v5009_v60 = vand.u32 4294901760, %v5008_v49 }
 0x44e   : > { %23387 = vmatpush3.bf16.msra.mxu0 %v25496_v46  ;;  %23483 = vmatpush3.bf16.msra.mxu1 %v25787_v38  ;;  %v25825_v46 = vld [vmem:[%s24865_s8 + $0xb0] sm:$0xff]  ;;  %v4987_v13 = vsub.f32 %v25802_v45, %v29064_v25  ;;  %v25872_v25 = vsub.f32 %v25828_v32, %v29070_v24  ;;  %v4995_v61 = vand.u32 4294901760, %v4994_v63  ;;  %v5002_v63 = vand.u32 4294901760, %v5001_v5 }
 0x44f   : > { %23397 = vmatprep.subr.bf16.mxu0 %v29207_v21  ;;  %23484 = vmatprep.subr.bf16.mxu1 %v29207_v21  ;;  %v29227_v0 = vand.u32 4294901760, %v25825_v46 }
 0x450   : > { %v4988_v51 = vand.u32 4294901760, %v4987_v13  ;;  %v29076_v24 = vand.u32 4294901760, %v25872_v25  ;;  %v23518_v49 = vpack.c.bf16 %v5009_v60, %v5002_v63  ;;  %v29223_v60 = vand.u32 4294901760, %v25535_v36  ;;  %v25933_v63 = vld [vmem:[%s24865_s8 + $0xc0] sm:$0xff] }
 0x451   : > { %21124 = vmatmul.mubr.f32.vlgmr.msra.gmra.mrb[20].mxu0 %v25581_v57  ;;  %v29073_v57 = vand.u32 4294901760, %v25825_v46 }
 0x452   : > { %23399 = vmatpush3.bf16.msra.mxu0 %v25608_v7  ;;  %23486 = vmatpush3.bf16.msra.mxu1 %v25815_v33  ;;  %v29069_v7 = vand.u32 4294901760, %v25820_v3  ;;  %v23515_v13 = vpack.c.bf16 %v4995_v61, %v4988_v51  ;;  %v29221_v51 = vand.u32 4294901760, %v25515_v44 }
 0x453   : > { %23400 = vmatprep.subr.bf16.mxu0 %v29207_v21  ;;  %23496 = vmatprep.subr.bf16.mxu1 %v29207_v21  ;;  %v25867_v28 = vsub.f32 %v25825_v46, %v29073_v57  ;;  %v5022_v57 = vsub.f32 %v25872_v25, %v29076_v24 }
 0x454   : > { %21153 = vmatprep.mubr.msk.f32.mxu0 %vm24809_vm0, %v29206_v52 }
 0x455   : > { %21289 = vmatmul.mubr.f32.vlgmr.msra.gmra.mrb[18].mxu1 %v29069_v7  ;;  %v29077_v7 = vand.u32 4294901760, %v25867_v28  ;;  %v5023_v61 = vand.u32 4294901760, %v5022_v57  ;;  %v4900_v57 = vsel %vm2140_vm4, %v25585_v43, 0  ;;  %v25936_v43 = vld [vmem:[%s24865_s8 + $0xc8] sm:$0xff] }
 0x456   : > { %23402 = vmatpush3.bf16.msra.mxu0 %v25629_v14  ;;  %23498 = vmatpush3.bf16.msra.mxu1 %v25764_v42  ;;  %v23416_v14 = vpack.c.bf16 %v25520_v55, %v25515_v44 }
 0x457   : > { %23403 = vmatprep.subr.bf16.mxu0 %v29207_v21  ;;  %23499 = vmatprep.subr.bf16.mxu1 %v29207_v21  ;;  %v5015_v19 = vsub.f32 %v25867_v28, %v29077_v7 }
 0x458   : > { %21318 = vmatprep.mubr.msk.f32.mxu1 %vm24809_vm0, %v29206_v52 }
 0x459   : > { %v5016_v5 = vand.u32 4294901760, %v5015_v19  ;;  %v29224_v19 = vand.u32 4294901760, %v25540_v20 }
 0x45a   : > { %23405 = vmatpush3.bf16.msra.mxu0 %v25657_v59  ;;  %23501 = vmatpush3.bf16.msra.mxu1 %v25787_v38  ;;  %v23419_v59 = vpack.c.bf16 %v25540_v20, %v25535_v36  ;;  %v5424_v36 = vand.u32 4294901760, %v25933_v63  ;;  %v5427_v20 = vand.u32 4294901760, %v25936_v43 }
 0x45b   : > { %23415 = vmatprep.subr.bf16.mxu0 %v29207_v21  ;;  %23502 = vmatprep.subr.bf16.mxu1 %v29207_v21  ;;  %v23437_v44 = vpack.c.bf16 %v29224_v19, %v29223_v60 }
 0x45d   : > { %21154 = vmatmul.mubr.f32.vlgmr.msra.gmra.mrb[22].mxu0 %v25263_v50  ;;  %v23422_v50 = vpack.c.bf16 %v25562_v15, %v25557_v2  ;;  %v25971_v2 = vsub.f32 %v25933_v63, %v5424_v36  ;;  %v25976_v15 = vsub.f32 %v25936_v43, %v5427_v20  ;;  %v29234_v63 = vand.u32 4294901760, %v25708_v39 }
 0x45e   : > { %23417 = vmatpush3.bf16.msra.mxu0 %v23416_v14  ;;  %23504 = vmatpush3.bf16.msra.mxu1 %v25815_v33  ;;  %v29222_v14 = vand.u32 4294901760, %v25520_v55  ;;  %v25930_v55 = vpack.c.bf16 %v4906_v40, %v4903_v1  ;;  %v23440_v1 = vpack.c.bf16 %v29226_v62, %v29225_v35  ;;  %v25956_v40 = vpack.c.bf16 %v4912_v18, %v4909_v17 }
 0x45f   : > { %23418 = vmatprep.subr.bf16.mxu0 %v29207_v21  ;;  %23514 = vmatprep.subr.bf16.mxu1 %v29207_v21  ;;  %v25983_v17 = vpack.c.bf16 %v29228_v41, %v29227_v0  ;;  %v29075_v46 = vand.u32 4294901760, %v25971_v2  ;;  %v29074_v32 = vand.u32 4294901760, %v25976_v15  ;;  %v23470_v41 = vpack.c.bf16 %v25649_v12, %v25644_v30 }
 0x460   : > { %21183 = vmatprep.mubr.msk.f32.mxu0 %vm24809_vm0, %v29206_v52  ;;  %v29235_v43 = vand.u32 4294901760, %v25713_v22 }
 0x461   : > { %21319 = vmatmul.mubr.f32.vlgmr.msra.gmra.mrb[20].mxu1 %v25772_v9  ;;  %v5508_v60 = vsub.f32 %v25971_v2, %v29075_v46  ;;  %v5515_v19 = vsub.f32 %v25976_v15, %v29074_v32 }
 0x462   : > { %23420 = vmatpush3.bf16.msra.mxu0 %v23419_v59  ;;  %23516 = vmatpush3.bf16.msra.mxu1 %v23515_v13  ;;  %v23434_v59 = vpack.c.bf16 %v29222_v14, %v29221_v51  ;;  %v23521_v13 = vpack.c.bf16 %v5023_v61, %v5016_v5  ;;  %v25993_v51 = vld [vmem:[%s24865_s8 + $0xe0] sm:$0xff]  ;;  %v25996_v14 = vld [vmem:[%s24865_s8 + $0xe8] sm:$0xff] }
 0x463   : > { %23421 = vmatprep.subr.bf16.mxu0 %v29207_v21  ;;  %23517 = vmatprep.subr.bf16.mxu1 %v29207_v21  ;;  %v5509_v32 = vand.u32 4294901760, %v5508_v60  ;;  %v5516_v46 = vand.u32 4294901760, %v5515_v19 }
 0x464   : > { %21348 = vmatprep.mubr.msk.f32.mxu1 %vm24809_vm0, %v29206_v52 }
 0x465   : > { %v23569_v60 = vpack.c.bf16 %v5516_v46, %v5509_v32 }
 0x466   : > { %23423 = vmatpush3.bf16.msra.mxu0 %v23422_v50  ;;  %23519 = vmatpush3.bf16.msra.mxu1 %v23518_v49  ;;  %v25961_v50 = vld [vmem:[%s24865_s8 + $0xd0] sm:$0xff]  ;;  %v25964_v49 = vld [vmem:[%s24865_s8 + $0xd8] sm:$0xff] }
 0x467   : > { %23433 = vmatprep.subr.bf16.mxu0 %v29207_v21  ;;  %23520 = vmatprep.subr.bf16.mxu1 %v29207_v21  ;;  %v5430_v18 = vand.u32 4294901760, %v25961_v50  ;;  %v5433_v5 = vand.u32 4294901760, %v25964_v49 }
 0x469   : > { %21184 = vmatmul.mubr.f32.vlgmr.msra.gmra.mrb[24].mxu0 %v25246_v37  ;;  %v25938_v37 = vand.u32 4294901760, %v4900_v57 }
 0x46a   : > { %23435 = vmatpush3.bf16.msra.mxu0 %v23434_v59  ;;  %23522 = vmatpush3.bf16.msra.mxu1 %v23521_v13  ;;  %v26006_v59 = vsub.f32 %v25961_v50, %v5430_v18  ;;  %v26011_v13 = vsub.f32 %v25964_v49, %v5433_v5  ;;  %v29236_v50 = vand.u32 4294901760, %v25996_v14 }
 0x46b   : > { %23436 = vmatprep.subr.bf16.mxu0 %v29207_v21  ;;  %23532 = vmatprep.subr.bf16.mxu1 %v29207_v21  ;;  %v25988_v61 = vsub.f32 %v4900_v57, %v25938_v37  ;;  %v29079_v57 = vand.u32 4294901760, %v25996_v14 }
 0x46c   : > { %21213 = vmatprep.mubr.msk.f32.mxu0 %vm24809_vm0, %v29206_v52  ;;  %v29081_v35 = vand.u32 4294901760, %v26011_v13 }
 0x46d   : > { %21349 = vmatmul.mubr.f32.vlgmr.msra.gmra.mrb[22].mxu1 %v25938_v37 }
 0x46e   : > { %23438 = vmatpush3.bf16.msra.mxu0 %v23437_v44  ;;  %23534 = vmatpush3.bf16.msra.mxu1 %v25930_v55  ;;  %v29080_v44 = vand.u32 4294901760, %v26006_v59 }
 0x46f   : > { %23439 = vmatprep.subr.bf16.mxu0 %v29207_v21  ;;  %23535 = vmatprep.subr.bf16.mxu1 %v29207_v21 }
 0x470   : > { %21378 = vmatprep.mubr.msk.f32.mxu1 %vm24809_vm0, %v29206_v52  ;;  %v5522_v24 = vsub.f32 %v26006_v59, %v29080_v44 }
 0x472   : > { %23441 = vmatpush3.bf16.msra.mxu0 %v23440_v1  ;;  %23537 = vmatpush3.bf16.msra.mxu1 %v25956_v40  ;;  %v26040_v1 = vsub.f32 %v25996_v14, %v29079_v57  ;;  %v5523_v19 = vand.u32 4294901760, %v5522_v24  ;;  %v23476_v24 = vpack.c.bf16 %v25713_v22, %v25708_v39 }
 0x473   : > { %23451 = vmatprep.subr.bf16.mxu0 %v29207_v21  ;;  %23538 = vmatprep.subr.bf16.mxu1 %v29207_v21 }
 0x475   : > { %21214 = vmatmul.mubr.f32.vlgmr.msra.gmra.mrb[26].mxu0 %v25241_v34  ;;  %v5436_v34 = vand.u32 4294901760, %v25993_v51 }
 0x476   : > { %23453 = vmatpush3.bf16.msra.mxu0 %v25764_v42  ;;  %23540 = vmatpush3.bf16.msra.mxu1 %v25983_v17  ;;  %v29078_v42 = vand.u32 4294901760, %v25988_v61 }
 0x477   : > { %23454 = vmatprep.subr.bf16.mxu0 %v29207_v21  ;;  %23550 = vmatprep.subr.bf16.mxu1 %v29207_v21  ;;  %v26035_v62 = vsub.f32 %v25993_v51, %v5436_v34  ;;  %v26153_v49 = vpack.c.bf16 %v29236_v50, %v5436_v34 }
 0x478   : > { %21243 = vmatprep.mubr.msk.f32.mxu0 %vm24809_vm0, %v29206_v52 }
 0x479   : > { %21379 = vmatmul.mubr.f32.vlgmr.msra.gmra.mrb[24].mxu1 %v29078_v42  ;;  %v29085_v7 = vand.u32 4294901760, %v26035_v62  ;;  %v29084_v42 = vand.u32 4294901760, %v26040_v1 }
 0x47a   : > { %23456 = vmatpush3.bf16.msra.mxu0 %v25787_v38  ;;  %23552 = vmatpush3.bf16.msra.mxu1 %v25930_v55  ;;  %v29229_v38 = vand.u32 4294901760, %v25820_v3 }
 0x47b   : > { %23457 = vmatprep.subr.bf16.mxu0 %v29207_v21  ;;  %23553 = vmatprep.subr.bf16.mxu1 %v29207_v21 }
 0x47c   : > { %v4455_v0 = vsub.f32 %v25820_v3, %v29229_v38  ;;  %21408 = vmatprep.mubr.msk.f32.mxu1 %vm24809_vm0, %v29206_v52  ;;  %v5529_v38 = vsub.f32 %v26011_v13, %v29081_v35  ;;  %v5536_v35 = vsub.f32 %v26035_v62, %v29085_v7 }
 0x47e   : > { %23459 = vmatpush3.bf16.msra.mxu0 %v25815_v33  ;;  %23555 = vmatpush3.bf16.msra.mxu1 %v25956_v40  ;;  %v4456_v57 = vand.u32 4294901760, %v4455_v0  ;;  %v23473_v33 = vpack.c.bf16 %v25684_v31, %v25679_v4  ;;  %v5530_v44 = vand.u32 4294901760, %v5529_v38  ;;  %v5543_v0 = vsub.f32 %v26040_v1, %v29084_v42 }
 0x47f   : > { %23469 = vmatprep.subr.bf16.mxu0 %v29207_v21  ;;  %23556 = vmatprep.subr.bf16.mxu1 %v29207_v21  ;;  %v5537_v32 = vand.u32 4294901760, %v5536_v35  ;;  %v29231_v38 = vand.u32 4294901760, %v25649_v12  ;;  %v29232_v35 = vand.u32 4294901760, %v25679_v4  ;;  %v26100_v12 = vpack.c.bf16 %v5427_v20, %v5424_v36 }
 0x480   : > { %v23572_v46 = vpack.c.bf16 %v5530_v44, %v5523_v19  ;;  %v5421_v44 = vsel %vm2140_vm4, %v25583_v53, 0  ;;  %v29233_v19 = vand.u32 4294901760, %v25684_v31  ;;  %v26106_v53 = vld [vmem:[%s24865_s8 + $0xf8] sm:$0xff]  ;;  %v23494_v36 = vpack.c.bf16 %v29235_v43, %v29234_v63 }
 0x481   : > { %21244 = vmatmul.mubr.f32.vlgmr.msra.gmra.mrb[28].mxu0 %v4456_v57  ;;  %v5544_v57 = vand.u32 4294901760, %v5543_v0  ;;  %v26103_v0 = vld [vmem:[%s24865_s8 + $0xf0] sm:$0xff]  ;;  %v5948_v31 = vand.u32 4294901760, %v26106_v53  ;;  %v26126_v20 = vpack.c.bf16 %v5433_v5, %v5430_v18 }
 0x482   : > { %23471 = vmatpush3.bf16.msra.mxu0 %v23470_v41  ;;  %23558 = vmatpush3.bf16.msra.mxu1 %v25983_v17  ;;  %v29230_v41 = vand.u32 4294901760, %v25644_v30  ;;  %v23491_v30 = vpack.c.bf16 %v29233_v19, %v29232_v35  ;;  %v5945_v4 = vand.u32 4294901760, %v26103_v0 }
 0x483   : > { %23472 = vmatprep.subr.bf16.mxu0 %v29207_v21  ;;  %23568 = vmatprep.subr.bf16.mxu1 %v29207_v21  ;;  %v26146_v39 = vsub.f32 %v26106_v53, %v5948_v31  ;;  %v29243_v53 = vand.u32 4294901760, %v25872_v25 }
 0x484   : > { %21273 = vmatprep.mubr.msk.f32.mxu0 %vm24809_vm0, %v29206_v52  ;;  %v26141_v22 = vsub.f32 %v26103_v0, %v5945_v4  ;;  %v29242_v0 = vand.u32 4294901760, %v25867_v28 }
 0x485   : > { %21409 = vmatmul.mubr.f32.vlgmr.msra.gmra.mrb[26].mxu1 %v25938_v37  ;;  %v29082_v14 = vand.u32 4294901760, %v26146_v39 }
 0x486   : > { %23474 = vmatpush3.bf16.msra.mxu0 %v23473_v33  ;;  %23570 = vmatpush3.bf16.msra.mxu1 %v23569_v60  ;;  %v23488_v33 = vpack.c.bf16 %v29231_v38, %v29230_v41  ;;  %v23575_v60 = vpack.c.bf16 %v5544_v57, %v5537_v32  ;;  %v26163_v57 = vld [vmem:[%s24865_s8 + $0x110] sm:$0xff]  ;;  %v26166_v41 = vld [vmem:[%s24865_s8 + $0x118] sm:$0xff]  ;;  %v29083_v51 = vand.u32 4294901760, %v26141_v22 }
 0x487   : > { %23475 = vmatprep.subr.bf16.mxu0 %v29207_v21  ;;  %23571 = vmatprep.subr.bf16.mxu1 %v29207_v21 }
 0x488   : > { %21438 = vmatprep.mubr.msk.f32.mxu1 %vm24809_vm0, %v29206_v52 }
 0x48a   : > { %23477 = vmatpush3.bf16.msra.mxu0 %v23476_v24  ;;  %23573 = vmatpush3.bf16.msra.mxu1 %v23572_v46  ;;  %v26131_v24 = vld [vmem:[%s24865_s8 + $0x100] sm:$0xff]  ;;  %v26134_v46 = vld [vmem:[%s24865_s8 + $0x108] sm:$0xff] }
 0x48b   : > { %23487 = vmatprep.subr.bf16.mxu0 %v29207_v21  ;;  %23574 = vmatprep.subr.bf16.mxu1 %v29207_v21  ;;  %v5951_v18 = vand.u32 4294901760, %v26131_v24  ;;  %v5954_v5 = vand.u32 4294901760, %v26134_v46 }
 0x48d   : > { %21274 = vmatmul.mubr.f32.vlgmr.msra.gmra.mrb[30].mxu0 %v25820_v3  ;;  %v26108_v3 = vand.u32 4294901760, %v5421_v44  ;;  %v26176_v34 = vsub.f32 %v26131_v24, %v5951_v18  ;;  %v26181_v38 = vsub.f32 %v26134_v46, %v5954_v5 }
 0x48e   : > { %23489 = vmatpush3.bf16.msra.mxu0 %v23488_v33  ;;  %23576 = vmatpush3.bf16.msra.mxu1 %v23575_v60  ;;  %v5960_v33 = vand.u32 4294901760, %v26166_v41  ;;  %v6029_v60 = vsub.f32 %v26141_v22, %v29083_v51 }
 0x48f   : > { %23490 = vmatprep.subr.bf16.mxu0 %v29207_v21  ;;  %23586 = vmatprep.subr.bf16.mxu1 %v29207_v21  ;;  %v26158_v32 = vsub.f32 %v5421_v44, %v26108_v3  ;;  %v6036_v44 = vsub.f32 %v26146_v39, %v29082_v14  ;;  %v29087_v35 = vand.u32 4294901760, %v26176_v34  ;;  %v29088_v19 = vand.u32 4294901760, %v26181_v38 }
 0x490   : > { %21303 = vmatprep.mubr.msk.f32.mxu0 %vm24809_vm0, %v29206_v52  ;;  %v26210_v63 = vsub.f32 %v26166_v41, %v5960_v33  ;;  %v6030_v50 = vand.u32 4294901760, %v6029_v60 }
 0x491   : > { %21439 = vmatmul.mubr.f32.vlgmr.msra.gmra.mrb[28].mxu1 %v26108_v3  ;;  %v6037_v14 = vand.u32 4294901760, %v6036_v44  ;;  %v6043_v51 = vsub.f32 %v26176_v34, %v29087_v35 }
 0x492   : > { %23492 = vmatpush3.bf16.msra.mxu0 %v23491_v30  ;;  %23588 = vmatpush3.bf16.msra.mxu1 %v26100_v12  ;;  %v29091_v7 = vand.u32 4294901760, %v26210_v63 }
 0x493   : > { %23493 = vmatprep.subr.bf16.mxu0 %v29207_v21  ;;  %23589 = vmatprep.subr.bf16.mxu1 %v29207_v21  ;;  %v23623_v60 = vpack.c.bf16 %v6037_v14, %v6030_v50  ;;  %v6044_v44 = vand.u32 4294901760, %v6043_v51  ;;  %v23530_v51 = vpack.c.bf16 %v25872_v25, %v25867_v28  ;;  %v29238_v50 = vand.u32 4294901760, %v25802_v45 }
 0x494   : > { %21468 = vmatprep.mubr.msk.f32.mxu1 %vm24809_vm0, %v29206_v52 }
 0x496   : > { %23495 = vmatpush3.bf16.msra.mxu0 %v23494_v36  ;;  %23591 = vmatpush3.bf16.msra.mxu1 %v26126_v20  ;;  %v23524_v36 = vpack.c.bf16 %v25807_v47, %v25802_v45 }
 0x497   : > { %23505 = vmatprep.subr.bf16.mxu0 %v29207_v21  ;;  %23592 = vmatprep.subr.bf16.mxu1 %v29207_v21 }
 0x499   : > { %21304 = vmatmul.mubr.f32.vlgmr.msra.gmra.mrb[32].mxu0 %v25772_v9  ;;  %v5957_v9 = vand.u32 4294901760, %v26163_v57 }
 0x49a   : > { %23507 = vmatpush3.bf16.msra.mxu0 %v25930_v55  ;;  %23594 = vmatpush3.bf16.msra.mxu1 %v26153_v49  ;;  %v29086_v55 = vand.u32 4294901760, %v26158_v32 }
 0x49b   : > { %23508 = vmatprep.subr.bf16.mxu0 %v29207_v21  ;;  %23604 = vmatprep.subr.bf16.mxu1 %v29207_v21  ;;  %v26205_v30 = vsub.f32 %v26163_v57, %v5957_v9  ;;  %v26323_v24 = vpack.c.bf16 %v5960_v33, %v5957_v9 }
 0x49c   : > { %21333 = vmatprep.mubr.msk.f32.mxu0 %vm24809_vm0, %v29206_v52 }
 0x49d   : > { %21469 = vmatmul.mubr.f32.vlgmr.msra.gmra.mrb[30].mxu1 %v29086_v55  ;;  %v29092_v42 = vand.u32 4294901760, %v26205_v30 }
 0x49e   : > { %23510 = vmatpush3.bf16.msra.mxu0 %v25956_v40  ;;  %23606 = vmatpush3.bf16.msra.mxu1 %v26100_v12  ;;  %v29237_v40 = vand.u32 4294901760, %v25988_v61 }
 0x49f   : > { %23511 = vmatprep.subr.bf16.mxu0 %v29207_v21  ;;  %23607 = vmatprep.subr.bf16.mxu1 %v29207_v21 }
 0x4a0   : > { %v4976_v43 = vsub.f32 %v25988_v61, %v29237_v40  ;;  %21498 = vmatprep.mubr.msk.f32.mxu1 %vm24809_vm0, %v29206_v52  ;;  %v6050_v40 = vsub.f32 %v26181_v38, %v29088_v19  ;;  %v6057_v19 = vsub.f32 %v26205_v30, %v29092_v42 }
 0x4a2   : > { %23513 = vmatpush3.bf16.msra.mxu0 %v25983_v17  ;;  %23609 = vmatpush3.bf16.msra.mxu1 %v26126_v20  ;;  %v4977_v55 = vand.u32 4294901760, %v4976_v43  ;;  %v23527_v17 = vpack.c.bf16 %v25843_v26, %v25838_v11  ;;  %v6051_v35 = vand.u32 4294901760, %v6050_v40  ;;  %v6064_v43 = vsub.f32 %v26210_v63, %v29091_v7 }
 0x4a3   : > { %23523 = vmatprep.subr.bf16.mxu0 %v29207_v21  ;;  %23610 = vmatprep.subr.bf16.mxu1 %v29207_v21  ;;  %v29239_v40 = vand.u32 4294901760, %v25807_v47  ;;  %v26270_v47 = vpack.c.bf16 %v5948_v31, %v5945_v4  ;;  %v23548_v4 = vpack.c.bf16 %v29243_v53, %v29242_v0  ;;  %v26296_v31 = vpack.c.bf16 %v5954_v5, %v5951_v18 }
 0x4a4   : > { %v23626_v14 = vpack.c.bf16 %v6051_v35, %v6044_v44  ;;  %v5942_v35 = vsel %vm2140_vm4, %v25597_v56, 0  ;;  %v29241_v44 = vand.u32 4294901760, %v25843_v26  ;;  %v26276_v56 = vld [vmem:[%s24865_s8 + $0x128] sm:$0xff]  ;;  %v23578_v0 = vpack.c.bf16 %v25976_v15, %v25971_v2 }
 0x4a5   : > { %21334 = vmatmul.mubr.f32.vlgmr.msra.gmra.mrb[34].mxu0 %v4977_v55  ;;  %v6058_v55 = vand.u32 4294901760, %v6057_v19  ;;  %v29240_v19 = vand.u32 4294901760, %v25838_v11  ;;  %v6469_v26 = vand.u32 4294901760, %v26276_v56 }
 0x4a6   : > { %23525 = vmatpush3.bf16.msra.mxu0 %v23524_v36  ;;  %23612 = vmatpush3.bf16.msra.mxu1 %v26153_v49  ;;  %v6065_v36 = vand.u32 4294901760, %v6064_v43  ;;  %v26273_v43 = vld [vmem:[%s24865_s8 + $0x120] sm:$0xff] }
 0x4a7   : > { %23526 = vmatprep.subr.bf16.mxu0 %v29207_v21  ;;  %23622 = vmatprep.subr.bf16.mxu1 %v29207_v21  ;;  %v23545_v45 = vpack.c.bf16 %v29241_v44, %v29240_v19  ;;  %v6466_v11 = vand.u32 4294901760, %v26273_v43  ;;  %v26316_v25 = vsub.f32 %v26276_v56, %v6469_v26 }
 0x4a8   : > { %21363 = vmatprep.mubr.msk.f32.mxu0 %vm24809_vm0, %v29206_v52 }
 0x4a9   : > { %21499 = vmatmul.mubr.f32.vlgmr.msra.gmra.mrb[32].mxu1 %v26108_v3  ;;  %v26311_v28 = vsub.f32 %v26273_v43, %v6466_v11  ;;  %v29089_v41 = vand.u32 4294901760, %v26316_v25 }
 0x4aa   : > { %23528 = vmatpush3.bf16.msra.mxu0 %v23527_v17  ;;  %23624 = vmatpush3.bf16.msra.mxu1 %v23623_v60  ;;  %v23542_v17 = vpack.c.bf16 %v29239_v40, %v29238_v50  ;;  %v23629_v60 = vpack.c.bf16 %v6065_v36, %v6058_v55  ;;  %v26333_v55 = vld [vmem:[%s24865_s8 + $0x140] sm:$0xff]  ;;  %v26336_v36 = vld [vmem:[%s24865_s8 + $0x148] sm:$0xff] }
 0x4ab   : > { %23529 = vmatprep.subr.bf16.mxu0 %v29207_v21  ;;  %23625 = vmatprep.subr.bf16.mxu1 %v29207_v21  ;;  %v29090_v57 = vand.u32 4294901760, %v26311_v28  ;;  %v6481_v50 = vand.u32 4294901760, %v26336_v36 }
 0x4ac   : > { %21528 = vmatprep.mubr.msk.f32.mxu1 %vm24809_vm0, %v29206_v52 }
 0x4ad   : > { %v6550_v40 = vsub.f32 %v26311_v28, %v29090_v57  ;;  %v26380_v44 = vsub.f32 %v26336_v36, %v6481_v50 }
 0x4ae   : > { %23531 = vmatpush3.bf16.msra.mxu0 %v23530_v51  ;;  %23627 = vmatpush3.bf16.msra.mxu1 %v23626_v14  ;;  %v26301_v51 = vld [vmem:[%s24865_s8 + $0x130] sm:$0xff]  ;;  %v26304_v14 = vld [vmem:[%s24865_s8 + $0x138] sm:$0xff] }
 0x4af   : > { %23541 = vmatprep.subr.bf16.mxu0 %v29207_v21  ;;  %23628 = vmatprep.subr.bf16.mxu1 %v29207_v21  ;;  %v6472_v46 = vand.u32 4294901760, %v26301_v51  ;;  %v6475_v18 = vand.u32 4294901760, %v26304_v14  ;;  %v6551_v53 = vand.u32 4294901760, %v6550_v40  ;;  %v6584_v7 = vand.u32 4294901760, %v26380_v44 }
 0x4b1   : > { %21364 = vmatmul.mubr.f32.vlgmr.msra.gmra.mrb[36].mxu0 %v25988_v61  ;;  %v26278_v61 = vand.u32 4294901760, %v5942_v35  ;;  %v26346_v9 = vsub.f32 %v26301_v51, %v6472_v46  ;;  %v26351_v33 = vsub.f32 %v26304_v14, %v6475_v18  ;;  %v23638_v51 = vpack.c.bf16 %v26210_v63, %v26205_v30 }
 0x4b2   : > { %23543 = vmatpush3.bf16.msra.mxu0 %v23542_v17  ;;  %23630 = vmatpush3.bf16.msra.mxu1 %v23629_v60  ;;  %v6557_v17 = vsub.f32 %v26316_v25, %v29089_v41 }
 0x4b3   : > { %23544 = vmatprep.subr.bf16.mxu0 %v29207_v21  ;;  %23640 = vmatprep.subr.bf16.mxu1 %v29207_v21  ;;  %v26328_v5 = vsub.f32 %v5942_v35, %v26278_v61  ;;  %v29093_v60 = vand.u32 4294901760, %v26346_v9  ;;  %v29094_v35 = vand.u32 4294901760, %v26351_v33 }
 0x4b4   : > { %21393 = vmatprep.mubr.msk.f32.mxu0 %vm24809_vm0, %v29206_v52 }
 0x4b5   : > { %21529 = vmatmul.mubr.f32.vlgmr.msra.gmra.mrb[34].mxu1 %v26278_v61  ;;  %v6564_v41 = vsub.f32 %v26346_v9, %v29093_v60 }
 0x4b6   : > { %23546 = vmatpush3.bf16.msra.mxu0 %v23545_v45  ;;  %23642 = vmatpush3.bf16.msra.mxu1 %v26270_v47 }
 0x4b7   : > { %23547 = vmatprep.subr.bf16.mxu0 %v29207_v21  ;;  %23643 = vmatprep.subr.bf16.mxu1 %v29207_v21 }
 0x4b8   : > { %21558 = vmatprep.mubr.msk.f32.mxu1 %vm24809_vm0, %v29206_v52 }
 0x4ba   : > { %23549 = vmatpush3.bf16.msra.mxu0 %v23548_v4  ;;  %23645 = vmatpush3.bf16.msra.mxu1 %v26296_v31  ;;  %v6558_v4 = vand.u32 4294901760, %v6557_v17  ;;  %v6565_v17 = vand.u32 4294901760, %v6564_v41 }
 0x4bb   : > { %23559 = vmatprep.subr.bf16.mxu0 %v29207_v21  ;;  %23646 = vmatprep.subr.bf16.mxu1 %v29207_v21 }
 0x4bc   : > { %v23677_v40 = vpack.c.bf16 %v6558_v4, %v6551_v53  ;;  %v29245_v4 = vand.u32 4294901760, %v25971_v2 }
 0x4bd   : > { %21394 = vmatmul.mubr.f32.vlgmr.msra.gmra.mrb[38].mxu0 %v25938_v37  ;;  %v6478_v37 = vand.u32 4294901760, %v26333_v55 }
 0x4be   : > { %23561 = vmatpush3.bf16.msra.mxu0 %v26100_v12  ;;  %23648 = vmatpush3.bf16.msra.mxu1 %v26323_v24  ;;  %v6017_v12 = vand.u32 4294901760, %v26328_v5 }
 0x4bf   : > { %23562 = vmatprep.subr.bf16.mxu0 %v29207_v21  ;;  %23658 = vmatprep.subr.bf16.mxu1 %v29207_v21  ;;  %v26375_v19 = vsub.f32 %v26333_v55, %v6478_v37 }
 0x4c0   : > { %21423 = vmatprep.mubr.msk.f32.mxu0 %vm24809_vm0, %v29206_v52 }
 0x4c1   : > { %21559 = vmatmul.mubr.f32.vlgmr.msra.gmra.mrb[36].mxu1 %v6017_v12  ;;  %v6577_v57 = vand.u32 4294901760, %v26375_v19 }
 0x4c2   : > { %23564 = vmatpush3.bf16.msra.mxu0 %v26126_v20  ;;  %23660 = vmatpush3.bf16.msra.mxu1 %v26270_v47  ;;  %v29244_v20 = vand.u32 4294901760, %v26158_v32 }
 0x4c3   : > { %23565 = vmatprep.subr.bf16.mxu0 %v29207_v21  ;;  %23661 = vmatprep.subr.bf16.mxu1 %v29207_v21 }
 0x4c4   : > { %v5497_v45 = vsub.f32 %v26158_v32, %v29244_v20  ;;  %21588 = vmatprep.mubr.msk.f32.mxu1 %vm24809_vm0, %v29206_v52  ;;  %v6571_v20 = vsub.f32 %v26351_v33, %v29094_v35  ;;  %v6578_v35 = vsub.f32 %v26375_v19, %v6577_v57 }
 0x4c6   : > { %23567 = vmatpush3.bf16.msra.mxu0 %v26153_v49  ;;  %23663 = vmatpush3.bf16.msra.mxu1 %v26296_v31  ;;  %v5498_v42 = vand.u32 4294901760, %v5497_v45  ;;  %v23581_v49 = vpack.c.bf16 %v26011_v13, %v26006_v59  ;;  %v6572_v60 = vand.u32 4294901760, %v6571_v20  ;;  %v6585_v45 = vsub.f32 %v26380_v44, %v6584_v7 }
 0x4c7   : > { %23577 = vmatprep.subr.bf16.mxu0 %v29207_v21  ;;  %23664 = vmatprep.subr.bf16.mxu1 %v29207_v21  ;;  %v29246_v20 = vand.u32 4294901760, %v25976_v15  ;;  %v26440_v15 = vpack.c.bf16 %v6469_v26, %v6466_v11 }
 0x4c8   : > { %v23680_v41 = vpack.c.bf16 %v6572_v60, %v6565_v17  ;;  %v6586_v53 = vand.u32 4294901760, %v6585_v45  ;;  %v6463_v60 = vsel %vm2140_vm4, %v25594_v29, 0  ;;  %v29248_v17 = vand.u32 4294901760, %v26011_v13 }
 0x4c9   : > { %21424 = vmatmul.mubr.f32.vlgmr.msra.gmra.mrb[40].mxu0 %v5498_v42  ;;  %v23584_v42 = vpack.c.bf16 %v26040_v1, %v26035_v62  ;;  %v26442_v45 = vand.u32 4294901760, %v6463_v60  ;;  %v29249_v29 = vand.u32 4294901760, %v26035_v62  ;;  %v26469_v62 = vpack.c.bf16 %v6481_v50, %v6478_v37 }
 0x4ca   : > { %23579 = vmatpush3.bf16.msra.mxu0 %v23578_v0  ;;  %23666 = vmatpush3.bf16.msra.mxu1 %v26323_v24  ;;  %v6579_v0 = vand.u32 4294901760, %v6578_v35  ;;  %v29247_v35 = vand.u32 4294901760, %v26006_v59  ;;  %v29250_v59 = vand.u32 4294901760, %v26040_v1  ;;  %v29253_v50 = vand.u32 4294901760, %v26176_v34 }
 0x4cb   : > { %23580 = vmatprep.subr.bf16.mxu0 %v29207_v21  ;;  %23676 = vmatprep.subr.bf16.mxu1 %v29207_v21  ;;  %v26472_v1 = vsub.f32 %v6463_v60, %v26442_v45 }
 0x4cc   : > { %21453 = vmatprep.mubr.msk.f32.mxu0 %vm24809_vm0, %v29206_v52  ;;  %v23599_v2 = vpack.c.bf16 %v29248_v17, %v29247_v35  ;;  %v23602_v13 = vpack.c.bf16 %v29250_v59, %v29249_v29  ;;  %v23689_v35 = vpack.c.bf16 %v26351_v33, %v26346_v9  ;;  %v23692_v17 = vpack.c.bf16 %v26380_v44, %v26375_v19 }
 0x4cd   : > { %21589 = vmatmul.mubr.f32.vlgmr.msra.gmra.mrb[38].mxu1 %v26278_v61  ;;  %v6538_v43 = vand.u32 4294901760, %v26472_v1  ;;  %v29257_v59 = vand.u32 4294901760, %v26311_v28 }
 0x4ce   : > { %23582 = vmatpush3.bf16.msra.mxu0 %v23581_v49  ;;  %23678 = vmatpush3.bf16.msra.mxu1 %v23677_v40  ;;  %v23596_v49 = vpack.c.bf16 %v29246_v20, %v29245_v4  ;;  %v23683_v40 = vpack.c.bf16 %v6586_v53, %v6579_v0 }
 0x4cf   : > { %23583 = vmatprep.subr.bf16.mxu0 %v29207_v21  ;;  %23679 = vmatprep.subr.bf16.mxu1 %v29207_v21 }
 0x4d0   : > { %21618 = vmatprep.mubr.msk.f32.mxu1 %vm24809_vm0, %v29206_v52 }
 0x4d2   : > { %23585 = vmatpush3.bf16.msra.mxu0 %v23584_v42  ;;  %23681 = vmatpush3.bf16.msra.mxu1 %v23680_v41 }
 0x4d3   : > { %23595 = vmatprep.subr.bf16.mxu0 %v29207_v21  ;;  %23682 = vmatprep.subr.bf16.mxu1 %v29207_v21 }
 0x4d5   : > { %21454 = vmatmul.mubr.f32.vlgmr.msra.gmra.mrb[42].mxu0 %v26158_v32  ;;  %v26458_v32 = vpack.c.bf16 %v6475_v18, %v6472_v46  ;;  %v29251_v46 = vand.u32 4294901760, %v26141_v22  ;;  %v29252_v18 = vand.u32 4294901760, %v26146_v39 }
 0x4d6   : > { %23597 = vmatpush3.bf16.msra.mxu0 %v23596_v49  ;;  %23684 = vmatpush3.bf16.msra.mxu1 %v23683_v40 }
 0x4d7   : > { %23598 = vmatprep.subr.bf16.mxu0 %v29207_v21  ;;  %23694 = vmatprep.subr.bf16.mxu1 %v29207_v21  ;;  %v23650_v55 = vpack.c.bf16 %v29252_v18, %v29251_v46 }
 0x4d8   : > { %21483 = vmatprep.mubr.msk.f32.mxu0 %vm24809_vm0, %v29206_v52 }
 0x4d9   : > { %21619 = vmatmul.mubr.f32.vlgmr.msra.gmra.mrb[40].mxu1 %v26442_v45 }
 0x4da   : > { %23600 = vmatpush3.bf16.msra.mxu0 %v23599_v2  ;;  %23696 = vmatpush3.bf16.msra.mxu1 %v26440_v15 }
 0x4db   : > { %23601 = vmatprep.subr.bf16.mxu0 %v29207_v21  ;;  %23697 = vmatprep.subr.bf16.mxu1 %v29207_v21 }
 0x4dc   : > { %21648 = vmatprep.mubr.msk.f32.mxu1 %vm24809_vm0, %v29206_v52 }
 0x4de   : > { %23603 = vmatpush3.bf16.msra.mxu0 %v23602_v13  ;;  %23699 = vmatpush3.bf16.msra.mxu1 %v26458_v32  ;;  %v29258_v13 = vand.u32 4294901760, %v26316_v25 }
 0x4df   : > { %23613 = vmatprep.subr.bf16.mxu0 %v29207_v21  ;;  %23700 = vmatprep.subr.bf16.mxu1 %v29207_v21 }
 0x4e1   : > { %21484 = vmatmul.mubr.f32.vlgmr.msra.gmra.mrb[44].mxu0 %v26108_v3  ;;  %v6018_v3 = vsub.f32 %v26328_v5, %v6017_v12  ;;  %v29254_v12 = vand.u32 4294901760, %v26181_v38 }
 0x4e2   : > { %23615 = vmatpush3.bf16.msra.mxu0 %v26270_v47  ;;  %23702 = vmatpush3.bf16.msra.mxu1 %v26469_v62  ;;  %v23632_v47 = vpack.c.bf16 %v26146_v39, %v26141_v22  ;;  %v29255_v22 = vand.u32 4294901760, %v26205_v30  ;;  %v29256_v39 = vand.u32 4294901760, %v26210_v63  ;;  %v6539_v30 = vsub.f32 %v26472_v1, %v6538_v43 }
 0x4e3   : > { %23616 = vmatprep.subr.bf16.mxu0 %v29207_v21  ;;  %23712 = vmatprep.subr.bf16.mxu1 %v29207_v21  ;;  %v6019_v56 = vand.u32 4294901760, %v6018_v3  ;;  %v23653_v42 = vpack.c.bf16 %v29254_v12, %v29253_v50  ;;  %v29259_v3 = vand.u32 4294901760, %v26346_v9 }
 0x4e4   : > { %21513 = vmatprep.mubr.msk.f32.mxu0 %vm24809_vm0, %v29206_v52  ;;  %v23656_v41 = vpack.c.bf16 %v29256_v39, %v29255_v22  ;;  %v6540_v49 = vand.u32 4294901760, %v6539_v30 }
 0x4e5   : > { %21649 = vmatmul.mubr.f32.vlgmr.msra.gmra.mrb[42].mxu1 %v6538_v43 }
 0x4e6   : > { %23618 = vmatpush3.bf16.msra.mxu0 %v26296_v31  ;;  %23714 = vmatpush3.bf16.msra.mxu1 %v26440_v15  ;;  %v23635_v31 = vpack.c.bf16 %v26181_v38, %v26176_v34 }
 0x4e7   : > { %23619 = vmatprep.subr.bf16.mxu0 %v29207_v21  ;;  %23715 = vmatprep.subr.bf16.mxu1 %v29207_v21 }
 0x4e8   : > { %21678 = vmatprep.mubr.msk.f32.mxu1 %vm24809_vm0, %v29206_v52 }
 0x4ea   : > { %23621 = vmatpush3.bf16.msra.mxu0 %v26323_v24  ;;  %23717 = vmatpush3.bf16.msra.mxu1 %v26458_v32 }
 0x4eb   : > { %23631 = vmatprep.subr.bf16.mxu0 %v29207_v21  ;;  %23718 = vmatprep.subr.bf16.mxu1 %v29207_v21 }
 0x4ec   : > { %v26499_v11 = vpop.f32.mrb[8].mxu1 }
 0x4ed   : > { %21514 = vmatmul.mubr.f32.vlgmr.msra.gmra.mrb[46].mxu0 %v6019_v56  ;;  %v21140_v26 = vpop.f32.mrb[9].mxu1 }
 0x4ee   : > { %23633 = vmatpush3.bf16.msra.mxu0 %v23632_v47  ;;  %23720 = vmatpush3.bf16.msra.mxu1 %v26469_v62  ;;  %v29260_v47 = vand.u32 4294901760, %v26351_v33 }
 0x4ef   : > { %23634 = vmatprep.subr.bf16.mxu0 %v29207_v21  ;;  %21543 = vmatprep.mubr.msk.f32.mxu0 %vm24809_vm0, %v29206_v52 }
 0x4f0   : > { %v23707_v56 = vpack.c.bf16 %v29260_v47, %v29259_v3 }
 0x4f1   : > { %21679 = vmatmul.mubr.f32.vlgmr.msra.gmra.mrb[44].mxu1 %v26442_v45 }
 0x4f2   : > { %23636 = vmatpush3.bf16.msra.mxu0 %v23635_v31  ;;  %7627 = vmatprep.mubr.f32.mxu1 %v29206_v52 }
 0x4f3   : > { %23637 = vmatprep.subr.bf16.mxu0 %v29207_v21 }
 0x4f4   : > { %v3427_v14 = vpop.f32.mrb[12].mxu0 }
 0x4f5   : > { %v21065_v24 = vpop.f32.mrb[13].mxu0 }
 0x4f6   : > { %23639 = vmatpush3.bf16.msra.mxu0 %v23638_v51 }
 0x4f7   : > { %23649 = vmatprep.subr.bf16.mxu0 %v29207_v21 }
 0x4f8   : > { %v26517_v36 = vpop.f32.mrb[10].mxu1 }
 0x4f9   : > { %v21170_v37 = vpop.f32.mrb[11].mxu1  ;;  %21544 = vmatmul.mubr.f32.vlgmr.msra.gmra.mrb[48].mxu0 %v26328_v5 }
 0x4fa   : > { %23651 = vmatpush3.bf16.msra.mxu0 %v23650_v55  ;;  %21573 = vmatprep.mubr.msk.f32.mxu0 %vm24809_vm0, %v29206_v52 }
 0x4fb   : > { %23652 = vmatprep.subr.bf16.mxu0 %v29207_v21 }
 0x4fe   : > { %23654 = vmatpush3.bf16.msra.mxu0 %v23653_v42 }
 0x4ff   : > { %23655 = vmatprep.subr.bf16.mxu0 %v29207_v21 }
 0x500   : > { %v3528_v5 = vpop.f32.mrb[14].mxu0 }
 0x501   : > { %v3529_v0 = vadd.f32 %v3528_v5, %v3427_v14  ;;  %v21080_v53 = vpop.f32.mrb[15].mxu0 }
 0x502   : > { %23657 = vmatpush3.bf16.msra.mxu0 %v23656_v41 }
 0x503   : > { %23667 = vmatprep.subr.bf16.mxu0 %v29207_v21 }
 0x504   : > { %v4202_v34 = vpop.f32.mrb[12].mxu1 }
 0x505   : > { %v21200_v38 = vpop.f32.mrb[13].mxu1  ;;  %21574 = vmatmul.mubr.f32.vlgmr.msra.gmra.mrb[50].mxu0 %v26278_v61  ;;  %v23686_v61 = vpack.c.bf16 %v26316_v25, %v26311_v28  ;;  %v23710_v28 = vpack.c.bf16 %v6584_v7, %v6577_v57 }
 0x506   : > { %23669 = vmatpush3.bf16.msra.mxu0 %v26440_v15  ;;  %21603 = vmatprep.mubr.msk.f32.mxu0 %vm24809_vm0, %v29206_v52 }
 0x507   : > { %23670 = vmatprep.subr.bf16.mxu0 %v29207_v21 }
 0x50a   : > { %23672 = vmatpush3.bf16.msra.mxu0 %v26458_v32  ;;  %v23704_v32 = vpack.c.bf16 %v29258_v13, %v29257_v59 }
 0x50b   : > { %23673 = vmatprep.subr.bf16.mxu0 %v29207_v21 }
 0x50c   : > { %v3612_v63 = vpop.f32.mrb[16].mxu0 }
 0x50d   : > { %v3613_v4 = vadd.f32 %v3612_v63, %v3529_v0  ;;  %v21095_v20 = vpop.f32.mrb[17].mxu0 }
 0x50e   : > { %23675 = vmatpush3.bf16.msra.mxu0 %v26469_v62 }
 0x50f   : > { %23685 = vmatprep.subr.bf16.mxu0 %v29207_v21 }
 0x510   : > { %v4368_v40 = vpop.f32.mrb[14].mxu1 }
 0x511   : > { %v21230_v60 = vpop.f32.mrb[15].mxu1  ;;  %21604 = vmatmul.mubr.f32.vlgmr.msra.gmra.mrb[52].mxu0 %v6540_v49 }
 0x512   : > { %23687 = vmatpush3.bf16.msra.mxu0 %v23686_v61  ;;  %21633 = vmatprep.mubr.msk.f32.mxu0 %vm24809_vm0, %v29206_v52 }
 0x513   : > { %23688 = vmatprep.subr.bf16.mxu0 %v29207_v21 }
 0x516   : > { %23690 = vmatpush3.bf16.msra.mxu0 %v23689_v35 }
 0x517   : > { %23691 = vmatprep.subr.bf16.mxu0 %v29207_v21 }
 0x518   : > { %v3691_v2 = vpop.f32.mrb[18].mxu0 }
 0x519   : > { %v3692_v15 = vadd.f32 %v3691_v2, %v3613_v4  ;;  %v21110_v29 = vpop.f32.mrb[19].mxu0 }
 0x51a   : > { %23693 = vmatpush3.bf16.msra.mxu0 %v23692_v17 }
 0x51b   : > { %23703 = vmatprep.subr.bf16.mxu0 %v29207_v21 }
 0x51c   : > { %v4559_v62 = vpop.f32.mrb[16].mxu1 }
 0x51d   : > { %v21260_v43 = vpop.f32.mrb[17].mxu1  ;;  %21634 = vmatmul.mubr.f32.vlgmr.msra.gmra.mrb[54].mxu0 %v26472_v1 }
 0x51e   : > { %23705 = vmatpush3.bf16.msra.mxu0 %v23704_v32  ;;  %21663 = vmatprep.mubr.msk.f32.mxu0 %vm24809_vm0, %v29206_v52  ;;  %v6998_v43 = vld [vmem:[%s24880_s24 + $0x8] sm:$0xff] }
 0x51f   : > { %23706 = vmatprep.subr.bf16.mxu0 %v29207_v21 }
 0x522   : > { %23708 = vmatpush3.bf16.msra.mxu0 %v23707_v56  ;;  %v7017_v56 = vand.u32 4294901760, %v6998_v43 }
 0x523   : > { %23709 = vmatprep.subr.bf16.mxu0 %v29207_v21 }
 0x524   : > { %v3780_v25 = vpop.f32.mrb[20].mxu0 }
 0x525   : > { %v3781_v1 = vadd.f32 %v3780_v25, %v3692_v15  ;;  %v21125_v26 = vpop.f32.mrb[21].mxu0 }
 0x526   : > { %23711 = vmatpush3.bf16.msra.mxu0 %v23710_v28 }
 0x527   : > { %v3858_v9 = vadd.f32 %v26499_v11, %v3781_v1  ;;  %23721 = vmatprep.subr.bf16.mxu0 %v29207_v21 }
 0x528   : > { %v4722_v33 = vpop.f32.mrb[18].mxu1 }
 0x529   : > { %v21290_v31 = vpop.f32.mrb[19].mxu1  ;;  %21664 = vmatmul.mubr.f32.vlgmr.msra.gmra.mrb[56].mxu0 %v26442_v45 }
 0x52a   : > { %21693 = vmatprep.mubr.msk.f32.mxu0 %vm24809_vm0, %v29206_v52 }
 0x530   : > { %v3938_v19 = vpop.f32.mrb[22].mxu0 }
 0x531   : > { %v3939_v44 = vadd.f32 %v3938_v19, %v3858_v9  ;;  %v21155_v7 = vpop.f32.mrb[23].mxu0  ;;  %v6999_v9 = vld [vmem:[%s24880_s24 + $0x10] sm:$0xff] }
 0x532   : > { %v7020_v19 = vand.u32 4294901760, %v6999_v9 }
 0x533   : > { %v4040_v57 = vadd.f32 %v26517_v36, %v3939_v44 }
 0x534   : > { %v4888_v51 = vpop.f32.mrb[20].mxu1 }
 0x535   : > { %v21320_v14 = vpop.f32.mrb[21].mxu1 }
 0x53c   : > { %v4123_v24 = vpop.f32.mrb[24].mxu0 }
 0x53d   : > { %v4124_v46 = vadd.f32 %v4123_v24, %v4040_v57  ;;  %v21185_v18 = vpop.f32.mrb[25].mxu0  ;;  %v26601_v24 = vsub.f32 %v6999_v9, %v7020_v19 }
 0x53e   : > { %v7002_v18 = vld [vmem:[%s24880_s24 + $0x28] sm:$0xff] }
 0x53f   : > { %v4203_v11 = vadd.f32 %v4202_v34, %v4124_v46  ;;  %v7001_v46 = vld [vmem:[%s24880_s24 + $0x20] sm:$0xff] }
 0x540   : > { %v5080_v55 = vpop.f32.mrb[22].mxu1 }
 0x541   : > { %v21350_v37 = vpop.f32.mrb[23].mxu1 }
 0x542   : > { %v7029_v37 = vand.u32 4294901760, %v7002_v18 }
 0x548   : > { %v4291_v50 = vpop.f32.mrb[26].mxu0 }
 0x549   : > { %v4292_v12 = vadd.f32 %v4291_v50, %v4203_v11  ;;  %v21215_v42 = vpop.f32.mrb[27].mxu0 }
 0x54b   : > { %v4369_v45 = vadd.f32 %v4368_v40, %v4292_v12 }
 0x54c   : > { %v5243_v22 = vpop.f32.mrb[24].mxu1 }
 0x54d   : > { %v21380_v39 = vpop.f32.mrb[25].mxu1 }
 0x554   : > { %v4458_v41 = vpop.f32.mrb[28].mxu0 }
 0x555   : > { %v4560_v5 = vadd.f32 %v4559_v62, %v4458_v41  ;;  %v21245_v0 = vpop.f32.mrb[29].mxu0  ;;  %v6997_v62 = vld [vmem:[%s24880_s24] sm:$0xff] }
 0x556   : > { %v7014_v47 = vand.u32 4294901760, %v6997_v62 }
 0x558   : > { %v26577_v53 = vpop.f32.mrb[26].mxu1  ;;  %v26587_v1 = vpack.c.bf16 %v7017_v56, %v7014_v47  ;;  %v26595_v57 = vsub.f32 %v6997_v62, %v7014_v47 }
 0x559   : > { %v21410_v36 = vpop.f32.mrb[27].mxu1 }
 0x55a   : > { %23723 = vmatpush3.bf16.msra.mxu0 %v26587_v1  ;;  %v7097_v50 = vand.u32 4294901760, %v26595_v57 }
 0x55b   : > { %23724 = vmatprep.subr.bf16.mxu0 %v29207_v21 }
 0x55c   : > { %v7098_v39 = vsub.f32 %v26595_v57, %v7097_v50 }
 0x55e   : > { %v7099_v0 = vand.u32 4294901760, %v7098_v39 }
 0x560   : > { %v4643_v38 = vpop.f32.mrb[30].mxu0 }
 0x561   : > { %v4644_v30 = vadd.f32 %v4643_v38, %v4560_v5  ;;  %v21275_v63 = vpop.f32.mrb[31].mxu0 }
 0x562   : > { %v7111_v63 = vand.u32 4294901760, %v26601_v24 }
 0x563   : > { %v4723_v4 = vadd.f32 %v4722_v33, %v4644_v30  ;;  %v7000_v33 = vld [vmem:[%s24880_s24 + $0x18] sm:$0xff] }
 0x564   : > { %v26579_v34 = vpop.f32.mrb[28].mxu1  ;;  %v7023_v44 = vand.u32 4294901760, %v7000_v33 }
 0x565   : > { %v21440_v20 = vpop.f32.mrb[29].mxu1 }
 0x566   : > { %v26599_v14 = vpack.c.bf16 %v7023_v44, %v7020_v19  ;;  %v26605_v11 = vsub.f32 %v7000_v33, %v7023_v44 }
 0x568   : > { %23726 = vmatpush3.bf16.msra.mxu0 %v26599_v14  ;;  %v23743_v44 = vpack.c.bf16 %v26605_v11, %v26601_v24 }
 0x569   : > { %23727 = vmatprep.subr.bf16.mxu0 %v29207_v21 }
 0x56c   : > { %v4811_v61 = vpop.f32.mrb[32].mxu0 }
 0x56d   : > { %v4812_v49 = vadd.f32 %v4811_v61, %v4723_v4  ;;  %v21305_v40 = vpop.f32.mrb[33].mxu0  ;;  %v7118_v4 = vand.u32 4294901760, %v26605_v11 }
 0x56f   : > { %v4889_v60 = vadd.f32 %v4888_v51, %v4812_v49  ;;  %v26597_v51 = vsub.f32 %v6998_v43, %v7017_v56  ;;  %v7112_v49 = vsub.f32 %v26601_v24, %v7111_v63  ;;  %v7119_v40 = vsub.f32 %v26605_v11, %v7118_v4 }
 0x570   : > { %v26581_v35 = vpop.f32.mrb[30].mxu1 }
 0x571   : > { %v4892_v17 = vadd.f32 %v4889_v60, %v4369_v45  ;;  %v21470_v2 = vpop.f32.mrb[31].mxu1  ;;  %v7104_v12 = vand.u32 4294901760, %v26597_v51  ;;  %v23740_v9 = vpack.c.bf16 %v26597_v51, %v26595_v57 }
 0x573   : > { %v7105_v41 = vsub.f32 %v26597_v51, %v7104_v12 }
 0x575   : > { %v7106_v36 = vand.u32 4294901760, %v7105_v41 }
 0x577   : > { %v26623_v20 = vpack.c.bf16 %v7106_v36, %v7099_v0 }
 0x578   : > { %v4979_v15 = vpop.f32.mrb[34].mxu0 }
 0x579   : > { %v5081_v29 = vadd.f32 %v5080_v55, %v4979_v15  ;;  %v21335_v59 = vpop.f32.mrb[35].mxu0  ;;  %v7026_v55 = vand.u32 4294901760, %v7001_v46 }
 0x57a   : > { %v7120_v59 = vand.u32 4294901760, %v7119_v40  ;;  %v26647_v40 = vpack.c.bf16 %v7118_v4, %v7111_v63 }
 0x57b   : > { %v26611_v42 = vpack.c.bf16 %v7029_v37, %v7026_v55  ;;  %v26613_v45 = vsub.f32 %v7001_v46, %v7026_v55 }
 0x57c   : > { %v26583_v13 = vpop.f32.mrb[32].mxu1 }
 0x57d   : > { %v21500_v32 = vpop.f32.mrb[33].mxu1  ;;  %23729 = vmatpush3.bf16.msra.mxu0 %v26611_v42 }
 0x57e   : > { %23730 = vmatprep.subr.bf16.mxu0 %v29207_v21  ;;  %v7125_v32 = vand.u32 4294901760, %v26613_v45 }
 0x584   : > { %v5164_v3 = vpop.f32.mrb[36].mxu0 }
 0x585   : > { %v5165_v28 = vadd.f32 %v5164_v3, %v5081_v29  ;;  %v21365_v25 = vpop.f32.mrb[37].mxu0  ;;  %v7113_v29 = vand.u32 4294901760, %v7112_v49  ;;  %v7126_v3 = vsub.f32 %v26613_v45, %v7125_v32 }
 0x587   : > { %v5244_v26 = vadd.f32 %v5243_v22, %v5165_v28  ;;  %v26615_v22 = vsub.f32 %v7002_v18, %v7029_v37  ;;  %v26630_v43 = vpack.c.bf16 %v7120_v59, %v7113_v29 }
 0x588   : > { %v26591_v31 = vpop.f32.mrb[34].mxu1 }
 0x589   : > { %v21530_v7 = vpop.f32.mrb[35].mxu1  ;;  %v7132_v62 = vand.u32 4294901760, %v26615_v22 }
 0x58a   : > { %v23746_v7 = vpack.c.bf16 %v26615_v22, %v26613_v45 }
 0x58b   : > { %v7133_v47 = vsub.f32 %v26615_v22, %v7132_v62  ;;  %v7537_v22 = vld [vmem:[%s24890_s6 + $0x8] sm:$0xff] }
 0x58d   : > { %v7134_v56 = vand.u32 4294901760, %v7133_v47 }
 0x590   : > { %v5332_v5 = vpop.f32.mrb[38].mxu0 }
 0x591   : > { %v5333_v38 = vadd.f32 %v5332_v5, %v5244_v26  ;;  %v21395_v30 = vpop.f32.mrb[39].mxu0 }
 0x593   : > { %v5410_v61 = vadd.f32 %v26577_v53, %v5333_v38  ;;  %v7127_v53 = vand.u32 4294901760, %v7126_v3  ;;  %v26645_v38 = vpack.c.bf16 %v7104_v12, %v7097_v50 }
 0x594   : > { %v6285_v60 = vpop.f32.mrb[36].mxu1 }
 0x595   : > { %v5413_v2 = vadd.f32 %v5410_v61, %v4892_v17  ;;  %v21560_v15 = vpop.f32.mrb[37].mxu1  ;;  %v26634_v25 = vpack.c.bf16 %v7134_v56, %v7127_v53 }
 0x596   : > { %v26649_v15 = vpack.c.bf16 %v7132_v62, %v7125_v32 }
 0x59c   : > { %v5500_v28 = vpop.f32.mrb[40].mxu0 }
 0x59d   : > { %v5602_v17 = vadd.f32 %v26579_v34, %v5500_v28  ;;  %v21425_v26 = vpop.f32.mrb[41].mxu0 }
 0x5a0   : > { %v6451_v33 = vpop.f32.mrb[38].mxu1 }
 0x5a1   : > { %v21590_v19 = vpop.f32.mrb[39].mxu1 }
 0x5a8   : > { %v5685_v46 = vpop.f32.mrb[42].mxu0 }
 0x5a9   : > { %v5686_v18 = vadd.f32 %v5685_v46, %v5602_v17  ;;  %v21455_v55 = vpop.f32.mrb[43].mxu0 }
 0x5ab   : > { %v5765_v37 = vadd.f32 %v26581_v35, %v5686_v18 }
 0x5ac   : > { %v6643_v39 = vpop.f32.mrb[40].mxu1 }
 0x5ad   : > { %v21620_v41 = vpop.f32.mrb[41].mxu1 }
 0x5b4   : > { %v5853_v34 = vpop.f32.mrb[44].mxu0 }
 0x5b5   : > { %v5854_v5 = vadd.f32 %v5853_v34, %v5765_v37  ;;  %v21485_v0 = vpop.f32.mrb[45].mxu0 }
 0x5b7   : > { %v5931_v36 = vadd.f32 %v26583_v13, %v5854_v5  ;;  %v19567_v5 = vld [vmem:[%s24870_s14] ss:$0 sm:$0xff] }
 0x5b8   : > { %v6806_v30 = vpop.f32.mrb[42].mxu1 }
 0x5b9   : > { %v5934_v61 = vadd.f32 %v5931_v36, %v5413_v2  ;;  %v21650_v49 = vpop.f32.mrb[43].mxu1  ;;  %v19568_v36 = vld [vmem:[%s24875_s19] ss:$0 sm:$0xff] }
 0x5c0   : > { %v6021_v29 = vpop.f32.mrb[46].mxu0 }
 0x5c1   : > { %v6123_v59 = vadd.f32 %v26591_v31, %v6021_v29  ;;  %v21515_v35 = vpop.f32.mrb[47].mxu0 }
 0x5c4   : > { %v6972_v3 = vpop.f32.mrb[44].mxu1 }
 0x5c5   : > { %v21680_v47 = vpop.f32.mrb[45].mxu1 }
 0x5cc   : > { %v6206_v53 = vpop.f32.mrb[48].mxu0 }
 0x5cd   : > { %v6207_v56 = vadd.f32 %v6206_v53, %v6123_v59  ;;  %v21545_v28 = vpop.f32.mrb[49].mxu0 }
 0x5ce   : > { %v7541_v28 = vld [vmem:[%s24890_s6 + $0x28] sm:$0xff] }
 0x5cf   : > { %v6286_v17 = vadd.f32 %v6285_v60, %v6207_v56  ;;  %v6978_v60 = vpop.permute.xlu0 %6977 }
 0x5d8   : > { %v6374_v13 = vpop.f32.mrb[50].mxu0 }
 0x5d9   : > { %v6375_v50 = vadd.f32 %v6374_v13, %v6286_v17  ;;  %v21575_v12 = vpop.f32.mrb[51].mxu0  ;;  %v7543_v17 = vld [vmem:[%s24890_s6 + $0x38] sm:$0xff]  ;;  %v7563_v13 = vand.u32 4294901760, %v7541_v28 }
 0x5da   : > { %v7540_v12 = vld [vmem:[%s24890_s6 + $0x20] sm:$0xff] }
 0x5db   : > { %v6452_v2 = vadd.f32 %v6451_v33, %v6375_v50  ;;  %v7567_v50 = vand.u32 4294901760, %v7543_v17 }
 0x5dd   : > { %v6455_v26 = vadd.f32 %v6452_v2, %v5934_v61  ;;  %v7542_v2 = vld [vmem:[%s24890_s6 + $0x30] sm:$0xff] }
 0x5e4   : > { %v6542_v63 = vpop.f32.mrb[52].mxu0 }
 0x5e5   : > { %v6644_v4 = vadd.f32 %v6643_v39, %v6542_v63  ;;  %v21605_v32 = vpop.f32.mrb[53].mxu0 }
 0x5e6   : > { %v7569_v32 = vand.u32 4294901760, %v7542_v2 }
 0x5f0   : > { %v6727_v62 = vpop.f32.mrb[54].mxu0 }
 0x5f1   : > { %v6728_v19 = vadd.f32 %v6727_v62, %v6644_v4  ;;  %v21635_v31 = vpop.f32.mrb[55].mxu0  ;;  %v7565_v4 = vand.u32 4294901760, %v7540_v12 }
 0x5f2   : > { %v26736_v31 = vpack.c.bf16 %v7567_v50, %v7563_v13 }
 0x5f3   : > { %v6807_v46 = vadd.f32 %v6806_v30, %v6728_v19 }
 0x5fc   : > { %v6895_v18 = vpop.f32.mrb[56].mxu0 }
 0x5fd   : > { %v6896_v55 = vadd.f32 %v6895_v18, %v6807_v46  ;;  %v21665_v37 = vpop.f32.mrb[57].mxu0  ;;  %v26738_v46 = vsub.f32 %v7541_v28, %v7563_v13  ;;  %v26740_v18 = vsub.f32 %v7543_v17, %v7567_v50 }
 0x5fe   : > { %v26743_v37 = vpack.c.bf16 %v7569_v32, %v7565_v4 }
 0x5ff   : > { %v6973_v41 = vadd.f32 %v6972_v3, %v6896_v55  ;;  %v23795_v28 = vpack.c.bf16 %v26740_v18, %v26738_v46 }
 0x601   : > { %v6976_v34 = vadd.f32 %v6973_v41, %v6455_v26  ;;  %v7669_v41 = vsub.f32 %v7540_v12, %v7565_v4 }
 0x603   : > { %v6980_v0 = vadd.f32 %v6978_v60, %v6976_v34  ;;  %v7681_v34 = vsub.f32 %v7542_v2, %v7569_v32 }
 0x605   : > { %v6988_v49 = vmul.f32 %v19567_v5, %v6980_v0  ;;  %v23797_v17 = vpack.c.bf16 %v7681_v34, %v7669_v41 }
 0x607   : > { %v26654_v33 = vadd.f32 %v19568_v36, %v6988_v49 }
 0x609   : > { %v7011_v39 = vsel %vm2140_vm4, %v26654_v33, 0 }
 0x60a   : > { %v7084_v61 = vand.u32 4294901760, %v7011_v39 }
 0x60c   : > { %v7085_v29 = vsub.f32 %v7011_v39, %v7084_v61  ;;  %v7664_v39 = vand.u32 4294901760, %v26738_v46 }
 0x60e   : > { %v7086_v59 = vand.u32 4294901760, %v7085_v29 }
 0x610   : > { %v7087_v35 = vsub.f32 %v7085_v29, %v7086_v59 }
 0x612   : > { %v7088_v30 = vand.u32 4294901760, %v7087_v35  ;;  %v7670_v35 = vand.u32 4294901760, %v7669_v41 }
 0x614   : > { %21694 = vmatmul.mubr.f32.vlgmr.msra.gmra.mrb[58].mxu0 %v7088_v30  ;;  %v7682_v30 = vand.u32 4294901760, %v7681_v34 }
 0x615   : > { %23732 = vmatpush3.bf16.msra.mxu0 %v26623_v20  ;;  %21708 = vmatprep.mubr.msk.f32.mxu0 %vm24809_vm0, %v29206_v52 }
 0x616   : > { %23733 = vmatprep.subr.bf16.mxu0 %v29207_v21  ;;  %v23813_v2 = vpack.c.bf16 %v7682_v30, %v7670_v35 }
 0x619   : > { %23735 = vmatpush3.bf16.msra.mxu0 %v26630_v43  ;;  %v7555_v43 = vand.u32 4294901760, %v7537_v22 }
 0x61a   : > { %23736 = vmatprep.subr.bf16.mxu0 %v29207_v21 }
 0x61d   : > { %23738 = vmatpush3.bf16.msra.mxu0 %v26634_v25 }
 0x61e   : > { %23739 = vmatprep.subr.bf16.mxu0 %v29207_v21 }
 0x620   : > { %21709 = vmatmul.mubr.f32.vlgmr.msra.gmra.mrb[58].mxu0 %v7084_v61 }
 0x621   : > { %23741 = vmatpush3.bf16.msra.mxu0 %v23740_v9  ;;  %21723 = vmatprep.mubr.msk.f32.mxu0 %vm24809_vm0, %v29206_v52  ;;  %v7536_v9 = vld [vmem:[%s24890_s6] sm:$0xff] }
 0x622   : > { %23742 = vmatprep.subr.bf16.mxu0 %v29207_v21 }
 0x625   : > { %23744 = vmatpush3.bf16.msra.mxu0 %v23743_v44  ;;  %v7538_v44 = vld [vmem:[%s24890_s6 + $0x10] sm:$0xff] }
 0x626   : > { %23745 = vmatprep.subr.bf16.mxu0 %v29207_v21 }
 0x629   : > { %23747 = vmatpush3.bf16.msra.mxu0 %v23746_v7  ;;  %v7557_v7 = vand.u32 4294901760, %v7536_v9 }
 0x62a   : > { %23748 = vmatprep.subr.bf16.mxu0 %v29207_v21 }
 0x62b   : > { %v26722_v53 = vsub.f32 %v7536_v9, %v7557_v7 }
 0x62c   : > { %21724 = vmatmul.mubr.f32.vlgmr.msra.gmra.mrb[58].mxu0 %v7085_v29 }
 0x62d   : > { %23750 = vmatpush3.bf16.msra.mxu0 %v26587_v1  ;;  %21738 = vmatprep.mubr.msk.f32.mxu0 %vm24809_vm0, %v29206_v52  ;;  %v7646_v62 = vand.u32 4294901760, %v26722_v53 }
 0x62e   : > { %23751 = vmatprep.subr.bf16.mxu0 %v29207_v21 }
 0x62f   : > { %v7647_v0 = vsub.f32 %v26722_v53, %v7646_v62 }
 0x631   : > { %23753 = vmatpush3.bf16.msra.mxu0 %v26599_v14  ;;  %v7648_v29 = vand.u32 4294901760, %v7647_v0  ;;  %v29270_v0 = vld [vmem:[#allocation30_spill] sm:$0xff] }
 0x632   : > { %23754 = vmatprep.subr.bf16.mxu0 %v29207_v21 }
 0x635   : > { %23756 = vmatpush3.bf16.msra.mxu0 %v26611_v42 }
 0x636   : > { %23757 = vmatprep.subr.bf16.mxu0 %v29207_v21 }
 0x638   : > { %21739 = vmatmul.mubr.f32.vlgmr.msra.gmra.mrb[58].mxu0 %v7086_v59 }
 0x639   : > { %23759 = vmatpush3.bf16.msra.mxu0 %v26645_v38  ;;  %21753 = vmatprep.mubr.msk.f32.mxu0 %vm24809_vm0, %v29206_v52  ;;  %v7561_v38 = vand.u32 4294901760, %v7538_v44 }
 0x63a   : > { %23760 = vmatprep.subr.bf16.mxu0 %v29207_v21 }
 0x63b   : > { %v26720_v47 = vpack.c.bf16 %v7561_v38, %v7557_v7  ;;  %v26724_v56 = vsub.f32 %v7538_v44, %v7561_v38 }
 0x63d   : > { %23762 = vmatpush3.bf16.msra.mxu0 %v26647_v40  ;;  %v7658_v19 = vand.u32 4294901760, %v26724_v56  ;;  %v23793_v38 = vpack.c.bf16 %v26724_v56, %v26722_v53 }
 0x63e   : > { %23763 = vmatprep.subr.bf16.mxu0 %v29207_v21 }
 0x63f   : > { %v7659_v36 = vsub.f32 %v26724_v56, %v7658_v19  ;;  %v23809_v50 = vpack.c.bf16 %v7658_v19, %v7646_v62 }
 0x641   : > { %23765 = vmatpush3.bf16.msra.mxu0 %v26649_v15  ;;  %v26716_v15 = vsub.f32 %v7537_v22, %v7555_v43  ;;  %v7660_v59 = vand.u32 4294901760, %v7659_v36  ;;  %v7683_v22 = vsub.f32 %v7681_v34, %v7682_v30  ;;  %v29267_v34 = vld [vmem:[#allocation27_spill] sm:$0xff]  ;;  %v8754_v36 = vld [vmem:[%s24900_s20] sm:$0xff]  ;;  %v8757_v30 = vld [vmem:[%s24900_s20 + $0x18] sm:$0xff] }
 0x642   : > { %23766 = vmatprep.subr.bf16.mxu0 %v29207_v21 }
 0x643   : > { %v7640_v26 = vand.u32 4294901760, %v26716_v15 }
 0x644   : > { %21754 = vmatmul.mubr.f32.vlgmr.msra.gmra.mrb[58].mxu0 %v7084_v61 }
 0x645   : > { %23768 = vmatpush3.bf16.msra.mxu0 %v26587_v1  ;;  %21768 = vmatprep.mubr.msk.f32.mxu0 %vm24809_vm0, %v29206_v52  ;;  %v19569_v1 = vld [vmem:[%s24885_s30] ss:$0 sm:$0xff]  ;;  %v7641_v55 = vsub.f32 %v26716_v15, %v7640_v26 }
 0x646   : > { %23769 = vmatprep.subr.bf16.mxu0 %v29207_v21 }
 0x647   : > { %v7642_v5 = vand.u32 4294901760, %v7641_v55 }
 0x649   : > { %23771 = vmatpush3.bf16.msra.mxu0 %v26599_v14 }
 0x64a   : > { %23772 = vmatprep.subr.bf16.mxu0 %v29207_v21 }
 0x64d   : > { %23774 = vmatpush3.bf16.msra.mxu0 %v26611_v42  ;;  %v7539_v42 = vld [vmem:[%s24890_s6 + $0x18] sm:$0xff] }
 0x64e   : > { %23823 = vmatprep.subr.bf16.mxu0 %v29207_v21  ;;  %v7559_v25 = vand.u32 4294901760, %v7539_v42 }
 0x650   : > { %21769 = vmatmul.mubr.f32.vlgmr.msra.gmra.mrb[58].mxu0 %v7084_v61  ;;  %v26714_v40 = vpack.c.bf16 %v7559_v25, %v7555_v43  ;;  %v26718_v3 = vsub.f32 %v7539_v42, %v7559_v25  ;;  %v7676_v61 = vand.u32 4294901760, %v26740_v18  ;;  %v7684_v25 = vand.u32 4294901760, %v7683_v22  ;;  %v29275_v22 = vld [vmem:[#allocation35_spill] sm:$0xff] }
 0x651   : > { %21845 = vmatprep.mubr.msk.f32.mxu0 %vm24809_vm0, %v29206_v52 }
 0x652   : > { %23776 = vmatprep.subr.bf16.mxu1 %v26714_v40  ;;  %v7652_v63 = vand.u32 4294901760, %v26718_v3  ;;  %v23791_v7 = vpack.c.bf16 %v26718_v3, %v26716_v15  ;;  %v23811_v12 = vpack.c.bf16 %v7676_v61, %v7664_v39 }
 0x653   : > { %23778 = vmatpush1.bf16.msra.mxu1 %v26720_v47 }
 0x654   : > { %v7653_v60 = vsub.f32 %v26718_v3, %v7652_v63  ;;  %23780 = vmatprep.subr.bf16.mxu1 %v26736_v31  ;;  %v23807_v13 = vpack.c.bf16 %v7652_v63, %v7640_v26 }
 0x656   : > { %v7654_v49 = vand.u32 4294901760, %v7653_v60  ;;  %v29268_v60 = vld [vmem:[#allocation28_spill] sm:$0xff] }
 0x657   : > { %23782 = vmatpush1.bf16.msra.mxu1 %v26743_v37 }
 0x723   : > { %v7520_v57 = vpop.f32.mrb[58].mxu0 }
 0x724   : > { %v26707_v51 = vadd.f32 %v19569_v1, %v7520_v57  ;;  %v21770_v24 = vpop.f32.mrb[59].mxu0  ;;  %v23783_v1 = vpack.c.bf16 %v7654_v49, %v7642_v5  ;;  %v7665_v57 = vsub.f32 %v26738_v46, %v7664_v39  ;;  %v29269_v5 = vld [vmem:[#allocation29_spill] sm:$0xff]  ;;  %v8755_v49 = vld [vmem:[%s24900_s20 + $0x8] sm:$0xff] }
 0x725   : > { %v7677_v24 = vsub.f32 %v26740_v18, %v7676_v61  ;;  %v29264_v18 = vld [vmem:[#allocation24_spill] sm:$0xff]  ;;  %v29271_v39 = vld [vmem:[#allocation31_spill] sm:$0xff] }
 0x726   : > { %v7525_v11 = vsub.f32 0.0, %v26707_v51  ;;  %23784 = vmatprep.subr.bf16.mxu1 %v23783_v1  ;;  %v7666_v42 = vand.u32 4294901760, %v7665_v57  ;;  %v29272_v61 = vld [vmem:[#allocation32_spill] sm:$0xff]  ;;  %v29273_v1 = vld [vmem:[#allocation33_spill] sm:$0xff]  ;;  %v29274_v57 = vld [vmem:[#allocation34_spill] sm:$0xff] }
 0x728   : > { %v7526_v14 = vmul.f32 1.442695, %v7525_v11 }
 0x72a   : > { %24749 = vpow2.f32 %v7526_v14  ;;  %v23785_v14 = vpack.c.bf16 %v7660_v59, %v7648_v29  ;;  %v9251_v29 = vand.u32 4294901760, %v8754_v36  ;;  %v9254_v59 = vand.u32 4294901760, %v8755_v49 }
 0x734   : > { %v24750_v45 = vpop.eup %24749 }
 0x735   : > { %v7528_v20 = vadd.f32 1.0, %v24750_v45  ;;  %v7671_v45 = vsub.f32 %v7669_v41, %v7670_v35  ;;  %v29266_v41 = vld [vmem:[#allocation26_spill] sm:$0xff]  ;;  %v8756_v35 = vld [vmem:[%s24900_s20 + $0x10] sm:$0xff] }
 0x737   : > { %24751 = vrcp.f32 %v7528_v20  ;;  %v7678_v20 = vand.u32 4294901760, %v7677_v24  ;;  %v7672_v43 = vand.u32 4294901760, %v7671_v45  ;;  %v26829_v24 = vsub.f32 %v8754_v36, %v9251_v29 }
 0x738   : > { %24753 = vtanh.f32 %v26707_v51  ;;  %v9260_v45 = vand.u32 4294901760, %v8757_v30 }
 0x739   : > { %v23787_v9 = vpack.c.bf16 %v7678_v20, %v7666_v42  ;;  %v23789_v44 = vpack.c.bf16 %v7684_v25, %v7672_v43  ;;  %v29102_v42 = vand.u32 4294901760, %v26829_v24 }
 0x73a   : > { %v26839_v25 = vsub.f32 %v8757_v30, %v9260_v45 }
 0x741   : > { %v24752_v11 = vpop.eup %24751 }
 0x742   : > { %7532 = vrot.lane.b32.xlu1 %v24752_v11, %s24813_s18  ;;  %v24754_v4 = vpop.eup %24753  ;;  %v26831_v11 = vsub.f32 %v8755_v49, %v9254_v59  ;;  %s29334_s18 = sld [smem:[#allocation8_spill]] }
 0x744   : > { %v29101_v20 = vand.u32 4294901760, %v26831_v11 }
 0x746   : > { %12200 = vrot.lane.b32.xlu1 %v26654_v33, %s24814_s22  ;;  %s24816_s22 = smov 104  }
 0x7b4   : > { %v7533_v32 = vpop.permute.xlu1 %7532 }
 0x7b5   : > { %v7535_v33 = vmul.f32 %v24754_v4, %v7533_v32 }
 0x7b7   : > { %v7553_v55 = vsel %vm7551_vm5, %v7535_v33, 0  ;;  %v26785_v51 = vand.u32 4294901760, %v7535_v33 }
 0x7b8   : > { %v26763_v15 = vand.u32 4294901760, %v7553_v55 }
 0x7b9   : > { %v8221_v63 = vsub.f32 %v7535_v33, %v26785_v51  ;;  %v26872_v33 = vpack.c.bf16 %v9254_v59, %v9251_v29 }
 0x7ba   : > { %v26766_v3 = vsub.f32 %v7553_v55, %v26763_v15 }
 0x7bb   : > { %v8222_v62 = vand.u32 4294901760, %v8221_v63 }
 0x7bc   : > { %v26769_v53 = vand.u32 4294901760, %v26766_v3 }
 0x7bd   : > { %v8223_v19 = vsub.f32 %v8221_v63, %v8222_v62 }
 0x7be   : > { %v7631_v56 = vsub.f32 %v26766_v3, %v26769_v53 }
 0x7bf   : > { %v8224_v46 = vand.u32 4294901760, %v8223_v19 }
 0x7c0   : > { %v26773_v26 = vand.u32 4294901760, %v7631_v56  ;;  %v9735_v56 = vld [vmem:[%s24900_s20 + $0x40] sm:$0xff] }
 0x7c2   : > { %7633 = vmatmul.mubr.f32.vlgmr.msra.gmra.mrb[46].mxu1 %v26773_v26 }
 0x7c3   : > { %23786 = vmatpush1.bf16.msra.mxu1 %v23785_v14  ;;  %7742 = vmatprep.mubr.f32.mxu1 %v29206_v52  ;;  %v9257_v14 = vand.u32 4294901760, %v8756_v35 }
 0x7c4   : > { %23788 = vmatprep.subr.bf16.mxu1 %v23787_v9  ;;  %v9333_v9 = vsub.f32 %v26829_v24, %v29102_v42  ;;  %v2135_v42 = vlaneseq }
 0x7c5   : > { %v26837_v43 = vsub.f32 %v8756_v35, %v9257_v14  ;;  %v26876_v55 = vpack.c.bf16 %v9260_v45, %v9257_v14  ;;  %v9737_v14 = vld [vmem:[%s24900_s20 + $0x50] sm:$0xff]  ;;  %v9738_v45 = vld [vmem:[%s24900_s20 + $0x58] sm:$0xff] }
 0x7c7   : > { %23790 = vmatpush1.bf16.msra.mxu1 %v23789_v44  ;;  %v9340_v44 = vsub.f32 %v26831_v11, %v29101_v20 }
 0x7c8   : > { %23792 = vmatprep.subr.bf16.mxu1 %v23791_v7  ;;  %v29100_v7 = vand.u32 4294901760, %v26837_v43 }
 0x7ca   : > { %7744 = vmatmul.mubr.f32.vlgmr.msra.gmra.mrb[46].mxu1 %v26763_v15 }
 0x7cb   : > { %23794 = vmatpush1.bf16.msra.mxu1 %v23793_v38  ;;  %7829 = vmatprep.mubr.f32.mxu1 %v29206_v52  ;;  %v29099_v38 = vand.u32 4294901760, %v26839_v25 }
 0x7cc   : > { %23796 = vmatprep.subr.bf16.mxu1 %v23795_v28  ;;  %v9334_v28 = vand.u32 4294901760, %v9333_v9  ;;  %v9749_v9 = vand.u32 4294901760, %v9737_v14 }
 0x7cf   : > { %23798 = vmatpush1.bf16.msra.mxu1 %v23797_v17  ;;  %v9341_v17 = vand.u32 4294901760, %v9340_v44  ;;  %v9752_v44 = vand.u32 4294901760, %v9738_v45 }
 0x7d0   : > { %23800 = vmatprep.subr.bf16.mxu1 %v26714_v40 }
 0x7d2   : > { %7832 = vmatmul.mubr.f32.vlgmr.msra.gmra.mrb[46].mxu1 %v26766_v3 }
 0x7d3   : > { %23802 = vmatpush1.bf16.msra.mxu1 %v26720_v47  ;;  %7909 = vmatprep.mubr.f32.mxu1 %v29206_v52 }
 0x7d4   : > { %23804 = vmatprep.subr.bf16.mxu1 %v26736_v31 }
 0x7d7   : > { %23806 = vmatpush1.bf16.msra.mxu1 %v26743_v37 }
 0x7d8   : > { %23808 = vmatprep.subr.bf16.mxu1 %v23807_v13  ;;  %v9347_v13 = vsub.f32 %v26837_v43, %v29100_v7  ;;  %v29279_v7 = vld [vmem:[#allocation37_spill] sm:$0xff] }
 0x7da   : > { %7913 = vmatmul.mubr.f32.vlgmr.msra.gmra.mrb[46].mxu1 %v26769_v53 }
 0x7db   : > { %23810 = vmatpush1.bf16.msra.mxu1 %v23809_v50  ;;  %8006 = vmatprep.mubr.f32.mxu1 %v29206_v52  ;;  %v9354_v50 = vsub.f32 %v26839_v25, %v29099_v38 }
 0x7dc   : > { %23812 = vmatprep.subr.bf16.mxu1 %v23811_v12  ;;  %v23866_v12 = vpack.c.bf16 %v9341_v17, %v9334_v28  ;;  %v26910_v28 = vsub.f32 %v9737_v14, %v9749_v9  ;;  %v26912_v17 = vsub.f32 %v9738_v45, %v9752_v44 }
 0x7dd   : > { %v9355_v4 = vand.u32 4294901760, %v9354_v50 }
 0x7de   : > { %v29096_v50 = vand.u32 4294901760, %v26912_v17 }
 0x7df   : > { %23814 = vmatpush1.bf16.msra.mxu1 %v23813_v2  ;;  %v9348_v2 = vand.u32 4294901760, %v9347_v13  ;;  %v29095_v13 = vand.u32 4294901760, %v26910_v28 }
 0x7e0   : > { %23816 = vmatprep.subr.bf16.mxu1 %v26714_v40  ;;  %v29261_v40 = vld [vmem:[#allocation21_spill] sm:$0xff] }
 0x7e1   : > { %v23869_v32 = vpack.c.bf16 %v9355_v4, %v9348_v2  ;;  %v9846_v2 = vsub.f32 %v26912_v17, %v29096_v50  ;;  %v8761_v50 = vld [vmem:[%s24900_s20 + $0x38] sm:$0xff] }
 0x7e2   : > { %8008 = vmatmul.mubr.f32.vlgmr.msra.gmra.mrb[46].mxu1 %v26763_v15 }
 0x7e3   : > { %23818 = vmatpush1.bf16.msra.mxu1 %v26720_v47  ;;  %8085 = vmatprep.mubr.f32.mxu1 %v29206_v52  ;;  %v29262_v47 = vld [vmem:[#allocation22_spill] sm:$0xff] }
 0x7e4   : > { %23820 = vmatprep.subr.bf16.mxu1 %v26736_v31  ;;  %v29263_v31 = vld [vmem:[#allocation23_spill] sm:$0xff] }
 0x7e7   : > { %23822 = vmatpush1.bf16.msra.mxu1 %v26743_v37  ;;  %v29265_v37 = vld [vmem:[#allocation25_spill] sm:$0xff] }
 0x7e8   : > { %21771 = vmatprep.subr.mxu1 %v26785_v51 }
 0x7ea   : > { %8087 = vmatmul.mubr.f32.vlgmr.msra.gmra.mrb[46].mxu1 %v26763_v15 }
 0x7eb   : > { %21772 = vmatpush3.msra.mxu1 %v26785_v51  ;;  %21773 = vmatprep.mubr.f32.mxu1 %v25398_v10 }
 0x7ec   : > { %21782 = vmatprep.subr.mxu1 %v8224_v46 }
 0x7ee   : > { %21774 = vmatmul.mubr.f32.vlgmr.msra.gmra.mrb[48].mxu1 %v25406_v8 }
 0x7ef   : > { %21783 = vmatpush3.msra.mxu1 %v8224_v46  ;;  %21776 = vmatprep.mubr.f32.mxu1 %v25412_v58 }
 0x7f0   : > { %21793 = vmatprep.subr.mxu1 %v8221_v63 }
 0x7f2   : > { %21777 = vmatmul.mubr.f32.gmra.mrb[50].mxu1 %v25418_v16 }
 0x7f3   : > { %21779 = vmatprep.mubr.f32.mxu1 %v25423_v23 }
 0x7f6   : > { %21780 = vmatmul.mubr.f32.gmra.mrb[52].mxu1 %v25426_v27  ;;  %v27319_v27 = vld [vmem:[%s24900_s20 + $0xc8] sm:$0xff] }
 0x7f7   : > { %21784 = vmatprep.mubr.f32.mxu1 %v25214_v6 }
 0x7fa   : > { %21785 = vmatmul.mubr.f32.vlgmr.msra.gmra.mrb[48].mxu1 %v25261_v48 }
 0x7fb   : > { %21794 = vmatpush3.msra.mxu1 %v8221_v63  ;;  %21787 = vmatprep.mubr.f32.mxu1 %v25266_v54  ;;  %v9743_v63 = vand.u32 4294901760, %v9735_v56 }
 0x7fc   : > { %21804 = vmatprep.subr.mxu1 %v26785_v51 }
 0x7fd   : > { %v26892_v19 = vsub.f32 %v9735_v56, %v9743_v63 }
 0x7fe   : > { %21788 = vmatmul.mubr.f32.gmra.mrb[50].mxu1 %v29261_v40 }
 0x7ff   : > { %21790 = vmatprep.mubr.f32.mxu1 %v29262_v47  ;;  %v29098_v46 = vand.u32 4294901760, %v26892_v19 }
 0x801   : > { %v9825_v49 = vsub.f32 %v26892_v19, %v29098_v46 }
 0x802   : > { %21791 = vmatmul.mubr.f32.gmra.mrb[52].mxu1 %v29263_v31 }
 0x803   : > { %21795 = vmatprep.mubr.f32.mxu1 %v29264_v18  ;;  %v9826_v59 = vand.u32 4294901760, %v9825_v49  ;;  %v8759_v49 = vld [vmem:[%s24900_s20 + $0x28] sm:$0xff] }
 0x806   : > { %21796 = vmatmul.mubr.f32.vlgmr.msra.gmra.mrb[48].mxu1 %v29265_v37 }
 0x807   : > { %21805 = vmatpush3.msra.mxu1 %v26785_v51  ;;  %21798 = vmatprep.mubr.f32.mxu1 %v29266_v41 }
 0x808   : > { %21815 = vmatprep.subr.mxu1 %v8222_v62 }
 0x80a   : > { %21799 = vmatmul.mubr.f32.gmra.mrb[50].mxu1 %v29267_v34 }
 0x80b   : > { %21801 = vmatprep.mubr.f32.mxu1 %v29268_v60 }
 0x80e   : > { %21802 = vmatmul.mubr.f32.gmra.mrb[52].mxu1 %v29269_v5 }
 0x80f   : > { %21806 = vmatprep.mubr.f32.mxu1 %v29270_v0 }
 0x812   : > { %21807 = vmatmul.mubr.f32.vlgmr.msra.gmra.mrb[48].mxu1 %v29271_v39  ;;  %v26987_v39 = vld [vmem:[%s24900_s20 + $0x70] sm:$0xff] }
 0x813   : > { %21816 = vmatpush3.msra.mxu1 %v8222_v62  ;;  %21809 = vmatprep.mubr.f32.mxu1 %v29272_v61 }
 0x814   : > { %21826 = vmatprep.subr.mxu1 %v26785_v51 }
 0x816   : > { %21810 = vmatmul.mubr.f32.gmra.mrb[50].mxu1 %v29273_v1 }
 0x817   : > { %21812 = vmatprep.mubr.f32.mxu1 %v29274_v57  ;;  %v26982_v57 = vld [vmem:[%s24900_s20 + $0x68] sm:$0xff] }
 0x818   : > { %v29106_v61 = vand.u32 4294901760, %v26982_v57 }
 0x81a   : > { %21813 = vmatmul.mubr.f32.gmra.mrb[52].mxu1 %v29275_v22  ;;  %v26967_v22 = vshrl.u32 %v2135_v42, 7  ;;  %v26979_v42 = vld [vmem:[%s24900_s20 + $0x60] sm:$0xff] }
 0x81b   : > { %21817 = vmatprep.mubr.f32.mxu1 %v25214_v6  ;;  %v29104_v1 = vand.u32 4294901760, %v26979_v42 }
 0x81c   : > { %29278 = vst [vmem:[#allocation38_spill] sm:$0xff] %v26967_v22 }
 0x81e   : > { %21818 = vmatmul.mubr.f32.vlgmr.msra.gmra.mrb[48].mxu1 %v25261_v48 }
 0x81f   : > { %21827 = vmatpush3.msra.mxu1 %v26785_v51  ;;  %21820 = vmatprep.mubr.f32.mxu1 %v25266_v54  ;;  %v9736_v51 = vld [vmem:[%s24900_s20 + $0x48] sm:$0xff] }
 0x820   : > { %23865 = vmatprep.subr.bf16.mxu1 %v29207_v21  ;;  %v9746_v62 = vand.u32 4294901760, %v9736_v51 }
 0x822   : > { %21821 = vmatmul.mubr.f32.gmra.mrb[50].mxu1 %v29261_v40 }
 0x823   : > { %21823 = vmatprep.mubr.f32.mxu1 %v29262_v47 }
 0x826   : > { %21824 = vmatmul.mubr.f32.gmra.mrb[52].mxu1 %v29263_v31 }
 0x827   : > { %21828 = vmatprep.mubr.f32.mxu1 %v25214_v6 }
 0x82a   : > { %21829 = vmatmul.mubr.f32.vlgmr.msra.gmra.mrb[48].mxu1 %v25261_v48 }
 0x82b   : > { %21831 = vmatprep.mubr.f32.mxu1 %v25266_v54  ;;  %23867 = vmatpush3.bf16.msra.mxu1 %v23866_v12  ;;  %v9839_v12 = vsub.f32 %v26910_v28, %v29095_v13  ;;  %v8760_v13 = vld [vmem:[%s24900_s20 + $0x30] sm:$0xff] }
 0x82c   : > { %23868 = vmatprep.subr.bf16.mxu1 %v29207_v21 }
 0x82d   : > { %v9840_v4 = vand.u32 4294901760, %v9839_v12  ;;  %v8772_v12 = vand.u32 4294901760, %v8760_v13 }
 0x82e   : > { %21832 = vmatmul.mubr.f32.gmra.mrb[50].mxu1 %v29261_v40 }
 0x82f   : > { %21834 = vmatprep.mubr.f32.mxu1 %v29262_v47  ;;  %23870 = vmatpush3.bf16.msra.mxu1 %v23869_v32  ;;  %v9847_v32 = vand.u32 4294901760, %v9846_v2  ;;  %v8775_v2 = vand.u32 4294901760, %v8761_v50 }
 0x830   : > { %23877 = vmatprep.subr.bf16.mxu1 %v29207_v21 }
 0x831   : > { %v23905_v56 = vpack.c.bf16 %v9847_v32, %v9840_v4 }
 0x832   : > { %21835 = vmatmul.mubr.f32.gmra.mrb[52].mxu1 %v29263_v31 }
 0x833   : > { %21922 = vmatprep.mubr.msk.f32.mxu1 %vm24809_vm0, %v29206_v52 }
 0x836   : > { %21923 = vmatmul.mubr.f32.vlgmr.msra.gmra.mrb[54].mxu1 %v26763_v15 }
 0x837   : > { %23879 = vmatpush3.bf16.msra.mxu1 %v26872_v33  ;;  %21944 = vmatprep.mubr.msk.f32.mxu1 %vm24809_vm0, %v29206_v52 }
 0x838   : > { %23880 = vmatprep.subr.bf16.mxu1 %v29207_v21 }
 0x83b   : > { %23882 = vmatpush3.bf16.msra.mxu1 %v26876_v55 }
 0x83c   : > { %23889 = vmatprep.subr.bf16.mxu1 %v29207_v21 }
 0x83e   : > { %21945 = vmatmul.mubr.f32.vlgmr.msra.gmra.mrb[56].mxu1 %v26769_v53  ;;  %v26894_v53 = vsub.f32 %v9736_v51, %v9746_v62  ;;  %v8758_v51 = vld [vmem:[%s24900_s20 + $0x20] sm:$0xff] }
 0x83f   : > { %23891 = vmatpush3.bf16.msra.mxu1 %v26872_v33  ;;  %21966 = vmatprep.mubr.msk.f32.mxu1 %vm24809_vm0, %v29206_v52 }
 0x840   : > { %23892 = vmatprep.subr.bf16.mxu1 %v29207_v21  ;;  %v29097_v36 = vand.u32 4294901760, %v26894_v53 }
 0x842   : > { %v9832_v29 = vsub.f32 %v26894_v53, %v29097_v36 }
 0x843   : > { %23894 = vmatpush3.bf16.msra.mxu1 %v26876_v55 }
 0x844   : > { %23901 = vmatprep.subr.bf16.mxu1 %v29207_v21  ;;  %v9833_v35 = vand.u32 4294901760, %v9832_v29  ;;  %v8766_v29 = vand.u32 4294901760, %v8758_v51 }
 0x846   : > { %21967 = vmatmul.mubr.f32.vlgmr.msra.gmra.mrb[58].mxu1 %v26763_v15  ;;  %v23902_v30 = vpack.c.bf16 %v9833_v35, %v9826_v59  ;;  %v8769_v59 = vand.u32 4294901760, %v8759_v49  ;;  %v26925_v35 = vpack.c.bf16 %v9746_v62, %v9743_v63  ;;  %v26929_v14 = vsub.f32 %v8758_v51, %v8766_v29 }
 0x847   : > { %21988 = vmatprep.mubr.msk.f32.mxu1 %vm24809_vm0, %v29206_v52  ;;  %v26939_v63 = vpack.c.bf16 %v9752_v44, %v9749_v9  ;;  %v26941_v62 = vpack.c.bf16 %v8775_v2, %v8772_v12  ;;  %v26945_v51 = vsub.f32 %v8761_v50, %v8775_v2 }
 0x848   : > { %23903 = vmatpush3.bf16.msra.mxu1 %v23902_v30  ;;  %v26927_v30 = vpack.c.bf16 %v8769_v59, %v8766_v29  ;;  %v26931_v45 = vsub.f32 %v8759_v49, %v8769_v59  ;;  %v8847_v4 = vand.u32 4294901760, %v26929_v14 }
 0x849   : > { %23904 = vmatprep.subr.bf16.mxu1 %v29207_v21  ;;  %v8868_v46 = vand.u32 4294901760, %v26945_v51 }
 0x84a   : > { %23825 = vmatpush3.bf16.msra.mxu0 %v26927_v30  ;;  %v8854_v32 = vand.u32 4294901760, %v26931_v45  ;;  %v8848_v49 = vsub.f32 %v26929_v14, %v8847_v4 }
 0x84b   : > { %23826 = vmatprep.subr.bf16.mxu0 %v29207_v21 }
 0x84c   : > { %23906 = vmatpush3.bf16.msra.mxu1 %v23905_v56  ;;  %v26943_v56 = vsub.f32 %v8760_v13, %v8772_v12  ;;  %v8855_v29 = vsub.f32 %v26931_v45, %v8854_v32  ;;  %v8849_v59 = vand.u32 4294901760, %v8848_v49  ;;  %v8869_v13 = vsub.f32 %v26945_v51, %v8868_v46 }
 0x84d   : > { %23913 = vmatprep.subr.bf16.mxu1 %v29207_v21  ;;  %v26963_v20 = vpack.c.bf16 %v8854_v32, %v8847_v4 }
 0x84e   : > { %23828 = vmatpush3.bf16.msra.mxu0 %v26941_v62  ;;  %v8861_v36 = vand.u32 4294901760, %v26943_v56  ;;  %v8856_v9 = vand.u32 4294901760, %v8855_v29  ;;  %v8870_v2 = vand.u32 4294901760, %v8869_v13  ;;  %v7544_v13 = vld [vmem:[%s29277_s26] sm:$0x3]  ;;  %s29355_s26 = sld [smem:[#allocation9_spill]] }
 0x84f   : > { %23829 = vmatprep.subr.bf16.mxu0 %v29207_v21 }
 0x850   : > { %v8862_v44 = vsub.f32 %v26943_v56, %v8861_v36  ;;  %v26955_v50 = vpack.c.bf16 %v8856_v9, %v8849_v59  ;;  %v26965_v29 = vpack.c.bf16 %v8868_v46, %v8861_v36  ;;  %v2137_v59 = vsub.s32 2, %v26967_v22 }
 0x851   : > { %v29103_v9 = vsub.s32 1, %v26967_v22 }
 0x852   : > { %v8863_v12 = vand.u32 4294901760, %v8862_v44  ;;  %v2133_v44 = vld [vmem:[%s29276_s23] sm:$0x7]  ;;  %s29343_s23 = sld [smem:[#allocation10_spill]] }
 0x854   : > { %v26957_v38 = vpack.c.bf16 %v8870_v2, %v8863_v12  ;;  %v2138_v12 = vrot.slane %v2133_v44, %v2137_v59  ;;  %v7549_v2 = vrot.slane %v7544_v13, %v29103_v9  ;;  %v26990_v59 = vld [vmem:[%s24900_s20 + $0x78] sm:$0xff] }
 0x855   : > { %v29280_v0 = vand.u32 4294901760, %v26990_v59 }
 0x856   : > { %v24498_v46 = vadd.f32 %v29279_v7, %v2138_v12  ;;  %v26995_v7 = vsub.f32 %v26979_v42, %v29104_v1 }
 0x8bd   : > { %v8088_v4 = vpop.f32.mrb[46].mxu1 }
 0x8be   : > { %v8089_v32 = vpop.f32.mrb[47].mxu1  ;;  %v29107_v4 = vand.u32 4294901760, %v26987_v39 }
 0x8bf   : > { %v24506_v36 = vadd.f32 %v8089_v32, %v7549_v2  ;;  %v27001_v2 = vsub.f32 %v26982_v57, %v29106_v61  ;;  %v29281_v32 = vand.u32 4294901760, %v26995_v7 }
 0x8c1   : > { %v26976_v49 = vadd.f32 %v24506_v36, %v24498_v46  ;;  %v10318_v34 = vsub.f32 %v26995_v7, %v29281_v32 }
 0x8fd   : > { %v21830_v44 = vpop.f32.mrb[48].mxu1 }
 0x8fe   : > { %v9740_v13 = vsel %vm7551_vm5, %v21830_v44, 0  ;;  %v8720_v12 = vpop.f32.mrb[49].mxu1  ;;  %v27029_v44 = vsub.f32 %v26990_v59, %v29280_v0 }
 0x8ff   : > { %v27005_v46 = vand.u32 4294901760, %v9740_v13  ;;  %v8763_v36 = vsel %vm7551_vm5, %v8720_v12, 0  ;;  %v27024_v12 = vsub.f32 %v26987_v39, %v29107_v4 }
 0x900   : > { %v27008_v9 = vand.u32 4294901760, %v8763_v36  ;;  %v29284_v54 = vand.u32 4294901760, %v27029_v44 }
 0x901   : > { %v27010_v1 = vpop.f32.mrb[50].mxu1  ;;  %21989 = vmatmul.mubr.f32.vlgmr.msra.gmra.mrb[60].mxu1 %v27005_v46  ;;  %v29283_v18 = vand.u32 4294901760, %v27024_v12 }
 0x902   : > { %v27015_v22 = vsub.f32 %v8763_v36, %v27008_v9  ;;  %23915 = vmatpush3.bf16.msra.mxu1 %v26925_v35  ;;  %v8732_v61 = vpop.f32.mrb[51].mxu1  ;;  %22010 = vmatprep.mubr.msk.f32.mxu1 %vm24809_vm0, %v29206_v52  ;;  %v27032_v36 = vsub.f32 %v9740_v13, %v27005_v46  ;;  %v29282_v13 = vand.u32 4294901760, %v27001_v2 }
 0x903   : > { %23916 = vmatprep.subr.bf16.mxu1 %v29207_v21  ;;  %v10332_v40 = vsub.f32 %v27024_v12, %v29283_v18  ;;  %v10233_v48 = vsel %vm7551_vm5, %v8732_v61, 0 }
 0x904   : > { %v29109_v5 = vand.u32 4294901760, %v27015_v22  ;;  %v10325_v41 = vsub.f32 %v27001_v2, %v29282_v13  ;;  %v29114_v31 = vand.u32 4294901760, %v27032_v36  ;;  %v10319_v13 = vand.u32 4294901760, %v10318_v34  ;;  %v27079_v34 = vld [vmem:[%s24900_s20 + $0x88] sm:$0xff] }
 0x905   : > { %v27036_v60 = vpop.f32.mrb[52].mxu1  ;;  %v10333_v18 = vand.u32 4294901760, %v10332_v40 }
 0x906   : > { %v8837_v4 = vsub.f32 %v27015_v22, %v29109_v5  ;;  %23918 = vmatpush3.bf16.msra.mxu1 %v26939_v63  ;;  %v27045_v0 = vpop.f32.mrb[53].mxu1  ;;  %v10326_v37 = vand.u32 4294901760, %v10325_v41 }
 0x907   : > { %23925 = vmatprep.subr.bf16.mxu1 %v29207_v21 }
 0x908   : > { %v8838_v32 = vand.u32 4294901760, %v8837_v4  ;;  %v10339_v4 = vsub.f32 %v27029_v44, %v29284_v54  ;;  %v27076_v54 = vld [vmem:[%s24900_s20 + $0x80] sm:$0xff] }
 0x909   : > { %22011 = vmatmul.mubr.f32.vlgmr.msra.gmra.mrb[62].mxu1 %v29114_v31  ;;  %v27056_v5 = vpop.f32.mrb[54].mxu1  ;;  %v27096_v31 = vld [vmem:[%s24900_s20 + $0x98] sm:$0xff] }
 0x90a   : > { %23927 = vmatpush3.bf16.msra.mxu1 %v26925_v35  ;;  %21846 = vmatmul.mubr.f32.vlgmr.msra.gmra.mrb[60].mxu0 %v8838_v32  ;;  %v21924_v47 = vpop.f32.mrb[55].mxu1  ;;  %v10340_v41 = vand.u32 4294901760, %v10339_v4  ;;  %v29117_v32 = vand.u32 4294901760, %v27079_v34  ;;  %v27093_v4 = vld [vmem:[%s24900_s20 + $0x90] sm:$0xff] }
 0x90b   : > { %23831 = vmatpush3.bf16.msra.mxu0 %v26955_v50  ;;  %23928 = vmatprep.subr.bf16.mxu1 %v29207_v21  ;;  %v23938_v47 = vpack.c.bf16 %v10326_v37, %v10319_v13  ;;  %v29285_v13 = vpack.c.bf16 %v26931_v45, %v26929_v14  ;;  %v29287_v14 = vand.u32 4294901760, %v26982_v57  ;;  %v29288_v57 = vpack.c.bf16 %v26945_v51, %v26943_v56 }
 0x90c   : > { %23832 = vmatprep.subr.bf16.mxu0 %v29207_v21  ;;  %22032 = vmatprep.mubr.msk.f32.mxu1 %vm24809_vm0, %v29206_v52  ;;  %v23941_v37 = vpack.c.bf16 %v10340_v41, %v10333_v18  ;;  %v27118_v61 = vsub.f32 %v27079_v34, %v29117_v32  ;;  %v29121_v41 = vand.u32 4294901760, %v27093_v4 }
 0x90d   : > { %21856 = vmatprep.mubr.msk.f32.mxu0 %vm24809_vm0, %v29206_v52 }
 0x90e   : > { %23930 = vmatpush3.bf16.msra.mxu1 %v26939_v63  ;;  %v29120_v51 = vand.u32 4294901760, %v27118_v61 }
 0x90f   : > { %23834 = vmatpush3.bf16.msra.mxu0 %v26957_v38  ;;  %23937 = vmatprep.subr.bf16.mxu1 %v29207_v21  ;;  %v29122_v38 = vand.u32 4294901760, %v27076_v54 }
 0x910   : > { %23835 = vmatprep.subr.bf16.mxu0 %v29207_v21 }
 0x911   : > { %v27082_v50 = vpop.f32.mrb[56].mxu1  ;;  %22033 = vmatmul.mubr.f32.vlgmr.msra.gmra.mrb[64].mxu1 %v27005_v46  ;;  %v27113_v18 = vsub.f32 %v27076_v54, %v29122_v38 }
 0x912   : > { %21857 = vmatmul.mubr.f32.vlgmr.msra.gmra.mrb[62].mxu0 %v27008_v9  ;;  %v21946_v40 = vpop.f32.mrb[57].mxu1  ;;  %23939 = vmatpush3.bf16.msra.mxu1 %v23938_v47  ;;  %v29286_v47 = vand.u32 4294901760, %v26979_v42  ;;  %v27122_v42 = vand.u32 4294901760, %v10233_v48 }
 0x913   : > { %23837 = vmatpush3.bf16.msra.mxu0 %v29285_v13  ;;  %23940 = vmatprep.subr.bf16.mxu1 %v29207_v21  ;;  %v29118_v40 = vand.u32 4294901760, %v27096_v31  ;;  %v29289_v13 = vand.u32 4294901760, %v26987_v39  ;;  %v29119_v56 = vand.u32 4294901760, %v27113_v18 }
 0x914   : > { %23838 = vmatprep.subr.bf16.mxu0 %v29207_v21  ;;  %22054 = vmatprep.mubr.msk.f32.mxu1 %vm24809_vm0, %v29206_v52  ;;  %v27108_v45 = vpack.c.bf16 %v29287_v14, %v29286_v47  ;;  %v29290_v47 = vand.u32 4294901760, %v26990_v59  ;;  %v27153_v59 = vsub.f32 %v10233_v48, %v27122_v42  ;;  %v10818_v48 = vsub.f32 %v27118_v61, %v29120_v51 }
 0x915   : > { %21867 = vmatprep.mubr.msk.f32.mxu0 %vm24809_vm0, %v29206_v52  ;;  %v27150_v39 = vsub.f32 %v27096_v31, %v29118_v40 }
 0x916   : > { %23942 = vmatpush3.bf16.msra.mxu1 %v23941_v37  ;;  %v27136_v14 = vpack.c.bf16 %v29290_v47, %v29289_v13  ;;  %v29127_v40 = vand.u32 4294901760, %v27153_v59 }
 0x917   : > { %23840 = vmatpush3.bf16.msra.mxu0 %v29288_v57  ;;  %23949 = vmatprep.subr.bf16.mxu1 %v29207_v21  ;;  %v27145_v57 = vsub.f32 %v27093_v4, %v29121_v41  ;;  %v29125_v47 = vand.u32 4294901760, %v27150_v39  ;;  %v10819_v41 = vand.u32 4294901760, %v10818_v48  ;;  %v27200_v48 = vld [vmem:[%s24900_s20 + $0xa8] sm:$0xff] }
 0x918   : > { %23841 = vmatprep.subr.bf16.mxu0 %v29207_v21 }
 0x919   : > { %v27129_v37 = vpop.f32.mrb[58].mxu1  ;;  %22055 = vmatmul.mubr.f32.vlgmr.msra.gmra.mrb[66].mxu1 %v27122_v42  ;;  %v29126_v13 = vand.u32 4294901760, %v27145_v57  ;;  %v10832_v6 = vsub.f32 %v27150_v39, %v29125_v47  ;;  %v10726_v47 = vsel %vm7551_vm5, %v27010_v1, 0 }
 0x91a   : > { %21868 = vmatmul.mubr.f32.vlgmr.msra.gmra.mrb[64].mxu0 %v27015_v22  ;;  %v21968_v32 = vpop.f32.mrb[59].mxu1  ;;  %23951 = vmatpush3.bf16.msra.mxu1 %v27108_v45 }
 0x91b   : > { %23843 = vmatpush3.bf16.msra.mxu0 %v26927_v30  ;;  %23952 = vmatprep.subr.bf16.mxu1 %v29207_v21  ;;  %v10811_v32 = vsub.f32 %v27113_v18, %v29119_v56  ;;  %v29291_v56 = vand.u32 4294901760, %v27015_v22  ;;  %v10825_v38 = vsub.f32 %v27145_v57, %v29126_v13 }
 0x91c   : > { %23844 = vmatprep.subr.bf16.mxu0 %v29207_v21  ;;  %22076 = vmatprep.mubr.msk.f32.mxu1 %vm24809_vm0, %v29206_v52 }
 0x91d   : > { %21878 = vmatprep.mubr.msk.f32.mxu0 %vm24809_vm0, %v29206_v52  ;;  %v10812_v51 = vand.u32 4294901760, %v10811_v32  ;;  %v10833_v32 = vand.u32 4294901760, %v10832_v6  ;;  %v29128_v6 = vand.u32 4294901760, %v27200_v48 }
 0x91e   : > { %23954 = vmatpush3.bf16.msra.mxu1 %v27136_v14 }
 0x91f   : > { %23846 = vmatpush3.bf16.msra.mxu0 %v26941_v62  ;;  %23961 = vmatprep.subr.bf16.mxu1 %v29207_v21  ;;  %v23974_v22 = vpack.c.bf16 %v10819_v41, %v10812_v51  ;;  %v27213_v51 = vld [vmem:[%s24900_s20 + $0xb8] sm:$0xff]  ;;  %v27236_v1 = vsub.f32 %v27200_v48, %v29128_v6 }
 0x920   : > { %23847 = vmatprep.subr.bf16.mxu0 %v29207_v21 }
 0x921   : > { %22077 = vmatmul.mubr.f32.vlgmr.msra.gmra.mrb[68].mxu1 %v29127_v40  ;;  %v29129_v40 = vand.u32 4294901760, %v27213_v51 }
 0x922   : > { %21879 = vmatmul.mubr.f32.vlgmr.msra.gmra.mrb[66].mxu0 %v29291_v56  ;;  %23963 = vmatpush3.bf16.msra.mxu1 %v27108_v45  ;;  %v10826_v56 = vand.u32 4294901760, %v10825_v38 }
 0x923   : > { %23849 = vmatpush3.bf16.msra.mxu0 %v26963_v20  ;;  %23964 = vmatprep.subr.bf16.mxu1 %v29207_v21  ;;  %v27197_v20 = vld [vmem:[%s24900_s20 + $0xa0] sm:$0xff] }
 0x924   : > { %23850 = vmatprep.subr.bf16.mxu0 %v29207_v21  ;;  %22098 = vmatprep.mubr.msk.f32.mxu1 %vm24809_vm0, %v29206_v52  ;;  %v23977_v41 = vpack.c.bf16 %v10833_v32, %v10826_v56  ;;  %v29136_v38 = vand.u32 4294901760, %v27197_v20 }
 0x925   : > { %21889 = vmatprep.mubr.msk.f32.mxu0 %vm24809_vm0, %v29206_v52 }
 0x926   : > { %23966 = vmatpush3.bf16.msra.mxu1 %v27136_v14  ;;  %v27231_v32 = vsub.f32 %v27197_v20, %v29136_v38  ;;  %v27316_v38 = vld [vmem:[%s24900_s20 + $0xc0] sm:$0xff] }
 0x927   : > { %23852 = vmatpush3.bf16.msra.mxu0 %v26965_v29  ;;  %23973 = vmatprep.subr.bf16.mxu1 %v29207_v21  ;;  %v27210_v29 = vld [vmem:[%s24900_s20 + $0xb0] sm:$0xff] }
 0x928   : > { %23853 = vmatprep.subr.bf16.mxu0 %v29207_v21  ;;  %v29132_v13 = vand.u32 4294901760, %v27210_v29 }
 0x929   : > { %22099 = vmatmul.mubr.f32.vlgmr.msra.gmra.mrb[70].mxu1 %v27122_v42 }
 0x92a   : > { %21890 = vmatmul.mubr.f32.vlgmr.msra.gmra.mrb[68].mxu0 %v27008_v9  ;;  %23975 = vmatpush3.bf16.msra.mxu1 %v23974_v22  ;;  %v29292_v22 = vand.u32 4294901760, %v27076_v54  ;;  %v27240_v54 = vand.u32 4294901760, %v10726_v47  ;;  %v27259_v6 = vsub.f32 %v27210_v29, %v29132_v13 }
 0x92b   : > { %23855 = vmatpush3.bf16.msra.mxu0 %v26927_v30  ;;  %23976 = vmatprep.subr.bf16.mxu1 %v29207_v21  ;;  %v29293_v30 = vand.u32 4294901760, %v27079_v34  ;;  %v29294_v34 = vand.u32 4294901760, %v27093_v4  ;;  %v27264_v4 = vsub.f32 %v27213_v51, %v29129_v40  ;;  %v23872_v40 = vpack.c.bf16 %v26831_v11, %v26829_v24 }
 0x92c   : > { %23856 = vmatprep.subr.bf16.mxu0 %v29207_v21  ;;  %22120 = vmatprep.mubr.msk.f32.mxu1 %vm24809_vm0, %v29206_v52 }
 0x92d   : > { %21900 = vmatprep.mubr.msk.f32.mxu0 %vm24809_vm0, %v29206_v52  ;;  %v27226_v56 = vpack.c.bf16 %v29293_v30, %v29292_v22  ;;  %v29131_v30 = vand.u32 4294901760, %v27231_v32 }
 0x92e   : > { %23978 = vmatpush3.bf16.msra.mxu1 %v23977_v41  ;;  %v29295_v41 = vand.u32 4294901760, %v27096_v31  ;;  %v27267_v31 = vsub.f32 %v10726_v47, %v27240_v54  ;;  %v29133_v47 = vand.u32 4294901760, %v27259_v6 }
 0x92f   : > { %23858 = vmatpush3.bf16.msra.mxu0 %v26941_v62  ;;  %23985 = vmatprep.subr.bf16.mxu1 %v29207_v21  ;;  %v29130_v62 = vand.u32 4294901760, %v27236_v1 }
 0x930   : > { %23859 = vmatprep.subr.bf16.mxu0 %v29207_v21  ;;  %v27250_v22 = vpack.c.bf16 %v29295_v41, %v29294_v34  ;;  %v29134_v34 = vand.u32 4294901760, %v27264_v4  ;;  %v29135_v41 = vand.u32 4294901760, %v27267_v31 }
 0x931   : > { %22121 = vmatmul.mubr.f32.vlgmr.msra.gmra.mrb[72].mxu1 %v27240_v54 }
 0x932   : > { %21901 = vmatmul.mubr.f32.vlgmr.msra.gmra.mrb[70].mxu0 %v27008_v9  ;;  %23987 = vmatpush3.bf16.msra.mxu1 %v27226_v56  ;;  %v11304_v9 = vsub.f32 %v27231_v32, %v29131_v30  ;;  %v11325_v13 = vsub.f32 %v27264_v4, %v29134_v34  ;;  %v29297_v34 = vand.u32 4294901760, %v26831_v11  ;;  %v29299_v11 = vand.u32 4294901760, %v26839_v25 }
 0x933   : > { %23861 = vmatpush3.bf16.msra.mxu0 %v26872_v33  ;;  %23988 = vmatprep.subr.bf16.mxu1 %v29207_v21  ;;  %v11311_v33 = vsub.f32 %v27236_v1, %v29130_v62 }
 0x934   : > { %23862 = vmatprep.subr.bf16.mxu0 %v29207_v21  ;;  %22142 = vmatprep.mubr.msk.f32.mxu1 %vm24809_vm0, %v29206_v52  ;;  %v11305_v62 = vand.u32 4294901760, %v11304_v9 }
 0x935   : > { %21911 = vmatprep.mubr.msk.f32.mxu0 %vm24809_vm0, %v29206_v52  ;;  %v11312_v30 = vand.u32 4294901760, %v11311_v33 }
 0x936   : > { %23990 = vmatpush3.bf16.msra.mxu1 %v27250_v22 }
 0x937   : > { %23864 = vmatpush3.bf16.msra.mxu0 %v26876_v55  ;;  %23997 = vmatprep.subr.bf16.mxu1 %v29207_v21  ;;  %v11318_v55 = vsub.f32 %v27259_v6, %v29133_v47  ;;  %v24010_v9 = vpack.c.bf16 %v11312_v30, %v11305_v62  ;;  %v11326_v47 = vand.u32 4294901760, %v11325_v13  ;;  %v11715_v30 = vand.u32 4294901760, %v27316_v38 }
 0x938   : > { %23871 = vmatprep.subr.bf16.mxu0 %v29207_v21  ;;  %v11718_v62 = vand.u32 4294901760, %v27319_v27 }
 0x939   : > { %22143 = vmatmul.mubr.f32.vlgmr.msra.gmra.mrb[74].mxu1 %v29135_v41  ;;  %v11319_v33 = vand.u32 4294901760, %v11318_v55  ;;  %v27332_v55 = vld [vmem:[%s24900_s20 + $0xd0] sm:$0xff] }
 0x93a   : > { %21912 = vmatmul.mubr.f32.vlgmr.msra.gmra.mrb[72].mxu0 %v26773_v26  ;;  %23999 = vmatpush3.bf16.msra.mxu1 %v27226_v56  ;;  %v23875_v26 = vpack.c.bf16 %v26839_v25, %v26837_v43  ;;  %v29301_v25 = vand.u32 4294901760, %v27200_v48  ;;  %v29302_v48 = vand.u32 4294901760, %v27210_v29 }
 0x93b   : > { %23873 = vmatpush3.bf16.msra.mxu0 %v23872_v40  ;;  %24000 = vmatprep.subr.bf16.mxu1 %v29207_v21  ;;  %v29296_v40 = vand.u32 4294901760, %v26829_v24  ;;  %v24013_v13 = vpack.c.bf16 %v11326_v47, %v11319_v33  ;;  %v29298_v24 = vand.u32 4294901760, %v26837_v43  ;;  %v29300_v43 = vand.u32 4294901760, %v27197_v20 }
 0x93c   : > { %23874 = vmatprep.subr.bf16.mxu0 %v29207_v21  ;;  %22164 = vmatprep.mubr.msk.f32.mxu1 %vm24809_vm0, %v29206_v52 }
 0x93d   : > { %21933 = vmatprep.mubr.msk.f32.mxu0 %vm24809_vm0, %v29206_v52  ;;  %v23884_v41 = vpack.c.bf16 %v29297_v34, %v29296_v40  ;;  %v23887_v34 = vpack.c.bf16 %v29299_v11, %v29298_v24  ;;  %v27348_v47 = vpack.c.bf16 %v29301_v25, %v29300_v43  ;;  %v29303_v40 = vand.u32 4294901760, %v27213_v51 }
 0x93e   : > { %24002 = vmatpush3.bf16.msra.mxu1 %v27250_v22 }
 0x93f   : > { %23876 = vmatpush3.bf16.msra.mxu0 %v23875_v26  ;;  %24009 = vmatprep.subr.bf16.mxu1 %v29207_v21  ;;  %v27335_v26 = vld [vmem:[%s24900_s20 + $0xd8] sm:$0xff] }
 0x940   : > { %23883 = vmatprep.subr.bf16.mxu0 %v29207_v21  ;;  %v29138_v33 = vand.u32 4294901760, %v27335_v26 }
 0x941   : > { %22165 = vmatmul.mubr.f32.vlgmr.msra.gmra.mrb[76].mxu1 %v27240_v54 }
 0x942   : > { %21934 = vmatmul.mubr.f32.vlgmr.msra.gmra.mrb[74].mxu0 %v26766_v3  ;;  %24011 = vmatpush3.bf16.msra.mxu1 %v24010_v9  ;;  %v11219_v3 = vsel %vm7551_vm5, %v27045_v0, 0  ;;  %v27358_v0 = vsub.f32 %v27319_v27, %v11718_v62  ;;  %v29141_v9 = vand.u32 4294901760, %v27332_v55  ;;  %v27385_v29 = vsub.f32 %v27335_v26, %v29138_v33 }
 0x943   : > { %23885 = vmatpush3.bf16.msra.mxu0 %v23884_v41  ;;  %24012 = vmatprep.subr.bf16.mxu1 %v29207_v21  ;;  %v27353_v41 = vsub.f32 %v27316_v38, %v11715_v30  ;;  %v27362_v20 = vand.u32 4294901760, %v11219_v3  ;;  %v29311_v38 = vand.u32 4294901760, %v27153_v59 }
 0x944   : > { %23886 = vmatprep.subr.bf16.mxu0 %v29207_v21  ;;  %22186 = vmatprep.mubr.msk.f32.mxu1 %vm24809_vm0, %v29206_v52  ;;  %v29139_v11 = vand.u32 4294901760, %v27358_v0 }
 0x945   : > { %21955 = vmatprep.mubr.msk.f32.mxu0 %vm24809_vm0, %v29206_v52  ;;  %v29140_v24 = vand.u32 4294901760, %v27353_v41  ;;  %v27388_v51 = vsub.f32 %v11219_v3, %v27362_v20 }
 0x946   : > { %24014 = vmatpush3.bf16.msra.mxu1 %v24013_v13  ;;  %v27371_v13 = vpack.c.bf16 %v29303_v40, %v29302_v48  ;;  %v11804_v3 = vsub.f32 %v27358_v0, %v29139_v11  ;;  %v29142_v48 = vand.u32 4294901760, %v27385_v29 }
 0x947   : > { %23888 = vmatpush3.bf16.msra.mxu0 %v23887_v34  ;;  %24021 = vmatprep.subr.bf16.mxu1 %v29207_v21  ;;  %v27380_v34 = vsub.f32 %v27332_v55, %v29141_v9  ;;  %v29144_v40 = vand.u32 4294901760, %v27388_v51 }
 0x948   : > { %23895 = vmatprep.subr.bf16.mxu0 %v29207_v21  ;;  %v11818_v9 = vsub.f32 %v27385_v29, %v29142_v48  ;;  %v29306_v48 = vand.u32 4294901760, %v26894_v53 }
 0x949   : > { %22187 = vmatmul.mubr.f32.vlgmr.msra.gmra.mrb[78].mxu1 %v27362_v20  ;;  %v29143_v25 = vand.u32 4294901760, %v27380_v34 }
 0x94a   : > { %21956 = vmatmul.mubr.f32.vlgmr.msra.gmra.mrb[76].mxu0 %v26763_v15  ;;  %24023 = vmatpush3.bf16.msra.mxu1 %v27348_v47  ;;  %v29304_v15 = vand.u32 4294901760, %v27032_v36 }
 0x94b   : > { %23897 = vmatpush3.bf16.msra.mxu0 %v26925_v35  ;;  %24024 = vmatprep.subr.bf16.mxu1 %v29207_v21  ;;  %v11797_v35 = vsub.f32 %v27353_v41, %v29140_v24  ;;  %v11805_v24 = vand.u32 4294901760, %v11804_v3  ;;  %v11819_v3 = vand.u32 4294901760, %v11818_v9  ;;  %v29307_v9 = vand.u32 4294901760, %v26910_v28 }
 0x94c   : > { %v9814_v43 = vsub.f32 %v27032_v36, %v29304_v15  ;;  %23898 = vmatprep.subr.bf16.mxu0 %v29207_v21  ;;  %22208 = vmatprep.mubr.msk.f32.mxu1 %vm24809_vm0, %v29206_v52  ;;  %v23908_v15 = vpack.c.bf16 %v26894_v53, %v26892_v19  ;;  %v27457_v53 = vpack.c.bf16 %v11718_v62, %v11715_v30 }
 0x94d   : > { %21977 = vmatprep.mubr.msk.f32.mxu0 %vm24809_vm0, %v29206_v52  ;;  %v11798_v11 = vand.u32 4294901760, %v11797_v35  ;;  %v10307_v30 = vsub.f32 %v27153_v59, %v29311_v38 }
 0x94e   : > { %24026 = vmatpush3.bf16.msra.mxu1 %v27371_v13  ;;  %v9815_v33 = vand.u32 4294901760, %v9814_v43  ;;  %v23911_v43 = vpack.c.bf16 %v26912_v17, %v26910_v28 }
 0x94f   : > { %23900 = vmatpush3.bf16.msra.mxu0 %v26939_v63  ;;  %24033 = vmatprep.subr.bf16.mxu1 %v29207_v21  ;;  %v11811_v63 = vsub.f32 %v27380_v34, %v29143_v25  ;;  %v10308_v62 = vand.u32 4294901760, %v10307_v30 }
 0x950   : > { %23907 = vmatprep.subr.bf16.mxu0 %v29207_v21 }
 0x951   : > { %22209 = vmatmul.mubr.f32.vlgmr.msra.gmra.mrb[80].mxu1 %v29144_v40  ;;  %v11812_v35 = vand.u32 4294901760, %v11811_v63 }
 0x952   : > { %21978 = vmatmul.mubr.f32.vlgmr.msra.gmra.mrb[78].mxu0 %v9815_v33  ;;  %24035 = vmatpush3.bf16.msra.mxu1 %v27348_v47  ;;  %v24046_v33 = vpack.c.bf16 %v11805_v24, %v11798_v11  ;;  %v29308_v24 = vand.u32 4294901760, %v26912_v17  ;;  %v29310_v17 = vand.u32 4294901760, %v27335_v26  ;;  %v29313_v26 = vand.u32 4294901760, %v27001_v2 }
 0x953   : > { %23909 = vmatpush3.bf16.msra.mxu0 %v23908_v15  ;;  %24036 = vmatprep.subr.bf16.mxu1 %v29207_v21  ;;  %v29305_v15 = vand.u32 4294901760, %v26892_v19  ;;  %v24049_v40 = vpack.c.bf16 %v11819_v3, %v11812_v35  ;;  %v11712_v19 = vsel %vm7551_vm5, %v27036_v60, 0  ;;  %v29309_v60 = vand.u32 4294901760, %v27332_v55 }
 0x954   : > { %23910 = vmatprep.subr.bf16.mxu0 %v29207_v21  ;;  %22230 = vmatprep.mubr.msk.f32.mxu1 %vm24809_vm0, %v29206_v52  ;;  %v23923_v11 = vpack.c.bf16 %v29308_v24, %v29307_v9  ;;  %v27459_v28 = vand.u32 4294901760, %v11712_v19  ;;  %v29312_v55 = vand.u32 4294901760, %v26995_v7  ;;  %v29324_v3 = vand.u32 4294901760, %v27259_v6 }
 0x955   : > { %21999 = vmatprep.mubr.msk.f32.mxu0 %vm24809_vm0, %v29206_v52  ;;  %v23920_v25 = vpack.c.bf16 %v29306_v48, %v29305_v15  ;;  %v27470_v27 = vpack.c.bf16 %v29310_v17, %v29309_v60  ;;  %v29314_v48 = vand.u32 4294901760, %v27024_v12  ;;  %v29325_v15 = vand.u32 4294901760, %v27264_v4 }
 0x956   : > { %24038 = vmatpush3.bf16.msra.mxu1 %v27371_v13 }
 0x957   : > { %23912 = vmatpush3.bf16.msra.mxu0 %v23911_v43  ;;  %24045 = vmatprep.subr.bf16.mxu1 %v29207_v21  ;;  %v29319_v43 = vand.u32 4294901760, %v27145_v57  ;;  %v24031_v9 = vpack.c.bf16 %v29325_v15, %v29324_v3 }
 0x958   : > { %23919 = vmatprep.subr.bf16.mxu0 %v29207_v21 }
 0x959   : > { %22231 = vmatmul.mubr.f32.vlgmr.msra.gmra.mrb[82].mxu1 %v27362_v20 }
 0x95a   : > { %22000 = vmatmul.mubr.f32.vlgmr.msra.gmra.mrb[80].mxu0 %v27032_v36  ;;  %24047 = vmatpush3.bf16.msra.mxu1 %v24046_v33  ;;  %v27473_v36 = vsub.f32 %v11712_v19, %v27459_v28  ;;  %v29320_v33 = vand.u32 4294901760, %v27150_v39  ;;  %v29329_v19 = vand.u32 4294901760, %v27385_v29 }
 0x95b   : > { %23921 = vmatpush3.bf16.msra.mxu0 %v23920_v25  ;;  %24048 = vmatprep.subr.bf16.mxu1 %v29207_v21  ;;  %v23956_v25 = vpack.c.bf16 %v29313_v26, %v29312_v55 }
 0x95c   : > { %23922 = vmatprep.subr.bf16.mxu0 %v29207_v21  ;;  %22252 = vmatprep.mubr.msk.f32.mxu1 %vm24809_vm0, %v29206_v52  ;;  %v23995_v35 = vpack.c.bf16 %v29320_v33, %v29319_v43 }
 0x95d   : > { %22021 = vmatprep.mubr.msk.f32.mxu0 %vm24809_vm0, %v29206_v52 }
 0x95e   : > { %24050 = vmatpush3.bf16.msra.mxu1 %v24049_v40  ;;  %v29315_v40 = vand.u32 4294901760, %v27029_v44 }
 0x95f   : > { %23924 = vmatpush3.bf16.msra.mxu0 %v23923_v11  ;;  %24057 = vmatprep.subr.bf16.mxu1 %v29207_v21  ;;  %v29328_v11 = vand.u32 4294901760, %v27380_v34 }
 0x960   : > { %23931 = vmatprep.subr.bf16.mxu0 %v29207_v21  ;;  %v23959_v63 = vpack.c.bf16 %v29315_v40, %v29314_v48 }
 0x961   : > { %22253 = vmatmul.mubr.f32.vlgmr.msra.gmra.mrb[84].mxu1 %v27459_v28 }
 0x962   : > { %22022 = vmatmul.mubr.f32.vlgmr.msra.gmra.mrb[82].mxu0 %v27005_v46  ;;  %24059 = vmatpush3.bf16.msra.mxu1 %v27457_v53  ;;  %v11785_v46 = vand.u32 4294901760, %v27473_v36 }
 0x963   : > { %23933 = vmatpush3.bf16.msra.mxu0 %v27108_v45  ;;  %24060 = vmatprep.subr.bf16.mxu1 %v29207_v21  ;;  %v23944_v45 = vpack.c.bf16 %v27001_v2, %v26995_v7  ;;  %v29316_v7 = vand.u32 4294901760, %v27267_v31 }
 0x964   : > { %23934 = vmatprep.subr.bf16.mxu0 %v29207_v21  ;;  %22274 = vmatprep.mubr.msk.f32.mxu1 %vm24809_vm0, %v29206_v52 }
 0x965   : > { %22043 = vmatprep.mubr.msk.f32.mxu0 %vm24809_vm0, %v29206_v52  ;;  %v10800_v2 = vsub.f32 %v27267_v31, %v29316_v7 }
 0x966   : > { %24062 = vmatpush3.bf16.msra.mxu1 %v27470_v27 }
 0x967   : > { %23936 = vmatpush3.bf16.msra.mxu0 %v27136_v14  ;;  %24069 = vmatprep.subr.bf16.mxu1 %v29207_v21  ;;  %v23947_v14 = vpack.c.bf16 %v27029_v44, %v27024_v12  ;;  %v23980_v44 = vpack.c.bf16 %v27118_v61, %v27113_v18  ;;  %v10801_v12 = vand.u32 4294901760, %v10800_v2 }
 0x968   : > { %23943 = vmatprep.subr.bf16.mxu0 %v29207_v21 }
 0x969   : > { %22275 = vmatmul.mubr.f32.vlgmr.msra.gmra.mrb[86].mxu1 %v11785_v46 }
 0x96a   : > { %22044 = vmatmul.mubr.f32.vlgmr.msra.gmra.mrb[84].mxu0 %v10308_v62  ;;  %24071 = vmatpush3.bf16.msra.mxu1 %v27457_v53 }
 0x96b   : > { %23945 = vmatpush3.bf16.msra.mxu0 %v23944_v45  ;;  %24072 = vmatprep.subr.bf16.mxu1 %v29207_v21 }
 0x96c   : > { %23946 = vmatprep.subr.bf16.mxu0 %v29207_v21  ;;  %22296 = vmatprep.mubr.msk.f32.mxu1 %vm24809_vm0, %v29206_v52 }
 0x96d   : > { %22065 = vmatprep.mubr.msk.f32.mxu0 %vm24809_vm0, %v29206_v52 }
 0x96e   : > { %24074 = vmatpush3.bf16.msra.mxu1 %v27470_v27 }
 0x96f   : > { %23948 = vmatpush3.bf16.msra.mxu0 %v23947_v14 }
 0x970   : > { %23955 = vmatprep.subr.bf16.mxu0 %v29207_v21 }
 0x971   : > { %22297 = vmatmul.mubr.f32.vlgmr.msra.gmra.mrb[88].mxu1 %v27459_v28 }
 0x972   : > { %22066 = vmatmul.mubr.f32.vlgmr.msra.gmra.mrb[86].mxu0 %v27153_v59  ;;  %12818 = vmatprep.mubr.f32.mxu1 %v29206_v52  ;;  %v29317_v59 = vand.u32 4294901760, %v27113_v18  ;;  %v29321_v18 = vand.u32 4294901760, %v27388_v51 }
 0x973   : > { %23957 = vmatpush3.bf16.msra.mxu0 %v23956_v25  ;;  %22087 = vmatprep.mubr.msk.f32.mxu0 %vm24809_vm0, %v29206_v52 }
 0x974   : > { %23958 = vmatprep.subr.bf16.mxu0 %v29207_v21 }
 0x977   : > { %23960 = vmatpush3.bf16.msra.mxu0 %v23959_v63 }
 0x978   : > { %23967 = vmatprep.subr.bf16.mxu0 %v29207_v21 }
 0x97a   : > { %22088 = vmatmul.mubr.f32.vlgmr.msra.gmra.mrb[88].mxu0 %v27122_v42  ;;  %v23983_v42 = vpack.c.bf16 %v27150_v39, %v27145_v57  ;;  %v24016_v57 = vpack.c.bf16 %v27236_v1, %v27231_v32 }
 0x97b   : > { %23969 = vmatpush3.bf16.msra.mxu0 %v27226_v56  ;;  %22109 = vmatprep.mubr.msk.f32.mxu0 %vm24809_vm0, %v29206_v52  ;;  %v29318_v56 = vand.u32 4294901760, %v27118_v61  ;;  %v11293_v61 = vsub.f32 %v27388_v51, %v29321_v18 }
 0x97c   : > { %23970 = vmatprep.subr.bf16.mxu0 %v29207_v21 }
 0x97d   : > { %v11294_v39 = vand.u32 4294901760, %v11293_v61 }
 0x97f   : > { %23972 = vmatpush3.bf16.msra.mxu0 %v27250_v22  ;;  %v23992_v22 = vpack.c.bf16 %v29318_v56, %v29317_v59 }
 0x980   : > { %23979 = vmatprep.subr.bf16.mxu0 %v29207_v21 }
 0x982   : > { %22110 = vmatmul.mubr.f32.vlgmr.msra.gmra.mrb[90].mxu0 %v10801_v12 }
 0x983   : > { %23981 = vmatpush3.bf16.msra.mxu0 %v23980_v44  ;;  %22131 = vmatprep.mubr.msk.f32.mxu0 %vm24809_vm0, %v29206_v52 }
 0x984   : > { %23982 = vmatprep.subr.bf16.mxu0 %v29207_v21 }
 0x987   : > { %23984 = vmatpush3.bf16.msra.mxu0 %v23983_v42 }
 0x988   : > { %23991 = vmatprep.subr.bf16.mxu0 %v29207_v21 }
 0x98a   : > { %22132 = vmatmul.mubr.f32.vlgmr.msra.gmra.mrb[92].mxu0 %v27267_v31  ;;  %v29322_v31 = vand.u32 4294901760, %v27231_v32  ;;  %v24052_v32 = vpack.c.bf16 %v27358_v0, %v27353_v41 }
 0x98b   : > { %23993 = vmatpush3.bf16.msra.mxu0 %v23992_v22  ;;  %22153 = vmatprep.mubr.msk.f32.mxu0 %vm24809_vm0, %v29206_v52 }
 0x98c   : > { %23994 = vmatprep.subr.bf16.mxu0 %v29207_v21 }
 0x98f   : > { %23996 = vmatpush3.bf16.msra.mxu0 %v23995_v35 }
 0x990   : > { %24003 = vmatprep.subr.bf16.mxu0 %v29207_v21 }
 0x992   : > { %22154 = vmatmul.mubr.f32.vlgmr.msra.gmra.mrb[94].mxu0 %v27240_v54  ;;  %v24019_v54 = vpack.c.bf16 %v27264_v4, %v27259_v6  ;;  %v11786_v6 = vsub.f32 %v27473_v36, %v11785_v46  ;;  %v24055_v4 = vpack.c.bf16 %v27385_v29, %v27380_v34 }
 0x993   : > { %24005 = vmatpush3.bf16.msra.mxu0 %v27348_v47  ;;  %22175 = vmatprep.mubr.msk.f32.mxu0 %vm24809_vm0, %v29206_v52  ;;  %v29323_v47 = vand.u32 4294901760, %v27236_v1 }
 0x994   : > { %24006 = vmatprep.subr.bf16.mxu0 %v29207_v21  ;;  %v11787_v1 = vand.u32 4294901760, %v11786_v6 }
 0x997   : > { %24008 = vmatpush3.bf16.msra.mxu0 %v27371_v13  ;;  %v24028_v13 = vpack.c.bf16 %v29323_v47, %v29322_v31 }
 0x998   : > { %24015 = vmatprep.subr.bf16.mxu0 %v29207_v21 }
 0x99a   : > { %22176 = vmatmul.mubr.f32.vlgmr.msra.gmra.mrb[96].mxu0 %v11294_v39 }
 0x99b   : > { %24017 = vmatpush3.bf16.msra.mxu0 %v24016_v57  ;;  %22197 = vmatprep.mubr.msk.f32.mxu0 %vm24809_vm0, %v29206_v52 }
 0x99c   : > { %24018 = vmatprep.subr.bf16.mxu0 %v29207_v21 }
 0x99f   : > { %24020 = vmatpush3.bf16.msra.mxu0 %v24019_v54 }
 0x9a0   : > { %24027 = vmatprep.subr.bf16.mxu0 %v29207_v21 }
 0x9a2   : > { %22198 = vmatmul.mubr.f32.vlgmr.msra.gmra.mrb[98].mxu0 %v27388_v51  ;;  %v29327_v51 = vand.u32 4294901760, %v27358_v0 }
 0x9a3   : > { %24029 = vmatpush3.bf16.msra.mxu0 %v24028_v13  ;;  %22219 = vmatprep.mubr.msk.f32.mxu0 %vm24809_vm0, %v29206_v52 }
 0x9a4   : > { %24030 = vmatprep.subr.bf16.mxu0 %v29207_v21 }
 0x9a7   : > { %24032 = vmatpush3.bf16.msra.mxu0 %v24031_v9 }
 0x9a8   : > { %24039 = vmatprep.subr.bf16.mxu0 %v29207_v21 }
 0x9aa   : > { %22220 = vmatmul.mubr.f32.vlgmr.msra.gmra.mrb[100].mxu0 %v27362_v20  ;;  %v29326_v20 = vand.u32 4294901760, %v27353_v41 }
 0x9ab   : > { %24041 = vmatpush3.bf16.msra.mxu0 %v27457_v53  ;;  %22241 = vmatprep.mubr.msk.f32.mxu0 %vm24809_vm0, %v29206_v52  ;;  %v24067_v53 = vpack.c.bf16 %v29329_v19, %v29328_v11 }
 0x9ac   : > { %24042 = vmatprep.subr.bf16.mxu0 %v29207_v21  ;;  %v24064_v24 = vpack.c.bf16 %v29327_v51, %v29326_v20 }
 0x9af   : > { %24044 = vmatpush3.bf16.msra.mxu0 %v27470_v27 }
 0x9b0   : > { %24051 = vmatprep.subr.bf16.mxu0 %v29207_v21 }
 0x9b2   : > { %22242 = vmatmul.mubr.f32.vlgmr.msra.gmra.mrb[102].mxu0 %v11787_v1 }
 0x9b3   : > { %24053 = vmatpush3.bf16.msra.mxu0 %v24052_v32  ;;  %22263 = vmatprep.mubr.msk.f32.mxu0 %vm24809_vm0, %v29206_v52 }
 0x9b4   : > { %24054 = vmatprep.subr.bf16.mxu0 %v29207_v21 }
 0x9b7   : > { %24056 = vmatpush3.bf16.msra.mxu0 %v24055_v4 }
 0x9b8   : > { %24063 = vmatprep.subr.bf16.mxu0 %v29207_v21 }
 0x9ba   : > { %22264 = vmatmul.mubr.f32.vlgmr.msra.gmra.mrb[104].mxu0 %v27473_v36 }
 0x9bb   : > { %24065 = vmatpush3.bf16.msra.mxu0 %v24064_v24  ;;  %22285 = vmatprep.mubr.msk.f32.mxu0 %vm24809_vm0, %v29206_v52  ;;  %v12220_v24 = vld [vmem:[%s29330_s28] sm:$0xff] }
 0x9bc   : > { %24066 = vmatprep.subr.bf16.mxu0 %v29207_v21  ;;  %v12235_v11 = vand.u32 4294901760, %v12220_v24 }
 0x9bf   : > { %24068 = vmatpush3.bf16.msra.mxu0 %v24067_v53 }
 0x9c0   : > { %24075 = vmatprep.subr.bf16.mxu0 %v29207_v21 }
 0x9c2   : > { %22286 = vmatmul.mubr.f32.vlgmr.msra.gmra.mrb[106].mxu0 %v27459_v28 }
 0x9c3   : > { %22307 = vmatprep.mubr.msk.f32.mxu0 %vm24809_vm0, %v29206_v52 }
 0x9d4   : > { %v9908_v41 = vpop.f32.mrb[60].mxu1 }
 0x9d5   : > { %v21990_v0 = vpop.f32.mrb[61].mxu1 }
 0x9dc   : > { %v27616_v60 = vpop.f32.mrb[62].mxu1 }
 0x9dd   : > { %v22012_v34 = vpop.f32.mrb[63].mxu1  ;;  %v8840_v29 = vpop.f32.mrb[60].mxu0 }
 0x9de   : > { %v21847_v17 = vpop.f32.mrb[61].mxu0  ;;  %v27643_v34 = vsub.f32 %v12220_v24, %v12235_v11 }
 0x9e4   : > { %v27618_v27 = vpop.f32.mrb[64].mxu1 }
 0x9e5   : > { %v8931_v36 = vpop.f32.mrb[62].mxu0  ;;  %v22034_v38 = vpop.f32.mrb[65].mxu1 }
 0x9e6   : > { %v8932_v30 = vadd.f32 %v8931_v36, %v8840_v29  ;;  %v21858_v46 = vpop.f32.mrb[63].mxu0  ;;  %v12222_v36 = vld [vmem:[%s29330_s28 + $0x10] sm:$0xff]  ;;  %v12223_v38 = vld [vmem:[%s29330_s28 + $0x18] sm:$0xff] }
 0x9ec   : > { %v27620_v45 = vpop.f32.mrb[66].mxu1 }
 0x9ed   : > { %v9011_v62 = vpop.f32.mrb[64].mxu0  ;;  %v22056_v28 = vpop.f32.mrb[67].mxu1 }
 0x9ee   : > { %v9012_v14 = vadd.f32 %v9011_v62, %v8932_v30  ;;  %v21869_v55 = vpop.f32.mrb[65].mxu0  ;;  %v12244_v62 = vand.u32 4294901760, %v12223_v38  ;;  %v12316_v28 = vand.u32 4294901760, %v27643_v34 }
 0x9f4   : > { %v27622_v26 = vpop.f32.mrb[68].mxu1 }
 0x9f5   : > { %v9088_v25 = vpop.f32.mrb[66].mxu0  ;;  %v22078_v48 = vpop.f32.mrb[69].mxu1 }
 0x9f6   : > { %v9089_v40 = vadd.f32 %v9088_v25, %v9012_v14  ;;  %v21880_v63 = vpop.f32.mrb[67].mxu0  ;;  %v27657_v48 = vsub.f32 %v12223_v38, %v12244_v62 }
 0x9fc   : > { %v27624_v7 = vpop.f32.mrb[70].mxu1 }
 0x9fd   : > { %v9171_v2 = vpop.f32.mrb[68].mxu0  ;;  %v22100_v44 = vpop.f32.mrb[71].mxu1 }
 0x9fe   : > { %v9172_v12 = vadd.f32 %v9171_v2, %v9089_v40  ;;  %v21891_v42 = vpop.f32.mrb[69].mxu0  ;;  %v12317_v40 = vsub.f32 %v27643_v34, %v12316_v28  ;;  %v12337_v44 = vand.u32 4294901760, %v27657_v48 }
 0xa00   : > { %v12318_v63 = vand.u32 4294901760, %v12317_v40 }
 0xa04   : > { %v27626_v59 = vpop.f32.mrb[72].mxu1 }
 0xa05   : > { %v9246_v56 = vpop.f32.mrb[70].mxu0  ;;  %v22122_v22 = vpop.f32.mrb[73].mxu1 }
 0xa06   : > { %v9247_v43 = vadd.f32 %v9246_v56, %v9172_v12  ;;  %v21902_v33 = vpop.f32.mrb[71].mxu0  ;;  %v12338_v22 = vsub.f32 %v27657_v48, %v12337_v44 }
 0xa0c   : > { %v27628_v35 = vpop.f32.mrb[74].mxu1 }
 0xa0d   : > { %v9325_v18 = vpop.f32.mrb[72].mxu0  ;;  %v22144_v61 = vpop.f32.mrb[75].mxu1 }
 0xa0e   : > { %v9326_v57 = vadd.f32 %v9325_v18, %v9247_v43  ;;  %v21913_v39 = vpop.f32.mrb[73].mxu0 }
 0xa10   : > { %v9417_v54 = vadd.f32 %v27056_v5, %v9326_v57  ;;  %v12221_v5 = vld [vmem:[%s29330_s28 + $0x8] sm:$0xff] }
 0xa11   : > { %v12238_v19 = vand.u32 4294901760, %v12221_v5 }
 0xa13   : > { %v27641_v0 = vpack.c.bf16 %v12238_v19, %v12235_v11 }
 0xa14   : > { %v27631_v31 = vpop.f32.mrb[76].mxu1 }
 0xa15   : > { %v9496_v47 = vpop.f32.mrb[74].mxu0  ;;  %v22166_v13 = vpop.f32.mrb[77].mxu1  ;;  %24077 = vmatpush3.bf16.msra.mxu0 %v27641_v0 }
 0xa16   : > { %v9497_v3 = vadd.f32 %v9496_v47, %v9417_v54  ;;  %v21935_v15 = vpop.f32.mrb[75].mxu0  ;;  %24078 = vmatprep.subr.bf16.mxu0 %v29207_v21  ;;  %v12339_v54 = vand.u32 4294901760, %v12338_v22 }
 0xa18   : > { %v9574_v9 = vadd.f32 %v27082_v50, %v9497_v3  ;;  %v27645_v50 = vsub.f32 %v12221_v5, %v12238_v19 }
 0xa1a   : > { %v12323_v14 = vand.u32 4294901760, %v27645_v50  ;;  %v24088_v15 = vpack.c.bf16 %v27645_v50, %v27643_v34 }
 0xa1c   : > { %v27634_v6 = vpop.f32.mrb[78].mxu1  ;;  %v27678_v38 = vpack.c.bf16 %v12323_v14, %v12316_v28 }
 0xa1d   : > { %v9656_v32 = vpop.f32.mrb[76].mxu0  ;;  %v22188_v1 = vpop.f32.mrb[79].mxu1 }
 0xa1e   : > { %v9657_v4 = vadd.f32 %v9656_v32, %v9574_v9  ;;  %v21957_v20 = vpop.f32.mrb[77].mxu0 }
 0xa20   : > { %v9732_v51 = vadd.f32 %v27129_v37, %v9657_v4  ;;  %v12241_v37 = vand.u32 4294901760, %v12222_v36 }
 0xa22   : > { %v27653_v55 = vpack.c.bf16 %v12244_v62, %v12241_v37  ;;  %v27655_v25 = vsub.f32 %v12222_v36, %v12241_v37 }
 0xa24   : > { %v27639_v53 = vpop.f32.mrb[80].mxu1  ;;  %24080 = vmatpush3.bf16.msra.mxu0 %v27653_v55  ;;  %v12330_v2 = vand.u32 4294901760, %v27655_v25  ;;  %v24091_v20 = vpack.c.bf16 %v27657_v48, %v27655_v25 }
 0xa25   : > { %v9817_v29 = vpop.f32.mrb[78].mxu0  ;;  %v22210_v17 = vpop.f32.mrb[81].mxu1  ;;  %24081 = vmatprep.subr.bf16.mxu0 %v29207_v21 }
 0xa26   : > { %v9909_v30 = vadd.f32 %v9908_v41, %v9817_v29  ;;  %v21979_v46 = vpop.f32.mrb[79].mxu0  ;;  %v12324_v41 = vsub.f32 %v27645_v50, %v12323_v14  ;;  %v12331_v56 = vsub.f32 %v27655_v25, %v12330_v2  ;;  %v27680_v40 = vpack.c.bf16 %v12337_v44, %v12330_v2 }
 0xa28   : > { %v12325_v12 = vand.u32 4294901760, %v12324_v41  ;;  %v12332_v39 = vand.u32 4294901760, %v12331_v56 }
 0xa2a   : > { %v27667_v18 = vpack.c.bf16 %v12325_v12, %v12318_v63  ;;  %v27670_v13 = vpack.c.bf16 %v12339_v54, %v12332_v39 }
 0xa2c   : > { %v11702_v42 = vpop.f32.mrb[82].mxu1 }
 0xa2d   : > { %v9988_v43 = vpop.f32.mrb[80].mxu0  ;;  %v22232_v33 = vpop.f32.mrb[83].mxu1 }
 0xa2e   : > { %v9989_v61 = vadd.f32 %v9988_v43, %v9909_v30  ;;  %v22001_v57 = vpop.f32.mrb[81].mxu0 }
 0xa30   : > { %v10066_v47 = vadd.f32 %v27616_v60, %v9989_v61 }
 0xa34   : > { %v11880_v3 = vpop.f32.mrb[84].mxu1 }
 0xa35   : > { %v10148_v9 = vpop.f32.mrb[82].mxu0  ;;  %v22254_v32 = vpop.f32.mrb[85].mxu1 }
 0xa36   : > { %v10149_v1 = vadd.f32 %v10148_v9, %v10066_v47  ;;  %v22023_v4 = vpop.f32.mrb[83].mxu0 }
 0xa38   : > { %v10224_v24 = vadd.f32 %v27618_v27, %v10149_v1 }
 0xa3a   : > { %v10227_v5 = vadd.f32 %v10224_v24, %v9732_v51 }
 0xa3c   : > { %v12037_v11 = vpop.f32.mrb[86].mxu1 }
 0xa3d   : > { %v10310_v19 = vpop.f32.mrb[84].mxu0  ;;  %v22276_v29 = vpop.f32.mrb[87].mxu1 }
 0xa3e   : > { %v10402_v60 = vadd.f32 %v27620_v45, %v10310_v19  ;;  %v22045_v17 = vpop.f32.mrb[85].mxu0 }
 0xa44   : > { %v12195_v36 = vpop.f32.mrb[88].mxu1 }
 0xa45   : > { %v10481_v30 = vpop.f32.mrb[86].mxu0  ;;  %v22298_v46 = vpop.f32.mrb[89].mxu1 }
 0xa46   : > { %v10482_v37 = vadd.f32 %v10481_v30, %v10402_v60  ;;  %v22067_v62 = vpop.f32.mrb[87].mxu0 }
 0xa48   : > { %v10559_v41 = vadd.f32 %v27622_v26, %v10482_v37 }
 0xa4d   : > { %v10641_v63 = vpop.f32.mrb[88].mxu0 }
 0xa4e   : > { %v10642_v27 = vadd.f32 %v10641_v63, %v10559_v41  ;;  %v22089_v51 = vpop.f32.mrb[89].mxu0 }
 0xa4f   : > { %v19570_v51 = vld [vmem:[%s29331_s1] ss:$0 sm:$0xff]  ;;  %s29359_s1 = sld [smem:[#allocation13_spill]] }
 0xa50   : > { %v10717_v12 = vadd.f32 %v27624_v7, %v10642_v27 }
 0xa52   : > { %v10720_v56 = vadd.f32 %v10717_v12, %v10227_v5 }
 0xa55   : > { %v10803_v22 = vpop.f32.mrb[90].mxu0 }
 0xa56   : > { %v10895_v45 = vadd.f32 %v27626_v59, %v10803_v22  ;;  %v22111_v43 = vpop.f32.mrb[91].mxu0 }
 0xa5d   : > { %v10974_v28 = vpop.f32.mrb[92].mxu0 }
 0xa5e   : > { %v10975_v14 = vadd.f32 %v10974_v28, %v10895_v45  ;;  %v22133_v33 = vpop.f32.mrb[93].mxu0 }
 0xa60   : > { %v11052_v61 = vadd.f32 %v27628_v35, %v10975_v14 }
 0xa65   : > { %v11134_v57 = vpop.f32.mrb[94].mxu0 }
 0xa66   : > { %v11135_v2 = vadd.f32 %v11134_v57, %v11052_v61  ;;  %v22155_v44 = vpop.f32.mrb[95].mxu0 }
 0xa68   : > { %v11210_v26 = vadd.f32 %v27631_v31, %v11135_v2 }
 0xa6a   : > { %v11213_v39 = vadd.f32 %v11210_v26, %v10720_v56  ;;  %v19571_v56 = vld [vmem:[%s29332_s2] ss:$0 sm:$0xff]  ;;  %s29360_s2 = sld [smem:[#allocation11_spill]] }
 0xa6d   : > { %v11296_v54 = vpop.f32.mrb[96].mxu0 }
 0xa6e   : > { %v11388_v47 = vadd.f32 %v27634_v6, %v11296_v54  ;;  %v22177_v7 = vpop.f32.mrb[97].mxu0 }
 0xa75   : > { %v11467_v9 = vpop.f32.mrb[98].mxu0 }
 0xa76   : > { %v11468_v32 = vadd.f32 %v11467_v9, %v11388_v47  ;;  %v22199_v1 = vpop.f32.mrb[99].mxu0  ;;  %v12736_v9 = vld [vmem:[%s29334_s18 + $0x28] sm:$0xff] }
 0xa78   : > { %v11545_v59 = vadd.f32 %v27639_v53, %v11468_v32  ;;  %v12201_v53 = vpop.permute.xlu1 %12200 }
 0xa7d   : > { %v11627_v4 = vpop.f32.mrb[100].mxu0 }
 0xa7e   : > { %v11628_v24 = vadd.f32 %v11627_v4, %v11545_v59  ;;  %v22221_v5 = vpop.f32.mrb[101].mxu0  ;;  %v27741_v59 = vand.u32 4294901760, %v12736_v9  ;;  %v12735_v4 = vld [vmem:[%s29334_s18 + $0x20] sm:$0xff] }
 0xa80   : > { %v11703_v35 = vadd.f32 %v11702_v42, %v11628_v24 }
 0xa82   : > { %v11706_v19 = vadd.f32 %v11703_v35, %v11213_v39 }
 0xa85   : > { %v11789_v29 = vpop.f32.mrb[102].mxu0 }
 0xa86   : > { %v11881_v60 = vadd.f32 %v11880_v3, %v11789_v29  ;;  %v22243_v31 = vpop.f32.mrb[103].mxu0 }
 0xa87   : > { %v27746_v31 = vand.u32 4294901760, %v12735_v4 }
 0xa8d   : > { %v11960_v17 = vpop.f32.mrb[104].mxu0 }
 0xa8e   : > { %v11961_v30 = vadd.f32 %v11960_v17, %v11881_v60  ;;  %v22265_v46 = vpop.f32.mrb[105].mxu0 }
 0xa90   : > { %v12038_v6 = vadd.f32 %v12037_v11, %v11961_v30 }
 0xa95   : > { %v12120_v37 = vpop.f32.mrb[106].mxu0 }
 0xa96   : > { %v12121_v62 = vadd.f32 %v12120_v37, %v12038_v6  ;;  %v22287_v41 = vpop.f32.mrb[107].mxu0 }
 0xa98   : > { %v12196_v63 = vadd.f32 %v12195_v36, %v12121_v62 }
 0xa9a   : > { %v12199_v27 = vadd.f32 %v12196_v63, %v11706_v19 }
 0xa9c   : > { %v12203_v12 = vadd.f32 %v12201_v53, %v12199_v27 }
 0xa9e   : > { %v12211_v22 = vmul.f32 %v19570_v51, %v12203_v12  ;;  %v12854_v12 = vsub.f32 %v12736_v9, %v27741_v59  ;;  %v27810_v9 = vld [vmem:[%s29343_s23 + $0x8] sm:$0xff] }
 0xaa0   : > { %v12219_v42 = vadd.f32 %v19571_v56, %v12211_v22 }
 0xaa2   : > { %17273 = vrot.lane.b32.xlu1 %v12219_v42, %s24812_s16  ;;  %v12232_v3 = vsel %vm7551_vm5, %v12219_v42, 0  ;;  %v12860_v42 = vsub.f32 %v12735_v4, %v27746_v31 }
 0xaa3   : > { %v12303_v45 = vand.u32 4294901760, %v12232_v3 }
 0xaa5   : > { %v12304_v43 = vsub.f32 %v12232_v3, %v12303_v45 }
 0xaa6   : > { %13260 = vrot.lane.b32.xlu1 %v26976_v49, %s24815_s11  ;;  %v19572_v49 = vld [vmem:[%s29333_s15] ss:$0 sm:$0xff]  ;;  %s29361_s11 = sld [smem:[#allocation12_spill]]  ;;  %s29362_s15 = sld [smem:[#allocation14_spill]] }
 0xaa7   : > { %v12305_v11 = vand.u32 4294901760, %v12304_v43 }
 0xaa9   : > { %v12306_v28 = vsub.f32 %v12304_v43, %v12305_v11 }
 0xaab   : > { %v12307_v14 = vand.u32 4294901760, %v12306_v28 }
 0xaad   : > { %22308 = vmatmul.mubr.f32.vlgmr.msra.gmra.mrb[108].mxu0 %v12307_v14 }
 0xaae   : > { %24083 = vmatpush3.bf16.msra.mxu0 %v27667_v18  ;;  %22318 = vmatprep.mubr.msk.f32.mxu0 %vm24809_vm0, %v29206_v52 }
 0xaaf   : > { %24084 = vmatprep.subr.bf16.mxu0 %v29207_v21 }
 0xab2   : > { %24086 = vmatpush3.bf16.msra.mxu0 %v27670_v13  ;;  %v12732_v13 = vld [vmem:[%s29334_s18 + $0x8] sm:$0xff] }
 0xab3   : > { %24087 = vmatprep.subr.bf16.mxu0 %v29207_v21 }
 0xab5   : > { %22319 = vmatmul.mubr.f32.vlgmr.msra.gmra.mrb[108].mxu0 %v12303_v45 }
 0xab6   : > { %24089 = vmatpush3.bf16.msra.mxu0 %v24088_v15  ;;  %22329 = vmatprep.mubr.msk.f32.mxu0 %vm24809_vm0, %v29206_v52  ;;  %v12734_v15 = vld [vmem:[%s29334_s18 + $0x18] sm:$0xff] }
 0xab7   : > { %24090 = vmatprep.subr.bf16.mxu0 %v29207_v21  ;;  %v12752_v36 = vand.u32 4294901760, %v12734_v15 }
 0xab9   : > { %v12842_v2 = vsub.f32 %v12734_v15, %v12752_v36 }
 0xaba   : > { %24092 = vmatpush3.bf16.msra.mxu0 %v24091_v20 }
 0xabb   : > { %24093 = vmatprep.subr.bf16.mxu0 %v29207_v21  ;;  %v12843_v47 = vand.u32 4294901760, %v12842_v2 }
 0xabd   : > { %22330 = vmatmul.mubr.f32.vlgmr.msra.gmra.mrb[108].mxu0 %v12304_v43  ;;  %v12844_v5 = vsub.f32 %v12842_v2, %v12843_v47 }
 0xabe   : > { %24095 = vmatpush3.bf16.msra.mxu0 %v27641_v0  ;;  %22340 = vmatprep.mubr.msk.f32.mxu0 %vm24809_vm0, %v29206_v52 }
 0xabf   : > { %24096 = vmatprep.subr.bf16.mxu0 %v29207_v21  ;;  %v12845_v60 = vand.u32 4294901760, %v12844_v5  ;;  %v13927_v5 = vld [vmem:[%s29343_s23 + $0x10] sm:$0xff] }
 0xac2   : > { %24098 = vmatpush3.bf16.msra.mxu0 %v27653_v55 }
 0xac3   : > { %24099 = vmatprep.subr.bf16.mxu0 %v29207_v21 }
 0xac5   : > { %22341 = vmatmul.mubr.f32.vlgmr.msra.gmra.mrb[108].mxu0 %v12305_v11  ;;  %v12861_v11 = vand.u32 4294901760, %v12860_v42 }
 0xac6   : > { %24101 = vmatpush3.bf16.msra.mxu0 %v27678_v38  ;;  %22351 = vmatprep.mubr.msk.f32.mxu0 %vm24809_vm0, %v29206_v52  ;;  %v12731_v38 = vld [vmem:[%s29334_s18] sm:$0xff] }
 0xac7   : > { %24102 = vmatprep.subr.bf16.mxu0 %v29207_v21  ;;  %v12750_v33 = vand.u32 4294901760, %v12731_v38 }
 0xac9   : > { %v12836_v44 = vsub.f32 %v12731_v38, %v12750_v33  ;;  %v29337_v38 = vld [vmem:[#allocation19_spill] sm:$0xff] }
 0xaca   : > { %24104 = vmatpush3.bf16.msra.mxu0 %v27680_v40  ;;  %v12733_v40 = vld [vmem:[%s29334_s18 + $0x10] sm:$0xff] }
 0xacb   : > { %24105 = vmatprep.subr.bf16.mxu0 %v29207_v21  ;;  %v12754_v61 = vand.u32 4294901760, %v12733_v40  ;;  %v12837_v32 = vand.u32 4294901760, %v12836_v44 }
 0xacd   : > { %22352 = vmatmul.mubr.f32.vlgmr.msra.gmra.mrb[108].mxu0 %v12303_v45  ;;  %v12848_v26 = vsub.f32 %v12733_v40, %v12754_v61  ;;  %v27737_v7 = vpack.c.bf16 %v12754_v61, %v12750_v33  ;;  %v12838_v35 = vsub.f32 %v12836_v44, %v12837_v32  ;;  %v29338_v40 = vld [vmem:[#allocation20_spill] sm:$0xff]  ;;  %v29346_v61 = vld [vmem:[#allocation27_spill] sm:$0xff] }
 0xace   : > { %24107 = vmatpush3.bf16.msra.mxu0 %v27641_v0  ;;  %22362 = vmatprep.mubr.msk.f32.mxu0 %vm24809_vm0, %v29206_v52  ;;  %v29342_v33 = vld [vmem:[#allocation24_spill] sm:$0xff] }
 0xacf   : > { %24108 = vmatprep.subr.bf16.mxu0 %v29207_v21  ;;  %v12849_v1 = vand.u32 4294901760, %v12848_v26  ;;  %v12839_v17 = vand.u32 4294901760, %v12838_v35  ;;  %v24121_v41 = vpack.c.bf16 %v12848_v26, %v12836_v44  ;;  %v29349_v44 = vld [vmem:[#allocation30_spill] sm:$0xff] }
 0xad1   : > { %v12850_v19 = vsub.f32 %v12848_v26, %v12849_v1  ;;  %v24129_v27 = vpack.c.bf16 %v12849_v1, %v12837_v32  ;;  %v29350_v26 = vld [vmem:[#allocation31_spill] sm:$0xff] }
 0xad2   : > { %24110 = vmatpush3.bf16.msra.mxu0 %v27653_v55  ;;  %v12748_v55 = vand.u32 4294901760, %v12732_v13  ;;  %v29354_v32 = vld [vmem:[#allocation35_spill] sm:$0xff] }
 0xad3   : > { %24135 = vmatprep.subr.bf16.mxu0 %v29207_v21  ;;  %v12851_v30 = vand.u32 4294901760, %v12850_v19 }
 0xad4   : > { %v12830_v57 = vsub.f32 %v12732_v13, %v12748_v55  ;;  %v27735_v39 = vpack.c.bf16 %v12752_v36, %v12748_v55  ;;  %v29335_v55 = vld [vmem:[#allocation36_spill] sm:$0xff]  ;;  %v29336_v36 = vld [vmem:[#allocation18_spill] sm:$0xff] }
 0xad5   : > { %22363 = vmatmul.mubr.f32.vlgmr.msra.gmra.mrb[108].mxu0 %v12303_v45  ;;  %v24117_v6 = vpack.c.bf16 %v12851_v30, %v12839_v17  ;;  %v12855_v45 = vand.u32 4294901760, %v12854_v12  ;;  %v13928_v30 = vld [vmem:[%s29343_s23 + $0x18] sm:$0xff] }
 0xad6   : > { %22437 = vmatprep.mubr.msk.f32.mxu0 %vm24809_vm0, %v29206_v52  ;;  %v12831_v54 = vand.u32 4294901760, %v12830_v57  ;;  %24112 = vmatprep.subr.bf16.mxu1 %v27735_v39  ;;  %v24119_v62 = vpack.c.bf16 %v12842_v2, %v12830_v57  ;;  %v29348_v2 = vld [vmem:[#allocation29_spill] sm:$0xff] }
 0xad7   : > { %24114 = vmatpush1.bf16.msra.mxu1 %v27737_v7  ;;  %v12856_v14 = vsub.f32 %v12854_v12, %v12855_v45 }
 0xad8   : > { %v12832_v24 = vsub.f32 %v12830_v57, %v12831_v54  ;;  %12757 = vmatprep.subr.mxu1 %v27741_v59  ;;  %v24127_v63 = vpack.c.bf16 %v12843_v47, %v12831_v54  ;;  %v29347_v57 = vld [vmem:[#allocation28_spill] sm:$0xff]  ;;  %v29352_v54 = vld [vmem:[#allocation33_spill] sm:$0xff]  ;;  %v29353_v47 = vld [vmem:[#allocation34_spill] sm:$0xff] }
 0xada   : > { %v12833_v29 = vand.u32 4294901760, %v12832_v24 }
 0xadb   : > { %12759 = vmatpush1.msra.mxu1 %v27746_v31 }
 0xadc   : > { %v24115_v46 = vpack.c.bf16 %v12845_v60, %v12833_v29  ;;  %v27834_v29 = vand.u32 4294901760, %v13927_v5 }
 0xade   : > { %24116 = vmatprep.subr.bf16.mxu1 %v24115_v46  ;;  %v13929_v46 = vld [vmem:[%s29343_s23 + $0x20] sm:$0xff] }
 0xba8   : > { %v12715_v34 = vpop.f32.mrb[108].mxu0 }
 0xba9   : > { %v24507_v50 = vadd.f32 %v19572_v49, %v12715_v34  ;;  %v22364_v0 = vpop.f32.mrb[109].mxu0  ;;  %v12862_v34 = vsub.f32 %v12860_v42, %v12861_v11 }
 0xbaa   : > { %v12857_v0 = vand.u32 4294901760, %v12856_v14 }
 0xbab   : > { %v12720_v25 = vsub.f32 0.0, %v24507_v50 }
 0xbad   : > { %v12721_v48 = vmul.f32 1.442695, %v12720_v25  ;;  %v12863_v25 = vand.u32 4294901760, %v12862_v34 }
 0xbaf   : > { %24755 = vpow2.f32 %v12721_v48 }
 0xbb9   : > { %v24756_v18 = vpop.eup %24755 }
 0xbba   : > { %v12723_v20 = vadd.f32 1.0, %v24756_v18 }
 0xbbc   : > { %24757 = vrcp.f32 %v12723_v20 }
 0xbbd   : > { %24759 = vtanh.f32 %v24507_v50 }
 0xbc6   : > { %v24758_v37 = vpop.eup %24757 }
 0xbc7   : > { %12727 = vrot.lane.b32.xlu0 %v24758_v37, %s24816_s22  ;;  %v24760_v53 = vpop.eup %24759  ;;  %v14879_v37 = vld [vmem:[%s29343_s23 + $0x38] sm:$0xff]  ;;  %s29363_s22 = sld [smem:[#allocation15_spill]] }
 0xc39   : > { %v12728_v51 = vpop.permute.xlu0 %12727 }
 0xc3a   : > { %v12730_v56 = vmul.f32 %v24760_v53, %v12728_v51 }
 0xc3c   : > { %v12746_v22 = vsel %vm12744_vm6, %v12730_v56, 0  ;;  %v13265_v48 = vand.u32 4294901760, %v12730_v56 }
 0xc3d   : > { %v27752_v3 = vand.u32 4294901760, %v12746_v22 }
 0xc3e   : > { %v13392_v18 = vsub.f32 %v12730_v56, %v13265_v48 }
 0xc3f   : > { %v27755_v43 = vsub.f32 %v12746_v22, %v27752_v3 }
 0xc40   : > { %v13393_v13 = vand.u32 4294901760, %v13392_v18 }
 0xc41   : > { %v27758_v28 = vand.u32 4294901760, %v27755_v43 }
 0xc42   : > { %v13394_v15 = vsub.f32 %v13392_v18, %v13393_v13 }
 0xc43   : > { %v12822_v49 = vsub.f32 %v27755_v43, %v27758_v28 }
 0xc44   : > { %v13395_v20 = vand.u32 4294901760, %v13394_v15 }
 0xc45   : > { %v27762_v50 = vand.u32 4294901760, %v12822_v49 }
 0xc47   : > { %12824 = vmatmul.mubr.f32.vlgmr.msra.gmra.mrb[90].mxu1 %v27762_v50 }
 0xc48   : > { %24118 = vmatpush1.bf16.msra.mxu1 %v24117_v6  ;;  %12923 = vmatprep.mubr.f32.mxu1 %v29206_v52  ;;  %v14878_v6 = vld [vmem:[%s29343_s23 + $0x30] sm:$0xff] }
 0xc49   : > { %12858 = vmatprep.subr.mxu1 %v12857_v0 }
 0xc4c   : > { %12864 = vmatpush1.msra.mxu1 %v12863_v25 }
 0xc4d   : > { %12925 = vmatmul.mubr.f32.vlgmr.msra.gmra.mrb[92].mxu1 %v27752_v3  ;;  %24120 = vmatprep.subr.bf16.mxu1 %v24119_v62  ;;  %v13935_v62 = vand.u32 4294901760, %v13928_v30 }
 0xc4e   : > { %24122 = vmatpush1.bf16.msra.mxu1 %v24121_v41  ;;  %13006 = vmatprep.mubr.f32.mxu1 %v29206_v52  ;;  %v13938_v41 = vand.u32 4294901760, %v13929_v46 }
 0xc4f   : > { %12944 = vmatprep.subr.mxu1 %v12854_v12  ;;  %v27864_v53 = vsub.f32 %v13928_v30, %v13935_v62 }
 0xc50   : > { %v27866_v51 = vsub.f32 %v13929_v46, %v13938_v41  ;;  %v27870_v56 = vpack.c.bf16 %v13938_v41, %v13935_v62 }
 0xc51   : > { %v14015_v22 = vand.u32 4294901760, %v27864_v53 }
 0xc52   : > { %12947 = vmatpush1.msra.mxu1 %v12860_v42  ;;  %v14022_v42 = vand.u32 4294901760, %v27866_v51  ;;  %24137 = vmatpush3.bf16.msra.mxu0 %v27870_v56 }
 0xc53   : > { %13009 = vmatmul.mubr.f32.vlgmr.msra.gmra.mrb[94].mxu1 %v27755_v43  ;;  %24124 = vmatprep.subr.bf16.mxu1 %v27735_v39  ;;  %v14016_v14 = vsub.f32 %v27864_v53, %v14015_v22 }
 0xc54   : > { %24126 = vmatpush1.bf16.msra.mxu1 %v27737_v7  ;;  %13084 = vmatprep.mubr.f32.mxu1 %v29206_v52  ;;  %v14023_v49 = vsub.f32 %v27866_v51, %v14022_v42 }
 0xc55   : > { %13023 = vmatprep.subr.mxu1 %v27741_v59  ;;  %22435 = vmatprep.subr.mxu0 %v29206_v52 }
 0xc58   : > { %13025 = vmatpush1.msra.mxu1 %v27746_v31 }
 0xc59   : > { %13088 = vmatmul.mubr.f32.vlgmr.msra.gmra.mrb[96].mxu1 %v27758_v28  ;;  %24128 = vmatprep.subr.bf16.mxu1 %v24127_v63  ;;  %v14885_v63 = vand.u32 4294901760, %v14878_v6 }
 0xc5a   : > { %24130 = vmatpush1.bf16.msra.mxu1 %v24129_v27  ;;  %13175 = vmatprep.mubr.f32.mxu1 %v29206_v52  ;;  %v14888_v27 = vand.u32 4294901760, %v14879_v37 }
 0xc5b   : > { %13112 = vmatprep.subr.mxu1 %v12855_v45  ;;  %v13930_v45 = vld [vmem:[%s29343_s23 + $0x28] sm:$0xff]  ;;  %v27883_v34 = vsub.f32 %v14878_v6, %v14885_v63  ;;  %v27909_v6 = vld [vmem:[%s29343_s23 + $0x60] sm:$0xff] }
 0xc5c   : > { %v27868_v12 = vpack.c.bf16 %v14888_v27, %v14885_v63  ;;  %v27885_v0 = vsub.f32 %v14879_v37, %v14888_v27  ;;  %v27912_v37 = vld [vmem:[%s29343_s23 + $0x68] sm:$0xff]  ;;  %v15843_v62 = vand.u32 4294901760, %v27909_v6 }
 0xc5d   : > { %v15846_v41 = vand.u32 4294901760, %v27912_v37 }
 0xc5e   : > { %13116 = vmatpush1.msra.mxu1 %v12861_v11  ;;  %v27879_v11 = vld [vmem:[%s29343_s23 + $0x40] sm:$0xff]  ;;  %v27919_v63 = vsub.f32 %v27909_v6, %v15843_v62 }
 0xc5f   : > { %13177 = vmatmul.mubr.f32.vlgmr.msra.gmra.mrb[98].mxu1 %v27752_v3  ;;  %24132 = vmatprep.subr.bf16.mxu1 %v27735_v39  ;;  %v29351_v39 = vld [vmem:[#allocation32_spill] sm:$0xff]  ;;  %v27889_v25 = vand.u32 4294901760, %v27879_v11  ;;  %v27924_v27 = vsub.f32 %v27912_v37, %v15846_v41 }
 0xc60   : > { %24134 = vmatpush1.bf16.msra.mxu1 %v27737_v7  ;;  %13252 = vmatprep.mubr.f32.mxu1 %v29206_v52  ;;  %v27807_v7 = vld [vmem:[%s29343_s23] sm:$0xff]  ;;  %v15838_v37 = vld [vmem:[%s29343_s23 + $0x70] sm:$0xff] }
 0xc61   : > { %13191 = vmatprep.subr.mxu1 %v27741_v59  ;;  %v14407_v1 = vand.u32 4294901760, %v27807_v7  ;;  %v14410_v59 = vand.u32 4294901760, %v27810_v9 }
 0xc63   : > { %v27821_v4 = vsub.f32 %v27807_v7, %v14407_v1  ;;  %v27826_v24 = vsub.f32 %v27810_v9, %v14410_v59  ;;  %v28106_v6 = vpack.c.bf16 %v14410_v59, %v14407_v1  ;;  %v28118_v7 = vand.u32 4294901760, %v15838_v37 }
 0xc64   : > { %13193 = vmatpush1.msra.mxu1 %v27746_v31  ;;  %v27843_v31 = vsub.f32 %v13927_v5, %v27834_v29 }
 0xc65   : > { %13254 = vmatmul.mubr.f32.vlgmr.msra.gmra.mrb[100].mxu1 %v27752_v3  ;;  %22365 = vmatprep.subr.mxu1 %v13265_v48  ;;  %v14487_v35 = vand.u32 4294901760, %v27821_v4  ;;  %v14494_v19 = vand.u32 4294901760, %v27826_v24 }
 0xc66   : > { %22366 = vmatpush3.msra.mxu1 %v13265_v48  ;;  %22367 = vmatprep.mubr.f32.mxu1 %v25398_v10  ;;  %v29339_v10 = vld [vmem:[#allocation21_spill] sm:$0xff]  ;;  %v14501_v17 = vand.u32 4294901760, %v27843_v31 }
 0xc67   : > { %22376 = vmatprep.subr.mxu1 %v13395_v20  ;;  %v24166_v60 = vpack.c.bf16 %v14494_v19, %v14487_v35 }
 0xc69   : > { %22368 = vmatmul.mubr.f32.vlgmr.msra.gmra.mrb[102].mxu1 %v25406_v8  ;;  %v29340_v8 = vld [vmem:[#allocation22_spill] sm:$0xff] }
 0xc6a   : > { %22377 = vmatpush3.msra.mxu1 %v13395_v20  ;;  %22370 = vmatprep.mubr.f32.mxu1 %v25412_v58  ;;  %v29341_v58 = vld [vmem:[#allocation23_spill] sm:$0xff]  ;;  %v24142_v20 = vpack.c.bf16 %v27866_v51, %v27864_v53 }
 0xc6b   : > { %22387 = vmatprep.subr.mxu1 %v13392_v18 }
 0xc6d   : > { %22371 = vmatmul.mubr.f32.gmra.mrb[104].mxu1 %v25418_v16  ;;  %v29344_v16 = vld [vmem:[#allocation25_spill] sm:$0xff] }
 0xc6e   : > { %22373 = vmatprep.mubr.f32.mxu1 %v25423_v23  ;;  %v29345_v23 = vld [vmem:[#allocation26_spill] sm:$0xff] }
 0xc71   : > { %22374 = vmatmul.mubr.f32.gmra.mrb[106].mxu1 %v29335_v55  ;;  %v12737_v55 = vld [vmem:[%s29355_s26] sm:$0x3]  ;;  %s29366_s26 = sld [smem:[#allocation16_spill]] }
 0xc72   : > { %22378 = vmatprep.mubr.f32.mxu1 %v29336_v36 }
 0xc75   : > { %22379 = vmatmul.mubr.f32.vlgmr.msra.gmra.mrb[102].mxu1 %v29337_v38 }
 0xc76   : > { %22388 = vmatpush3.msra.mxu1 %v13392_v18  ;;  %22381 = vmatprep.mubr.f32.mxu1 %v29338_v40  ;;  %v14017_v18 = vand.u32 4294901760, %v14016_v14 }
 0xc77   : > { %22398 = vmatprep.subr.mxu1 %v13265_v48 }
 0xc79   : > { %22382 = vmatmul.mubr.f32.gmra.mrb[104].mxu1 %v29339_v10 }
 0xc7a   : > { %22384 = vmatprep.mubr.f32.mxu1 %v29340_v8 }
 0xc7d   : > { %22385 = vmatmul.mubr.f32.gmra.mrb[106].mxu1 %v29341_v58 }
 0xc7e   : > { %22389 = vmatprep.mubr.f32.mxu1 %v29342_v33 }
 0xc81   : > { %22390 = vmatmul.mubr.f32.vlgmr.msra.gmra.mrb[102].mxu1 %v29344_v16 }
 0xc82   : > { %22399 = vmatpush3.msra.mxu1 %v13265_v48  ;;  %22392 = vmatprep.mubr.f32.mxu1 %v29345_v23 }
 0xc83   : > { %22409 = vmatprep.subr.mxu1 %v13393_v13 }
 0xc85   : > { %22393 = vmatmul.mubr.f32.gmra.mrb[104].mxu1 %v29346_v61 }
 0xc86   : > { %22395 = vmatprep.mubr.f32.mxu1 %v29347_v57 }
 0xc89   : > { %22396 = vmatmul.mubr.f32.gmra.mrb[106].mxu1 %v29348_v2 }
 0xc8a   : > { %22400 = vmatprep.mubr.f32.mxu1 %v29349_v44 }
 0xc8d   : > { %22401 = vmatmul.mubr.f32.vlgmr.msra.gmra.mrb[102].mxu1 %v29350_v26 }
 0xc8e   : > { %22410 = vmatpush3.msra.mxu1 %v13393_v13  ;;  %22403 = vmatprep.mubr.f32.mxu1 %v29351_v39  ;;  %v14024_v13 = vand.u32 4294901760, %v14023_v49 }
 0xc8f   : > { %22420 = vmatprep.subr.mxu1 %v13265_v48 }
 0xc90   : > { %v27896_v15 = vpack.c.bf16 %v14024_v13, %v14017_v18 }
 0xc91   : > { %22404 = vmatmul.mubr.f32.gmra.mrb[104].mxu1 %v29352_v54 }
 0xc92   : > { %22406 = vmatprep.mubr.f32.mxu1 %v29353_v47 }
 0xc95   : > { %22407 = vmatmul.mubr.f32.gmra.mrb[106].mxu1 %v29354_v32 }
 0xc96   : > { %22411 = vmatprep.mubr.f32.mxu1 %v29336_v36 }
 0xc99   : > { %22412 = vmatmul.mubr.f32.vlgmr.msra.gmra.mrb[102].mxu1 %v29337_v38 }
 0xc9a   : > { %22421 = vmatpush3.msra.mxu1 %v13265_v48  ;;  %22414 = vmatprep.mubr.f32.mxu1 %v29338_v40  ;;  %v27891_v48 = vand.u32 4294901760, %v13930_v45 }
 0xc9b   : > { %24165 = vmatprep.subr.bf16.mxu1 %v29207_v21 }
 0xc9c   : > { %22436 = vmatpush3.msra.mxu0 %v27891_v48 }
 0xc9d   : > { %22415 = vmatmul.mubr.f32.gmra.mrb[104].mxu1 %v29339_v10  ;;  %24138 = vmatprep.subr.bf16.mxu0 %v29207_v21 }
 0xc9e   : > { %22417 = vmatprep.mubr.f32.mxu1 %v29340_v8 }
 0xca1   : > { %22418 = vmatmul.mubr.f32.gmra.mrb[106].mxu1 %v29341_v58 }
 0xca2   : > { %22422 = vmatprep.mubr.f32.mxu1 %v29336_v36  ;;  %v27902_v36 = vpack.c.bf16 %v14022_v42, %v14015_v22  ;;  %v15923_v22 = vand.u32 4294901760, %v27919_v63  ;;  %v15930_v42 = vand.u32 4294901760, %v27924_v27 }
 0xca4   : > { %v15924_v14 = vsub.f32 %v27919_v63, %v15923_v22  ;;  %v15931_v49 = vsub.f32 %v27924_v27, %v15930_v42 }
 0xca5   : > { %22423 = vmatmul.mubr.f32.vlgmr.msra.gmra.mrb[102].mxu1 %v29337_v38 }
 0xca6   : > { %22425 = vmatprep.mubr.f32.mxu1 %v29338_v40  ;;  %24167 = vmatpush3.bf16.msra.mxu1 %v24166_v60  ;;  %v15925_v18 = vand.u32 4294901760, %v15924_v14  ;;  %v15932_v13 = vand.u32 4294901760, %v15931_v49 }
 0xca7   : > { %22525 = vmatprep.subr.mxu1 %v29206_v52 }
 0xca9   : > { %22426 = vmatmul.mubr.f32.gmra.mrb[104].mxu1 %v29339_v10  ;;  %v29356_v10 = vld [vmem:[#allocation38_spill] sm:$0xff] }
 0xcaa   : > { %22428 = vmatprep.mubr.f32.mxu1 %v29340_v8  ;;  %22526 = vmatpush3.msra.mxu1 %v14501_v17  ;;  %v29357_v8 = vsub.s32 1, %v29356_v10 }
 0xcab   : > { %24171 = vmatprep.subr.bf16.mxu1 %v29207_v21 }
 0xcad   : > { %22429 = vmatmul.mubr.f32.gmra.mrb[106].mxu1 %v29341_v58  ;;  %v12742_v58 = vrot.slane %v12737_v55, %v29357_v8  ;;  %v27934_v55 = vpack.c.bf16 %v15932_v13, %v15925_v18  ;;  %v14965_v13 = vand.u32 4294901760, %v27883_v34 }
 0xcae   : > { %22527 = vmatprep.mubr.msk.f32.mxu1 %vm24809_vm0, %v29206_v52 }
 0xcb1   : > { %22528 = vmatmul.mubr.f32.vlgmr.msra.gmra.mrb[108].mxu1 %v27752_v3 }
 0xcb2   : > { %22545 = vmatprep.mubr.msk.f32.mxu1 %vm24809_vm0, %v29206_v52  ;;  %24173 = vmatpush3.bf16.msra.mxu1 %v27868_v12 }
 0xcb3   : > { %22543 = vmatprep.subr.mxu1 %v29206_v52 }
 0xcb6   : > { %22544 = vmatpush3.msra.mxu1 %v27889_v25 }
 0xcb7   : > { %24177 = vmatprep.subr.bf16.mxu1 %v29207_v21 }
 0xd1a   : > { %v12825_v38 = vpop.f32.mrb[90].mxu1 }
 0xd1b   : > { %v12826_v40 = vpop.f32.mrb[91].mxu1 }
 0xd1c   : > { %v12827_v33 = vadd.f32 %v12826_v40, %v12742_v58 }
 0xd20   : > { %v12926_v16 = vpop.f32.mrb[92].mxu1 }
 0xd21   : > { %v12927_v23 = vpop.f32.mrb[93].mxu1 }
 0xd22   : > { %v12928_v61 = vadd.f32 %v12927_v23, %v12827_v33  ;;  %v27941_v33 = vsub.f32 %v13930_v45, %v27891_v48 }
 0xd26   : > { %v13010_v57 = vpop.f32.mrb[94].mxu1 }
 0xd27   : > { %v13011_v2 = vpop.f32.mrb[95].mxu1 }
 0xd28   : > { %v13012_v44 = vadd.f32 %v13011_v2, %v12928_v61 }
 0xd2c   : > { %v13089_v26 = vpop.f32.mrb[96].mxu1 }
 0xd2d   : > { %v13090_v39 = vpop.f32.mrb[97].mxu1  ;;  %v14029_v26 = vand.u32 4294901760, %v27941_v33 }
 0xd2e   : > { %v13091_v54 = vadd.f32 %v13090_v39, %v13012_v44 }
 0xd32   : > { %v13178_v47 = vpop.f32.mrb[98].mxu1 }
 0xd33   : > { %v13179_v32 = vpop.f32.mrb[99].mxu1 }
 0xd34   : > { %v13180_v5 = vadd.f32 %v13179_v32, %v13091_v54 }
 0xd38   : > { %v13255_v60 = vpop.f32.mrb[100].mxu1 }
 0xd39   : > { %v13256_v30 = vpop.f32.mrb[101].mxu1 }
 0xd3a   : > { %v27906_v46 = vadd.f32 %v13256_v30, %v13180_v5  ;;  %v24178_v5 = vpack.c.bf16 %v27885_v0, %v27883_v34  ;;  %v14030_v30 = vsub.f32 %v27941_v33, %v14029_v26 }
 0xd78   : > { %v22424_v38 = vpop.f32.mrb[102].mxu1 }
 0xd79   : > { %v14882_v40 = vsel %vm12744_vm6, %v22424_v38, 0  ;;  %v13891_v10 = vpop.f32.mrb[103].mxu1  ;;  %v14972_v38 = vand.u32 4294901760, %v27885_v0 }
 0xd7a   : > { %v27937_v8 = vand.u32 4294901760, %v14882_v40  ;;  %v13932_v58 = vsel %vm12744_vm6, %v13891_v10, 0  ;;  %v27978_v10 = vsub.f32 %v27879_v11, %v27889_v25 }
 0xd7b   : > { %v27943_v16 = vand.u32 4294901760, %v13932_v58  ;;  %v24184_v11 = vpack.c.bf16 %v14972_v38, %v14965_v13 }
 0xd7c   : > { %v27946_v23 = vsub.f32 %v14882_v40, %v27937_v8  ;;  %v27948_v61 = vpop.f32.mrb[104].mxu1 }
 0xd7d   : > { %v27951_v57 = vsub.f32 %v13932_v58, %v27943_v16  ;;  %v13903_v2 = vpop.f32.mrb[105].mxu1 }
 0xd7e   : > { %v14954_v44 = vand.u32 4294901760, %v27946_v23  ;;  %v15361_v49 = vsel %vm12744_vm6, %v13903_v2, 0  ;;  %v14031_v2 = vand.u32 4294901760, %v14030_v30  ;;  %v14979_v30 = vand.u32 4294901760, %v27978_v10 }
 0xd7f   : > { %v14004_v39 = vand.u32 4294901760, %v27951_v57  ;;  %v27980_v58 = vand.u32 4294901760, %v15361_v49 }
 0xd80   : > { %v14955_v45 = vsub.f32 %v27946_v23, %v14954_v44  ;;  %v27959_v54 = vpop.f32.mrb[106].mxu1 }
 0xd81   : > { %v14005_v47 = vsub.f32 %v27951_v57, %v14004_v39  ;;  %v27964_v32 = vpop.f32.mrb[107].mxu1 }
 0xd82   : > { %v14956_v60 = vand.u32 4294901760, %v14955_v45  ;;  %v15357_v45 = vld [vmem:[%s29343_s23 + $0x48] sm:$0xff] }
 0xd83   : > { %v14006_v14 = vand.u32 4294901760, %v14005_v47  ;;  %v15358_v47 = vld [vmem:[%s29343_s23 + $0x50] sm:$0xff] }
 0xd84   : > { %v27972_v18 = vpop.f32.mrb[108].mxu1  ;;  %22546 = vmatmul.mubr.f32.vlgmr.msra.gmra.mrb[110].mxu1 %v14956_v60  ;;  %v15367_v60 = vand.u32 4294901760, %v15358_v47 }
 0xd85   : > { %24179 = vmatpush3.bf16.msra.mxu1 %v24178_v5  ;;  %22438 = vmatmul.mubr.f32.vlgmr.msra.gmra.mrb[110].mxu0 %v14006_v14  ;;  %v22529_v40 = vpop.f32.mrb[109].mxu1  ;;  %v15364_v5 = vand.u32 4294901760, %v15357_v45 }
 0xd86   : > { %24140 = vmatpush3.bf16.msra.mxu0 %v27896_v15  ;;  %22561 = vmatprep.subr.mxu1 %v29206_v52  ;;  %v27997_v15 = vsub.f32 %v15361_v49, %v27980_v58  ;;  %v15359_v40 = vld [vmem:[%s29343_s23 + $0x58] sm:$0xff] }
 0xd87   : > { %22444 = vmatprep.subr.mxu0 %v29206_v52  ;;  %22563 = vmatprep.mubr.msk.f32.mxu1 %vm24809_vm0, %v29206_v52  ;;  %v28014_v49 = vpack.c.bf16 %v15367_v60, %v15364_v5  ;;  %v28026_v51 = vsub.f32 %v15357_v45, %v15364_v5 }
 0xd88   : > { %22446 = vmatprep.mubr.msk.f32.mxu0 %vm24809_vm0, %v29206_v52  ;;  %v29145_v14 = vand.u32 4294901760, %v27997_v15 }
 0xd89   : > { %22562 = vmatpush3.msra.mxu1 %v27978_v10  ;;  %v15444_v5 = vand.u32 4294901760, %v28026_v51 }
 0xd8a   : > { %22445 = vmatpush3.msra.mxu0 %v14031_v2  ;;  %22564 = vmatmul.mubr.f32.vlgmr.msra.gmra.mrb[112].mxu1 %v27946_v23  ;;  %v15434_v53 = vsub.f32 %v27997_v15, %v29145_v14  ;;  %v28032_v2 = vand.u32 4294901760, %v15359_v40 }
 0xd8b   : > { %24183 = vmatprep.subr.bf16.mxu1 %v29207_v21  ;;  %22447 = vmatmul.mubr.f32.vlgmr.msra.gmra.mrb[112].mxu0 %v27943_v16 }
 0xd8c   : > { %24141 = vmatprep.subr.bf16.mxu0 %v29207_v21  ;;  %24185 = vmatpush3.bf16.msra.mxu1 %v24184_v11  ;;  %v15435_v11 = vand.u32 4294901760, %v15434_v53  ;;  %v28054_v53 = vsub.f32 %v15359_v40, %v28032_v2 }
 0xd8d   : > { %24143 = vmatpush3.bf16.msra.mxu0 %v24142_v20  ;;  %22579 = vmatprep.subr.mxu1 %v29206_v52  ;;  %v28028_v20 = vsub.f32 %v15358_v47, %v15367_v60  ;;  %v15840_v47 = vsel %vm12744_vm6, %v27948_v61, 0 }
 0xd8e   : > { %22453 = vmatprep.subr.mxu0 %v29206_v52  ;;  %22581 = vmatprep.mubr.msk.f32.mxu1 %vm24809_vm0, %v29206_v52  ;;  %v28056_v14 = vand.u32 4294901760, %v15840_v47 }
 0xd8f   : > { %22455 = vmatprep.mubr.msk.f32.mxu0 %vm24809_vm0, %v29206_v52  ;;  %v24196_v45 = vpack.c.bf16 %v28028_v20, %v28026_v51  ;;  %v15451_v60 = vand.u32 4294901760, %v28028_v20 }
 0xd90   : > { %22580 = vmatpush3.msra.mxu1 %v14979_v30 }
 0xd91   : > { %22454 = vmatpush3.msra.mxu0 %v27941_v33  ;;  %22582 = vmatmul.mubr.f32.vlgmr.msra.gmra.mrb[114].mxu1 %v27937_v8  ;;  %v24202_v61 = vpack.c.bf16 %v15451_v60, %v15444_v5  ;;  %v28092_v33 = vpack.c.bf16 %v15846_v41, %v15843_v62  ;;  %v14502_v62 = vsub.f32 %v27843_v31, %v14501_v17  ;;  %v16319_v41 = vsel %vm12744_vm6, %v27964_v32, 0  ;;  %v16315_v32 = vld [vmem:[%s29343_s23 + $0x78] sm:$0xff] }
 0xd92   : > { %24189 = vmatprep.subr.bf16.mxu1 %v29207_v21  ;;  %22456 = vmatmul.mubr.f32.vlgmr.msra.gmra.mrb[114].mxu0 %v27951_v57  ;;  %v28071_v57 = vsub.f32 %v15840_v47, %v28056_v14  ;;  %v28142_v40 = vand.u32 4294901760, %v16319_v41 }
 0xd93   : > { %24144 = vmatprep.subr.bf16.mxu0 %v29207_v21  ;;  %24191 = vmatpush3.bf16.msra.mxu1 %v28014_v49  ;;  %v14503_v17 = vand.u32 4294901760, %v14502_v62  ;;  %v14980_v62 = vsub.f32 %v27978_v10, %v14979_v30  ;;  %v16796_v30 = vld [vmem:[%s29343_s23 + $0xa0] sm:$0xff] }
 0xd94   : > { %24146 = vmatpush3.bf16.msra.mxu0 %v27870_v56  ;;  %22597 = vmatprep.subr.mxu1 %v29206_v52  ;;  %v28160_v47 = vsub.f32 %v16319_v41, %v28142_v40 }
 0xd95   : > { %22462 = vmatprep.subr.mxu0 %v29206_v52  ;;  %22599 = vmatprep.mubr.msk.f32.mxu1 %vm24809_vm0, %v29206_v52  ;;  %v14981_v10 = vand.u32 4294901760, %v14980_v62 }
 0xd96   : > { %22464 = vmatprep.mubr.msk.f32.mxu0 %vm24809_vm0, %v29206_v52 }
 0xd97   : > { %22598 = vmatpush3.msra.mxu1 %v28032_v2 }
 0xd98   : > { %22463 = vmatpush3.msra.mxu0 %v27891_v48  ;;  %22600 = vmatmul.mubr.f32.vlgmr.msra.gmra.mrb[116].mxu1 %v15435_v11  ;;  %v16316_v11 = vld [vmem:[%s29343_s23 + $0x80] sm:$0xff] }
 0xd99   : > { %24195 = vmatprep.subr.bf16.mxu1 %v29207_v21  ;;  %22465 = vmatmul.mubr.f32.vlgmr.msra.gmra.mrb[116].mxu0 %v14004_v39  ;;  %v15912_v39 = vand.u32 4294901760, %v28071_v57 }
 0xd9a   : > { %24147 = vmatprep.subr.bf16.mxu0 %v29207_v21  ;;  %24197 = vmatpush3.bf16.msra.mxu1 %v24196_v45  ;;  %v24160_v45 = vpack.c.bf16 %v27826_v24, %v27821_v4 }
 0xd9b   : > { %24149 = vmatpush3.bf16.msra.mxu0 %v27902_v36  ;;  %22615 = vmatprep.subr.mxu1 %v29206_v52  ;;  %v15458_v36 = vand.u32 4294901760, %v28054_v53 }
 0xd9c   : > { %22471 = vmatprep.subr.mxu0 %v29206_v52  ;;  %22617 = vmatprep.mubr.msk.f32.mxu1 %vm24809_vm0, %v29206_v52 }
 0xd9d   : > { %22473 = vmatprep.mubr.msk.f32.mxu0 %vm24809_vm0, %v29206_v52 }
 0xd9e   : > { %22616 = vmatpush3.msra.mxu1 %v28054_v53 }
 0xd9f   : > { %22472 = vmatpush3.msra.mxu0 %v14029_v26  ;;  %22618 = vmatmul.mubr.f32.vlgmr.msra.gmra.mrb[118].mxu1 %v27997_v15  ;;  %v14495_v26 = vsub.f32 %v27826_v24, %v14494_v19  ;;  %v24214_v19 = vpack.c.bf16 %v27924_v27, %v27919_v63  ;;  %v16322_v63 = vand.u32 4294901760, %v16315_v32  ;;  %v16325_v27 = vand.u32 4294901760, %v16316_v11 }
 0xda0   : > { %24201 = vmatprep.subr.bf16.mxu1 %v29207_v21  ;;  %22474 = vmatmul.mubr.f32.vlgmr.msra.gmra.mrb[118].mxu0 %v27943_v16 }
 0xda1   : > { %24150 = vmatprep.subr.bf16.mxu0 %v29207_v21  ;;  %24203 = vmatpush3.bf16.msra.mxu1 %v24202_v61  ;;  %v14496_v1 = vand.u32 4294901760, %v14495_v26  ;;  %v28174_v24 = vpack.c.bf16 %v16325_v27, %v16322_v63  ;;  %v28188_v26 = vsub.f32 %v16316_v11, %v16325_v27  ;;  %v28273_v27 = vand.u32 4294901760, %v16796_v30 }
 0xda2   : > { %24152 = vmatpush3.bf16.msra.mxu0 %v27870_v56  ;;  %22633 = vmatprep.subr.mxu1 %v29206_v52  ;;  %v14488_v56 = vsub.f32 %v27821_v4, %v14487_v35  ;;  %v15913_v35 = vsub.f32 %v28071_v57, %v15912_v39  ;;  %v16391_v4 = vand.u32 4294901760, %v28160_v47 }
 0xda3   : > { %22480 = vmatprep.subr.mxu0 %v29206_v52  ;;  %22635 = vmatprep.mubr.msk.f32.mxu1 %vm24809_vm0, %v29206_v52 }
 0xda4   : > { %22482 = vmatprep.mubr.msk.f32.mxu0 %vm24809_vm0, %v29206_v52  ;;  %v14489_v9 = vand.u32 4294901760, %v14488_v56  ;;  %v15914_v59 = vand.u32 4294901760, %v15913_v35  ;;  %v16392_v61 = vsub.f32 %v28160_v47, %v16391_v4  ;;  %v28186_v56 = vsub.f32 %v16315_v32, %v16322_v63 }
 0xda5   : > { %22634 = vmatpush3.msra.mxu1 %v15458_v36  ;;  %v14966_v35 = vsub.f32 %v27883_v34, %v14965_v13  ;;  %v16409_v13 = vand.u32 4294901760, %v28188_v26 }
 0xda6   : > { %22481 = vmatpush3.msra.mxu0 %v27891_v48  ;;  %22636 = vmatmul.mubr.f32.vlgmr.msra.gmra.mrb[120].mxu1 %v27980_v58  ;;  %v24157_v48 = vpack.c.bf16 %v14496_v1, %v14489_v9  ;;  %v14973_v9 = vsub.f32 %v27885_v0, %v14972_v38  ;;  %v16798_v1 = vsel %vm12744_vm6, %v27959_v54, 0  ;;  %v16402_v34 = vand.u32 4294901760, %v28186_v56 }
 0xda7   : > { %24207 = vmatprep.subr.bf16.mxu1 %v29207_v21  ;;  %22483 = vmatmul.mubr.f32.vlgmr.msra.gmra.mrb[120].mxu0 %v27943_v16  ;;  %v28140_v16 = vsub.f32 %v15838_v37, %v28118_v7  ;;  %v14967_v54 = vand.u32 4294901760, %v14966_v35 }
 0xda8   : > { %24153 = vmatprep.subr.bf16.mxu0 %v29207_v21  ;;  %24209 = vmatpush3.bf16.msra.mxu1 %v28092_v33  ;;  %v14974_v38 = vand.u32 4294901760, %v14973_v9 }
 0xda9   : > { %24155 = vmatpush3.bf16.msra.mxu0 %v28106_v6  ;;  %22651 = vmatprep.subr.mxu1 %v29206_v52 }
 0xdaa   : > { %22489 = vmatprep.subr.mxu0 %v29206_v52  ;;  %22653 = vmatprep.mubr.msk.f32.mxu1 %vm24809_vm0, %v29206_v52 }
 0xdab   : > { %22491 = vmatprep.mubr.msk.f32.mxu0 %vm24809_vm0, %v29206_v52 }
 0xdac   : > { %22652 = vmatpush3.msra.mxu1 %v28118_v7 }
 0xdad   : > { %22490 = vmatpush3.msra.mxu0 %v27834_v29  ;;  %22654 = vmatmul.mubr.f32.vlgmr.msra.gmra.mrb[122].mxu1 %v15914_v59  ;;  %v28221_v59 = vand.u32 4294901760, %v16798_v1 }
 0xdae   : > { %24213 = vmatprep.subr.bf16.mxu1 %v29207_v21  ;;  %22492 = vmatmul.mubr.f32.vlgmr.msra.gmra.mrb[122].mxu0 %v27762_v50  ;;  %v24220_v50 = vpack.c.bf16 %v15930_v42, %v15923_v22  ;;  %v15937_v22 = vand.u32 4294901760, %v28140_v16  ;;  %v16317_v42 = vld [vmem:[%s29343_s23 + $0x88] sm:$0xff] }
 0xdaf   : > { %24156 = vmatprep.subr.bf16.mxu0 %v29207_v21  ;;  %24215 = vmatpush3.bf16.msra.mxu1 %v24214_v19  ;;  %v28192_v37 = vand.u32 4294901760, %v16317_v42  ;;  %v16794_v19 = vld [vmem:[%s29343_s23 + $0x90] sm:$0xff]  ;;  %v28241_v41 = vsub.f32 %v16798_v1, %v28221_v59 }
 0xdb0   : > { %24158 = vmatpush3.bf16.msra.mxu0 %v24157_v48  ;;  %22669 = vmatprep.subr.mxu1 %v29206_v52  ;;  %v16795_v48 = vld [vmem:[%s29343_s23 + $0x98] sm:$0xff] }
 0xdb1   : > { %22498 = vmatprep.subr.mxu0 %v29206_v52  ;;  %22671 = vmatprep.mubr.msk.f32.mxu1 %vm24809_vm0, %v29206_v52  ;;  %v28219_v0 = vsub.f32 %v16317_v42, %v28192_v37 }
 0xdb2   : > { %22500 = vmatprep.mubr.msk.f32.mxu0 %vm24809_vm0, %v29206_v52 }
 0xdb3   : > { %22670 = vmatpush3.msra.mxu1 %v28140_v16  ;;  %v16416_v32 = vand.u32 4294901760, %v28219_v0 }
 0xdb4   : > { %22499 = vmatpush3.msra.mxu0 %v14503_v17  ;;  %22672 = vmatmul.mubr.f32.vlgmr.msra.gmra.mrb[124].mxu1 %v28071_v57  ;;  %v16801_v17 = vand.u32 4294901760, %v16794_v19 }
 0xdb5   : > { %24219 = vmatprep.subr.bf16.mxu1 %v29207_v21  ;;  %22501 = vmatmul.mubr.f32.vlgmr.msra.gmra.mrb[124].mxu0 %v27752_v3 }
 0xdb6   : > { %24159 = vmatprep.subr.bf16.mxu0 %v29207_v21  ;;  %24221 = vmatpush3.bf16.msra.mxu1 %v24220_v50  ;;  %v16804_v50 = vand.u32 4294901760, %v16795_v48 }
 0xdb7   : > { %24161 = vmatpush3.bf16.msra.mxu0 %v24160_v45  ;;  %22687 = vmatprep.subr.mxu1 %v29206_v52  ;;  %v28267_v45 = vsub.f32 %v16794_v19, %v16801_v17 }
 0xdb8   : > { %22507 = vmatprep.subr.mxu0 %v29206_v52  ;;  %22689 = vmatprep.mubr.msk.f32.mxu1 %vm24809_vm0, %v29206_v52  ;;  %v28269_v63 = vsub.f32 %v16795_v48, %v16804_v50 }
 0xdb9   : > { %22509 = vmatprep.mubr.msk.f32.mxu0 %vm24809_vm0, %v29206_v52  ;;  %v16881_v35 = vand.u32 4294901760, %v28267_v45 }
 0xdba   : > { %22688 = vmatpush3.msra.mxu1 %v15937_v22  ;;  %v16888_v9 = vand.u32 4294901760, %v28269_v63 }
 0xdbb   : > { %22508 = vmatpush3.msra.mxu0 %v27843_v31  ;;  %22690 = vmatmul.mubr.f32.vlgmr.msra.gmra.mrb[126].mxu1 %v28056_v14  ;;  %v24232_v31 = vpack.c.bf16 %v28188_v26, %v28186_v56 }
 0xdbc   : > { %24225 = vmatprep.subr.bf16.mxu1 %v29207_v21  ;;  %22510 = vmatmul.mubr.f32.vlgmr.msra.gmra.mrb[126].mxu0 %v27755_v43  ;;  %v16393_v43 = vand.u32 4294901760, %v16392_v61  ;;  %v24250_v61 = vpack.c.bf16 %v28269_v63, %v28267_v45  ;;  %v24256_v23 = vpack.c.bf16 %v16888_v9, %v16881_v35 }
 0xdbd   : > { %24162 = vmatprep.subr.bf16.mxu0 %v29207_v21  ;;  %24227 = vmatpush3.bf16.msra.mxu1 %v28174_v24 }
 0xdbe   : > { %24164 = vmatpush3.bf16.msra.mxu0 %v28106_v6  ;;  %22705 = vmatprep.subr.mxu1 %v29206_v52 }
 0xdbf   : > { %22516 = vmatprep.subr.mxu0 %v29206_v52  ;;  %22707 = vmatprep.mubr.msk.f32.mxu1 %vm24809_vm0, %v29206_v52 }
 0xdc0   : > { %22518 = vmatprep.mubr.msk.f32.mxu0 %vm24809_vm0, %v29206_v52 }
 0xdc1   : > { %22706 = vmatpush3.msra.mxu1 %v28192_v37 }
 0xdc2   : > { %22517 = vmatpush3.msra.mxu0 %v27834_v29  ;;  %22708 = vmatmul.mubr.f32.vlgmr.msra.gmra.mrb[128].mxu1 %v16393_v43  ;;  %v15445_v43 = vsub.f32 %v28026_v51, %v15444_v5  ;;  %v28299_v51 = vsub.f32 %v16796_v30, %v28273_v27 }
 0xdc3   : > { %24231 = vmatprep.subr.bf16.mxu1 %v29207_v21  ;;  %22519 = vmatmul.mubr.f32.vlgmr.msra.gmra.mrb[128].mxu0 %v27758_v28  ;;  %v24238_v28 = vpack.c.bf16 %v16409_v13, %v16402_v34 }
 0xdc4   : > { %24168 = vmatprep.subr.bf16.mxu0 %v29207_v21  ;;  %24233 = vmatpush3.bf16.msra.mxu1 %v24232_v31  ;;  %v15452_v31 = vsub.f32 %v28028_v20, %v15451_v60  ;;  %v15446_v20 = vand.u32 4294901760, %v15445_v43  ;;  %v16895_v60 = vand.u32 4294901760, %v28299_v51 }
 0xdc5   : > { %24170 = vmatpush3.bf16.msra.mxu0 %v28106_v6  ;;  %22723 = vmatprep.subr.mxu1 %v29206_v52  ;;  %v24175_v6 = vpack.c.bf16 %v14974_v38, %v14967_v54 }
 0xdc6   : > { %22534 = vmatprep.subr.mxu0 %v29206_v52  ;;  %22725 = vmatprep.mubr.msk.f32.mxu1 %vm24809_vm0, %v29206_v52  ;;  %v15453_v5 = vand.u32 4294901760, %v15452_v31 }
 0xdc7   : > { %22536 = vmatprep.mubr.msk.f32.mxu0 %vm24809_vm0, %v29206_v52 }
 0xdc8   : > { %22724 = vmatpush3.msra.mxu1 %v28219_v0 }
 0xdc9   : > { %22535 = vmatpush3.msra.mxu0 %v27834_v29  ;;  %22726 = vmatmul.mubr.f32.vlgmr.msra.gmra.mrb[130].mxu1 %v28160_v47  ;;  %v16870_v29 = vand.u32 4294901760, %v28241_v41 }
 0xdca   : > { %24237 = vmatprep.subr.bf16.mxu1 %v29207_v21  ;;  %22537 = vmatmul.mubr.f32.vlgmr.msra.gmra.mrb[130].mxu0 %v27752_v3  ;;  %v28256_v3 = vpack.c.bf16 %v16804_v50, %v16801_v17 }
 0xdcb   : > { %24174 = vmatprep.subr.bf16.mxu0 %v29207_v21  ;;  %24239 = vmatpush3.bf16.msra.mxu1 %v24238_v28  ;;  %v16871_v11 = vsub.f32 %v28241_v41, %v16870_v29 }
 0xdcc   : > { %24176 = vmatpush3.bf16.msra.mxu0 %v24175_v6  ;;  %22741 = vmatprep.subr.mxu1 %v29206_v52 }
 0xdcd   : > { %22552 = vmatprep.subr.mxu0 %v29206_v52  ;;  %22743 = vmatprep.mubr.msk.f32.mxu1 %vm24809_vm0, %v29206_v52  ;;  %v16872_v42 = vand.u32 4294901760, %v16871_v11 }
 0xdce   : > { %22554 = vmatprep.mubr.msk.f32.mxu0 %vm24809_vm0, %v29206_v52 }
 0xdcf   : > { %22742 = vmatpush3.msra.mxu1 %v16416_v32 }
 0xdd0   : > { %22553 = vmatpush3.msra.mxu0 %v14981_v10  ;;  %22744 = vmatmul.mubr.f32.vlgmr.msra.gmra.mrb[132].mxu1 %v28142_v40 }
 0xdd1   : > { %24243 = vmatprep.subr.bf16.mxu1 %v29207_v21  ;;  %22555 = vmatmul.mubr.f32.vlgmr.msra.gmra.mrb[132].mxu0 %v27937_v8 }
 0xdd2   : > { %24180 = vmatprep.subr.bf16.mxu0 %v29207_v21  ;;  %24245 = vmatpush3.bf16.msra.mxu1 %v28256_v3 }
 0xdd3   : > { %24182 = vmatpush3.bf16.msra.mxu0 %v27868_v12  ;;  %22759 = vmatprep.subr.mxu1 %v29206_v52 }
 0xdd4   : > { %22570 = vmatprep.subr.mxu0 %v29206_v52  ;;  %22761 = vmatprep.mubr.msk.f32.mxu1 %vm24809_vm0, %v29206_v52 }
 0xdd5   : > { %22572 = vmatprep.mubr.msk.f32.mxu0 %vm24809_vm0, %v29206_v52 }
 0xdd6   : > { %22760 = vmatpush3.msra.mxu1 %v28273_v27 }
 0xdd7   : > { %22571 = vmatpush3.msra.mxu0 %v27889_v25  ;;  %22762 = vmatmul.mubr.f32.vlgmr.msra.gmra.mrb[134].mxu1 %v16872_v42 }
 0xdd8   : > { %24249 = vmatprep.subr.bf16.mxu1 %v29207_v21  ;;  %22573 = vmatmul.mubr.f32.vlgmr.msra.gmra.mrb[134].mxu0 %v14954_v44  ;;  %v24193_v44 = vpack.c.bf16 %v15453_v5, %v15446_v20  ;;  %v17294_v20 = vld [vmem:[%s29359_s1 + $0x8] sm:$0xff] }
 0xdd9   : > { %24186 = vmatprep.subr.bf16.mxu0 %v29207_v21  ;;  %24251 = vmatpush3.bf16.msra.mxu1 %v24250_v61 }
 0xdda   : > { %24188 = vmatpush3.bf16.msra.mxu0 %v27868_v12  ;;  %22777 = vmatprep.subr.mxu1 %v29206_v52  ;;  %v15459_v12 = vsub.f32 %v28054_v53, %v15458_v36  ;;  %v16417_v36 = vsub.f32 %v28219_v0, %v16416_v32 }
 0xddb   : > { %22588 = vmatprep.subr.mxu0 %v29206_v52  ;;  %22779 = vmatprep.mubr.msk.f32.mxu1 %vm24809_vm0, %v29206_v52 }
 0xddc   : > { %22590 = vmatprep.mubr.msk.f32.mxu0 %vm24809_vm0, %v29206_v52  ;;  %v15460_v1 = vand.u32 4294901760, %v15459_v12  ;;  %v16418_v57 = vand.u32 4294901760, %v16417_v36  ;;  %v17310_v12 = vand.u32 4294901760, %v17294_v20 }
 0xddd   : > { %22778 = vmatpush3.msra.mxu1 %v28299_v51 }
 0xdde   : > { %22589 = vmatpush3.msra.mxu0 %v27889_v25  ;;  %22780 = vmatmul.mubr.f32.vlgmr.msra.gmra.mrb[136].mxu1 %v28241_v41  ;;  %v29358_v25 = vand.u32 4294901760, %v27997_v15 }
 0xddf   : > { %24255 = vmatprep.subr.bf16.mxu1 %v29207_v21  ;;  %22591 = vmatmul.mubr.f32.vlgmr.msra.gmra.mrb[136].mxu0 %v27937_v8  ;;  %v15938_v8 = vsub.f32 %v28140_v16, %v15937_v22  ;;  %v16896_v22 = vsub.f32 %v28299_v51, %v16895_v60  ;;  %v17293_v51 = vld [vmem:[%s29359_s1] sm:$0xff] }
 0xde0   : > { %24192 = vmatprep.subr.bf16.mxu0 %v29207_v21  ;;  %24257 = vmatpush3.bf16.msra.mxu1 %v24256_v23 }
 0xde1   : > { %24194 = vmatpush3.bf16.msra.mxu0 %v24193_v44  ;;  %22795 = vmatprep.subr.mxu1 %v29206_v52  ;;  %v15939_v15 = vand.u32 4294901760, %v15938_v8  ;;  %v16897_v47 = vand.u32 4294901760, %v16896_v22  ;;  %v17307_v44 = vand.u32 4294901760, %v17293_v51 }
 0xde2   : > { %22606 = vmatprep.subr.mxu0 %v29206_v52  ;;  %22797 = vmatprep.mubr.msk.f32.mxu1 %vm24809_vm0, %v29206_v52 }
 0xde3   : > { %22608 = vmatprep.mubr.msk.f32.mxu0 %vm24809_vm0, %v29206_v52  ;;  %v28456_v8 = vpack.c.bf16 %v17310_v12, %v17307_v44 }
 0xde4   : > { %22796 = vmatpush3.msra.mxu1 %v16895_v60 }
 0xde5   : > { %22607 = vmatpush3.msra.mxu0 %v15460_v1  ;;  %22798 = vmatmul.mubr.f32.vlgmr.msra.gmra.mrb[138].mxu1 %v28221_v59 }
 0xde6   : > { %22609 = vmatmul.mubr.f32.vlgmr.msra.gmra.mrb[138].mxu0 %v27980_v58  ;;  %24198 = vmatprep.subr.bf16.mxu0 %v29207_v21 }
 0xde7   : > { %24200 = vmatpush3.bf16.msra.mxu0 %v28014_v49  ;;  %22626 = vmatprep.mubr.msk.f32.mxu0 %vm24809_vm0, %v29206_v52 }
 0xde8   : > { %22624 = vmatprep.subr.mxu0 %v29206_v52  ;;  %24261 = vmatprep.subr.bf16.mxu1 %v29207_v21 }
 0xde9   : > { %22815 = vmatprep.mubr.msk.f32.mxu1 %vm24809_vm0, %v29206_v52  ;;  %24263 = vmatpush3.bf16.msra.mxu1 %v28456_v8 }
 0xdea   : > { %22813 = vmatprep.subr.mxu1 %v29206_v52 }
 0xdeb   : > { %22625 = vmatpush3.msra.mxu0 %v28032_v2 }
 0xdec   : > { %22627 = vmatmul.mubr.f32.vlgmr.msra.gmra.mrb[140].mxu0 %v29358_v25  ;;  %24204 = vmatprep.subr.bf16.mxu0 %v29207_v21  ;;  %v28454_v25 = vld [vmem:[%s29359_s1 + $0x10] sm:$0xff] }
 0xded   : > { %24206 = vmatpush3.bf16.msra.mxu0 %v28014_v49  ;;  %22644 = vmatprep.mubr.msk.f32.mxu0 %vm24809_vm0, %v29206_v52 }
 0xdee   : > { %22642 = vmatprep.subr.mxu0 %v29206_v52 }
 0xdf1   : > { %22643 = vmatpush3.msra.mxu0 %v28032_v2 }
 0xdf2   : > { %22645 = vmatmul.mubr.f32.vlgmr.msra.gmra.mrb[142].mxu0 %v27980_v58  ;;  %24210 = vmatprep.subr.bf16.mxu0 %v29207_v21  ;;  %v16410_v58 = vsub.f32 %v28188_v26, %v16409_v13 }
 0xdf3   : > { %24212 = vmatpush3.bf16.msra.mxu0 %v27934_v55  ;;  %22662 = vmatprep.mubr.msk.f32.mxu0 %vm24809_vm0, %v29206_v52  ;;  %v16403_v55 = vsub.f32 %v28186_v56, %v16402_v34 }
 0xdf4   : > { %22660 = vmatprep.subr.mxu0 %v29206_v52  ;;  %v16411_v2 = vand.u32 4294901760, %v16410_v58  ;;  %v28464_v58 = vand.u32 4294901760, %v28454_v25 }
 0xdf5   : > { %v16404_v49 = vand.u32 4294901760, %v16403_v55  ;;  %v28460_v55 = vsub.f32 %v17294_v20, %v17310_v12 }
 0xdf6   : > { %22814 = vmatpush3.msra.mxu1 %v28464_v58 }
 0xdf7   : > { %22661 = vmatpush3.msra.mxu0 %v15939_v15  ;;  %v24229_v53 = vpack.c.bf16 %v16411_v2, %v16404_v49  ;;  %v28458_v15 = vsub.f32 %v17293_v51, %v17307_v44  ;;  %v17394_v2 = vand.u32 4294901760, %v28460_v55  ;;  %24264 = vmatprep.subr.bf16.mxu1 %v29207_v21 }
 0xdf8   : > { %22663 = vmatmul.mubr.f32.vlgmr.msra.gmra.mrb[144].mxu0 %v28056_v14  ;;  %24216 = vmatprep.subr.bf16.mxu0 %v29207_v21 }
 0xdf9   : > { %24218 = vmatpush3.bf16.msra.mxu0 %v28092_v33  ;;  %22680 = vmatprep.mubr.msk.f32.mxu0 %vm24809_vm0, %v29206_v52  ;;  %v17387_v49 = vand.u32 4294901760, %v28458_v15 }
 0xdfa   : > { %22678 = vmatprep.subr.mxu0 %v29206_v52 }
 0xdfb   : > { %v17388_v36 = vsub.f32 %v28458_v15, %v17387_v49 }
 0xdfd   : > { %22679 = vmatpush3.msra.mxu0 %v28118_v7 }
 0xdfe   : > { %22681 = vmatmul.mubr.f32.vlgmr.msra.gmra.mrb[146].mxu0 %v15912_v39  ;;  %24222 = vmatprep.subr.bf16.mxu0 %v29207_v21  ;;  %v16889_v39 = vsub.f32 %v28269_v63, %v16888_v9 }
 0xdff   : > { %24224 = vmatpush3.bf16.msra.mxu0 %v28092_v33  ;;  %22698 = vmatprep.mubr.msk.f32.mxu0 %vm24809_vm0, %v29206_v52 }
 0xe00   : > { %22696 = vmatprep.subr.mxu0 %v29206_v52 }
 0xe03   : > { %22697 = vmatpush3.msra.mxu0 %v28118_v7  ;;  %v16890_v7 = vand.u32 4294901760, %v16889_v39 }
 0xe04   : > { %22699 = vmatmul.mubr.f32.vlgmr.msra.gmra.mrb[148].mxu0 %v28056_v14  ;;  %24228 = vmatprep.subr.bf16.mxu0 %v29207_v21  ;;  %v16882_v14 = vsub.f32 %v28267_v45, %v16881_v35 }
 0xe05   : > { %24230 = vmatpush3.bf16.msra.mxu0 %v24229_v53  ;;  %22716 = vmatprep.mubr.msk.f32.mxu0 %vm24809_vm0, %v29206_v52 }
 0xe06   : > { %22714 = vmatprep.subr.mxu0 %v29206_v52  ;;  %v16883_v33 = vand.u32 4294901760, %v16882_v14 }
 0xe08   : > { %v24247_v16 = vpack.c.bf16 %v16890_v7, %v16883_v33 }
 0xe09   : > { %22715 = vmatpush3.msra.mxu0 %v16418_v57  ;;  %v17395_v57 = vsub.f32 %v28460_v55, %v17394_v2 }
 0xe0a   : > { %22717 = vmatmul.mubr.f32.vlgmr.msra.gmra.mrb[150].mxu0 %v28142_v40  ;;  %24234 = vmatprep.subr.bf16.mxu0 %v29207_v21 }
 0xe0b   : > { %24236 = vmatpush3.bf16.msra.mxu0 %v28174_v24  ;;  %22734 = vmatprep.mubr.msk.f32.mxu0 %vm24809_vm0, %v29206_v52  ;;  %v17396_v22 = vand.u32 4294901760, %v17395_v57 }
 0xe0c   : > { %22732 = vmatprep.subr.mxu0 %v29206_v52 }
 0xe0f   : > { %22733 = vmatpush3.msra.mxu0 %v28192_v37 }
 0xe10   : > { %22735 = vmatmul.mubr.f32.vlgmr.msra.gmra.mrb[152].mxu0 %v16391_v4  ;;  %24240 = vmatprep.subr.bf16.mxu0 %v29207_v21 }
 0xe11   : > { %24242 = vmatpush3.bf16.msra.mxu0 %v28174_v24  ;;  %22752 = vmatprep.mubr.msk.f32.mxu0 %vm24809_vm0, %v29206_v52 }
 0xe12   : > { %22750 = vmatprep.subr.mxu0 %v29206_v52 }
 0xe15   : > { %22751 = vmatpush3.msra.mxu0 %v28192_v37 }
 0xe16   : > { %22753 = vmatmul.mubr.f32.vlgmr.msra.gmra.mrb[154].mxu0 %v28142_v40  ;;  %24246 = vmatprep.subr.bf16.mxu0 %v29207_v21 }
 0xe17   : > { %24248 = vmatpush3.bf16.msra.mxu0 %v24247_v16  ;;  %22770 = vmatprep.mubr.msk.f32.mxu0 %vm24809_vm0, %v29206_v52  ;;  %v17389_v16 = vand.u32 4294901760, %v17388_v36 }
 0xe18   : > { %22768 = vmatprep.subr.mxu0 %v29206_v52 }
 0xe1b   : > { %22769 = vmatpush3.msra.mxu0 %v16897_v47  ;;  %v28475_v47 = vpack.c.bf16 %v17396_v22, %v17389_v16 }
 0xe1c   : > { %22771 = vmatmul.mubr.f32.vlgmr.msra.gmra.mrb[156].mxu0 %v28221_v59  ;;  %24252 = vmatprep.subr.bf16.mxu0 %v29207_v21 }
 0xe1d   : > { %24254 = vmatpush3.bf16.msra.mxu0 %v28256_v3  ;;  %22788 = vmatprep.mubr.msk.f32.mxu0 %vm24809_vm0, %v29206_v52 }
 0xe1e   : > { %22786 = vmatprep.subr.mxu0 %v29206_v52 }
 0xe21   : > { %22787 = vmatpush3.msra.mxu0 %v28273_v27 }
 0xe22   : > { %22789 = vmatmul.mubr.f32.vlgmr.msra.gmra.mrb[158].mxu0 %v16870_v29  ;;  %24258 = vmatprep.subr.bf16.mxu0 %v29207_v21 }
 0xe23   : > { %24260 = vmatpush3.bf16.msra.mxu0 %v28256_v3  ;;  %22806 = vmatprep.mubr.msk.f32.mxu0 %vm24809_vm0, %v29206_v52 }
 0xe24   : > { %22804 = vmatprep.subr.mxu0 %v29206_v52 }
 0xe27   : > { %22805 = vmatpush3.msra.mxu0 %v28273_v27 }
 0xe28   : > { %22807 = vmatmul.mubr.f32.vlgmr.msra.gmra.mrb[160].mxu0 %v28221_v59  ;;  %22863 = vmatprep.subr.mxu0 %v29206_v52 }
 0xe29   : > { %22865 = vmatprep.mubr.msk.f32.mxu0 %vm24809_vm0, %v29206_v52 }
 0xe57   : > { %v28435_v40 = vpop.f32.mrb[110].mxu1 }
 0xe58   : > { %v14008_v4 = vpop.f32.mrb[110].mxu0  ;;  %v22547_v24 = vpop.f32.mrb[111].mxu1 }
 0xe59   : > { %v22439_v56 = vpop.f32.mrb[111].mxu0 }
 0xe5d   : > { %v28437_v26 = vpop.f32.mrb[112].mxu1 }
 0xe5e   : > { %v14094_v37 = vpop.f32.mrb[112].mxu0  ;;  %v22565_v34 = vpop.f32.mrb[113].mxu1 }
 0xe5f   : > { %v14095_v13 = vadd.f32 %v14094_v37, %v14008_v4  ;;  %v22448_v0 = vpop.f32.mrb[113].mxu0 }
 0xe60   : > { %v24268_v0 = vpack.c.bf16 %v28460_v55, %v28458_v15 }
 0xe64   : > { %v28439_v54 = vpop.f32.mrb[114].mxu1 }
 0xe65   : > { %v14172_v38 = vpop.f32.mrb[114].mxu0  ;;  %v22583_v59 = vpop.f32.mrb[115].mxu1 }
 0xe66   : > { %v14173_v28 = vadd.f32 %v14172_v38, %v14095_v13  ;;  %v22457_v19 = vpop.f32.mrb[115].mxu0 }
 0xe6b   : > { %v28441_v48 = vpop.f32.mrb[116].mxu1 }
 0xe6c   : > { %v14248_v6 = vpop.f32.mrb[116].mxu0  ;;  %v22601_v62 = vpop.f32.mrb[117].mxu1 }
 0xe6d   : > { %v14249_v41 = vadd.f32 %v14248_v6, %v14173_v28  ;;  %v22466_v17 = vpop.f32.mrb[117].mxu0 }
 0xe72   : > { %v28443_v50 = vpop.f32.mrb[118].mxu1 }
 0xe73   : > { %v14328_v32 = vpop.f32.mrb[118].mxu0  ;;  %v22619_v10 = vpop.f32.mrb[119].mxu1 }
 0xe74   : > { %v14329_v29 = vadd.f32 %v14328_v32, %v14249_v41  ;;  %v22475_v3 = vpop.f32.mrb[119].mxu0 }
 0xe75   : > { %v28482_v3 = vpack.c.bf16 %v17394_v2, %v17387_v49 }
 0xe79   : > { %v28445_v30 = vpop.f32.mrb[120].mxu1 }
 0xe7a   : > { %v14402_v11 = vpop.f32.mrb[120].mxu0  ;;  %v22637_v45 = vpop.f32.mrb[121].mxu1 }
 0xe7b   : > { %v14403_v63 = vadd.f32 %v14402_v11, %v14329_v29  ;;  %v22484_v27 = vpop.f32.mrb[121].mxu0 }
 0xe80   : > { %v28447_v42 = vpop.f32.mrb[122].mxu1 }
 0xe81   : > { %v14480_v61 = vpop.f32.mrb[122].mxu0  ;;  %v22655_v43 = vpop.f32.mrb[123].mxu1 }
 0xe82   : > { %v14481_v31 = vadd.f32 %v14480_v61, %v14403_v63  ;;  %v22493_v35 = vpop.f32.mrb[123].mxu0 }
 0xe87   : > { %v28449_v9 = vpop.f32.mrb[124].mxu1 }
 0xe88   : > { %v14566_v5 = vpop.f32.mrb[124].mxu0  ;;  %v22673_v23 = vpop.f32.mrb[125].mxu1 }
 0xe89   : > { %v14567_v60 = vadd.f32 %v14566_v5, %v14481_v31  ;;  %v22502_v1 = vpop.f32.mrb[125].mxu0 }
 0xe8e   : > { %v28469_v53 = vpop.f32.mrb[126].mxu1 }
 0xe8f   : > { %v14644_v14 = vpop.f32.mrb[126].mxu0  ;;  %v22691_v39 = vpop.f32.mrb[127].mxu1 }
 0xe90   : > { %v14645_v33 = vadd.f32 %v14644_v14, %v14567_v60  ;;  %v22511_v7 = vpop.f32.mrb[127].mxu0 }
 0xe95   : > { %v16395_v4 = vpop.f32.mrb[128].mxu1 }
 0xe96   : > { %v14720_v24 = vpop.f32.mrb[128].mxu0  ;;  %v22709_v56 = vpop.f32.mrb[129].mxu1 }
 0xe97   : > { %v14721_v37 = vadd.f32 %v14720_v24, %v14645_v33  ;;  %v22520_v34 = vpop.f32.mrb[129].mxu0 }
 0xe99   : > { %v14801_v13 = vadd.f32 %v27972_v18, %v14721_v37 }
 0xe9c   : > { %v16559_v38 = vpop.f32.mrb[130].mxu1 }
 0xe9d   : > { %v14874_v59 = vpop.f32.mrb[130].mxu0  ;;  %v22727_v28 = vpop.f32.mrb[131].mxu1 }
 0xe9e   : > { %v14875_v19 = vadd.f32 %v14874_v59, %v14801_v13  ;;  %v22538_v6 = vpop.f32.mrb[131].mxu0 }
 0xea3   : > { %v16715_v62 = vpop.f32.mrb[132].mxu1 }
 0xea4   : > { %v15044_v41 = vpop.f32.mrb[132].mxu0  ;;  %v22745_v17 = vpop.f32.mrb[133].mxu1 }
 0xea5   : > { %v15045_v32 = vadd.f32 %v15044_v41, %v28435_v40  ;;  %v22556_v10 = vpop.f32.mrb[133].mxu0 }
 0xea7   : > { %v15123_v29 = vadd.f32 %v28437_v26, %v15045_v32 }
 0xeaa   : > { %v16874_v11 = vpop.f32.mrb[134].mxu1 }
 0xeab   : > { %v15198_v18 = vpop.f32.mrb[134].mxu0  ;;  %v22763_v45 = vpop.f32.mrb[135].mxu1 }
 0xeac   : > { %v15199_v63 = vadd.f32 %v15198_v18, %v15123_v29  ;;  %v22574_v27 = vpop.f32.mrb[135].mxu0 }
 0xeae   : > { %v15279_v61 = vadd.f32 %v28439_v54, %v15199_v63 }
 0xeb1   : > { %v17038_v43 = vpop.f32.mrb[136].mxu1 }
 0xeb2   : > { %v15352_v31 = vpop.f32.mrb[136].mxu0  ;;  %v22781_v35 = vpop.f32.mrb[137].mxu1 }
 0xeb3   : > { %v15353_v51 = vadd.f32 %v15352_v31, %v15279_v61  ;;  %v22592_v20 = vpop.f32.mrb[137].mxu0 }
 0xeb5   : > { %v15356_v5 = vadd.f32 %v15353_v51, %v14875_v19 }
 0xeb8   : > { %v17194_v23 = vpop.f32.mrb[138].mxu1 }
 0xeb9   : > { %v15523_v40 = vpop.f32.mrb[138].mxu0  ;;  %v22799_v44 = vpop.f32.mrb[139].mxu1 }
 0xeba   : > { %v15524_v26 = vadd.f32 %v15523_v40, %v28441_v48  ;;  %v22610_v12 = vpop.f32.mrb[139].mxu0  ;;  %v17274_v40 = vpop.permute.xlu1 %17273 }
 0xebc   : > { %v15602_v60 = vadd.f32 %v28443_v50, %v15524_v26  ;;  %v19574_v26 = vld [vmem:[%s29361_s11] ss:$0 sm:$0xff] }
 0xebf   : > { %v15677_v1 = vpop.f32.mrb[140].mxu0 }
 0xec0   : > { %v15678_v49 = vadd.f32 %v15677_v1, %v15602_v60  ;;  %v22628_v2 = vpop.f32.mrb[141].mxu0 }
 0xec2   : > { %v15758_v36 = vadd.f32 %v28445_v30, %v15678_v49 }
 0xec5   : > { %v15831_v54 = vpop.f32.mrb[142].mxu0 }
 0xec6   : > { %v15832_v57 = vadd.f32 %v15831_v54, %v15758_v36  ;;  %v22646_v14 = vpop.f32.mrb[143].mxu0 }
 0xec8   : > { %v15835_v39 = vadd.f32 %v15832_v57, %v15356_v5 }
 0xecb   : > { %v16002_v33 = vpop.f32.mrb[144].mxu0 }
 0xecc   : > { %v16003_v7 = vadd.f32 %v16002_v33, %v28447_v42  ;;  %v22664_v16 = vpop.f32.mrb[145].mxu0  ;;  %v17790_v33 = vld [vmem:[%s29363_s22] sm:$0xff] }
 0xece   : > { %v16081_v22 = vadd.f32 %v28449_v9, %v16003_v7  ;;  %v17802_v7 = vand.u32 4294901760, %v17790_v33 }
 0xed0   : > { %22864 = vmatpush3.msra.mxu0 %v17802_v7  ;;  %v17879_v16 = vsub.f32 %v17790_v33, %v17802_v7 }
 0xed1   : > { %v16156_v24 = vpop.f32.mrb[146].mxu0  ;;  %22868 = vmatprep.subr.mxu0 %v29206_v52 }
 0xed2   : > { %v16157_v48 = vadd.f32 %v16156_v24, %v16081_v22  ;;  %v22682_v56 = vpop.f32.mrb[147].mxu0 }
 0xed4   : > { %v16237_v50 = vadd.f32 %v28469_v53, %v16157_v48 }
 0xed7   : > { %v16310_v37 = vpop.f32.mrb[148].mxu0 }
 0xed8   : > { %v16311_v34 = vadd.f32 %v16310_v37, %v16237_v50  ;;  %v22700_v13 = vpop.f32.mrb[149].mxu0  ;;  %v17880_v50 = vand.u32 4294901760, %v17879_v16 }
 0xeda   : > { %v16314_v59 = vadd.f32 %v16311_v34, %v15835_v39  ;;  %v17881_v13 = vsub.f32 %v17879_v16, %v17880_v50 }
 0xedd   : > { %v16481_v30 = vpop.f32.mrb[150].mxu0 }
 0xede   : > { %v16482_v28 = vadd.f32 %v16481_v30, %v16395_v4  ;;  %v22718_v19 = vpop.f32.mrb[151].mxu0 }
 0xee0   : > { %v16560_v6 = vadd.f32 %v16559_v38, %v16482_v28  ;;  %v17882_v28 = vand.u32 4294901760, %v17881_v13  ;;  %v13261_v13 = vpop.permute.xlu1 %13260 }
 0xee3   : > { %v16635_v41 = vpop.f32.mrb[152].mxu0 }
 0xee4   : > { %v16636_v17 = vadd.f32 %v16635_v41, %v16560_v6  ;;  %v22736_v32 = vpop.f32.mrb[153].mxu0 }
 0xee6   : > { %v16716_v42 = vadd.f32 %v16715_v62, %v16636_v17  ;;  %v19573_v62 = vld [vmem:[%s29360_s2] ss:$0 sm:$0xff]  ;;  %s1093_s2 = scalar_lea.vmem %s24990_s4, %s19563_s0 }
 0xee9   : > { %v16789_v10 = vpop.f32.mrb[154].mxu0 }
 0xeea   : > { %v16790_v29 = vadd.f32 %v16789_v10, %v16716_v42  ;;  %v22754_v9 = vpop.f32.mrb[155].mxu0 }
 0xeec   : > { %v16793_v18 = vadd.f32 %v16790_v29, %v16314_v59 }
 0xeef   : > { %v16960_v45 = vpop.f32.mrb[156].mxu0 }
 0xef0   : > { %v16961_v53 = vadd.f32 %v16960_v45, %v16874_v11  ;;  %v22772_v63 = vpop.f32.mrb[157].mxu0  ;;  %v17400_v11 = vsub.f32 %v28454_v25, %v28464_v58  ;;  %v19575_v25 = vld [vmem:[%s29362_s15] ss:$0 sm:$0xff] }
 0xef2   : > { %v17039_v27 = vadd.f32 %v17038_v43, %v16961_v53  ;;  %v17401_v2 = vand.u32 4294901760, %v17400_v11 }
 0xef4   : > { %v17402_v54 = vsub.f32 %v17400_v11, %v17401_v2 }
 0xef5   : > { %v17114_v61 = vpop.f32.mrb[158].mxu0 }
 0xef6   : > { %v17115_v31 = vadd.f32 %v17114_v61, %v17039_v27  ;;  %v22790_v35 = vpop.f32.mrb[159].mxu0  ;;  %v17403_v14 = vand.u32 4294901760, %v17402_v54 }
 0xef8   : > { %v17195_v4 = vadd.f32 %v17194_v23, %v17115_v31 }
 0xefb   : > { %v17268_v51 = vpop.f32.mrb[160].mxu0 }
 0xefc   : > { %v17269_v38 = vadd.f32 %v17268_v51, %v17195_v4  ;;  %v22808_v20 = vpop.f32.mrb[161].mxu0 }
 0xefe   : > { %v17272_v5 = vadd.f32 %v17269_v38, %v16793_v18 }
 0xf00   : > { %v17276_v44 = vadd.f32 %v17274_v40, %v17272_v5 }
 0xf02   : > { %v17284_v12 = vmul.f32 %v19573_v62, %v17276_v44 }
 0xf04   : > { %v17292_v60 = vadd.f32 %v19574_v26, %v17284_v12 }
 0xf06   : > { %v17304_v1 = vsel %vm12744_vm6, %v17292_v60, 0 }
 0xf07   : > { %v17374_v43 = vand.u32 4294901760, %v17304_v1 }
 0xf09   : > { %v17375_v49 = vsub.f32 %v17304_v1, %v17374_v43 }
 0xf0b   : > { %v17376_v36 = vand.u32 4294901760, %v17375_v49 }
 0xf0d   : > { %v17377_v23 = vsub.f32 %v17375_v49, %v17376_v36 }
 0xf0f   : > { %v17378_v57 = vand.u32 4294901760, %v17377_v23 }
 0xf11   : > { %22816 = vmatmul.mubr.f32.vlgmr.msra.gmra.mrb[140].mxu1 %v17378_v57 }
 0xf12   : > { %24266 = vmatpush3.bf16.msra.mxu1 %v28475_v47  ;;  %22824 = vmatprep.mubr.msk.f32.mxu1 %vm24809_vm0, %v29206_v52 }
 0xf13   : > { %22822 = vmatprep.subr.mxu1 %v29206_v52 }
 0xf16   : > { %22823 = vmatpush3.msra.mxu1 %v17403_v14 }
 0xf17   : > { %24267 = vmatprep.subr.bf16.mxu1 %v29207_v21 }
 0xf19   : > { %22825 = vmatmul.mubr.f32.vlgmr.msra.gmra.mrb[140].mxu1 %v17374_v43 }
 0xf1a   : > { %24269 = vmatpush3.bf16.msra.mxu1 %v24268_v0  ;;  %22833 = vmatprep.mubr.msk.f32.mxu1 %vm24809_vm0, %v29206_v52 }
 0xf1b   : > { %22831 = vmatprep.subr.mxu1 %v29206_v52 }
 0xf1e   : > { %22832 = vmatpush3.msra.mxu1 %v17400_v11 }
 0xf1f   : > { %24270 = vmatprep.subr.bf16.mxu1 %v29207_v21 }
 0xf21   : > { %22834 = vmatmul.mubr.f32.vlgmr.msra.gmra.mrb[140].mxu1 %v17375_v49 }
 0xf22   : > { %24272 = vmatpush3.bf16.msra.mxu1 %v28456_v8  ;;  %22842 = vmatprep.mubr.msk.f32.mxu1 %vm24809_vm0, %v29206_v52 }
 0xf23   : > { %22840 = vmatprep.subr.mxu1 %v29206_v52 }
 0xf26   : > { %22841 = vmatpush3.msra.mxu1 %v28464_v58 }
 0xf27   : > { %24273 = vmatprep.subr.bf16.mxu1 %v29207_v21 }
 0xf29   : > { %22843 = vmatmul.mubr.f32.vlgmr.msra.gmra.mrb[140].mxu1 %v17376_v36 }
 0xf2a   : > { %24275 = vmatpush3.bf16.msra.mxu1 %v28482_v3  ;;  %22851 = vmatprep.mubr.msk.f32.mxu1 %vm24809_vm0, %v29206_v52 }
 0xf2b   : > { %22849 = vmatprep.subr.mxu1 %v29206_v52 }
 0xf2e   : > { %22850 = vmatpush3.msra.mxu1 %v17401_v2 }
 0xf2f   : > { %24276 = vmatprep.subr.bf16.mxu1 %v29207_v21 }
 0xf31   : > { %22852 = vmatmul.mubr.f32.vlgmr.msra.gmra.mrb[140].mxu1 %v17374_v43 }
 0xf32   : > { %24278 = vmatpush3.bf16.msra.mxu1 %v28456_v8  ;;  %22860 = vmatprep.mubr.msk.f32.mxu1 %vm24809_vm0, %v29206_v52 }
 0xf33   : > { %22858 = vmatprep.subr.mxu1 %v29206_v52 }
 0xf36   : > { %22859 = vmatpush3.msra.mxu1 %v28464_v58 }
 0xf37   : > { %24375 = vmatprep.subr.bf16.mxu1 %v29207_v21 }
 0xf39   : > { %22861 = vmatmul.mubr.f32.vlgmr.msra.gmra.mrb[140].mxu1 %v17374_v43 }
 0xf3a   : > { %23074 = vmatprep.mubr.msk.f32.mxu1 %vm24809_vm0, %v29206_v52 }
0x100c   : > { %v17774_v15 = vpop.f32.mrb[140].mxu1 }
0x100d   : > { %v24508_v55 = vadd.f32 %v19575_v25, %v17774_v15  ;;  %v22862_v47 = vpop.f32.mrb[141].mxu1 }
0x100f   : > { %v17779_v0 = vsub.f32 0.0, %v24508_v55 }
0x1011   : > { %v17780_v8 = vmul.f32 1.442695, %v17779_v0 }
0x1013   : > { %24761 = vpow2.f32 %v17780_v8 }
0x101d   : > { %v24762_v3 = vpop.eup %24761 }
0x101e   : > { %v17782_v39 = vadd.f32 1.0, %v24762_v3 }
0x1020   : > { %24763 = vrcp.f32 %v17782_v39 }
0x1021   : > { %24765 = vtanh.f32 %v24508_v55 }
0x102a   : > { %v24764_v58 = vpop.eup %24763 }
0x102b   : > { %17786 = vrot.lane.b32.xlu0 %v24764_v58, %s24812_s16  ;;  %v24766_v22 = vpop.eup %24765  ;;  %s29364_s16 = sld [smem:[#allocation17_spill]] }
0x1031   : > { %v18249_v6 = vld [vmem:[%s29364_s16] sm:$0xff]  ;;  %v18250_v41 = vld [vmem:[%s29364_s16 + $0x8] sm:$0xff]  ;;  %v18251_v10 = vld [vmem:[%s29364_s16 + $0x10] sm:$0xff] }
0x1032   : > { %v18269_v17 = vand.u32 4294901760, %v18249_v6  ;;  %v18272_v32 = vand.u32 4294901760, %v18250_v41  ;;  %v18252_v29 = vld [vmem:[%s29364_s16 + $0x18] sm:$0xff]  ;;  %v18275_v9 = vand.u32 4294901760, %v18251_v10  ;;  %v18253_v53 = vld [vmem:[%s29364_s16 + $0x20] sm:$0xff]  ;;  %v18254_v63 = vld [vmem:[%s29364_s16 + $0x28] sm:$0xff] }
0x1033   : > { %v18278_v18 = vand.u32 4294901760, %v18252_v29  ;;  %v18281_v27 = vand.u32 4294901760, %v18253_v53  ;;  %v18284_v61 = vand.u32 4294901760, %v18254_v63  ;;  %v18255_v51 = vld [vmem:[%s29364_s16 + $0x30] sm:$0xff]  ;;  %v18256_v38 = vld [vmem:[%s29364_s16 + $0x38] sm:$0xff] }
0x1034   : > { %v28551_v42 = vpack.c.bf16 %v18272_v32, %v18269_v17  ;;  %v28563_v31 = vsub.f32 %v18249_v6, %v18269_v17  ;;  %v28565_v35 = vsub.f32 %v18250_v41, %v18272_v32  ;;  %v28571_v20 = vsub.f32 %v18251_v10, %v18275_v9  ;;  %v18806_v32 = vld [vmem:[%s24980_s3] sm:$0xff]  ;;  %v18807_v10 = vld [vmem:[%s24980_s3 + $0x8] sm:$0xff] }
0x1035   : > { %v28557_v45 = vpack.c.bf16 %v18278_v18, %v18275_v9  ;;  %v28567_v4 = vpack.c.bf16 %v18284_v61, %v18281_v27  ;;  %v28573_v5 = vsub.f32 %v18252_v29, %v18278_v18  ;;  %v28576_v40 = vsub.f32 %v18253_v53, %v18281_v27  ;;  %v18808_v29 = vld [vmem:[%s24980_s3 + $0x10] sm:$0xff]  ;;  %v18809_v53 = vld [vmem:[%s24980_s3 + $0x18] sm:$0xff]  ;;  %v18810_v27 = vld [vmem:[%s24980_s3 + $0x20] sm:$0xff] }
0x1036   : > { %v28578_v62 = vsub.f32 %v18254_v63, %v18284_v61  ;;  %v18287_v44 = vand.u32 4294901760, %v18255_v51  ;;  %v18290_v26 = vand.u32 4294901760, %v18256_v38  ;;  %v18354_v12 = vand.u32 4294901760, %v28563_v31  ;;  %v18811_v61 = vld [vmem:[%s24980_s3 + $0x28] sm:$0xff] }
0x1037   : > { %v18361_v60 = vand.u32 4294901760, %v28565_v35  ;;  %v18368_v23 = vand.u32 4294901760, %v28571_v20  ;;  %v18375_v54 = vand.u32 4294901760, %v28573_v5  ;;  %v18382_v0 = vand.u32 4294901760, %v28576_v40 }
0x1038   : > { %v28583_v1 = vpack.c.bf16 %v18290_v26, %v18287_v44  ;;  %v28585_v11 = vsub.f32 %v18255_v51, %v18287_v44  ;;  %v28587_v43 = vsub.f32 %v18256_v38, %v18290_v26  ;;  %v18355_v49 = vsub.f32 %v28563_v31, %v18354_v12  ;;  %v18812_v26 = vld [vmem:[%s24980_s3 + $0x30] sm:$0xff] }
0x1039   : > { %v18362_v2 = vsub.f32 %v28565_v35, %v18361_v60  ;;  %v18369_v14 = vsub.f32 %v28571_v20, %v18368_v23  ;;  %v18376_v25 = vsub.f32 %v28573_v5, %v18375_v54  ;;  %v18389_v8 = vand.u32 4294901760, %v28578_v62 }
0x103a   : > { %v18356_v36 = vand.u32 4294901760, %v18355_v49  ;;  %v18383_v39 = vsub.f32 %v28576_v40, %v18382_v0  ;;  %v28623_v6 = vpack.c.bf16 %v18375_v54, %v18368_v23  ;;  %v18830_v9 = vand.u32 4294901760, %v18806_v32 }
0x103b   : > { %v18363_v57 = vand.u32 4294901760, %v18362_v2  ;;  %v18370_v55 = vand.u32 4294901760, %v18369_v14  ;;  %v18377_v47 = vand.u32 4294901760, %v18376_v25  ;;  %v18390_v33 = vsub.f32 %v28578_v62, %v18389_v8 }
0x103c   : > { %v28625_v41 = vpack.c.bf16 %v18389_v8, %v18382_v0  ;;  %v18833_v18 = vand.u32 4294901760, %v18807_v10  ;;  %v18836_v63 = vand.u32 4294901760, %v18808_v29  ;;  %v18839_v51 = vand.u32 4294901760, %v18809_v53 }
0x103d   : > { %v28597_v15 = vpack.c.bf16 %v18363_v57, %v18356_v36  ;;  %v28601_v3 = vpack.c.bf16 %v18377_v47, %v18370_v55  ;;  %v18391_v58 = vand.u32 4294901760, %v18390_v33  ;;  %v18842_v38 = vand.u32 4294901760, %v18810_v27 }
0x103e   : > { %v18845_v44 = vand.u32 4294901760, %v18811_v61  ;;  %v28639_v49 = vsub.f32 %v18807_v10, %v18833_v18  ;;  %v28641_v2 = vsub.f32 %v18808_v29, %v18836_v63  ;;  %v28643_v36 = vpack.c.bf16 %v18833_v18, %v18830_v9  ;;  %v28681_v10 = vld [vmem:[%s24980_s3 + $0x40] sm:$0xff] }
0x103f   : > { %v28645_v23 = vsub.f32 %v18809_v53, %v18839_v51  ;;  %v28647_v54 = vsub.f32 %v18810_v27, %v18842_v38  ;;  %v18848_v14 = vand.u32 4294901760, %v18812_v26  ;;  %v28685_v27 = vld [vmem:[%s24980_s3 + $0x48] sm:$0xff] }
0x1040   : > { %v28649_v57 = vsub.f32 %v18811_v61, %v18845_v44  ;;  %v29152_v55 = vand.u32 4294901760, %v28639_v49  ;;  %v29151_v47 = vand.u32 4294901760, %v28641_v2 }
0x1041   : > { %v29148_v8 = vand.u32 4294901760, %v28645_v23 }
0x1042   : > { %v29147_v33 = vand.u32 4294901760, %v28649_v57 }
0x109d   : > { %v17787_v24 = vpop.permute.xlu0 %17786 }
0x109e   : > { %v17789_v48 = vmul.f32 %v24766_v22, %v17787_v24  ;;  %v18403_v22 = vand.u32 4294901760, %v28587_v43 }
0x10a0   : > { %v17799_v56 = vsel %vm2655_vm3, %v17789_v48, 0 }
0x10a1   : > { %v17867_v37 = vand.u32 4294901760, %v17799_v56 }
0x10a3   : > { %v17868_v34 = vsub.f32 %v17799_v56, %v17867_v37  ;;  %v18404_v56 = vsub.f32 %v28587_v43, %v18403_v22 }
0x10a5   : > { %v17869_v59 = vand.u32 4294901760, %v17868_v34 }
0x10a7   : > { %v17870_v30 = vsub.f32 %v17868_v34, %v17869_v59 }
0x10a9   : > { %v17871_v19 = vand.u32 4294901760, %v17870_v30 }
0x10ab   : > { %22866 = vmatmul.mubr.f32.vlgmr.msra.gmra.mrb[162].mxu0 %v17871_v19  ;;  %v28621_v19 = vpack.c.bf16 %v18361_v60, %v18354_v12  ;;  %v18813_v12 = vld [vmem:[%s24980_s3 + $0x38] sm:$0xff]  ;;  %v28637_v60 = vsub.f32 %v18806_v32, %v18830_v9 }
0x10ac   : > { %22869 = vmatpush3.msra.mxu0 %v17882_v28  ;;  %22870 = vmatprep.mubr.msk.f32.mxu0 %vm24809_vm0, %v29206_v52  ;;  %v18851_v0 = vand.u32 4294901760, %v18813_v12 }
0x10ad   : > { %22873 = vmatprep.subr.mxu0 %v29206_v52  ;;  %v29153_v25 = vand.u32 4294901760, %v28637_v60 }
0x10b3   : > { %22871 = vmatmul.mubr.f32.vlgmr.msra.gmra.mrb[162].mxu0 %v17867_v37 }
0x10b4   : > { %22874 = vmatpush3.msra.mxu0 %v17879_v16  ;;  %22875 = vmatprep.mubr.msk.f32.mxu0 %vm24809_vm0, %v29206_v52  ;;  %v18396_v16 = vand.u32 4294901760, %v28585_v11 }
0x10b5   : > { %22878 = vmatprep.subr.mxu0 %v29206_v52 }
0x10b6   : > { %v18397_v48 = vsub.f32 %v28585_v11, %v18396_v16  ;;  %v28627_v17 = vpack.c.bf16 %v18403_v22, %v18396_v16  ;;  %v18931_v16 = vsub.f32 %v28639_v49, %v29152_v55  ;;  %v18938_v22 = vsub.f32 %v28641_v2, %v29151_v47 }
0x10b8   : > { %v18932_v9 = vand.u32 4294901760, %v18931_v16  ;;  %v18939_v18 = vand.u32 4294901760, %v18938_v22 }
0x10bb   : > { %22876 = vmatmul.mubr.f32.vlgmr.msra.gmra.mrb[162].mxu0 %v17868_v34 }
0x10bc   : > { %22879 = vmatpush3.msra.mxu0 %v17802_v7  ;;  %22880 = vmatprep.mubr.msk.f32.mxu0 %vm24809_vm0, %v29206_v52 }
0x10bd   : > { %22883 = vmatprep.subr.mxu0 %v29206_v52 }
0x10c3   : > { %22881 = vmatmul.mubr.f32.vlgmr.msra.gmra.mrb[162].mxu0 %v17869_v59 }
0x10c4   : > { %22884 = vmatpush3.msra.mxu0 %v17880_v50  ;;  %22885 = vmatprep.mubr.msk.f32.mxu0 %vm24809_vm0, %v29206_v52  ;;  %v18398_v50 = vand.u32 4294901760, %v18397_v48  ;;  %v28668_v48 = vsub.f32 %v18813_v12, %v18851_v0 }
0x10c5   : > { %22888 = vmatprep.subr.mxu0 %v29206_v52 }
0x10c6   : > { %v29150_v53 = vand.u32 4294901760, %v28668_v48 }
0x10cb   : > { %22886 = vmatmul.mubr.f32.vlgmr.msra.gmra.mrb[162].mxu0 %v17867_v37 }
0x10cc   : > { %22889 = vmatpush3.msra.mxu0 %v17802_v7  ;;  %22890 = vmatprep.mubr.msk.f32.mxu0 %vm24809_vm0, %v29206_v52  ;;  %v18384_v7 = vand.u32 4294901760, %v18383_v39  ;;  %v29146_v39 = vand.u32 4294901760, %v28647_v54 }
0x10cd   : > { %24279 = vmatprep.subr.bf16.mxu0 %v29207_v21 }
0x10ce   : > { %v28607_v24 = vpack.c.bf16 %v18391_v58, %v18384_v7  ;;  %v28657_v7 = vsub.f32 %v18812_v26, %v18848_v14  ;;  %v18924_v58 = vsub.f32 %v28637_v60, %v29153_v25  ;;  %v28688_v26 = vld [vmem:[%s24980_s3 + $0x50] sm:$0xff] }
0x10d0   : > { %v29149_v32 = vand.u32 4294901760, %v28657_v7  ;;  %v18925_v29 = vand.u32 4294901760, %v18924_v58  ;;  %v28697_v58 = vld [vmem:[%s24980_s3 + $0x58] sm:$0xff] }
0x10d2   : > { %v24376_v12 = vpack.c.bf16 %v18932_v9, %v18925_v29  ;;  %v29154_v29 = vand.u32 4294901760, %v28685_v27 }
0x10d3   : > { %22891 = vmatmul.mubr.f32.vlgmr.msra.gmra.mrb[162].mxu0 %v17867_v37  ;;  %v18405_v37 = vand.u32 4294901760, %v18404_v56  ;;  %v18945_v56 = vsub.f32 %v28645_v23, %v29148_v8  ;;  %v29159_v8 = vand.u32 4294901760, %v28681_v10 }
0x10d4   : > { %22909 = vmatprep.mubr.msk.f32.mxu0 %vm24809_vm0, %v29206_v52  ;;  %24281 = vmatpush3.bf16.msra.mxu0 %v28551_v42 }
0x10d5   : > { %24282 = vmatprep.subr.bf16.mxu0 %v29207_v21  ;;  %v28611_v34 = vpack.c.bf16 %v18405_v37, %v18398_v50  ;;  %v18952_v50 = vsub.f32 %v28647_v54, %v29146_v39  ;;  %v18959_v37 = vsub.f32 %v28649_v57, %v29147_v33  ;;  %v18946_v61 = vand.u32 4294901760, %v18945_v56  ;;  %24377 = vmatpush3.bf16.msra.mxu1 %v24376_v12 }
0x10d6   : > { %v18966_v39 = vsub.f32 %v28657_v7, %v29149_v32  ;;  %v28693_v33 = vpack.c.bf16 %v18839_v51, %v18836_v63  ;;  %v18973_v56 = vsub.f32 %v28668_v48, %v29150_v53  ;;  %v28706_v63 = vsub.f32 %v28681_v10, %v29159_v8  ;;  %24378 = vmatprep.subr.bf16.mxu1 %v29207_v21 }
0x10d7   : > { %v18953_v16 = vand.u32 4294901760, %v18952_v50  ;;  %v18960_v22 = vand.u32 4294901760, %v18959_v37  ;;  %v24379_v9 = vpack.c.bf16 %v18946_v61, %v18939_v18  ;;  %v28708_v51 = vpack.c.bf16 %v18845_v44, %v18842_v38  ;;  %v28721_v18 = vld [vmem:[%s24980_s3 + $0x60] sm:$0xff]  ;;  %v28724_v61 = vld [vmem:[%s24980_s3 + $0x68] sm:$0xff] }
0x10d8   : > { %24284 = vmatpush3.bf16.msra.mxu0 %v28557_v45  ;;  %v29155_v32 = vand.u32 4294901760, %v28688_v26  ;;  %v28715_v50 = vsub.f32 %v28685_v27, %v29154_v29  ;;  %v29156_v37 = vand.u32 4294901760, %v28697_v58  ;;  %v28718_v12 = vpack.c.bf16 %v18851_v0, %v18848_v14 }
0x10d9   : > { %24285 = vmatprep.subr.bf16.mxu0 %v29207_v21  ;;  %v18967_v53 = vand.u32 4294901760, %v18966_v39  ;;  %v29157_v38 = vand.u32 4294901760, %v28706_v63  ;;  %v29158_v47 = vand.u32 4294901760, %v28721_v18  ;;  %v18974_v55 = vand.u32 4294901760, %v18973_v56  ;;  %24380 = vmatpush3.bf16.msra.mxu1 %v24379_v9 }
0x10da   : > { %v28730_v44 = vsub.f32 %v28688_v26, %v29155_v32  ;;  %v29160_v25 = vand.u32 4294901760, %v28715_v50  ;;  %v28737_v14 = vsub.f32 %v28697_v58, %v29156_v37  ;;  %v29161_v0 = vand.u32 4294901760, %v28724_v61  ;;  %24381 = vmatprep.subr.bf16.mxu1 %v29207_v21 }
0x10db   : > { %v24382_v39 = vpack.c.bf16 %v18960_v22, %v18953_v16  ;;  %v18980_v29 = vsub.f32 %v28706_v63, %v29157_v38  ;;  %v28747_v56 = vsub.f32 %v28721_v18, %v29158_v47  ;;  %v24385_v22 = vpack.c.bf16 %v18974_v55, %v18967_v53 }
0x10dc   : > { %24287 = vmatpush3.bf16.msra.mxu0 %v28567_v4  ;;  %v29163_v32 = vand.u32 4294901760, %v28730_v44  ;;  %v18987_v37 = vsub.f32 %v28715_v50, %v29160_v25  ;;  %v29162_v9 = vand.u32 4294901760, %v28737_v14  ;;  %v28757_v16 = vsub.f32 %v28724_v61, %v29161_v0 }
0x10dd   : > { %24288 = vmatprep.subr.bf16.mxu0 %v29207_v21  ;;  %v18981_v38 = vand.u32 4294901760, %v18980_v29  ;;  %24383 = vmatpush3.bf16.msra.mxu1 %v24382_v39  ;;  %v29164_v28 = vand.u32 4294901760, %v28747_v56  ;;  %v19576_v39 = vld [vmem:[%s29366_s26] ss:$0 sm:$0xff] }
0x10de   : > { %29365 = vst [vmem:[#allocation37_spill] sm:$0xff] %v28757_v16  ;;  %v18994_v47 = vsub.f32 %v28730_v44, %v29163_v32  ;;  %v18988_v8 = vand.u32 4294901760, %v18987_v37  ;;  %v19001_v25 = vsub.f32 %v28737_v14, %v29162_v9  ;;  %v29165_v30 = vand.u32 4294901760, %v28757_v16  ;;  %24384 = vmatprep.subr.bf16.mxu1 %v29207_v21 }
0x10df   : > { %v19008_v29 = vsub.f32 %v28747_v56, %v29164_v28 }
0x10e0   : > { %24290 = vmatpush3.bf16.msra.mxu0 %v28583_v1  ;;  %v18995_v0 = vand.u32 4294901760, %v18994_v47  ;;  %v24388_v55 = vpack.c.bf16 %v18988_v8, %v18981_v38  ;;  %v19002_v53 = vand.u32 4294901760, %v19001_v25  ;;  %v19015_v37 = vsub.f32 %v28757_v16, %v29165_v30 }
0x10e1   : > { %24291 = vmatprep.subr.bf16.mxu0 %v29207_v21  ;;  %24386 = vmatpush3.bf16.msra.mxu1 %v24385_v22  ;;  %v19009_v32 = vand.u32 4294901760, %v19008_v29  ;;  %v13263_v25 = vadd.f32 %v13261_v13, %v27906_v46  ;;  %v29367_v46 = vpack.c.bf16 %v28565_v35, %v28563_v31  ;;  %v29370_v31 = vpack.c.bf16 %v28587_v43, %v28585_v11 }
0x10e2   : > { %24387 = vmatprep.subr.bf16.mxu1 %v29207_v21  ;;  %v24391_v9 = vpack.c.bf16 %v19002_v53, %v18995_v0  ;;  %v19016_v59 = vand.u32 4294901760, %v19015_v37  ;;  %v29371_v43 = vand.u32 4294901760, %v28681_v10 }
0x10e4   : > { %v24394_v28 = vpack.c.bf16 %v19016_v59, %v19009_v32 }
0x10e5   : > { %24389 = vmatpush3.bf16.msra.mxu1 %v24388_v55 }
0x10e6   : > { %24390 = vmatprep.subr.bf16.mxu1 %v29207_v21 }
0x10e9   : > { %24392 = vmatpush3.bf16.msra.mxu1 %v24391_v9 }
0x10ea   : > { %24393 = vmatprep.subr.bf16.mxu1 %v29207_v21 }
0x10ed   : > { %24395 = vmatpush3.bf16.msra.mxu1 %v24394_v28  ;;  %v29373_v28 = vand.u32 4294901760, %v28688_v26  ;;  %v19577_v26 = vld [vmem:[%s24975_s12] ss:$0 sm:$0xff] }
0x10ee   : > { %24396 = vmatprep.subr.bf16.mxu1 %v29207_v21 }
0x11a6   : > { %v18243_v47 = vpop.f32.mrb[162].mxu0 }
0x11a7   : > { %v24509_v8 = vadd.f32 %v19576_v39, %v18243_v47  ;;  %v22892_v38 = vpop.f32.mrb[163].mxu0 }
0x11a9   : > { %v18247_v22 = vadd.f32 %v24509_v8, %v13263_v25  ;;  %v24403_v25 = vpack.c.bf16 %v28645_v23, %v28641_v2 }
0x11ab   : > { %v18248_v30 = vmax.f32 %v18247_v22, 0.0  ;;  %v24406_v22 = vpack.c.bf16 %v28649_v57, %v28647_v54 }
0x11ad   : > { %v18266_v16 = vsel %vm18264_vm7, %v18248_v30, 0 }
0x11ae   : > { %v18341_v0 = vand.u32 4294901760, %v18266_v16 }
0x11b0   : > { %v18342_v55 = vsub.f32 %v18266_v16, %v18341_v0 }
0x11b2   : > { %v18343_v53 = vand.u32 4294901760, %v18342_v55 }
0x11b4   : > { %v18344_v29 = vsub.f32 %v18342_v55, %v18343_v53 }
0x11b6   : > { %v18345_v37 = vand.u32 4294901760, %v18344_v29  ;;  %v24415_v29 = vpack.c.bf16 %v28737_v14, %v28730_v44 }
0x11b8   : > { %22910 = vmatmul.mubr.f32.vlgmr.msra.gmra.mrb[164].mxu0 %v18345_v37  ;;  %v29377_v37 = vld [vmem:[#allocation37_spill] sm:$0xff] }
0x11b9   : > { %24293 = vmatpush3.bf16.msra.mxu0 %v28597_v15  ;;  %22928 = vmatprep.mubr.msk.f32.mxu0 %vm24809_vm0, %v29206_v52  ;;  %v29368_v15 = vpack.c.bf16 %v28573_v5, %v28571_v20 }
0x11ba   : > { %24294 = vmatprep.subr.bf16.mxu0 %v29207_v21 }
0x11bd   : > { %24296 = vmatpush3.bf16.msra.mxu0 %v28601_v3  ;;  %v29369_v3 = vpack.c.bf16 %v28578_v62, %v28576_v40 }
0x11be   : > { %24297 = vmatprep.subr.bf16.mxu0 %v29207_v21 }
0x11c1   : > { %24299 = vmatpush3.bf16.msra.mxu0 %v28607_v24  ;;  %v29372_v24 = vand.u32 4294901760, %v28685_v27 }
0x11c2   : > { %24300 = vmatprep.subr.bf16.mxu0 %v29207_v21 }
0x11c5   : > { %24302 = vmatpush3.bf16.msra.mxu0 %v28611_v34  ;;  %v28866_v34 = vpack.c.bf16 %v29372_v24, %v29371_v43  ;;  %v29387_v43 = vand.u32 4294901760, %v28715_v50 }
0x11c6   : > { %24303 = vmatprep.subr.bf16.mxu0 %v29207_v21 }
0x11c8   : > { %22929 = vmatmul.mubr.f32.vlgmr.msra.gmra.mrb[164].mxu0 %v18341_v0 }
0x11c9   : > { %24305 = vmatpush3.bf16.msra.mxu0 %v29367_v46  ;;  %22947 = vmatprep.mubr.msk.f32.mxu0 %vm24809_vm0, %v29206_v52  ;;  %v24418_v46 = vpack.c.bf16 %v29377_v37, %v28747_v56 }
0x11ca   : > { %24306 = vmatprep.subr.bf16.mxu0 %v29207_v21 }
0x11cd   : > { %24308 = vmatpush3.bf16.msra.mxu0 %v29368_v15  ;;  %v29378_v15 = vand.u32 4294901760, %v28637_v60 }
0x11ce   : > { %24309 = vmatprep.subr.bf16.mxu0 %v29207_v21 }
0x11d1   : > { %24311 = vmatpush3.bf16.msra.mxu0 %v29369_v3  ;;  %v29379_v3 = vand.u32 4294901760, %v28639_v49 }
0x11d2   : > { %24312 = vmatprep.subr.bf16.mxu0 %v29207_v21 }
0x11d5   : > { %24314 = vmatpush3.bf16.msra.mxu0 %v29370_v31  ;;  %v24448_v31 = vpack.c.bf16 %v29379_v3, %v29378_v15 }
0x11d6   : > { %24315 = vmatprep.subr.bf16.mxu0 %v29207_v21 }
0x11d8   : > { %22948 = vmatmul.mubr.f32.vlgmr.msra.gmra.mrb[164].mxu0 %v18342_v55  ;;  %v24409_v55 = vpack.c.bf16 %v28668_v48, %v28657_v7 }
0x11d9   : > { %24317 = vmatpush3.bf16.msra.mxu0 %v28551_v42  ;;  %22966 = vmatprep.mubr.msk.f32.mxu0 %vm24809_vm0, %v29206_v52 }
0x11da   : > { %24318 = vmatprep.subr.bf16.mxu0 %v29207_v21 }
0x11dd   : > { %24320 = vmatpush3.bf16.msra.mxu0 %v28557_v45 }
0x11de   : > { %24321 = vmatprep.subr.bf16.mxu0 %v29207_v21 }
0x11e1   : > { %24323 = vmatpush3.bf16.msra.mxu0 %v28567_v4 }
0x11e2   : > { %24324 = vmatprep.subr.bf16.mxu0 %v29207_v21 }
0x11e5   : > { %24326 = vmatpush3.bf16.msra.mxu0 %v28583_v1 }
0x11e6   : > { %24327 = vmatprep.subr.bf16.mxu0 %v29207_v21 }
0x11e8   : > { %22967 = vmatmul.mubr.f32.vlgmr.msra.gmra.mrb[164].mxu0 %v18343_v53  ;;  %v24412_v53 = vpack.c.bf16 %v28715_v50, %v28706_v63 }
0x11e9   : > { %24329 = vmatpush3.bf16.msra.mxu0 %v28621_v19  ;;  %22985 = vmatprep.mubr.msk.f32.mxu0 %vm24809_vm0, %v29206_v52  ;;  %v29374_v19 = vand.u32 4294901760, %v28697_v58 }
0x11ea   : > { %24330 = vmatprep.subr.bf16.mxu0 %v29207_v21 }
0x11ed   : > { %24332 = vmatpush3.bf16.msra.mxu0 %v28623_v6  ;;  %v28874_v6 = vpack.c.bf16 %v29374_v19, %v29373_v28 }
0x11ee   : > { %24333 = vmatprep.subr.bf16.mxu0 %v29207_v21 }
0x11f1   : > { %24335 = vmatpush3.bf16.msra.mxu0 %v28625_v41  ;;  %v29375_v41 = vand.u32 4294901760, %v28721_v18 }
0x11f2   : > { %24336 = vmatprep.subr.bf16.mxu0 %v29207_v21 }
0x11f5   : > { %24338 = vmatpush3.bf16.msra.mxu0 %v28627_v17  ;;  %v29376_v17 = vand.u32 4294901760, %v28724_v61  ;;  %v24400_v61 = vpack.c.bf16 %v28639_v49, %v28637_v60  ;;  %v29382_v60 = vand.u32 4294901760, %v28647_v54  ;;  %v29383_v49 = vand.u32 4294901760, %v28649_v57 }
0x11f6   : > { %24339 = vmatprep.subr.bf16.mxu0 %v29207_v21  ;;  %v29388_v54 = vand.u32 4294901760, %v28730_v44  ;;  %v29389_v57 = vand.u32 4294901760, %v28737_v14 }
0x11f7   : > { %v28883_v32 = vpack.c.bf16 %v29376_v17, %v29375_v41 }
0x11f8   : > { %22986 = vmatmul.mubr.f32.vlgmr.msra.gmra.mrb[164].mxu0 %v18341_v0 }
0x11f9   : > { %24341 = vmatpush3.bf16.msra.mxu0 %v28551_v42  ;;  %23004 = vmatprep.mubr.msk.f32.mxu0 %vm24809_vm0, %v29206_v52  ;;  %v18820_v42 = vld [vmem:[%s24980_s3 + $0x70] sm:$0xff] }
0x11fa   : > { %24342 = vmatprep.subr.bf16.mxu0 %v29207_v21  ;;  %v18872_v35 = vand.u32 4294901760, %v18820_v42 }
0x11fc   : > { %v28850_v20 = vsub.f32 %v18820_v42, %v18872_v35  ;;  %v29380_v42 = vand.u32 4294901760, %v28641_v2  ;;  %v29385_v2 = vand.u32 4294901760, %v28668_v48  ;;  %v29391_v48 = vand.u32 4294901760, %v29377_v37 }
0x11fd   : > { %24344 = vmatpush3.bf16.msra.mxu0 %v28557_v45  ;;  %v18821_v45 = vld [vmem:[%s24980_s3 + $0x78] sm:$0xff] }
0x11fe   : > { %24345 = vmatprep.subr.bf16.mxu0 %v29207_v21  ;;  %v19021_v40 = vand.u32 4294901760, %v28850_v20 }
0x1201   : > { %24347 = vmatpush3.bf16.msra.mxu0 %v28567_v4  ;;  %v18875_v4 = vand.u32 4294901760, %v18821_v45 }
0x1202   : > { %24348 = vmatprep.subr.bf16.mxu0 %v29207_v21 }
0x1203   : > { %v28852_v5 = vsub.f32 %v18821_v45, %v18875_v4  ;;  %v28887_v10 = vpack.c.bf16 %v18875_v4, %v18872_v35  ;;  %v29381_v45 = vand.u32 4294901760, %v28645_v23  ;;  %v24454_v4 = vpack.c.bf16 %v29383_v49, %v29382_v60 }
0x1205   : > { %24350 = vmatpush3.bf16.msra.mxu0 %v28583_v1  ;;  %v19028_v62 = vand.u32 4294901760, %v28852_v5  ;;  %v19022_v1 = vsub.f32 %v28850_v20, %v19021_v40  ;;  %v24421_v27 = vpack.c.bf16 %v28852_v5, %v28850_v20  ;;  %v24451_v35 = vpack.c.bf16 %v29381_v45, %v29380_v42 }
0x1206   : > { %24351 = vmatprep.subr.bf16.mxu0 %v29207_v21 }
0x1207   : > { %v19029_v11 = vsub.f32 %v28852_v5, %v19028_v62  ;;  %v19023_v13 = vand.u32 4294901760, %v19022_v1  ;;  %v29384_v1 = vand.u32 4294901760, %v28657_v7  ;;  %v29390_v7 = vand.u32 4294901760, %v28747_v56 }
0x1208   : > { %23005 = vmatmul.mubr.f32.vlgmr.msra.gmra.mrb[164].mxu0 %v18341_v0 }
0x1209   : > { %24353 = vmatpush3.bf16.msra.mxu0 %v28643_v36  ;;  %23039 = vmatprep.mubr.msk.f32.mxu0 %vm24809_vm0, %v29206_v52  ;;  %v19030_v59 = vand.u32 4294901760, %v19029_v11  ;;  %v24457_v23 = vpack.c.bf16 %v29385_v2, %v29384_v1  ;;  %v29386_v11 = vand.u32 4294901760, %v28706_v63  ;;  %v24469_v63 = vpack.c.bf16 %v19028_v62, %v19021_v40 }
0x120a   : > { %24354 = vmatprep.subr.bf16.mxu0 %v29207_v21 }
0x120b   : > { %v24397_v30 = vpack.c.bf16 %v19030_v59, %v19023_v13  ;;  %v24460_v24 = vpack.c.bf16 %v29387_v43, %v29386_v11  ;;  %v24463_v13 = vpack.c.bf16 %v29389_v57, %v29388_v54  ;;  %v24466_v59 = vpack.c.bf16 %v29391_v48, %v29390_v7 }
0x120d   : > { %24356 = vmatpush3.bf16.msra.mxu0 %v28693_v33  ;;  %24398 = vmatpush3.bf16.msra.mxu1 %v24397_v30 }
0x120e   : > { %24357 = vmatprep.subr.bf16.mxu0 %v29207_v21  ;;  %24399 = vmatprep.subr.bf16.mxu1 %v29207_v21 }
0x1211   : > { %24359 = vmatpush3.bf16.msra.mxu0 %v28708_v51 }
0x1212   : > { %24360 = vmatprep.subr.bf16.mxu0 %v29207_v21 }
0x1215   : > { %24362 = vmatpush3.bf16.msra.mxu0 %v28718_v12 }
0x1216   : > { %24363 = vmatprep.subr.bf16.mxu0 %v29207_v21 }
0x1219   : > { %24365 = vmatpush3.bf16.msra.mxu0 %v28866_v34 }
0x121a   : > { %24366 = vmatprep.subr.bf16.mxu0 %v29207_v21 }
0x121d   : > { %24368 = vmatpush3.bf16.msra.mxu0 %v28874_v6 }
0x121e   : > { %24369 = vmatprep.subr.bf16.mxu0 %v29207_v21 }
0x1221   : > { %24371 = vmatpush3.bf16.msra.mxu0 %v28883_v32 }
0x1222   : > { %24372 = vmatprep.subr.bf16.mxu0 %v29207_v21 }
0x1225   : > { %24374 = vmatpush3.bf16.msra.mxu0 %v28887_v10 }
0x12db   : > { %v18801_v58 = vpop.f32.mrb[164].mxu0 }
0x12dc   : > { %v24510_v9 = vadd.f32 %v19577_v26, %v18801_v58  ;;  %v23006_v16 = vpop.f32.mrb[165].mxu0 }
0x12de   : > { %v18805_v18 = vmax.f32 %v24510_v9, 0.0 }
0x12e0   : > { %v28895_v39 = vand.u32 4294901760, %v18805_v18 }
0x12e2   : > { %v18911_v47 = vsub.f32 %v18805_v18, %v28895_v39  ;;  %23075 = vmatmul.mubr.f32.vlgmr.msra.gmra.mrb[142].mxu1 %v28895_v39 }
0x12e3   : > { %24401 = vmatpush3.bf16.msra.mxu1 %v24400_v61  ;;  %23109 = vmatprep.mubr.msk.f32.mxu1 %vm24809_vm0, %v29206_v52 }
0x12e4   : > { %v18912_v8 = vand.u32 4294901760, %v18911_v47  ;;  %24402 = vmatprep.subr.bf16.mxu1 %v29207_v21 }
0x12e6   : > { %v18913_v38 = vsub.f32 %v18911_v47, %v18912_v8 }
0x12e7   : > { %24404 = vmatpush3.bf16.msra.mxu1 %v24403_v25 }
0x12e8   : > { %24405 = vmatprep.subr.bf16.mxu1 %v29207_v21  ;;  %v18914_v0 = vand.u32 4294901760, %v18913_v38 }
0x12ea   : > { %23040 = vmatmul.mubr.f32.vlgmr.msra.gmra.mrb[166].mxu0 %v18914_v0 }
0x12eb   : > { %24407 = vmatpush3.bf16.msra.mxu1 %v24406_v22 }
0x12ec   : > { %24408 = vmatprep.subr.bf16.mxu1 %v29207_v21 }
0x12ef   : > { %24410 = vmatpush3.bf16.msra.mxu1 %v24409_v55 }
0x12f0   : > { %24411 = vmatprep.subr.bf16.mxu1 %v29207_v21 }
0x12f3   : > { %24413 = vmatpush3.bf16.msra.mxu1 %v24412_v53 }
0x12f4   : > { %24414 = vmatprep.subr.bf16.mxu1 %v29207_v21 }
0x12f7   : > { %24416 = vmatpush3.bf16.msra.mxu1 %v24415_v29 }
0x12f8   : > { %24417 = vmatprep.subr.bf16.mxu1 %v29207_v21 }
0x12fb   : > { %24419 = vmatpush3.bf16.msra.mxu1 %v24418_v46 }
0x12fc   : > { %24420 = vmatprep.subr.bf16.mxu1 %v29207_v21 }
0x12ff   : > { %24422 = vmatpush3.bf16.msra.mxu1 %v24421_v27 }
0x1300   : > { %24423 = vmatprep.subr.bf16.mxu1 %v29207_v21 }
0x1302   : > { %23110 = vmatmul.mubr.f32.vlgmr.msra.gmra.mrb[142].mxu1 %v18911_v47 }
0x1303   : > { %24425 = vmatpush3.bf16.msra.mxu1 %v28643_v36  ;;  %23144 = vmatprep.mubr.msk.f32.mxu1 %vm24809_vm0, %v29206_v52 }
0x1304   : > { %24426 = vmatprep.subr.bf16.mxu1 %v29207_v21 }
0x1307   : > { %24428 = vmatpush3.bf16.msra.mxu1 %v28693_v33 }
0x1308   : > { %24429 = vmatprep.subr.bf16.mxu1 %v29207_v21 }
0x130b   : > { %24431 = vmatpush3.bf16.msra.mxu1 %v28708_v51 }
0x130c   : > { %24432 = vmatprep.subr.bf16.mxu1 %v29207_v21 }
0x130f   : > { %24434 = vmatpush3.bf16.msra.mxu1 %v28718_v12 }
0x1310   : > { %24435 = vmatprep.subr.bf16.mxu1 %v29207_v21 }
0x1313   : > { %24437 = vmatpush3.bf16.msra.mxu1 %v28866_v34 }
0x1314   : > { %24438 = vmatprep.subr.bf16.mxu1 %v29207_v21 }
0x1317   : > { %24440 = vmatpush3.bf16.msra.mxu1 %v28874_v6 }
0x1318   : > { %24441 = vmatprep.subr.bf16.mxu1 %v29207_v21 }
0x131b   : > { %24443 = vmatpush3.bf16.msra.mxu1 %v28883_v32 }
0x131c   : > { %24444 = vmatprep.subr.bf16.mxu1 %v29207_v21 }
0x131f   : > { %24446 = vmatpush3.bf16.msra.mxu1 %v28887_v10 }
0x1320   : > { %24447 = vmatprep.subr.bf16.mxu1 %v29207_v21 }
0x1322   : > { %23145 = vmatmul.mubr.f32.vlgmr.msra.gmra.mrb[142].mxu1 %v18912_v8 }
0x1323   : > { %24449 = vmatpush3.bf16.msra.mxu1 %v24448_v31  ;;  %23179 = vmatprep.mubr.msk.f32.mxu1 %vm24809_vm0, %v29206_v52 }
0x1324   : > { %24450 = vmatprep.subr.bf16.mxu1 %v29207_v21 }
0x1327   : > { %24452 = vmatpush3.bf16.msra.mxu1 %v24451_v35 }
0x1328   : > { %24453 = vmatprep.subr.bf16.mxu1 %v29207_v21 }
0x132b   : > { %24455 = vmatpush3.bf16.msra.mxu1 %v24454_v4 }
0x132c   : > { %24456 = vmatprep.subr.bf16.mxu1 %v29207_v21 }
0x132f   : > { %24458 = vmatpush3.bf16.msra.mxu1 %v24457_v23 }
0x1330   : > { %24459 = vmatprep.subr.bf16.mxu1 %v29207_v21 }
0x1333   : > { %24461 = vmatpush3.bf16.msra.mxu1 %v24460_v24 }
0x1334   : > { %24462 = vmatprep.subr.bf16.mxu1 %v29207_v21 }
0x1337   : > { %24464 = vmatpush3.bf16.msra.mxu1 %v24463_v13 }
0x1338   : > { %24465 = vmatprep.subr.bf16.mxu1 %v29207_v21 }
0x133b   : > { %24467 = vmatpush3.bf16.msra.mxu1 %v24466_v59 }
0x133c   : > { %24468 = vmatprep.subr.bf16.mxu1 %v29207_v21 }
0x133f   : > { %24470 = vmatpush3.bf16.msra.mxu1 %v24469_v63 }
0x1340   : > { %24471 = vmatprep.subr.bf16.mxu1 %v29207_v21 }
0x1342   : > { %23180 = vmatmul.mubr.f32.vlgmr.msra.gmra.mrb[142].mxu1 %v28895_v39 }
0x1343   : > { %24473 = vmatpush3.bf16.msra.mxu1 %v28643_v36  ;;  %23214 = vmatprep.mubr.msk.f32.mxu1 %vm24809_vm0, %v29206_v52 }
0x1344   : > { %24474 = vmatprep.subr.bf16.mxu1 %v29207_v21 }
0x1347   : > { %24476 = vmatpush3.bf16.msra.mxu1 %v28693_v33  ;;  %v19578_v33 = vld [vmem:[%s24985_s27] ss:$0 sm:$0xff] }
0x1348   : > { %24477 = vmatprep.subr.bf16.mxu1 %v29207_v21 }
0x134b   : > { %24479 = vmatpush3.bf16.msra.mxu1 %v28708_v51 }
0x134c   : > { %24480 = vmatprep.subr.bf16.mxu1 %v29207_v21 }
0x134f   : > { %24482 = vmatpush3.bf16.msra.mxu1 %v28718_v12 }
0x1350   : > { %24483 = vmatprep.subr.bf16.mxu1 %v29207_v21 }
0x1353   : > { %24485 = vmatpush3.bf16.msra.mxu1 %v28866_v34 }
0x1354   : > { %24486 = vmatprep.subr.bf16.mxu1 %v29207_v21 }
0x1357   : > { %24488 = vmatpush3.bf16.msra.mxu1 %v28874_v6 }
0x1358   : > { %24489 = vmatprep.subr.bf16.mxu1 %v29207_v21 }
0x135b   : > { %24491 = vmatpush3.bf16.msra.mxu1 %v28883_v32 }
0x135c   : > { %24492 = vmatprep.subr.bf16.mxu1 %v29207_v21 }
0x135f   : > { %24494 = vmatpush3.bf16.msra.mxu1 %v28887_v10 }
0x1362   : > { %23215 = vmatmul.mubr.f32.vlgmr.msra.gmra.mrb[142].mxu1 %v28895_v39 }
0x13bd   : > { %v18916_v52 = vpop.f32.mrb[166].mxu0 }
0x13be   : > { %v23041_v36 = vpop.f32.mrb[167].mxu0  ;;  %v18917_v51 = vadd.f32 %v19578_v33, %v18916_v52 }
0x1435   : > { %v19466_v50 = vpop.f32.mrb[142].mxu1 }
0x1436   : > { %v24512_v12 = vadd.f32 %v19466_v50, %v18917_v51  ;;  %v23216_v44 = vpop.f32.mrb[143].mxu1 }
0x1438   : > { %19471 = vst.msk [vmem:[%s1093_s2] sm:$0xff] %vm19470_vm8, %v24512_v12 }
0x1439 PF: > { %s83_s7 = sadd.s32 1, %s24773_s7  }
0x143a   : > { %p80_p4 = scmp.ge.s32.totalorder %s83_s7, 4  }
0x143c   :  { %82 = sbr.rel (!%p80_p4) target bundleno = 55 (0x37), region = 230 }

</bundles_post_ra>
